<compile_context>
chip_gen: v7x
topology: tpu7x:2x2x1
jax: 0.10.0
libtpu: 0.0.40
codegen_flags: <defaults>
</compile_context>

<pallas_src>
import functools

import jax
import jax.numpy as jnp
from jax.experimental import pallas as pl
from jax.experimental.pallas import tpu as pltpu

EPS = 1e-5                       # nn.BatchNorm2d default eps
LANE = 128                       # TPU lane width; channels padded to a multiple
VMEM_LIMIT = 32 * 1024 * 1024    # conservative scoped-VMEM cap (v7x-safe)


# ---------------------------------------------------------------------------
# small helpers
# ---------------------------------------------------------------------------
def _round_up(x, m):
    return (x + m - 1) // m * m


def _pad_last(x, target):
    pad = target - x.shape[-1]
    if pad == 0:
        return x
    return jnp.pad(x, [(0, 0)] * (x.ndim - 1) + [(0, pad)])


# ---------------------------------------------------------------------------
# in-kernel helpers
# ---------------------------------------------------------------------------
def _conv_acc(read, w_ref, taps, cin, want_center=False):
    """9 accumulating bf16 MXU matmuls over static flat-slab slices (no copies)."""
    acc = None
    center = None
    for t, off in enumerate(taps):
        xs = read(off)                                   # (M, cin) bf16 slice
        if want_center and t == 4:                       # (kh, kw) == (1, 1)
            center = xs
        d = jnp.dot(xs, w_ref[t * cin:(t + 1) * cin, :],
                    preferred_element_type=jnp.float32)
        acc = d if acc is None else acc + d
    return acc, center


def _mask_stats(acc, wrow, wo):
    """Zero invalid (right-halo) columns, emit Welford-style per-block partials."""
    m = acc.shape[0]
    col = jax.lax.broadcasted_iota(jnp.int32, (m, 1), 0) % wrow
    valid = col < wo
    accm = jnp.where(valid, acc, 0.0)
    cnt = (m // wrow) * wo
    s = jnp.sum(accm, axis=0, keepdims=True)             # (1, nout)  sum
    bmean = s / cnt
    dev = jnp.where(valid, acc - bmean, 0.0)
    q = jnp.sum(dev * dev, axis=0, keepdims=True)        # (1, nout)  sum (y-blkmean)^2
    return accm, s, q


# ---------------------------------------------------------------------------
# Pallas kernels
# ---------------------------------------------------------------------------
def _conv_stats_kernel(x_ref, w_ref, y_ref, ps_ref, pq_ref, *,
                       taps, m, wrow, wo, cin):
    """3x3 conv (pre-BN) + per-sample per-channel BN partials; bf16 output."""
    acc, _ = _conv_acc(lambda off: x_ref[0, off:off + m, :], w_ref, taps, cin)
    accm, s, q = _mask_stats(acc, wrow, wo)
    y_ref[...] = accm.astype(y_ref.dtype)[None]
    ps_ref[...] = s[None]
    pq_ref[...] = q[None]


def _conv_stats_proj_kernel(x_ref, w_ref, wsc_ref,
                            y_ref, ps_ref, pq_ref,
                            ysc_ref, pss_ref, pqs_ref, *,
                            taps, m, wrow, wo, cin):
    """3x3 conv + stats, plus fused strided 1x1 projection shortcut that reuses
    the already-sliced center tap slab."""
    acc, center = _conv_acc(lambda off: x_ref[0, off:off + m, :], w_ref, taps,
                            cin, want_center=True)
    accm, s, q = _mask_stats(acc, wrow, wo)
    y_ref[...] = accm.astype(y_ref.dtype)[None]
    ps_ref[...] = s[None]
    pq_ref[...] = q[None]

    acc_sc = jnp.dot(center, wsc_ref[...], preferred_element_type=jnp.float32)
    am, ss, qq = _mask_stats(acc_sc, wrow, wo)
    ysc_ref[...] = am.astype(ysc_ref.dtype)[None]
    pss_ref[...] = ss[None]
    pqs_ref[...] = qq[None]


def _affine_conv_stats_kernel(y1_ref, w_ref, sc1_ref, sh1_ref,
                              y_ref, ps_ref, pq_ref, pad_ref, *,
                              taps, m, wrow, wo, cin, lead):
    """Fused bn1-apply + ReLU + zero-pad (VMEM) + 3x3 conv + BN partials."""
    rp = pad_ref.shape[0]
    # zero the top / tail halo rows of the padded VMEM slab (cheap, megacore-safe)
    pad_ref[0:lead, :] = jnp.zeros((lead, cin), pad_ref.dtype)
    pad_ref[lead + m:rp, :] = jnp.zeros((rp - lead - m, cin), pad_ref.dtype)

    # bn1 affine + relu, re-zero the invalid halo columns, write interior (bf16)
    col = jax.lax.broadcasted_iota(jnp.int32, (m, 1), 0) % wrow
    valid = col < wo
    a = jnp.maximum(y1_ref[0].astype(jnp.float32) * sc1_ref[0] + sh1_ref[0], 0.0)
    pad_ref[lead:lead + m, :] = jnp.where(valid, a, 0.0).astype(pad_ref.dtype)

    # 3x3 conv from the VMEM slab
    acc, _ = _conv_acc(lambda off: pad_ref[off:off + m, :], w_ref, taps, cin)
    accm, s, q = _mask_stats(acc, wrow, wo)
    y_ref[...] = accm.astype(y_ref.dtype)[None]
    ps_ref[...] = s[None]
    pq_ref[...] = q[None]


def _bn_add_relu_kernel(y_ref, sc_ref, scale_ref, shift_ref, o_ref):
    """out = relu(bn2(y2) + identity shortcut)."""
    y = y_ref[0].astype(jnp.float32) * scale_ref[0] + shift_ref[0]
    o_ref[...] = jnp.maximum(y + sc_ref[0].astype(jnp.float32), 0.0)[None]


def _bn_proj_add_relu_kernel(y_ref, ysc_ref, scale_ref, shift_ref,
                             scale_sc_ref, shift_sc_ref, o_ref):
    """out = relu(bn2(y2) + bn_sc(1x1-conv shortcut))."""
    y = y_ref[0].astype(jnp.float32) * scale_ref[0] + shift_ref[0]
    s = ysc_ref[0].astype(jnp.float32) * scale_sc_ref[0] + shift_sc_ref[0]
    o_ref[...] = jnp.maximum(y + s, 0.0)[None]


# ---------------------------------------------------------------------------
# pallas_call wrappers
# ---------------------------------------------------------------------------
def _compiler_params():
    return pltpu.CompilerParams(
        dimension_semantics=("parallel", "parallel"),
        vmem_limit_bytes=VMEM_LIMIT)


def _conv1_call(zflat, w_mat, taps, m, wrow, wo, wsc_mat=None):
    n, rin, cin = zflat.shape
    cout = w_mat.shape[-1]
    n_co = cout // LANE
    grid = (n_co, n)   # co slow: weight block is re-fetched only when co changes

    x_spec = pl.BlockSpec((1, rin, cin), lambda co, b: (b, 0, 0))
    w_spec = pl.BlockSpec((9 * cin, LANE), lambda co, b: (0, co))
    y_spec = pl.BlockSpec((1, m, LANE), lambda co, b: (b, 0, co))
    p_spec = pl.BlockSpec((1, 1, LANE), lambda co, b: (b, 0, co))

    y_shape = jax.ShapeDtypeStruct((n, m, cout), jnp.bfloat16)
    p_shape = jax.ShapeDtypeStruct((n, 1, cout), jnp.float32)

    if wsc_mat is None:
        return pl.pallas_call(
            functools.partial(_conv_stats_kernel, taps=taps, m=m, wrow=wrow,
                              wo=wo, cin=cin),
            grid=grid,
            in_specs=[x_spec, w_spec],
            out_specs=(y_spec, p_spec, p_spec),
            out_shape=(y_shape, p_shape, p_shape),
            compiler_params=_compiler_params(),
        )(zflat, w_mat)

    wsc_spec = pl.BlockSpec((cin, LANE), lambda co, b: (0, co))
    return pl.pallas_call(
        functools.partial(_conv_stats_proj_kernel, taps=taps, m=m, wrow=wrow,
                          wo=wo, cin=cin),
        grid=grid,
        in_specs=[x_spec, w_spec, wsc_spec],
        out_specs=(y_spec, p_spec, p_spec, y_spec, p_spec, p_spec),
        out_shape=(y_shape, p_shape, p_shape, y_shape, p_shape, p_shape),
        compiler_params=_compiler_params(),
    )(zflat, w_mat, wsc_mat)


def _conv2_call(y1, w_mat, scale1, shift1, taps, m, wrow, wo, lead, rp):
    n, _, cin = y1.shape
    cout = w_mat.shape[-1]
    n_co = cout // LANE
    grid = (n_co, n)

    y1_spec = pl.BlockSpec((1, m, cin), lambda co, b: (b, 0, 0))
    w_spec = pl.BlockSpec((9 * cin, LANE), lambda co, b: (0, co))
    v_spec = pl.BlockSpec((1, cin), lambda co, b: (0, 0))
    y_spec = pl.BlockSpec((1, m, LANE), lambda co, b: (b, 0, co))
    p_spec = pl.BlockSpec((1, 1, LANE), lambda co, b: (b, 0, co))

    return pl.pallas_call(
        functools.partial(_affine_conv_stats_kernel, taps=taps, m=m, wrow=wrow,
                          wo=wo, cin=cin, lead=lead),
        grid=grid,
        in_specs=[y1_spec, w_spec, v_spec, v_spec],
        out_specs=(y_spec, p_spec, p_spec),
        out_shape=(jax.ShapeDtypeStruct((n, m, cout), jnp.bfloat16),
                   jax.ShapeDtypeStruct((n, 1, cout), jnp.float32),
                   jax.ShapeDtypeStruct((n, 1, cout), jnp.float32)),
        scratch_shapes=[pltpu.VMEM((rp, cin), jnp.bfloat16)],
        compiler_params=_compiler_params(),
    )(y1, w_mat, scale1, shift1)


def _final_call(y2, scale2, shift2, shortcut):
    n, m, cout = y2.shape
    n_co = cout // LANE
    grid = (n_co, n)
    y_spec = pl.BlockSpec((1, m, LANE), lambda co, b: (b, 0, co))
    v_spec = pl.BlockSpec((1, LANE), lambda co, b: (0, co))
    out_shape = jax.ShapeDtypeStruct((n, m, cout), jnp.float32)

    if len(shortcut) == 1:                       # identity shortcut
        (x_sc,) = shortcut
        return pl.pallas_call(
            _bn_add_relu_kernel,
            grid=grid,
            in_specs=[y_spec, y_spec, v_spec, v_spec],
            out_specs=y_spec,
            out_shape=out_shape,
            compiler_params=_compiler_params(),
        )(y2, x_sc, scale2, shift2)

    ysc, scale_sc, shift_sc = shortcut           # projection shortcut
    return pl.pallas_call(
        _bn_proj_add_relu_kernel,
        grid=grid,
        in_specs=[y_spec, y_spec, v_spec, v_spec, v_spec, v_spec],
        out_specs=y_spec,
        out_shape=out_shape,
        compiler_params=_compiler_params(),
    )(y2, ysc, scale2, shift2, scale_sc, shift_sc)


# ---------------------------------------------------------------------------
# layout glue (XLA side): weight packing, BN finalize
# ---------------------------------------------------------------------------
def _w3x3_to_mat(w, cin_p, cout_p):
    """(cout, cin, 3, 3) -> zero-padded, tap-major (9*cin_p, cout_p) bf16 matrix."""
    co, ci = w.shape[0], w.shape[1]
    wp = jnp.zeros((cout_p, cin_p, 3, 3), jnp.float32).at[:co, :ci].set(w)
    return jnp.transpose(wp, (2, 3, 1, 0)).reshape(9 * cin_p, cout_p).astype(jnp.bfloat16)


def _w1x1_to_mat(w, cin_p, cout_p):
    co, ci = w.shape[0], w.shape[1]
    wp = jnp.zeros((cout_p, cin_p), jnp.float32).at[:co, :ci].set(w.reshape(co, ci))
    return jnp.transpose(wp, (1, 0)).astype(jnp.bfloat16)


def _bn_affine(psum, psq, cnt_blk, gamma, beta, cpad):
    """Welford merge of per-block partials -> per-channel BN scale/shift (XLA)."""
    total = psum.shape[0] * cnt_blk
    s_all = jnp.sum(psum, axis=0)                       # (1, cpad)
    mean = s_all / total
    bmean = psum / cnt_blk                              # (N, 1, cpad)
    m2 = jnp.sum(psq, axis=0) + cnt_blk * jnp.sum((bmean - mean) ** 2, axis=0)
    var = jnp.maximum(m2 / total, 0.0)
    g = _pad_last(gamma.reshape(1, -1).astype(jnp.float32), cpad)
    b = _pad_last(beta.reshape(1, -1).astype(jnp.float32), cpad)
    scale = g * jax.lax.rsqrt(var + EPS)
    shift = b - mean * scale
    return scale, shift


# ---------------------------------------------------------------------------
# BasicBlock forward (Pallas)
# ---------------------------------------------------------------------------
def basic_block_pallas(x_nchw, params, stride):
    n, c_in, h, w = x_nchw.shape
    planes = params["w1"].shape[0]
    s = stride
    ho = (h - 1) // s + 1
    wo = (w - 1) // s + 1
    cip = _round_up(c_in, LANE)
    cop = _round_up(planes, LANE)
    projection = (s != 1) or (c_in != planes)

    # per-phase geometry of the padded (phase-split) input
    ha = max(ho + 2 // s, -(-(h + 2) // s))
    wb = max(wo + 2, -(-(w + 2) // s))      # = wo + 2 : conv2 reuses this row pitch
    m = ho * wb                             # conv output rows (valid cols j < wo)

    # ---- input layout: NHWC, bf16 early, channel pad, spatial pad, phase split,
    #      flatten to (N, rows, cip) so every 3x3 tap is a static flat slice.
    x = _pad_last(jnp.transpose(x_nchw, (0, 2, 3, 1)).astype(jnp.bfloat16), cip)
    xp = jnp.pad(x, ((0, 0), (1, s * ha - h - 1), (1, s * wb - w - 1), (0, 0)))
    if s == 1:
        z = xp
    else:
        z = xp.reshape(n, ha, s, wb, s, cip)
        z = jnp.transpose(z, (0, 2, 4, 1, 3, 5)).reshape(n, s * s * ha, wb, cip)
    taps1 = tuple(((((kh % s) * s + (kw % s)) * ha + kh // s) * wb + kw // s)
                  for kh in range(3) for kw in range(3))
    nat = s * s * ha * wb
    rin = _round_up(max(nat, max(taps1) + m), 8)
    zflat = z.reshape(n, nat, cip)
    if rin > nat:
        zflat = jnp.pad(zflat, ((0, 0), (0, rin - nat), (0, 0)))

    w1m = _w3x3_to_mat(params["w1"], cip, cop)
    w2m = _w3x3_to_mat(params["w2"], cop, cop)
    cnt_blk = ho * wo

    # ---- conv1 (+ fused 1x1 projection shortcut) + BN1 partial stats --------
    if projection:
        wscm = _w1x1_to_mat(params["wsc"], cip, cop)
        y1, p1s, p1q, ysc, pscs, pscq = _conv1_call(zflat, w1m, taps1, m, wb, wo, wscm)
    else:
        y1, p1s, p1q = _conv1_call(zflat, w1m, taps1, m, wb, wo)
    scale1, shift1 = _bn_affine(p1s, p1q, cnt_blk, params["g1"], params["b1"], cop)

    # ---- conv2 with fused bn1-apply + ReLU + pad (all VMEM-resident) --------
    lead = _round_up(wb + 1, 8)
    taps2 = tuple(kh * wb + kw + lead - wb - 1 for kh in range(3) for kw in range(3))
    rp = _round_up(lead + m + wb + 1, 8)
    y2, p2s, p2q = _conv2_call(y1, w2m, scale1, shift1, taps2, m, wb, wo, lead, rp)
    scale2, shift2 = _bn_affine(p2s, p2q, cnt_blk, params["g2"], params["b2"], cop)

    # ---- bn2 apply + shortcut + relu (fused elementwise Pallas kernel) ------
    if projection:
        scale_sc, shift_sc = _bn_affine(pscs, pscq, cnt_blk,
                                        params["gsc"], params["bsc"], cop)
        out_flat = _final_call(y2, scale2, shift2, (ysc, scale_sc, shift_sc))
    else:
        # identity shortcut == center-tap slab of the already-padded input
        x_sc = zflat[:, wb + 1:wb + 1 + m, :]
        out_flat = _final_call(y2, scale2, shift2, (x_sc,))

    out = out_flat.reshape(n, ho, wb, cop)[:, :, :wo, :planes]
    return jnp.transpose(out, (0, 3, 1, 2))             # back to NCHW


# ---------------------------------------------------------------------------
# Pure-JAX reference (same math, no Pallas) for verification
# ---------------------------------------------------------------------------
def basic_block_ref(x_nchw, params, stride):
    x = jnp.transpose(x_nchw, (0, 2, 3, 1)).astype(jnp.float32)

    def conv3x3(y, w_oikk, s):
        return jax.lax.conv_general_dilated(
            y, jnp.transpose(w_oikk, (2, 3, 1, 0)), (s, s), ((1, 1), (1, 1)),
            dimension_numbers=("NHWC", "HWIO", "NHWC"))

    def bn(y, g, b):
        mean = y.mean(axis=(0, 1, 2))
        var = ((y - mean) ** 2).mean(axis=(0, 1, 2))
        return (y - mean) * jax.lax.rsqrt(var + EPS) * g + b

    out = jax.nn.relu(bn(conv3x3(x, params["w1"], stride), params["g1"], params["b1"]))
    out = bn(conv3x3(out, params["w2"], 1), params["g2"], params["b2"])
    if "wsc" in params:
        sc = jax.lax.conv_general_dilated(
            x, jnp.transpose(params["wsc"], (2, 3, 1, 0)), (stride, stride), "VALID",
            dimension_numbers=("NHWC", "HWIO", "NHWC"))
        sc = bn(sc, params["gsc"], params["bsc"])
    else:
        sc = x
    return jnp.transpose(jax.nn.relu(out + sc), (0, 3, 1, 2))


# ---------------------------------------------------------------------------
# Deterministic parameter construction (shapes from BasicBlock.__init__)
# ---------------------------------------------------------------------------
def make_params(key, in_planes, planes, stride):
    k1, k2, k3 = jax.random.split(key, 3)
    params = {
        "w1": 0.1 * jax.random.normal(k1, (planes, in_planes, 3, 3), jnp.float32),
        "g1": jnp.ones((planes,), jnp.float32),
        "b1": jnp.zeros((planes,), jnp.float32),
        "w2": 0.1 * jax.random.normal(k2, (planes, planes, 3, 3), jnp.float32),
        "g2": jnp.ones((planes,), jnp.float32),
        "b2": jnp.zeros((planes,), jnp.float32),
    }
    if stride != 1 or in_planes != planes:
        params["wsc"] = 0.1 * jax.random.normal(k3, (planes, in_planes, 1, 1), jnp.float32)
        params["gsc"] = jnp.ones((planes,), jnp.float32)
        params["bsc"] = jnp.zeros((planes,), jnp.float32)
    return params


if __name__ == "__main__":
    key = jax.random.PRNGKey(0)
    kx, kp1, kp2 = jax.random.split(key, 3)

    x = jax.random.normal(kx, (2, 4, 16, 16), jnp.float32)
    fwd = jax.jit(basic_block_pallas, static_argnums=2)

    # Case 1: identity shortcut (in_planes == planes, stride == 1)
    params_id = make_params(kp1, in_planes=4, planes=4, stride=1)
    out_id = fwd(x, params_id, 1)
    jax.block_until_ready(out_id)
    ref_id = basic_block_ref(x, params_id, 1)
    assert out_id.shape == (2, 4, 16, 16)
    err_id = float(jnp.max(jnp.abs(out_id - ref_id)))
    # bf16 matmul operands AND bf16-stored intermediates -> looser tolerance vs f32 ref
    assert err_id < 1e-1, err_id

    # Case 2: projection shortcut (stride 2, channel change)
    params_dn = make_params(kp2, in_planes=4, planes=8, stride=2)
    out_dn = fwd(x, params_dn, 2)
    jax.block_until_ready(out_dn)
    ref_dn = basic_block_ref(x, params_dn, 2)
    assert out_dn.shape == (2, 8, 8, 8)
    err_dn = float(jnp.max(jnp.abs(out_dn - ref_dn)))
    assert err_dn < 1e-1, err_dn

    print("KERNEL_OK")
</pallas_src>

<mosaic_0001>
module attributes {stable_mosaic.version = 11 : i64} {
  func.func @_conv_stats_kernel(%arg0: i32, %arg1: i32, %arg2: memref<1x328x128xbf16, #tpu.memory_space<vmem>>, %arg3: memref<1152x128xbf16, #tpu.memory_space<vmem>>, %arg4: memref<1x288x128xbf16, #tpu.memory_space<vmem>>, %arg5: memref<1x1x128xf32, #tpu.memory_space<vmem>>, %arg6: memref<1x1x128xf32, #tpu.memory_space<vmem>>) attributes {dimension_semantics = [#tpu.dimension_semantics<parallel>, #tpu.dimension_semantics<parallel>], iteration_bounds = array<i64: 1, 2>, scalar_prefetch = 0 : i64, scratch_operands = 0 : i64, tpu.core_type = #tpu.core_type<tc>, window_params = [{transform_indices = @transform_0, window_bounds = array<i64: 1, 328, 128>}, {transform_indices = @transform_1, window_bounds = array<i64: 1152, 128>}, {transform_indices = @transform_2, window_bounds = array<i64: 1, 288, 128>}, {transform_indices = @transform_3, window_bounds = array<i64: 1, 1, 128>}, {transform_indices = @transform_4, window_bounds = array<i64: 1, 1, 128>}]} {
    %c0 = arith.constant 0 : index
    %c0_0 = arith.constant 0 : index
    %c0_1 = arith.constant 0 : index
    %0 = vector.load %arg2[%c0, %c0_0, %c0_1] : memref<1x328x128xbf16, #tpu.memory_space<vmem>>, vector<1x288x128xbf16>
    %1 = vector.shape_cast %0 : vector<1x288x128xbf16> to vector<288x128xbf16>
    %c0_2 = arith.constant 0 : index
    %c0_3 = arith.constant 0 : index
    %2 = vector.load %arg3[%c0_2, %c0_3] : memref<1152x128xbf16, #tpu.memory_space<vmem>>, vector<128x128xbf16>
    %cst = arith.constant dense<0.000000e+00> : vector<288x128xf32>
    %3 = tpu.matmul %1, %2, %cst {dimension_numbers = #tpu.dot_dimension_numbers<[1], [0], [0], [1], [0, 0, 1, 1], [], []>} : vector<288x128xbf16>, vector<128x128xbf16>, vector<288x128xf32> -> vector<288x128xf32>
    %c0_4 = arith.constant 0 : index
    %c1 = arith.constant 1 : index
    %c0_5 = arith.constant 0 : index
    %4 = vector.load %arg2[%c0_4, %c1, %c0_5] : memref<1x328x128xbf16, #tpu.memory_space<vmem>>, vector<1x288x128xbf16>
    %5 = vector.shape_cast %4 : vector<1x288x128xbf16> to vector<288x128xbf16>
    %c128 = arith.constant 128 : index
    %c0_6 = arith.constant 0 : index
    %6 = vector.load %arg3[%c128, %c0_6] : memref<1152x128xbf16, #tpu.memory_space<vmem>>, vector<128x128xbf16>
    %cst_7 = arith.constant dense<0.000000e+00> : vector<288x128xf32>
    %7 = tpu.matmul %5, %6, %cst_7 {dimension_numbers = #tpu.dot_dimension_numbers<[1], [0], [0], [1], [0, 0, 1, 1], [], []>} : vector<288x128xbf16>, vector<128x128xbf16>, vector<288x128xf32> -> vector<288x128xf32>
    %8 = arith.addf %3, %7 : vector<288x128xf32>
    %c0_8 = arith.constant 0 : index
    %c2 = arith.constant 2 : index
    %c0_9 = arith.constant 0 : index
    %9 = vector.load %arg2[%c0_8, %c2, %c0_9] : memref<1x328x128xbf16, #tpu.memory_space<vmem>>, vector<1x288x128xbf16>
    %10 = vector.shape_cast %9 : vector<1x288x128xbf16> to vector<288x128xbf16>
    %c256 = arith.constant 256 : index
    %c0_10 = arith.constant 0 : index
    %11 = vector.load %arg3[%c256, %c0_10] : memref<1152x128xbf16, #tpu.memory_space<vmem>>, vector<128x128xbf16>
    %cst_11 = arith.constant dense<0.000000e+00> : vector<288x128xf32>
    %12 = tpu.matmul %10, %11, %cst_11 {dimension_numbers = #tpu.dot_dimension_numbers<[1], [0], [0], [1], [0, 0, 1, 1], [], []>} : vector<288x128xbf16>, vector<128x128xbf16>, vector<288x128xf32> -> vector<288x128xf32>
    %13 = arith.addf %8, %12 : vector<288x128xf32>
    %c0_12 = arith.constant 0 : index
    %c18 = arith.constant 18 : index
    %c0_13 = arith.constant 0 : index
    %14 = vector.load %arg2[%c0_12, %c18, %c0_13] : memref<1x328x128xbf16, #tpu.memory_space<vmem>>, vector<1x288x128xbf16>
    %15 = vector.shape_cast %14 : vector<1x288x128xbf16> to vector<288x128xbf16>
    %c384 = arith.constant 384 : index
    %c0_14 = arith.constant 0 : index
    %16 = vector.load %arg3[%c384, %c0_14] : memref<1152x128xbf16, #tpu.memory_space<vmem>>, vector<128x128xbf16>
    %cst_15 = arith.constant dense<0.000000e+00> : vector<288x128xf32>
    %17 = tpu.matmul %15, %16, %cst_15 {dimension_numbers = #tpu.dot_dimension_numbers<[1], [0], [0], [1], [0, 0, 1, 1], [], []>} : vector<288x128xbf16>, vector<128x128xbf16>, vector<288x128xf32> -> vector<288x128xf32>
    %18 = arith.addf %13, %17 : vector<288x128xf32>
    %c0_16 = arith.constant 0 : index
    %c19 = arith.constant 19 : index
    %c0_17 = arith.constant 0 : index
    %19 = vector.load %arg2[%c0_16, %c19, %c0_17] : memref<1x328x128xbf16, #tpu.memory_space<vmem>>, vector<1x288x128xbf16>
    %20 = vector.shape_cast %19 : vector<1x288x128xbf16> to vector<288x128xbf16>
    %c512 = arith.constant 512 : index
    %c0_18 = arith.constant 0 : index
    %21 = vector.load %arg3[%c512, %c0_18] : memref<1152x128xbf16, #tpu.memory_space<vmem>>, vector<128x128xbf16>
    %cst_19 = arith.constant dense<0.000000e+00> : vector<288x128xf32>
    %22 = tpu.matmul %20, %21, %cst_19 {dimension_numbers = #tpu.dot_dimension_numbers<[1], [0], [0], [1], [0, 0, 1, 1], [], []>} : vector<288x128xbf16>, vector<128x128xbf16>, vector<288x128xf32> -> vector<288x128xf32>
    %23 = arith.addf %18, %22 : vector<288x128xf32>
    %c0_20 = arith.constant 0 : index
    %c20 = arith.constant 20 : index
    %c0_21 = arith.constant 0 : index
    %24 = vector.load %arg2[%c0_20, %c20, %c0_21] : memref<1x328x128xbf16, #tpu.memory_space<vmem>>, vector<1x288x128xbf16>
    %25 = vector.shape_cast %24 : vector<1x288x128xbf16> to vector<288x128xbf16>
    %c640 = arith.constant 640 : index
    %c0_22 = arith.constant 0 : index
    %26 = vector.load %arg3[%c640, %c0_22] : memref<1152x128xbf16, #tpu.memory_space<vmem>>, vector<128x128xbf16>
    %cst_23 = arith.constant dense<0.000000e+00> : vector<288x128xf32>
    %27 = tpu.matmul %25, %26, %cst_23 {dimension_numbers = #tpu.dot_dimension_numbers<[1], [0], [0], [1], [0, 0, 1, 1], [], []>} : vector<288x128xbf16>, vector<128x128xbf16>, vector<288x128xf32> -> vector<288x128xf32>
    %28 = arith.addf %23, %27 : vector<288x128xf32>
    %c0_24 = arith.constant 0 : index
    %c36 = arith.constant 36 : index
    %c0_25 = arith.constant 0 : index
    %29 = vector.load %arg2[%c0_24, %c36, %c0_25] : memref<1x328x128xbf16, #tpu.memory_space<vmem>>, vector<1x288x128xbf16>
    %30 = vector.shape_cast %29 : vector<1x288x128xbf16> to vector<288x128xbf16>
    %c768 = arith.constant 768 : index
    %c0_26 = arith.constant 0 : index
    %31 = vector.load %arg3[%c768, %c0_26] : memref<1152x128xbf16, #tpu.memory_space<vmem>>, vector<128x128xbf16>
    %cst_27 = arith.constant dense<0.000000e+00> : vector<288x128xf32>
    %32 = tpu.matmul %30, %31, %cst_27 {dimension_numbers = #tpu.dot_dimension_numbers<[1], [0], [0], [1], [0, 0, 1, 1], [], []>} : vector<288x128xbf16>, vector<128x128xbf16>, vector<288x128xf32> -> vector<288x128xf32>
    %33 = arith.addf %28, %32 : vector<288x128xf32>
    %c0_28 = arith.constant 0 : index
    %c37 = arith.constant 37 : index
    %c0_29 = arith.constant 0 : index
    %34 = vector.load %arg2[%c0_28, %c37, %c0_29] : memref<1x328x128xbf16, #tpu.memory_space<vmem>>, vector<1x288x128xbf16>
    %35 = vector.shape_cast %34 : vector<1x288x128xbf16> to vector<288x128xbf16>
    %c896 = arith.constant 896 : index
    %c0_30 = arith.constant 0 : index
    %36 = vector.load %arg3[%c896, %c0_30] : memref<1152x128xbf16, #tpu.memory_space<vmem>>, vector<128x128xbf16>
    %cst_31 = arith.constant dense<0.000000e+00> : vector<288x128xf32>
    %37 = tpu.matmul %35, %36, %cst_31 {dimension_numbers = #tpu.dot_dimension_numbers<[1], [0], [0], [1], [0, 0, 1, 1], [], []>} : vector<288x128xbf16>, vector<128x128xbf16>, vector<288x128xf32> -> vector<288x128xf32>
    %38 = arith.addf %33, %37 : vector<288x128xf32>
    %c0_32 = arith.constant 0 : index
    %c38 = arith.constant 38 : index
    %c0_33 = arith.constant 0 : index
    %39 = vector.load %arg2[%c0_32, %c38, %c0_33] : memref<1x328x128xbf16, #tpu.memory_space<vmem>>, vector<1x288x128xbf16>
    %40 = vector.shape_cast %39 : vector<1x288x128xbf16> to vector<288x128xbf16>
    %c1024 = arith.constant 1024 : index
    %c0_34 = arith.constant 0 : index
    %41 = vector.load %arg3[%c1024, %c0_34] : memref<1152x128xbf16, #tpu.memory_space<vmem>>, vector<128x128xbf16>
    %cst_35 = arith.constant dense<0.000000e+00> : vector<288x128xf32>
    %42 = tpu.matmul %40, %41, %cst_35 {dimension_numbers = #tpu.dot_dimension_numbers<[1], [0], [0], [1], [0, 0, 1, 1], [], []>} : vector<288x128xbf16>, vector<128x128xbf16>, vector<288x128xf32> -> vector<288x128xf32>
    %43 = arith.addf %38, %42 : vector<288x128xf32>
    %44 = tpu.iota {dimensions = array<i32: 0>} : vector<288x1xi32>
    %c18_i32 = arith.constant 18 : i32
    %c0_i32 = arith.constant 0 : i32
    %45 = arith.cmpi eq, %c18_i32, %c0_i32 : i32
    %c1_i32 = arith.constant 1 : i32
    %46 = arith.select %45, %c1_i32, %c18_i32 : i32
    %47 = vector.broadcast %46 : i32 to vector<288x1xi32>
    %48 = arith.remsi %44, %47 : vector<288x1xi32>
    %c0_i32_36 = arith.constant 0 : i32
    %49 = vector.broadcast %c0_i32_36 : i32 to vector<288x1xi32>
    %50 = arith.cmpi ne, %48, %49 : vector<288x1xi32>
    %c0_i32_37 = arith.constant 0 : i32
    %51 = vector.broadcast %c0_i32_37 : i32 to vector<288x1xi32>
    %52 = arith.cmpi slt, %48, %51 : vector<288x1xi32>
    %c0_i32_38 = arith.constant 0 : i32
    %53 = arith.cmpi slt, %46, %c0_i32_38 : i32
    %54 = vector.broadcast %53 : i1 to vector<288x1xi1>
    %55 = vector.broadcast %54 : vector<288x1xi1> to vector<288x1xi1>
    %56 = arith.xori %52, %55 : vector<288x1xi1>
    %57 = arith.andi %56, %50 : vector<288x1xi1>
    %58 = vector.broadcast %46 : i32 to vector<288x1xi32>
    %59 = arith.addi %48, %58 : vector<288x1xi32>
    %60 = arith.select %57, %59, %48 : vector<288x1xi1>, vector<288x1xi32>
    %c16_i32 = arith.constant 16 : i32
    %61 = vector.broadcast %c16_i32 : i32 to vector<288x1xi32>
    %62 = arith.cmpi slt, %60, %61 : vector<288x1xi32>
    %cst_39 = arith.constant 0.000000e+00 : f32
    %63 = vector.shape_cast %62 : vector<288x1xi1> to vector<288x1xi1>
    %64 = vector.broadcast %63 : vector<288x1xi1> to vector<288x128xi1>
    %65 = vector.broadcast %cst_39 : f32 to vector<288x128xf32>
    %66 = arith.select %64, %43, %65 : vector<288x128xi1>, vector<288x128xf32>
    %cst_40 = arith.constant dense<0.000000e+00> : vector<128xf32>
    %67 = vector.multi_reduction <add>, %66, %cst_40 [0] : vector<288x128xf32> to vector<128xf32>
    %68 = vector.shape_cast %67 : vector<128xf32> to vector<1x128xf32>
    %cst_41 = arith.constant 2.560000e+02 : f32
    %69 = vector.broadcast %cst_41 : f32 to vector<1x128xf32>
    %70 = arith.divf %68, %69 : vector<1x128xf32>
    %71 = vector.broadcast %70 : vector<1x128xf32> to vector<288x128xf32>
    %72 = arith.subf %43, %71 : vector<288x128xf32>
    %cst_42 = arith.constant 0.000000e+00 : f32
    %73 = vector.shape_cast %62 : vector<288x1xi1> to vector<288x1xi1>
    %74 = vector.broadcast %73 : vector<288x1xi1> to vector<288x128xi1>
    %75 = vector.broadcast %cst_42 : f32 to vector<288x128xf32>
    %76 = arith.select %74, %72, %75 : vector<288x128xi1>, vector<288x128xf32>
    %77 = arith.mulf %76, %76 : vector<288x128xf32>
    %cst_43 = arith.constant dense<0.000000e+00> : vector<128xf32>
    %78 = vector.multi_reduction <add>, %77, %cst_43 [0] : vector<288x128xf32> to vector<128xf32>
    %79 = vector.shape_cast %78 : vector<128xf32> to vector<1x128xf32>
    %80 = arith.truncf %66 : vector<288x128xf32> to vector<288x128xbf16>
    %81 = vector.shape_cast %80 : vector<288x128xbf16> to vector<1x288x128xbf16>
    %c0_44 = arith.constant 0 : index
    %c0_45 = arith.constant 0 : index
    %c0_46 = arith.constant 0 : index
    %82 = vector.load %arg4[%c0_44, %c0_45, %c0_46] : memref<1x288x128xbf16, #tpu.memory_space<vmem>>, vector<1x288x128xbf16>
    tpu.vector_store %arg4[%c0_44, %c0_45, %c0_46], %81 {strides = array<i32>} : memref<1x288x128xbf16, #tpu.memory_space<vmem>>, vector<1x288x128xbf16>,
    %83 = vector.shape_cast %68 : vector<1x128xf32> to vector<1x1x128xf32>
    %c0_47 = arith.constant 0 : index
    %c0_48 = arith.constant 0 : index
    %c0_49 = arith.constant 0 : index
    %84 = vector.load %arg5[%c0_47, %c0_48, %c0_49] : memref<1x1x128xf32, #tpu.memory_space<vmem>>, vector<1x1x128xf32>
    tpu.vector_store %arg5[%c0_47, %c0_48, %c0_49], %83 {strides = array<i32>} : memref<1x1x128xf32, #tpu.memory_space<vmem>>, vector<1x1x128xf32>,
    %85 = vector.shape_cast %79 : vector<1x128xf32> to vector<1x1x128xf32>
    %c0_50 = arith.constant 0 : index
    %c0_51 = arith.constant 0 : index
    %c0_52 = arith.constant 0 : index
    %86 = vector.load %arg6[%c0_50, %c0_51, %c0_52] : memref<1x1x128xf32, #tpu.memory_space<vmem>>, vector<1x1x128xf32>
    tpu.vector_store %arg6[%c0_50, %c0_51, %c0_52], %85 {strides = array<i32>} : memref<1x1x128xf32, #tpu.memory_space<vmem>>, vector<1x1x128xf32>,
    return
  }
  func.func @transform_0(%arg0: i32, %arg1: i32) -> (i32, i32, i32) {
    %c0_i32 = arith.constant 0 : i32
    %c0_i32_0 = arith.constant 0 : i32
    %c0_i32_1 = arith.constant 0 : i32
    return %arg1, %c0_i32, %c0_i32_0 : i32, i32, i32
  }
  func.func @transform_1(%arg0: i32, %arg1: i32) -> (i32, i32) {
    %c0_i32 = arith.constant 0 : i32
    %c0_i32_0 = arith.constant 0 : i32
    return %c0_i32, %arg0 : i32, i32
  }
  func.func @transform_2(%arg0: i32, %arg1: i32) -> (i32, i32, i32) {
    %c0_i32 = arith.constant 0 : i32
    %c0_i32_0 = arith.constant 0 : i32
    return %arg1, %c0_i32, %arg0 : i32, i32, i32
  }
  func.func @transform_3(%arg0: i32, %arg1: i32) -> (i32, i32, i32) {
    %c0_i32 = arith.constant 0 : i32
    %c0_i32_0 = arith.constant 0 : i32
    return %arg1, %c0_i32, %arg0 : i32, i32, i32
  }
  func.func @transform_4(%arg0: i32, %arg1: i32) -> (i32, i32, i32) {
    %c0_i32 = arith.constant 0 : i32
    %c0_i32_0 = arith.constant 0 : i32
    return %arg1, %c0_i32, %arg0 : i32, i32, i32
  }
}

module attributes {stable_mosaic.version = 11 : i64} {
  func.func @_bn_add_relu_kernel(%arg0: i32, %arg1: i32, %arg2: memref<1x288x128xbf16, #tpu.memory_space<vmem>>, %arg3: memref<1x288x128xbf16, #tpu.memory_space<vmem>>, %arg4: memref<1x128xf32, #tpu.memory_space<vmem>>, %arg5: memref<1x128xf32, #tpu.memory_space<vmem>>, %arg6: memref<1x288x128xf32, #tpu.memory_space<vmem>>) attributes {dimension_semantics = [#tpu.dimension_semantics<parallel>, #tpu.dimension_semantics<parallel>], iteration_bounds = array<i64: 1, 2>, scalar_prefetch = 0 : i64, scratch_operands = 0 : i64, tpu.core_type = #tpu.core_type<tc>, window_params = [{transform_indices = @transform_0, window_bounds = array<i64: 1, 288, 128>}, {transform_indices = @transform_1, window_bounds = array<i64: 1, 288, 128>}, {transform_indices = @transform_2, window_bounds = array<i64: 1, 128>}, {transform_indices = @transform_3, window_bounds = array<i64: 1, 128>}, {transform_indices = @transform_4, window_bounds = array<i64: 1, 288, 128>}]} {
    %c0 = arith.constant 0 : index
    %c0_0 = arith.constant 0 : index
    %c0_1 = arith.constant 0 : index
    %0 = vector.load %arg2[%c0, %c0_0, %c0_1] : memref<1x288x128xbf16, #tpu.memory_space<vmem>>, vector<1x288x128xbf16>
    %1 = vector.shape_cast %0 : vector<1x288x128xbf16> to vector<288x128xbf16>
    %2 = arith.extf %1 : vector<288x128xbf16> to vector<288x128xf32>
    %c0_2 = arith.constant 0 : index
    %c0_3 = arith.constant 0 : index
    %3 = vector.load %arg4[%c0_2, %c0_3] : memref<1x128xf32, #tpu.memory_space<vmem>>, vector<1x128xf32>
    %4 = vector.shape_cast %3 : vector<1x128xf32> to vector<128xf32>
    %5 = vector.shape_cast %4 : vector<128xf32> to vector<1x128xf32>
    %6 = vector.broadcast %5 : vector<1x128xf32> to vector<288x128xf32>
    %7 = arith.mulf %2, %6 : vector<288x128xf32>
    %c0_4 = arith.constant 0 : index
    %c0_5 = arith.constant 0 : index
    %8 = vector.load %arg5[%c0_4, %c0_5] : memref<1x128xf32, #tpu.memory_space<vmem>>, vector<1x128xf32>
    %9 = vector.shape_cast %8 : vector<1x128xf32> to vector<128xf32>
    %10 = vector.shape_cast %9 : vector<128xf32> to vector<1x128xf32>
    %11 = vector.broadcast %10 : vector<1x128xf32> to vector<288x128xf32>
    %12 = arith.addf %7, %11 : vector<288x128xf32>
    %c0_6 = arith.constant 0 : index
    %c0_7 = arith.constant 0 : index
    %c0_8 = arith.constant 0 : index
    %13 = vector.load %arg3[%c0_6, %c0_7, %c0_8] : memref<1x288x128xbf16, #tpu.memory_space<vmem>>, vector<1x288x128xbf16>
    %14 = vector.shape_cast %13 : vector<1x288x128xbf16> to vector<288x128xbf16>
    %15 = arith.extf %14 : vector<288x128xbf16> to vector<288x128xf32>
    %16 = arith.addf %12, %15 : vector<288x128xf32>
    %cst = arith.constant 0.000000e+00 : f32
    %17 = vector.broadcast %cst : f32 to vector<288x128xf32>
    %18 = arith.maximumf %16, %17 : vector<288x128xf32>
    %19 = vector.shape_cast %18 : vector<288x128xf32> to vector<1x288x128xf32>
    %c0_9 = arith.constant 0 : index
    %c0_10 = arith.constant 0 : index
    %c0_11 = arith.constant 0 : index
    %20 = vector.load %arg6[%c0_9, %c0_10, %c0_11] : memref<1x288x128xf32, #tpu.memory_space<vmem>>, vector<1x288x128xf32>
    tpu.vector_store %arg6[%c0_9, %c0_10, %c0_11], %19 {strides = array<i32>} : memref<1x288x128xf32, #tpu.memory_space<vmem>>, vector<1x288x128xf32>,
    return
  }
  func.func @transform_0(%arg0: i32, %arg1: i32) -> (i32, i32, i32) {
    %c0_i32 = arith.constant 0 : i32
    %c0_i32_0 = arith.constant 0 : i32
    return %arg1, %c0_i32, %arg0 : i32, i32, i32
  }
  func.func @transform_1(%arg0: i32, %arg1: i32) -> (i32, i32, i32) {
    %c0_i32 = arith.constant 0 : i32
    %c0_i32_0 = arith.constant 0 : i32
    return %arg1, %c0_i32, %arg0 : i32, i32, i32
  }
  func.func @transform_2(%arg0: i32, %arg1: i32) -> (i32, i32) {
    %c0_i32 = arith.constant 0 : i32
    %c0_i32_0 = arith.constant 0 : i32
    return %c0_i32, %arg0 : i32, i32
  }
  func.func @transform_3(%arg0: i32, %arg1: i32) -> (i32, i32) {
    %c0_i32 = arith.constant 0 : i32
    %c0_i32_0 = arith.constant 0 : i32
    return %c0_i32, %arg0 : i32, i32
  }
  func.func @transform_4(%arg0: i32, %arg1: i32) -> (i32, i32, i32) {
    %c0_i32 = arith.constant 0 : i32
    %c0_i32_0 = arith.constant 0 : i32
    return %arg1, %c0_i32, %arg0 : i32, i32, i32
  }
}

module attributes {stable_mosaic.version = 11 : i64} {
  func.func @_affine_conv_stats_kernel(%arg0: i32, %arg1: i32, %arg2: memref<1x288x128xbf16, #tpu.memory_space<vmem>>, %arg3: memref<1152x128xbf16, #tpu.memory_space<vmem>>, %arg4: memref<1x128xf32, #tpu.memory_space<vmem>>, %arg5: memref<1x128xf32, #tpu.memory_space<vmem>>, %arg6: memref<1x288x128xbf16, #tpu.memory_space<vmem>>, %arg7: memref<1x1x128xf32, #tpu.memory_space<vmem>>, %arg8: memref<1x1x128xf32, #tpu.memory_space<vmem>>, %arg9: memref<336x128xbf16, #tpu.memory_space<vmem>>) attributes {dimension_semantics = [#tpu.dimension_semantics<parallel>, #tpu.dimension_semantics<parallel>], iteration_bounds = array<i64: 1, 2>, scalar_prefetch = 0 : i64, scratch_operands = 1 : i64, tpu.core_type = #tpu.core_type<tc>, window_params = [{transform_indices = @transform_0, window_bounds = array<i64: 1, 288, 128>}, {transform_indices = @transform_1, window_bounds = array<i64: 1152, 128>}, {pipeline_mode = #tpu.pipeline_mode<synchronous>, transform_indices = @transform_2, window_bounds = array<i64: 1, 128>}, {pipeline_mode = #tpu.pipeline_mode<synchronous>, transform_indices = @transform_3, window_bounds = array<i64: 1, 128>}, {transform_indices = @transform_4, window_bounds = array<i64: 1, 288, 128>}, {transform_indices = @transform_5, window_bounds = array<i64: 1, 1, 128>}, {transform_indices = @transform_6, window_bounds = array<i64: 1, 1, 128>}]} {
    %cst = arith.constant 0.000000e+00 : bf16
    %0 = vector.broadcast %cst : bf16 to vector<24x128xbf16>
    %c0 = arith.constant 0 : index
    %c0_0 = arith.constant 0 : index
    %1 = vector.load %arg9[%c0, %c0_0] : memref<336x128xbf16, #tpu.memory_space<vmem>>, vector<24x128xbf16>
    tpu.vector_store %arg9[%c0, %c0_0], %0 {strides = array<i32>} : memref<336x128xbf16, #tpu.memory_space<vmem>>, vector<24x128xbf16>,
    %cst_1 = arith.constant 0.000000e+00 : bf16
    %2 = vector.broadcast %cst_1 : bf16 to vector<24x128xbf16>
    %c312 = arith.constant 312 : index
    %c0_2 = arith.constant 0 : index
    %3 = vector.load %arg9[%c312, %c0_2] : memref<336x128xbf16, #tpu.memory_space<vmem>>, vector<24x128xbf16>
    tpu.vector_store %arg9[%c312, %c0_2], %2 {strides = array<i32>} : memref<336x128xbf16, #tpu.memory_space<vmem>>, vector<24x128xbf16>,
    %4 = tpu.iota {dimensions = array<i32: 0>} : vector<288x1xi32>
    %c18_i32 = arith.constant 18 : i32
    %c0_i32 = arith.constant 0 : i32
    %5 = arith.cmpi eq, %c18_i32, %c0_i32 : i32
    %c1_i32 = arith.constant 1 : i32
    %6 = arith.select %5, %c1_i32, %c18_i32 : i32
    %7 = vector.broadcast %6 : i32 to vector<288x1xi32>
    %8 = arith.remsi %4, %7 : vector<288x1xi32>
    %c0_i32_3 = arith.constant 0 : i32
    %9 = vector.broadcast %c0_i32_3 : i32 to vector<288x1xi32>
    %10 = arith.cmpi ne, %8, %9 : vector<288x1xi32>
    %c0_i32_4 = arith.constant 0 : i32
    %11 = vector.broadcast %c0_i32_4 : i32 to vector<288x1xi32>
    %12 = arith.cmpi slt, %8, %11 : vector<288x1xi32>
    %c0_i32_5 = arith.constant 0 : i32
    %13 = arith.cmpi slt, %6, %c0_i32_5 : i32
    %14 = vector.broadcast %13 : i1 to vector<288x1xi1>
    %15 = vector.broadcast %14 : vector<288x1xi1> to vector<288x1xi1>
    %16 = arith.xori %12, %15 : vector<288x1xi1>
    %17 = arith.andi %16, %10 : vector<288x1xi1>
    %18 = vector.broadcast %6 : i32 to vector<288x1xi32>
    %19 = arith.addi %8, %18 : vector<288x1xi32>
    %20 = arith.select %17, %19, %8 : vector<288x1xi1>, vector<288x1xi32>
    %c16_i32 = arith.constant 16 : i32
    %21 = vector.broadcast %c16_i32 : i32 to vector<288x1xi32>
    %22 = arith.cmpi slt, %20, %21 : vector<288x1xi32>
    %c0_6 = arith.constant 0 : index
    %c0_7 = arith.constant 0 : index
    %c0_8 = arith.constant 0 : index
    %23 = vector.load %arg2[%c0_6, %c0_7, %c0_8] : memref<1x288x128xbf16, #tpu.memory_space<vmem>>, vector<1x288x128xbf16>
    %24 = vector.shape_cast %23 : vector<1x288x128xbf16> to vector<288x128xbf16>
    %25 = arith.extf %24 : vector<288x128xbf16> to vector<288x128xf32>
    %c0_9 = arith.constant 0 : index
    %c0_10 = arith.constant 0 : index
    %26 = vector.load %arg4[%c0_9, %c0_10] : memref<1x128xf32, #tpu.memory_space<vmem>>, vector<1x128xf32>
    %27 = vector.shape_cast %26 : vector<1x128xf32> to vector<128xf32>
    %28 = vector.shape_cast %27 : vector<128xf32> to vector<1x128xf32>
    %29 = vector.broadcast %28 : vector<1x128xf32> to vector<288x128xf32>
    %30 = arith.mulf %25, %29 : vector<288x128xf32>
    %c0_11 = arith.constant 0 : index
    %c0_12 = arith.constant 0 : index
    %31 = vector.load %arg5[%c0_11, %c0_12] : memref<1x128xf32, #tpu.memory_space<vmem>>, vector<1x128xf32>
    %32 = vector.shape_cast %31 : vector<1x128xf32> to vector<128xf32>
    %33 = vector.shape_cast %32 : vector<128xf32> to vector<1x128xf32>
    %34 = vector.broadcast %33 : vector<1x128xf32> to vector<288x128xf32>
    %35 = arith.addf %30, %34 : vector<288x128xf32>
    %cst_13 = arith.constant 0.000000e+00 : f32
    %36 = vector.broadcast %cst_13 : f32 to vector<288x128xf32>
    %37 = arith.maximumf %35, %36 : vector<288x128xf32>
    %cst_14 = arith.constant 0.000000e+00 : f32
    %38 = vector.shape_cast %22 : vector<288x1xi1> to vector<288x1xi1>
    %39 = vector.broadcast %38 : vector<288x1xi1> to vector<288x128xi1>
    %40 = vector.broadcast %cst_14 : f32 to vector<288x128xf32>
    %41 = arith.select %39, %37, %40 : vector<288x128xi1>, vector<288x128xf32>
    %42 = arith.truncf %41 : vector<288x128xf32> to vector<288x128xbf16>
    %c24 = arith.constant 24 : index
    %c0_15 = arith.constant 0 : index
    %43 = vector.load %arg9[%c24, %c0_15] : memref<336x128xbf16, #tpu.memory_space<vmem>>, vector<288x128xbf16>
    tpu.vector_store %arg9[%c24, %c0_15], %42 {strides = array<i32>} : memref<336x128xbf16, #tpu.memory_space<vmem>>, vector<288x128xbf16>,
    %c5 = arith.constant 5 : index
    %c0_16 = arith.constant 0 : index
    %44 = vector.load %arg9[%c5, %c0_16] : memref<336x128xbf16, #tpu.memory_space<vmem>>, vector<288x128xbf16>
    %c0_17 = arith.constant 0 : index
    %c0_18 = arith.constant 0 : index
    %45 = vector.load %arg3[%c0_17, %c0_18] : memref<1152x128xbf16, #tpu.memory_space<vmem>>, vector<128x128xbf16>
    %cst_19 = arith.constant dense<0.000000e+00> : vector<288x128xf32>
    %46 = tpu.matmul %44, %45, %cst_19 {dimension_numbers = #tpu.dot_dimension_numbers<[1], [0], [0], [1], [0, 0, 1, 1], [], []>} : vector<288x128xbf16>, vector<128x128xbf16>, vector<288x128xf32> -> vector<288x128xf32>
    %c6 = arith.constant 6 : index
    %c0_20 = arith.constant 0 : index
    %47 = vector.load %arg9[%c6, %c0_20] : memref<336x128xbf16, #tpu.memory_space<vmem>>, vector<288x128xbf16>
    %c128 = arith.constant 128 : index
    %c0_21 = arith.constant 0 : index
    %48 = vector.load %arg3[%c128, %c0_21] : memref<1152x128xbf16, #tpu.memory_space<vmem>>, vector<128x128xbf16>
    %cst_22 = arith.constant dense<0.000000e+00> : vector<288x128xf32>
    %49 = tpu.matmul %47, %48, %cst_22 {dimension_numbers = #tpu.dot_dimension_numbers<[1], [0], [0], [1], [0, 0, 1, 1], [], []>} : vector<288x128xbf16>, vector<128x128xbf16>, vector<288x128xf32> -> vector<288x128xf32>
    %50 = arith.addf %46, %49 : vector<288x128xf32>
    %c7 = arith.constant 7 : index
    %c0_23 = arith.constant 0 : index
    %51 = vector.load %arg9[%c7, %c0_23] : memref<336x128xbf16, #tpu.memory_space<vmem>>, vector<288x128xbf16>
    %c256 = arith.constant 256 : index
    %c0_24 = arith.constant 0 : index
    %52 = vector.load %arg3[%c256, %c0_24] : memref<1152x128xbf16, #tpu.memory_space<vmem>>, vector<128x128xbf16>
    %cst_25 = arith.constant dense<0.000000e+00> : vector<288x128xf32>
    %53 = tpu.matmul %51, %52, %cst_25 {dimension_numbers = #tpu.dot_dimension_numbers<[1], [0], [0], [1], [0, 0, 1, 1], [], []>} : vector<288x128xbf16>, vector<128x128xbf16>, vector<288x128xf32> -> vector<288x128xf32>
    %54 = arith.addf %50, %53 : vector<288x128xf32>
    %c23 = arith.constant 23 : index
    %c0_26 = arith.constant 0 : index
    %55 = vector.load %arg9[%c23, %c0_26] : memref<336x128xbf16, #tpu.memory_space<vmem>>, vector<288x128xbf16>
    %c384 = arith.constant 384 : index
    %c0_27 = arith.constant 0 : index
    %56 = vector.load %arg3[%c384, %c0_27] : memref<1152x128xbf16, #tpu.memory_space<vmem>>, vector<128x128xbf16>
    %cst_28 = arith.constant dense<0.000000e+00> : vector<288x128xf32>
    %57 = tpu.matmul %55, %56, %cst_28 {dimension_numbers = #tpu.dot_dimension_numbers<[1], [0], [0], [1], [0, 0, 1, 1], [], []>} : vector<288x128xbf16>, vector<128x128xbf16>, vector<288x128xf32> -> vector<288x128xf32>
    %58 = arith.addf %54, %57 : vector<288x128xf32>
    %c24_29 = arith.constant 24 : index
    %c0_30 = arith.constant 0 : index
    %59 = vector.load %arg9[%c24_29, %c0_30] : memref<336x128xbf16, #tpu.memory_space<vmem>>, vector<288x128xbf16>
    %c512 = arith.constant 512 : index
    %c0_31 = arith.constant 0 : index
    %60 = vector.load %arg3[%c512, %c0_31] : memref<1152x128xbf16, #tpu.memory_space<vmem>>, vector<128x128xbf16>
    %cst_32 = arith.constant dense<0.000000e+00> : vector<288x128xf32>
    %61 = tpu.matmul %59, %60, %cst_32 {dimension_numbers = #tpu.dot_dimension_numbers<[1], [0], [0], [1], [0, 0, 1, 1], [], []>} : vector<288x128xbf16>, vector<128x128xbf16>, vector<288x128xf32> -> vector<288x128xf32>
    %62 = arith.addf %58, %61 : vector<288x128xf32>
    %c25 = arith.constant 25 : index
    %c0_33 = arith.constant 0 : index
    %63 = vector.load %arg9[%c25, %c0_33] : memref<336x128xbf16, #tpu.memory_space<vmem>>, vector<288x128xbf16>
    %c640 = arith.constant 640 : index
    %c0_34 = arith.constant 0 : index
    %64 = vector.load %arg3[%c640, %c0_34] : memref<1152x128xbf16, #tpu.memory_space<vmem>>, vector<128x128xbf16>
    %cst_35 = arith.constant dense<0.000000e+00> : vector<288x128xf32>
    %65 = tpu.matmul %63, %64, %cst_35 {dimension_numbers = #tpu.dot_dimension_numbers<[1], [0], [0], [1], [0, 0, 1, 1], [], []>} : vector<288x128xbf16>, vector<128x128xbf16>, vector<288x128xf32> -> vector<288x128xf32>
    %66 = arith.addf %62, %65 : vector<288x128xf32>
    %c41 = arith.constant 41 : index
    %c0_36 = arith.constant 0 : index
    %67 = vector.load %arg9[%c41, %c0_36] : memref<336x128xbf16, #tpu.memory_space<vmem>>, vector<288x128xbf16>
    %c768 = arith.constant 768 : index
    %c0_37 = arith.constant 0 : index
    %68 = vector.load %arg3[%c768, %c0_37] : memref<1152x128xbf16, #tpu.memory_space<vmem>>, vector<128x128xbf16>
    %cst_38 = arith.constant dense<0.000000e+00> : vector<288x128xf32>
    %69 = tpu.matmul %67, %68, %cst_38 {dimension_numbers = #tpu.dot_dimension_numbers<[1], [0], [0], [1], [0, 0, 1, 1], [], []>} : vector<288x128xbf16>, vector<128x128xbf16>, vector<288x128xf32> -> vector<288x128xf32>
    %70 = arith.addf %66, %69 : vector<288x128xf32>
    %c42 = arith.constant 42 : index
    %c0_39 = arith.constant 0 : index
    %71 = vector.load %arg9[%c42, %c0_39] : memref<336x128xbf16, #tpu.memory_space<vmem>>, vector<288x128xbf16>
    %c896 = arith.constant 896 : index
    %c0_40 = arith.constant 0 : index
    %72 = vector.load %arg3[%c896, %c0_40] : memref<1152x128xbf16, #tpu.memory_space<vmem>>, vector<128x128xbf16>
    %cst_41 = arith.constant dense<0.000000e+00> : vector<288x128xf32>
    %73 = tpu.matmul %71, %72, %cst_41 {dimension_numbers = #tpu.dot_dimension_numbers<[1], [0], [0], [1], [0, 0, 1, 1], [], []>} : vector<288x128xbf16>, vector<128x128xbf16>, vector<288x128xf32> -> vector<288x128xf32>
    %74 = arith.addf %70, %73 : vector<288x128xf32>
    %c43 = arith.constant 43 : index
    %c0_42 = arith.constant 0 : index
    %75 = vector.load %arg9[%c43, %c0_42] : memref<336x128xbf16, #tpu.memory_space<vmem>>, vector<288x128xbf16>
    %c1024 = arith.constant 1024 : index
    %c0_43 = arith.constant 0 : index
    %76 = vector.load %arg3[%c1024, %c0_43] : memref<1152x128xbf16, #tpu.memory_space<vmem>>, vector<128x128xbf16>
    %cst_44 = arith.constant dense<0.000000e+00> : vector<288x128xf32>
    %77 = tpu.matmul %75, %76, %cst_44 {dimension_numbers = #tpu.dot_dimension_numbers<[1], [0], [0], [1], [0, 0, 1, 1], [], []>} : vector<288x128xbf16>, vector<128x128xbf16>, vector<288x128xf32> -> vector<288x128xf32>
    %78 = arith.addf %74, %77 : vector<288x128xf32>
    %79 = tpu.iota {dimensions = array<i32: 0>} : vector<288x1xi32>
    %c18_i32_45 = arith.constant 18 : i32
    %c0_i32_46 = arith.constant 0 : i32
    %80 = arith.cmpi eq, %c18_i32_45, %c0_i32_46 : i32
    %c1_i32_47 = arith.constant 1 : i32
    %81 = arith.select %80, %c1_i32_47, %c18_i32_45 : i32
    %82 = vector.broadcast %81 : i32 to vector<288x1xi32>
    %83 = arith.remsi %79, %82 : vector<288x1xi32>
    %c0_i32_48 = arith.constant 0 : i32
    %84 = vector.broadcast %c0_i32_48 : i32 to vector<288x1xi32>
    %85 = arith.cmpi ne, %83, %84 : vector<288x1xi32>
    %c0_i32_49 = arith.constant 0 : i32
    %86 = vector.broadcast %c0_i32_49 : i32 to vector<288x1xi32>
    %87 = arith.cmpi slt, %83, %86 : vector<288x1xi32>
    %c0_i32_50 = arith.constant 0 : i32
    %88 = arith.cmpi slt, %81, %c0_i32_50 : i32
    %89 = vector.broadcast %88 : i1 to vector<288x1xi1>
    %90 = vector.broadcast %89 : vector<288x1xi1> to vector<288x1xi1>
    %91 = arith.xori %87, %90 : vector<288x1xi1>
    %92 = arith.andi %91, %85 : vector<288x1xi1>
    %93 = vector.broadcast %81 : i32 to vector<288x1xi32>
    %94 = arith.addi %83, %93 : vector<288x1xi32>
    %95 = arith.select %92, %94, %83 : vector<288x1xi1>, vector<288x1xi32>
    %c16_i32_51 = arith.constant 16 : i32
    %96 = vector.broadcast %c16_i32_51 : i32 to vector<288x1xi32>
    %97 = arith.cmpi slt, %95, %96 : vector<288x1xi32>
    %cst_52 = arith.constant 0.000000e+00 : f32
    %98 = vector.shape_cast %97 : vector<288x1xi1> to vector<288x1xi1>
    %99 = vector.broadcast %98 : vector<288x1xi1> to vector<288x128xi1>
    %100 = vector.broadcast %cst_52 : f32 to vector<288x128xf32>
    %101 = arith.select %99, %78, %100 : vector<288x128xi1>, vector<288x128xf32>
    %cst_53 = arith.constant dense<0.000000e+00> : vector<128xf32>
    %102 = vector.multi_reduction <add>, %101, %cst_53 [0] : vector<288x128xf32> to vector<128xf32>
    %103 = vector.shape_cast %102 : vector<128xf32> to vector<1x128xf32>
    %cst_54 = arith.constant 2.560000e+02 : f32
    %104 = vector.broadcast %cst_54 : f32 to vector<1x128xf32>
    %105 = arith.divf %103, %104 : vector<1x128xf32>
    %106 = vector.broadcast %105 : vector<1x128xf32> to vector<288x128xf32>
    %107 = arith.subf %78, %106 : vector<288x128xf32>
    %cst_55 = arith.constant 0.000000e+00 : f32
    %108 = vector.shape_cast %97 : vector<288x1xi1> to vector<288x1xi1>
    %109 = vector.broadcast %108 : vector<288x1xi1> to vector<288x128xi1>
    %110 = vector.broadcast %cst_55 : f32 to vector<288x128xf32>
    %111 = arith.select %109, %107, %110 : vector<288x128xi1>, vector<288x128xf32>
    %112 = arith.mulf %111, %111 : vector<288x128xf32>
    %cst_56 = arith.constant dense<0.000000e+00> : vector<128xf32>
    %113 = vector.multi_reduction <add>, %112, %cst_56 [0] : vector<288x128xf32> to vector<128xf32>
    %114 = vector.shape_cast %113 : vector<128xf32> to vector<1x128xf32>
    %115 = arith.truncf %101 : vector<288x128xf32> to vector<288x128xbf16>
    %116 = vector.shape_cast %115 : vector<288x128xbf16> to vector<1x288x128xbf16>
    %c0_57 = arith.constant 0 : index
    %c0_58 = arith.constant 0 : index
    %c0_59 = arith.constant 0 : index
    %117 = vector.load %arg6[%c0_57, %c0_58, %c0_59] : memref<1x288x128xbf16, #tpu.memory_space<vmem>>, vector<1x288x128xbf16>
    tpu.vector_store %arg6[%c0_57, %c0_58, %c0_59], %116 {strides = array<i32>} : memref<1x288x128xbf16, #tpu.memory_space<vmem>>, vector<1x288x128xbf16>,
    %118 = vector.shape_cast %103 : vector<1x128xf32> to vector<1x1x128xf32>
    %c0_60 = arith.constant 0 : index
    %c0_61 = arith.constant 0 : index
    %c0_62 = arith.constant 0 : index
    %119 = vector.load %arg7[%c0_60, %c0_61, %c0_62] : memref<1x1x128xf32, #tpu.memory_space<vmem>>, vector<1x1x128xf32>
    tpu.vector_store %arg7[%c0_60, %c0_61, %c0_62], %118 {strides = array<i32>} : memref<1x1x128xf32, #tpu.memory_space<vmem>>, vector<1x1x128xf32>,
    %120 = vector.shape_cast %114 : vector<1x128xf32> to vector<1x1x128xf32>
    %c0_63 = arith.constant 0 : index
    %c0_64 = arith.constant 0 : index
    %c0_65 = arith.constant 0 : index
    %121 = vector.load %arg8[%c0_63, %c0_64, %c0_65] : memref<1x1x128xf32, #tpu.memory_space<vmem>>, vector<1x1x128xf32>
    tpu.vector_store %arg8[%c0_63, %c0_64, %c0_65], %120 {strides = array<i32>} : memref<1x1x128xf32, #tpu.memory_space<vmem>>, vector<1x1x128xf32>,
    return
  }
  func.func @transform_0(%arg0: i32, %arg1: i32) -> (i32, i32, i32) {
    %c0_i32 = arith.constant 0 : i32
    %c0_i32_0 = arith.constant 0 : i32
    %c0_i32_1 = arith.constant 0 : i32
    return %arg1, %c0_i32, %c0_i32_0 : i32, i32, i32
  }
  func.func @transform_1(%arg0: i32, %arg1: i32) -> (i32, i32) {
    %c0_i32 = arith.constant 0 : i32
    %c0_i32_0 = arith.constant 0 : i32
    return %c0_i32, %arg0 : i32, i32
  }
  func.func @transform_2(%arg0: i32, %arg1: i32) -> (i32, i32) {
    %c0_i32 = arith.constant 0 : i32
    %c0_i32_0 = arith.constant 0 : i32
    %c0_i32_1 = arith.constant 0 : i32
    return %c0_i32, %c0_i32_0 : i32, i32
  }
  func.func @transform_3(%arg0: i32, %arg1: i32) -> (i32, i32) {
    %c0_i32 = arith.constant 0 : i32
    %c0_i32_0 = arith.constant 0 : i32
    %c0_i32_1 = arith.constant 0 : i32
    return %c0_i32, %c0_i32_0 : i32, i32
  }
  func.func @transform_4(%arg0: i32, %arg1: i32) -> (i32, i32, i32) {
    %c0_i32 = arith.constant 0 : i32
    %c0_i32_0 = arith.constant 0 : i32
    return %arg1, %c0_i32, %arg0 : i32, i32, i32
  }
  func.func @transform_5(%arg0: i32, %arg1: i32) -> (i32, i32, i32) {
    %c0_i32 = arith.constant 0 : i32
    %c0_i32_0 = arith.constant 0 : i32
    return %arg1, %c0_i32, %arg0 : i32, i32, i32
  }
  func.func @transform_6(%arg0: i32, %arg1: i32) -> (i32, i32, i32) {
    %c0_i32 = arith.constant 0 : i32
    %c0_i32_0 = arith.constant 0 : i32
    return %arg1, %c0_i32, %arg0 : i32, i32, i32
  }
}

</mosaic_0001>

<bundles_post_ra>
// kernel: basic_block_pallas.5
= control target key start
LH: loop header
LB: loop body
LE: loop exit
PB: predicated region body
PF: predicated region fallthrough
CT: control target
= control target key end

     0   :  { %s1019_s15 = smov 0   ;;  %s1021_s16 = smov 0   ;;  %s1219_s0 = inlined_call_operand.vmem [shape: bf16[2,288,128], index: 0, kind: input, shape index: {}]   ;;  %s1220_s1 = inlined_call_operand.vmem [shape: bf16[2,288,128], index: 1, kind: input, shape index: {}]   ;;  %s1221_s2 = inlined_call_operand.vmem [shape: f32[1,128], index: 2, kind: input, shape index: {}]   ;;  %s1222_s3 = inlined_call_operand.vmem [shape: f32[1,128], index: 3, kind: input, shape index: {}]   ;;  %s1223_s4 = inlined_call_operand.vmem [shape: f32[2,288,128], index: 4, kind: output, shape index: {}]  }
   0x1   :  { %s1023_s17 = smov 0  }
   0x2 LB: > { %s23_s18 = sadd.s32 1, %s988_s16  ;;  %p758_p0 = scmp.ge.s32.totalorder %s992_s17, 1  ;;  %s992_s17 = sphi %s1023_s17, %s14_s17   ;;  %s988_s16 = sphi %s1021_s16, %s1225_s16   ;;  %s984_s15 = sphi %s1019_s15, %s1224_s15  }
   0x3   : > { %p24_p1 = scmp.ge.s32.totalorder %s23_s18, 2  ;;  %p212_p2 = scmp.lt.s32.totalorder %s992_s17, 3 }
   0x5   : > { %s1227_s18 = smov (%p24_p1, %s23_s18), 0  ;;  %p213_p3 = pnand %p758_p0, %p212_p2 }
   0x6   : > { %p258_p4 = scmp.lt.s32.totalorder (!%p213_p3), %s984_s15, 1  ;;  %v1053_v0 = vld [vmem:[%s1221_s2] ss:$0 sm:$0xff] (!%p213_p3) }
   0x7   : > { %216 = sbr.rel (%p213_p3) target bundleno = 78 (0x4e), region = 36  ;;  %v1064_v11 = vld [vmem:[%s1222_s3] ss:$0 sm:$0xff] (!%p213_p3) }
   0xe   : > { %s1229_s15 = smov (!%p258_p4, %s984_s15), 1 }
   0xf   : > { %s944_s19 = smul.u32 144, %s1229_s15 }
  0x10   : > { %s945_s30 = smul.u32 288, %s1229_s15 }
  0x11   : > { %s1043_s22 = scalar_lea.vmem %s1219_s0, %s944_s19  ;;  %s1048_s25 = scalar_lea.vmem %s1220_s1, %s944_s19 }
  0x12   : > { %v767_v1 = vld [vmem:[%s1043_s22] sm:$0xff]   ;;  %v910_v3 = vld [vmem:[%s1043_s22 + $0x8] sm:$0xff]   ;;  %v911_v9 = vld [vmem:[%s1043_s22 + $0x10] sm:$0xff]   ;;  %s1084_s7 = scalar_lea.vmem %s1223_s4, %s945_s30 }
  0x13   : > { %v839_v2 = vld [vmem:[%s1048_s25] sm:$0xff]   ;;  %v768_v4 = vunpack.c.l.bf16 %v767_v1  ;;  %v769_v6 = vunpack.c.h.bf16 %v767_v1  ;;  %v927_v8 = vld [vmem:[%s1048_s25 + $0x8] sm:$0xff]   ;;  %v928_v10 = vld [vmem:[%s1048_s25 + $0x10] sm:$0xff]   ;;  %v772_v12 = vunpack.c.l.bf16 %v910_v3  ;;  %v773_v14 = vunpack.c.h.bf16 %v910_v3 }
  0x14   : > { %v840_v5 = vunpack.c.l.bf16 %v839_v2  ;;  %v841_v7 = vunpack.c.h.bf16 %v839_v2  ;;  %v844_v13 = vunpack.c.l.bf16 %v927_v8  ;;  %v845_v15 = vunpack.c.h.bf16 %v927_v8  ;;  %v912_v16 = vld [vmem:[%s1043_s22 + $0x18] sm:$0xff]   ;;  %v913_v42 = vld [vmem:[%s1043_s22 + $0x20] sm:$0xff]   ;;  %v914_v52 = vld [vmem:[%s1043_s22 + $0x28] sm:$0xff]  }
  0x15   : > { %v367_v17 = vmul.f32 %v768_v4, %v1053_v0  ;;  %v368_v18 = vmul.f32 %v769_v6, %v1053_v0  ;;  %v776_v19 = vunpack.c.l.bf16 %v911_v9  ;;  %v848_v20 = vunpack.c.l.bf16 %v928_v10  ;;  %v929_v21 = vld [vmem:[%s1048_s25 + $0x18] sm:$0xff]   ;;  %v930_v47 = vld [vmem:[%s1048_s25 + $0x20] sm:$0xff]   ;;  %v931_v57 = vld [vmem:[%s1048_s25 + $0x28] sm:$0xff]  }
  0x16   : > { %v369_v22 = vmul.f32 %v772_v12, %v1053_v0  ;;  %v370_v23 = vmul.f32 %v773_v14, %v1053_v0  ;;  %v777_v24 = vunpack.c.h.bf16 %v911_v9  ;;  %v849_v25 = vunpack.c.h.bf16 %v928_v10  ;;  %v915_v62 = vld [vmem:[%s1043_s22 + $0x30] sm:$0xff]   ;;  %v916_v14 = vld [vmem:[%s1043_s22 + $0x38] sm:$0xff]  }
  0x17   : > { %v410_v26 = vadd.f32 %v1064_v11, %v367_v17  ;;  %v411_v27 = vadd.f32 %v1064_v11, %v368_v18  ;;  %v371_v28 = vmul.f32 %v776_v19, %v1053_v0  ;;  %v780_v29 = vunpack.c.l.bf16 %v912_v16  ;;  %v932_v4 = vld [vmem:[%s1048_s25 + $0x30] sm:$0xff]  }
  0x18   : > { %v412_v30 = vadd.f32 %v1064_v11, %v369_v22  ;;  %v413_v31 = vadd.f32 %v1064_v11, %v370_v23  ;;  %v372_v32 = vmul.f32 %v777_v24, %v1053_v0  ;;  %v852_v33 = vunpack.c.l.bf16 %v929_v21  ;;  %v933_v23 = vld [vmem:[%s1048_s25 + $0x38] sm:$0xff]  }
  0x19   : > { %v518_v34 = vadd.f32 %v840_v5, %v410_v26  ;;  %v519_v35 = vadd.f32 %v841_v7, %v411_v27  ;;  %v414_v36 = vadd.f32 %v1064_v11, %v371_v28  ;;  %v373_v37 = vmul.f32 %v780_v29, %v1053_v0 }
  0x1a   : > { %v520_v38 = vadd.f32 %v844_v13, %v412_v30  ;;  %v521_v39 = vadd.f32 %v845_v15, %v413_v31  ;;  %v415_v40 = vadd.f32 %v1064_v11, %v372_v32  ;;  %v781_v41 = vunpack.c.h.bf16 %v912_v16  ;;  %v917_v32 = vld [vmem:[%s1043_s22 + $0x40] sm:$0xff]  }
  0x1b   : > { %v554_v43 = vmax.f32 %v518_v34, 0.0  ;;  %v555_v44 = vmax.f32 %v519_v35, 0.0  ;;  %v522_v45 = vadd.f32 %v848_v20, %v414_v36  ;;  %v416_v46 = vadd.f32 %v1064_v11, %v373_v37  ;;  %v934_v37 = vld [vmem:[%s1048_s25 + $0x40] sm:$0xff]  }
  0x1c   : > { %v556_v48 = vmax.f32 %v520_v38, 0.0  ;;  %v557_v49 = vmax.f32 %v521_v39, 0.0  ;;  %v523_v50 = vadd.f32 %v849_v25, %v415_v40  ;;  %v374_v51 = vmul.f32 %v781_v41, %v1053_v0 }
  0x1d   : > { %590 = vst [vmem:[%s1084_s7] sm:$0xff] %v554_v43  ;;  %591 = vst [vmem:[%s1084_s7 + $0x8] sm:$0xff] %v555_v44  ;;  %v558_v53 = vmax.f32 %v522_v45, 0.0  ;;  %v524_v54 = vadd.f32 %v852_v33, %v416_v46  ;;  %v853_v55 = vunpack.c.h.bf16 %v929_v21  ;;  %v784_v56 = vunpack.c.l.bf16 %v913_v42  ;;  %v918_v46 = vld [vmem:[%s1043_s22 + $0x48] sm:$0xff]  }
  0x1e   : > { %592 = vst [vmem:[%s1084_s7 + $0x10] sm:$0xff] %v556_v48  ;;  %593 = vst [vmem:[%s1084_s7 + $0x18] sm:$0xff] %v557_v49  ;;  %v559_v58 = vmax.f32 %v523_v50, 0.0  ;;  %v417_v59 = vadd.f32 %v1064_v11, %v374_v51  ;;  %v856_v60 = vunpack.c.l.bf16 %v930_v47  ;;  %v785_v61 = vunpack.c.h.bf16 %v913_v42 }
  0x1f   : > { %594 = vst [vmem:[%s1084_s7 + $0x20] sm:$0xff] %v558_v53  ;;  %v560_v63 = vmax.f32 %v524_v54, 0.0  ;;  %v375_v1 = vmul.f32 %v784_v56, %v1053_v0  ;;  %v857_v2 = vunpack.c.h.bf16 %v930_v47  ;;  %v788_v3 = vunpack.c.l.bf16 %v914_v52  ;;  %v935_v47 = vld [vmem:[%s1048_s25 + $0x48] sm:$0xff]   ;;  %v919_v56 = vld [vmem:[%s1043_s22 + $0x50] sm:$0xff]  }
  0x20   : > { %595 = vst [vmem:[%s1084_s7 + $0x28] sm:$0xff] %v559_v58  ;;  %v525_v5 = vadd.f32 %v853_v55, %v417_v59  ;;  %v376_v6 = vmul.f32 %v785_v61, %v1053_v0  ;;  %v860_v7 = vunpack.c.l.bf16 %v931_v57  ;;  %v789_v8 = vunpack.c.h.bf16 %v914_v52  ;;  %v936_v61 = vld [vmem:[%s1048_s25 + $0x50] sm:$0xff]  }
  0x21   : > { %596 = vst [vmem:[%s1084_s7 + $0x30] sm:$0xff] %v560_v63  ;;  %v418_v9 = vadd.f32 %v1064_v11, %v375_v1  ;;  %v377_v10 = vmul.f32 %v788_v3, %v1053_v0  ;;  %v861_v12 = vunpack.c.h.bf16 %v931_v57  ;;  %v792_v13 = vunpack.c.l.bf16 %v915_v62 }
  0x22   : > { %v561_v15 = vmax.f32 %v525_v5, 0.0  ;;  %v419_v16 = vadd.f32 %v1064_v11, %v376_v6  ;;  %v378_v17 = vmul.f32 %v789_v8, %v1053_v0  ;;  %v864_v18 = vunpack.c.l.bf16 %v932_v4 }
  0x23   : > { %v526_v19 = vadd.f32 %v856_v60, %v418_v9  ;;  %v420_v20 = vadd.f32 %v1064_v11, %v377_v10  ;;  %v379_v21 = vmul.f32 %v792_v13, %v1053_v0  ;;  %v793_v22 = vunpack.c.h.bf16 %v915_v62 }
  0x24   : > { %597 = vst [vmem:[%s1084_s7 + $0x38] sm:$0xff] %v561_v15  ;;  %v527_v24 = vadd.f32 %v857_v2, %v419_v16  ;;  %v421_v25 = vadd.f32 %v1064_v11, %v378_v17  ;;  %v865_v26 = vunpack.c.h.bf16 %v932_v4  ;;  %v796_v27 = vunpack.c.l.bf16 %v916_v14  ;;  %v937_v17 = vld [vmem:[%s1048_s25 + $0x58] sm:$0xff]  }
  0x25   : > { %v562_v28 = vmax.f32 %v526_v19, 0.0  ;;  %v528_v29 = vadd.f32 %v860_v7, %v420_v20  ;;  %v422_v30 = vadd.f32 %v1064_v11, %v379_v21  ;;  %v380_v31 = vmul.f32 %v793_v22, %v1053_v0 }
  0x26   : > { %v563_v33 = vmax.f32 %v527_v24, 0.0  ;;  %v529_v34 = vadd.f32 %v861_v12, %v421_v25  ;;  %v381_v35 = vmul.f32 %v796_v27, %v1053_v0  ;;  %v868_v36 = vunpack.c.l.bf16 %v933_v23  ;;  %v920_v12 = vld [vmem:[%s1043_s22 + $0x58] sm:$0xff]  }
  0x27   : > { %598 = vst [vmem:[%s1084_s7 + $0x40] sm:$0xff] %v562_v28  ;;  %v564_v38 = vmax.f32 %v528_v29, 0.0  ;;  %v530_v39 = vadd.f32 %v864_v18, %v422_v30  ;;  %v423_v40 = vadd.f32 %v1064_v11, %v380_v31  ;;  %v797_v41 = vunpack.c.h.bf16 %v916_v14  ;;  %v938_v31 = vld [vmem:[%s1048_s25 + $0x60] sm:$0xff]  }
  0x28   : > { %599 = vst [vmem:[%s1084_s7 + $0x48] sm:$0xff] %v563_v33  ;;  %v565_v42 = vmax.f32 %v529_v34, 0.0  ;;  %v424_v43 = vadd.f32 %v1064_v11, %v381_v35  ;;  %v869_v44 = vunpack.c.h.bf16 %v933_v23  ;;  %v800_v45 = vunpack.c.l.bf16 %v917_v32 }
  0x29   : > { %600 = vst [vmem:[%s1084_s7 + $0x50] sm:$0xff] %v564_v38  ;;  %v566_v48 = vmax.f32 %v530_v39, 0.0  ;;  %v531_v49 = vadd.f32 %v865_v26, %v423_v40  ;;  %v382_v50 = vmul.f32 %v797_v41, %v1053_v0  ;;  %v872_v51 = vunpack.c.l.bf16 %v934_v37  ;;  %v921_v26 = vld [vmem:[%s1043_s22 + $0x60] sm:$0xff]   ;;  %v922_v40 = vld [vmem:[%s1043_s22 + $0x68] sm:$0xff]  }
  0x2a   : > { %601 = vst [vmem:[%s1084_s7 + $0x58] sm:$0xff] %v565_v42  ;;  %v532_v52 = vadd.f32 %v868_v36, %v424_v43  ;;  %v383_v53 = vmul.f32 %v800_v45, %v1053_v0  ;;  %v801_v54 = vunpack.c.h.bf16 %v917_v32  ;;  %v873_v55 = vunpack.c.h.bf16 %v934_v37  ;;  %v939_v41 = vld [vmem:[%s1048_s25 + $0x68] sm:$0xff]  }
  0x2b   : > { %602 = vst [vmem:[%s1084_s7 + $0x60] sm:$0xff] %v566_v48  ;;  %v567_v57 = vmax.f32 %v531_v49, 0.0  ;;  %v425_v58 = vadd.f32 %v1064_v11, %v382_v50  ;;  %v804_v59 = vunpack.c.l.bf16 %v918_v46  ;;  %v876_v60 = vunpack.c.l.bf16 %v935_v47  ;;  %v923_v50 = vld [vmem:[%s1043_s22 + $0x70] sm:$0xff]  }
  0x2c   : > { %v568_v62 = vmax.f32 %v532_v52, 0.0  ;;  %v426_v63 = vadd.f32 %v1064_v11, %v383_v53  ;;  %v384_v1 = vmul.f32 %v801_v54, %v1053_v0  ;;  %v805_v2 = vunpack.c.h.bf16 %v918_v46 }
  0x2d   : > { %603 = vst [vmem:[%s1084_s7 + $0x68] sm:$0xff] %v567_v57  ;;  %v533_v3 = vadd.f32 %v869_v44, %v425_v58  ;;  %v385_v4 = vmul.f32 %v804_v59, %v1053_v0  ;;  %v877_v5 = vunpack.c.h.bf16 %v935_v47  ;;  %v808_v6 = vunpack.c.l.bf16 %v919_v56  ;;  %v940_v59 = vld [vmem:[%s1048_s25 + $0x70] sm:$0xff]  }
  0x2e   : > { %604 = vst [vmem:[%s1084_s7 + $0x70] sm:$0xff] %v568_v62  ;;  %v534_v7 = vadd.f32 %v872_v51, %v426_v63  ;;  %v427_v8 = vadd.f32 %v1064_v11, %v384_v1  ;;  %v386_v9 = vmul.f32 %v805_v2, %v1053_v0  ;;  %v880_v10 = vunpack.c.l.bf16 %v936_v61 }
  0x2f   : > { %v569_v13 = vmax.f32 %v533_v3, 0.0  ;;  %v428_v14 = vadd.f32 %v1064_v11, %v385_v4  ;;  %v387_v15 = vmul.f32 %v808_v6, %v1053_v0  ;;  %v809_v16 = vunpack.c.h.bf16 %v919_v56 }
  0x30   : > { %v570_v18 = vmax.f32 %v534_v7, 0.0  ;;  %v535_v19 = vadd.f32 %v873_v55, %v427_v8  ;;  %v429_v20 = vadd.f32 %v1064_v11, %v386_v9  ;;  %v881_v21 = vunpack.c.h.bf16 %v936_v61 }
  0x31   : > { %605 = vst [vmem:[%s1084_s7 + $0x78] sm:$0xff] %v569_v13  ;;  %v536_v22 = vadd.f32 %v876_v60, %v428_v14  ;;  %v430_v23 = vadd.f32 %v1064_v11, %v387_v15  ;;  %v388_v24 = vmul.f32 %v809_v16, %v1053_v0  ;;  %v812_v25 = vunpack.c.l.bf16 %v920_v12 }
  0x32   : > { %606 = vst [vmem:[%s1084_s7 + $0x80] sm:$0xff] %v570_v18  ;;  %v571_v27 = vmax.f32 %v535_v19, 0.0  ;;  %v537_v28 = vadd.f32 %v877_v5, %v429_v20  ;;  %v884_v29 = vunpack.c.l.bf16 %v937_v17  ;;  %v813_v30 = vunpack.c.h.bf16 %v920_v12  ;;  %v924_v5 = vld [vmem:[%s1043_s22 + $0x78] sm:$0xff]   ;;  %v925_v20 = vld [vmem:[%s1043_s22 + $0x80] sm:$0xff]  }
  0x33   : > { %v572_v32 = vmax.f32 %v536_v22, 0.0  ;;  %v538_v33 = vadd.f32 %v880_v10, %v430_v23  ;;  %v431_v34 = vadd.f32 %v1064_v11, %v388_v24  ;;  %v389_v35 = vmul.f32 %v812_v25, %v1053_v0  ;;  %v941_v10 = vld [vmem:[%s1048_s25 + $0x78] sm:$0xff]  }
  0x34   : > { %607 = vst [vmem:[%s1084_s7 + $0x88] sm:$0xff] %v571_v27  ;;  %v573_v36 = vmax.f32 %v537_v28, 0.0  ;;  %v390_v37 = vmul.f32 %v813_v30, %v1053_v0  ;;  %v885_v38 = vunpack.c.h.bf16 %v937_v17  ;;  %v816_v39 = vunpack.c.l.bf16 %v921_v26 }
  0x35   : > { %608 = vst [vmem:[%s1084_s7 + $0x90] sm:$0xff] %v572_v32  ;;  %v574_v42 = vmax.f32 %v538_v33, 0.0  ;;  %v539_v43 = vadd.f32 %v881_v21, %v431_v34  ;;  %v432_v44 = vadd.f32 %v1064_v11, %v389_v35  ;;  %v888_v45 = vunpack.c.l.bf16 %v938_v31  ;;  %v926_v34 = vld [vmem:[%s1043_s22 + $0x88] sm:$0xff]  }
  0x36   : > { %609 = vst [vmem:[%s1084_s7 + $0x98] sm:$0xff] %v573_v36  ;;  %v433_v46 = vadd.f32 %v1064_v11, %v390_v37  ;;  %v391_v47 = vmul.f32 %v816_v39, %v1053_v0  ;;  %v817_v48 = vunpack.c.h.bf16 %v921_v26  ;;  %v889_v49 = vunpack.c.h.bf16 %v938_v31 }
  0x37   : > { %610 = vst [vmem:[%s1084_s7 + $0xa0] sm:$0xff] %v574_v42  ;;  %v575_v51 = vmax.f32 %v539_v43, 0.0  ;;  %v540_v52 = vadd.f32 %v884_v29, %v432_v44  ;;  %v820_v53 = vunpack.c.l.bf16 %v922_v40  ;;  %v892_v54 = vunpack.c.l.bf16 %v939_v41  ;;  %v942_v29 = vld [vmem:[%s1048_s25 + $0x80] sm:$0xff]   ;;  %v943_v42 = vld [vmem:[%s1048_s25 + $0x88] sm:$0xff]  }
  0x38   : > { %v541_v55 = vadd.f32 %v885_v38, %v433_v46  ;;  %v434_v56 = vadd.f32 %v1064_v11, %v391_v47  ;;  %v392_v57 = vmul.f32 %v817_v48, %v1053_v0  ;;  %v821_v58 = vunpack.c.h.bf16 %v922_v40 }
  0x39   : > { %611 = vst [vmem:[%s1084_s7 + $0xa8] sm:$0xff] %v575_v51  ;;  %v576_v60 = vmax.f32 %v540_v52, 0.0  ;;  %v393_v61 = vmul.f32 %v820_v53, %v1053_v0  ;;  %v893_v62 = vunpack.c.h.bf16 %v939_v41  ;;  %v824_v63 = vunpack.c.l.bf16 %v923_v50 }
  0x3a   : > { %v577_v1 = vmax.f32 %v541_v55, 0.0  ;;  %v542_v2 = vadd.f32 %v888_v45, %v434_v56  ;;  %v435_v3 = vadd.f32 %v1064_v11, %v392_v57  ;;  %v394_v4 = vmul.f32 %v821_v58, %v1053_v0 }
  0x3b   : > { %612 = vst [vmem:[%s1084_s7 + $0xb0] sm:$0xff] %v576_v60  ;;  %v436_v6 = vadd.f32 %v1064_v11, %v393_v61  ;;  %v395_v7 = vmul.f32 %v824_v63, %v1053_v0  ;;  %v896_v8 = vunpack.c.l.bf16 %v940_v59  ;;  %v825_v9 = vunpack.c.h.bf16 %v923_v50 }
  0x3c   : > { %613 = vst [vmem:[%s1084_s7 + $0xb8] sm:$0xff] %v577_v1  ;;  %v578_v12 = vmax.f32 %v542_v2, 0.0  ;;  %v543_v13 = vadd.f32 %v889_v49, %v435_v3  ;;  %v437_v14 = vadd.f32 %v1064_v11, %v394_v4  ;;  %v897_v15 = vunpack.c.h.bf16 %v940_v59 }
  0x3d   : > { %v544_v16 = vadd.f32 %v892_v54, %v436_v6  ;;  %v438_v17 = vadd.f32 %v1064_v11, %v395_v7  ;;  %v396_v18 = vmul.f32 %v825_v9, %v1053_v0  ;;  %v828_v19 = vunpack.c.l.bf16 %v924_v5 }
  0x3e   : > { %614 = vst [vmem:[%s1084_s7 + $0xc0] sm:$0xff] %v578_v12  ;;  %v579_v21 = vmax.f32 %v543_v13, 0.0  ;;  %v545_v22 = vadd.f32 %v893_v62, %v437_v14  ;;  %v900_v23 = vunpack.c.l.bf16 %v941_v10  ;;  %v829_v24 = vunpack.c.h.bf16 %v924_v5 }
  0x3f   : > { %v580_v25 = vmax.f32 %v544_v16, 0.0  ;;  %v546_v26 = vadd.f32 %v896_v8, %v438_v17  ;;  %v439_v27 = vadd.f32 %v1064_v11, %v396_v18  ;;  %v397_v28 = vmul.f32 %v828_v19, %v1053_v0 }
  0x40   : > { %615 = vst [vmem:[%s1084_s7 + $0xc8] sm:$0xff] %v579_v21  ;;  %v581_v30 = vmax.f32 %v545_v22, 0.0  ;;  %v398_v31 = vmul.f32 %v829_v24, %v1053_v0  ;;  %v901_v32 = vunpack.c.h.bf16 %v941_v10  ;;  %v832_v33 = vunpack.c.l.bf16 %v925_v20 }
  0x41   : > { %616 = vst [vmem:[%s1084_s7 + $0xd0] sm:$0xff] %v580_v25  ;;  %v582_v35 = vmax.f32 %v546_v26, 0.0  ;;  %v547_v36 = vadd.f32 %v897_v15, %v439_v27  ;;  %v440_v37 = vadd.f32 %v1064_v11, %v397_v28  ;;  %v904_v40 = vunpack.c.l.bf16 %v942_v29 }
  0x42   : > { %617 = vst [vmem:[%s1084_s7 + $0xd8] sm:$0xff] %v581_v30  ;;  %v441_v38 = vadd.f32 %v1064_v11, %v398_v31  ;;  %v399_v39 = vmul.f32 %v832_v33, %v1053_v0  ;;  %v833_v41 = vunpack.c.h.bf16 %v925_v20  ;;  %v905_v45 = vunpack.c.h.bf16 %v942_v29 }
  0x43   : > { %618 = vst [vmem:[%s1084_s7 + $0xe0] sm:$0xff] %v582_v35  ;;  %v583_v43 = vmax.f32 %v547_v36, 0.0  ;;  %v548_v44 = vadd.f32 %v900_v23, %v440_v37  ;;  %v836_v46 = vunpack.c.l.bf16 %v926_v34  ;;  %v837_v50 = vunpack.c.h.bf16 %v926_v34 }
  0x44   : > { %v549_v47 = vadd.f32 %v901_v32, %v441_v38  ;;  %v442_v48 = vadd.f32 %v1064_v11, %v399_v39  ;;  %v400_v49 = vmul.f32 %v833_v41, %v1053_v0  ;;  %v908_v53 = vunpack.c.l.bf16 %v943_v42 }
  0x45   : > { %619 = vst [vmem:[%s1084_s7 + $0xe8] sm:$0xff] %v583_v43  ;;  %v584_v51 = vmax.f32 %v548_v44, 0.0  ;;  %v401_v52 = vmul.f32 %v836_v46, %v1053_v0  ;;  %v909_v54 = vunpack.c.h.bf16 %v943_v42  ;;  %v402_v58 = vmul.f32 %v837_v50, %v1053_v0 }
  0x46   : > { %v585_v55 = vmax.f32 %v549_v47, 0.0  ;;  %v550_v56 = vadd.f32 %v904_v40, %v442_v48  ;;  %v443_v57 = vadd.f32 %v1064_v11, %v400_v49 }
  0x47   : > { %620 = vst [vmem:[%s1084_s7 + $0xf0] sm:$0xff] %v584_v51  ;;  %v444_v59 = vadd.f32 %v1064_v11, %v401_v52  ;;  %v445_v62 = vadd.f32 %v1064_v11, %v402_v58 }
  0x48   : > { %621 = vst [vmem:[%s1084_s7 + $0xf8] sm:$0xff] %v585_v55  ;;  %v586_v60 = vmax.f32 %v550_v56, 0.0  ;;  %v551_v61 = vadd.f32 %v905_v45, %v443_v57 }
  0x49   : > { %v552_v63 = vadd.f32 %v908_v53, %v444_v59  ;;  %v553_v2 = vadd.f32 %v909_v54, %v445_v62 }
  0x4a   : > { %622 = vst [vmem:[%s1084_s7 + $0x100] sm:$0xff] %v586_v60  ;;  %v587_v1 = vmax.f32 %v551_v61, 0.0 }
  0x4b   : > { %v588_v3 = vmax.f32 %v552_v63, 0.0  ;;  %v589_v4 = vmax.f32 %v553_v2, 0.0 }
  0x4c   : > { %623 = vst [vmem:[%s1084_s7 + $0x108] sm:$0xff] %v587_v1 }
  0x4d   : > { %624 = vst [vmem:[%s1084_s7 + $0x110] sm:$0xff] %v588_v3  ;;  %625 = vst [vmem:[%s1084_s7 + $0x118] sm:$0xff] %v589_v4 }
  0x4e PF: > { %s14_s17 = sadd.s32 1, %s992_s17   ;;  %s1224_s15 = smov %s988_s16 }
  0x4f   : > { %p11_p5 = scmp.ge.s32.totalorder %s14_s17, 4   ;;  %s1225_s16 = smov %s1227_s18 }
  0x51   :  { %13 = sbr.rel (!%p11_p5) target bundleno = 2 (0x2), region = 75 }

// kernel: basic_block_pallas.3
= control target key start
LH: loop header
LB: loop body
LE: loop exit
PB: predicated region body
PF: predicated region fallthrough
CT: control target
= control target key end

     0   :  { %s6888_s15 = smov 0   ;;  %s6890_s16 = smov 0   ;;  %s9421_s0 = inlined_call_operand.vmem [shape: bf16[2,328,128], index: 0, kind: input, shape index: {}]   ;;  %s9422_s1 = inlined_call_operand.vmem [shape: bf16[1152,128], index: 1, kind: input, shape index: {}]   ;;  %s9423_s2 = inlined_call_operand.vmem [shape: bf16[2,288,128], index: 2, kind: output, shape index: {0}]   ;;  %s9424_s3 = inlined_call_operand.vmem [shape: f32[2,1,128], index: 3, kind: output, shape index: {1}]   ;;  %s9425_s4 = inlined_call_operand.vmem [shape: f32[2,1,128], index: 4, kind: output, shape index: {2}]  }
   0x1   :  { %s6892_s17 = smov 0  }
   0x2 LB: > { %s24_s18 = sadd.s32 1, %s6857_s16  ;;  %p5240_p0 = scmp.ge.s32.totalorder %s6861_s17, 1  ;;  %s6861_s17 = sphi %s6892_s17, %s15_s17   ;;  %s6857_s16 = sphi %s6890_s16, %s9811_s16   ;;  %s6853_s15 = sphi %s6888_s15, %s9810_s15  }
   0x3   : > { %p25_p1 = scmp.ge.s32.totalorder %s24_s18, 2  ;;  %p194_p2 = scmp.lt.s32.totalorder %s6861_s17, 3 }
   0x5   : > { %s9813_s18 = smov (%p25_p1, %s24_s18), 0  ;;  %p195_p3 = pnand %p5240_p0, %p194_p2 }
   0x7   : > { %198 = sbr.rel (%p195_p3) target bundleno = 720 (0x2d0), region = 28 }
   0xe   : > { %v6662_v0 = vld [vmem:[%s9422_s1 + $0x40] sm:$0xff]   ;;  %p239_p4 = scmp.lt.s32.totalorder %s6853_s15, 1  ;;  %v6664_v2 = vld [vmem:[%s9422_s1 + $0x48] sm:$0xff]   ;;  %v6666_v4 = vld [vmem:[%s9422_s1 + $0x50] sm:$0xff]   ;;  %vm431_vm0 = vsmask.f32 7424 }
   0xf   : > { %v6663_v1 = vld [vmem:[%s9422_s1 + $0x100] sm:$0xff]   ;;  %5792 = vmatprep.subr.bf16.mxu1 %v6662_v0  ;;  %v6665_v3 = vld [vmem:[%s9422_s1 + $0x108] sm:$0xff]   ;;  %v6667_v5 = vld [vmem:[%s9422_s1 + $0x110] sm:$0xff]   ;;  %vm1885_vm1 = vsmask.f32 6400  ;;  %vm2355_vm2 = vcmask 1045504  }
  0x10   : > { %6000 = vmatprep.subr.bf16.mxu0 %v6663_v1  ;;  %5793 = vmatpush3.bf16.msra.mxu1 %v6662_v0  ;;  %s9815_s15 = smov (!%p239_p4, %s6853_s15), 1  ;;  %v6668_v6 = vld [vmem:[%s9422_s1 + $0x58] sm:$0xff]   ;;  %v6670_v8 = vld [vmem:[%s9422_s1 + $0x60] sm:$0xff]   ;;  %v6672_v10 = vld [vmem:[%s9422_s1 + $0x68] sm:$0xff]   ;;  %vm1086_vm3 = vcmask 1046528   ;;  %vm3624_vm5 = vcmask 1044480  }
  0x11   : > { %6001 = vmatpush3.bf16.msra.mxu0 %v6663_v1  ;;  %5794 = vmatprep.subr.bf16.mxu1 %v6664_v2  ;;  %v6669_v7 = vld [vmem:[%s9422_s1 + $0x118] sm:$0xff]   ;;  %s6564_s9 = smul.u32 164, %s9815_s15  ;;  %v6671_v9 = vld [vmem:[%s9422_s1 + $0x120] sm:$0xff]   ;;  %v6673_v11 = vld [vmem:[%s9422_s1 + $0x128] sm:$0xff]   ;;  %vm3154_vm4 = vsmask.f32 5376  ;;  %s261_s14 = scalar_lea.vmem %s9424_s3, %s9815_s15 }
  0x12   : > { %6002 = vmatprep.subr.bf16.mxu0 %v6665_v3  ;;  %v6674_v17 = vld [vmem:[%s9422_s1 + $0x70] sm:$0xff]   ;;  %v6676_v32 = vld [vmem:[%s9422_s1 + $0x78] sm:$0xff]   ;;  %v6683_v48 = vld [vmem:[%s9422_s1] sm:$0xff]   ;;  %s267_s22 = scalar_lea.vmem %s9425_s4, %s9815_s15 }
  0x13   : > { %s6942_s20 = scalar_lea.vmem %s9421_s0, %s6564_s9  ;;  %v6675_v20 = vld [vmem:[%s9422_s1 + $0x130] sm:$0xff]   ;;  %v6677_v36 = vld [vmem:[%s9422_s1 + $0x138] sm:$0xff]   ;;  %v6685_v54 = vld [vmem:[%s9422_s1 + $0x140] sm:$0xff]  }
  0x14   : > { %5795 = vmatpush3.bf16.msra.mxu1 %v6664_v2  ;;  %v269_v12 = vld [vmem:[%s6942_s20] sm:$0xf]  ;;  %v270_v13 = vld [vmem:[%s6942_s20 + $0x4] sm:$0xf]  ;;  %v6955_v15 = vld [vmem:[%s6942_s20 + $0x8] sm:$0xff]  }
  0x15   : > { %6003 = vmatpush3.bf16.msra.mxu0 %v6665_v3  ;;  %5796 = vmatprep.subr.bf16.mxu1 %v6666_v4  ;;  %v6952_v14 = vcombine.low %v269_v12, %v270_v13  ;;  %v6958_v16 = vld [vmem:[%s6942_s20 + $0x10] sm:$0xff]   ;;  %v1403_v18 = vld [vmem:[%s6942_s20 + $0x8] sm:$0xe]  ;;  %v6965_v19 = vld [vmem:[%s6942_s20 + $0xc] sm:$0xf]  ;;  %v440_v23 = vshll.u32 %v6955_v15, 16 }
  0x16   : > { %6004 = vmatprep.subr.bf16.mxu0 %v6667_v5  ;;  %v6974_v24 = vcombine.low %v1403_v18, %v6965_v19  ;;  %v6977_v25 = vld [vmem:[%s6942_s20 + $0x10] sm:$0xff]   ;;  %v1895_v26 = vshrl.u32 %v6958_v16, 16  ;;  %v1898_v27 = vshll.u32 %v6958_v16, 16  ;;  %v444_v40 = vshrl.u32 %v6955_v15, 16  ;;  %v6992_v41 = vld [vmem:[%s6942_s20 + $0x18] sm:$0xff]   ;;  %v7009_v57 = vld [vmem:[%s6942_s20 + $0x20] sm:$0xff]  }
  0x17   : > { %v433_v21 = vshrl.u32 %v6952_v14, 16  ;;  %v435_v22 = vshll.u32 %v6952_v14, 16  ;;  %v442_v29 = vrot.slane %v440_v23, 1  ;;  %v448_v35 = vshll.u32 %v6977_v25, 16  ;;  %v7006_v55 = vld [vmem:[%s6942_s20 + $0x18] sm:$0xff]   ;;  %v7013_v60 = vld [vmem:[%s6942_s20 + $0x20] sm:$0xff]  }
  0x18   : > { %5797 = vmatpush3.bf16.msra.mxu1 %v6666_v4  ;;  %v1887_v30 = vshrl.u32 %v6974_v24, 16  ;;  %v1890_v31 = vshll.u32 %v6974_v24, 16  ;;  %v1897_v33 = vrot.slane %v1895_v26, 1  ;;  %v1900_v34 = vrot.slane %v1898_v27, 2  ;;  %v7017_v62 = vld [vmem:[%s6942_s20 + $0x28] sm:$0xff]  }
  0x19   : > { %6005 = vmatpush3.bf16.msra.mxu0 %v6667_v5  ;;  %5798 = vmatprep.subr.bf16.mxu1 %v6668_v6  ;;  %v437_v28 = vrot.slane %v435_v22, 1  ;;  %v1904_v45 = vshrl.u32 %v6992_v41, 16  ;;  %v1907_v46 = vshll.u32 %v6992_v41, 16  ;;  %v450_v47 = vrot.slane %v448_v35, 1  ;;  %v7037_v22 = vld [vmem:[%s6942_s20 + $0x28] sm:$0xff]  }
  0x1a   : > { %6006 = vmatprep.subr.bf16.mxu0 %v6669_v7  ;;  %v1889_v38 = vrot.slane %v1887_v30, 1  ;;  %v1892_v39 = vrot.slane %v1890_v31, 2  ;;  %v1901_v42 = vor.u32 %v1900_v34, %v1897_v33  ;;  %v452_v49 = vshrl.u32 %v6977_v25, 16  ;;  %v7046_v31 = vld [vmem:[%s6942_s20 + $0x30] sm:$0xff]   ;;  %v7050_v33 = vld [vmem:[%s6942_s20 + $0x38] sm:$0xff]  }
  0x1b   : > { %v438_v37 = vor.u32 %v437_v28, %v433_v21  ;;  %v446_v51 = vor.u32 %v444_v40, %v442_v29  ;;  %v1906_v52 = vrot.slane %v1904_v45, 1  ;;  %v1909_v53 = vrot.slane %v1907_v46, 2  ;;  %v6691_v21 = vld [vmem:[%s9422_s1 + $0x150] sm:$0xff]  }
  0x1c   : > { %5799 = vmatpush3.bf16.msra.mxu1 %v6668_v6  ;;  %v1893_v44 = vor.u32 %v1892_v39, %v1889_v38  ;;  %v454_v58 = vor.u32 %v452_v49, %v450_v47  ;;  %v456_v59 = vshll.u32 %v7006_v55, 16  ;;  %v460_v61 = vshrl.u32 %v7006_v55, 16  ;;  %v7042_v28 = vld [vmem:[%s6942_s20 + $0x30] sm:$0xff]  }
  0x1d   : > { %6007 = vmatpush3.bf16.msra.mxu0 %v6669_v7  ;;  %5800 = vmatprep.subr.bf16.mxu1 %v6670_v8  ;;  %v443_v43 = vsel %vm431_vm0, %v438_v37, %v442_v29  ;;  %v1910_v56 = vor.u32 %v1909_v53, %v1906_v52  ;;  %v451_v63 = vsel %vm431_vm0, %v446_v51, %v450_v47  ;;  %v1913_v1 = vshrl.u32 %v7009_v57, 16  ;;  %v6686_v7 = vld [vmem:[%s9422_s1 + $0x148] sm:$0xff]   ;;  %v6699_v46 = vld [vmem:[%s9422_s1 + $0x10] sm:$0xff]   ;;  %v6698_v53 = vld [vmem:[%s9422_s1 + $0x160] sm:$0xff]  }
  0x1e   : > { %6008 = vmatprep.subr.bf16.mxu0 %v6671_v9  ;;  %5808 = vmatprep.mubr.bf16.mxu1 %v443_v43  ;;  %v1902_v50 = vsel %vm1885_vm1, %v1893_v44, %v1901_v42  ;;  %v1916_v2 = vshll.u32 %v7009_v57, 16  ;;  %v458_v3 = vrot.slane %v456_v59, 1  ;;  %v464_v4 = vshll.u32 %v7013_v60, 16  ;;  %v6693_v43 = vld [vmem:[%s9422_s1 + $0x158] sm:$0xff]  }
  0x1f   : > { %6016 = vmatprep.mubr.bf16.mxu0 %v1902_v50  ;;  %v1911_v0 = vsel %vm1885_vm1, %v1901_v42, %v1910_v56  ;;  %v1922_v5 = vshrl.u32 %v7017_v62, 16  ;;  %v1925_v6 = vshll.u32 %v7017_v62, 16  ;;  %v468_v23 = vshrl.u32 %v7013_v60, 16 }
  0x20   : > { %5801 = vmatpush3.bf16.msra.mxu1 %v6670_v8  ;;  %v1915_v8 = vrot.slane %v1913_v1, 1  ;;  %v466_v18 = vrot.slane %v464_v4, 1  ;;  %v472_v30 = vshll.u32 %v7037_v22, 16  ;;  %v1934_v37 = vshll.u32 %v7042_v28, 16  ;;  %v7079_v1 = vld [vmem:[%s6942_s20 + $0x40] sm:$0xff]  }
  0x21   : > { %6009 = vmatpush3.bf16.msra.mxu0 %v6671_v9  ;;  %5802 = vmatprep.subr.bf16.mxu1 %v6672_v10  ;;  %v1918_v9 = vrot.slane %v1916_v2, 2  ;;  %v1924_v12 = vrot.slane %v1922_v5, 1  ;;  %v480_v39 = vshll.u32 %v7046_v31, 16  ;;  %v1940_v40 = vshrl.u32 %v7050_v33, 16 }
  0x22   : > { %6010 = vmatprep.subr.bf16.mxu0 %v6673_v11  ;;  %v470_v29 = vor.u32 %v468_v23, %v466_v18  ;;  %v474_v38 = vrot.slane %v472_v30, 1  ;;  %v1943_v42 = vshll.u32 %v7050_v33, 16  ;;  %v1936_v45 = vrot.slane %v1934_v37, 2  ;;  %v6706_v30 = vld [vmem:[%s9422_s1 + $0x18] sm:$0xff]   ;;  %v2335_v37 = vld [vmem:[%s6942_s20 + $0x8] sm:$0xc] }
  0x23   : > { %v1919_v13 = vor.u32 %v1918_v9, %v1915_v8  ;;  %v482_v51 = vrot.slane %v480_v39, 1  ;;  %v2357_v39 = vrot.slane %v6958_v16, 2 }
  0x24   : > { %5803 = vmatpush3.bf16.msra.mxu1 %v6672_v10  ;;  %v6692_v10 = vld [vmem:[%s9422_s1 + $0x8] sm:$0xff]   ;;  %v475_v47 = vsel %vm431_vm0, %v470_v29, %v474_v38  ;;  %v1945_v52 = vrot.slane %v1943_v42, 2  ;;  %v6705_v29 = vld [vmem:[%s9422_s1 + $0x170] sm:$0xff]  }
  0x25   : > { %6011 = vmatpush3.bf16.msra.mxu0 %v6673_v11  ;;  %5804 = vmatprep.subr.bf16.mxu1 %v6674_v17  ;;  %v459_v11 = vsel %vm431_vm0, %v454_v58, %v458_v3  ;;  %v1920_v26 = vsel %vm1885_vm1, %v1910_v56, %v1919_v13  ;;  %v484_v56 = vshrl.u32 %v7046_v31, 16 }
  0x26   : > { %6012 = vmatprep.subr.bf16.mxu0 %v6675_v20 }
  0x28   : > { %5805 = vmatpush3.bf16.msra.mxu1 %v6674_v17  ;;  %v462_v17 = vor.u32 %v460_v61, %v458_v3  ;;  %v7075_v61 = vld [vmem:[%s6942_s20 + $0x40] sm:$0xff]   ;;  %v6700_v3 = vld [vmem:[%s9422_s1 + $0x168] sm:$0xff]  }
  0x29   : > { %6013 = vmatpush3.bf16.msra.mxu0 %v6675_v20  ;;  %5806 = vmatprep.subr.bf16.mxu1 %v6676_v32  ;;  %v1927_v20 = vrot.slane %v1925_v6, 2  ;;  %v1949_v4 = vshrl.u32 %v7075_v61, 16  ;;  %v1952_v5 = vshll.u32 %v7075_v61, 16 }
  0x2a   : > { %6014 = vmatprep.subr.bf16.mxu0 %v6677_v36  ;;  %v467_v34 = vsel %vm431_vm0, %v462_v17, %v466_v18 }
  0x2b   : > { %v1928_v27 = vor.u32 %v1927_v20, %v1924_v12  ;;  %v1954_v12 = vrot.slane %v1952_v5, 2  ;;  %v2361_v5 = vrot.slane %v7009_v57, 2 }
  0x2c   : > { %5807 = vmatpush3.bf16.msra.mxu1 %v6676_v32  ;;  %v476_v32 = vshrl.u32 %v7037_v22, 16 }
  0x2d   : > { %6015 = vmatpush3.bf16.msra.mxu0 %v6677_v36  ;;  %5844 = vmatprep.subr.bf16.mxu1 %v6683_v48  ;;  %v1929_v35 = vsel %vm1885_vm1, %v1919_v13, %v1928_v27  ;;  %v1931_v36 = vshrl.u32 %v7042_v28, 16 }
  0x2e   : > { %6052 = vmatprep.subr.bf16.mxu0 %v6685_v54  ;;  %v478_v50 = vor.u32 %v476_v32, %v474_v38  ;;  %v5323_v38 = vcombine.low %v2335_v37, %v6965_v19  ;;  %v6722_v37 = vld [vmem:[%s9422_s1 + $0x190] sm:$0xff]  }
  0x2f   : > { %5809 = vmatmul.mubr.bf16.vlgmr.msra.gmra.mrb[0].mxu1 %v451_v63  ;;  %v1933_v44 = vrot.slane %v1931_v36, 1  ;;  %v486_v63 = vor.u32 %v484_v56, %v482_v51  ;;  %v500_v36 = vshrl.u32 %v7079_v1, 16 }
  0x30   : > { %6017 = vmatmul.mubr.bf16.vlgmr.msra.gmra.mrb[0].mxu0 %v1911_v0  ;;  %5845 = vmatpush3.bf16.msra.mxu1 %v6683_v48  ;;  %v1942_v48 = vrot.slane %v1940_v40, 1  ;;  %v483_v2 = vsel %vm431_vm0, %v478_v50, %v482_v51  ;;  %v7113_v40 = vld [vmem:[%s6942_s20 + $0x50] sm:$0xff]   ;;  %v2356_v19 = vrot.slane %v5323_v38, 2 }
  0x31   : > { %6053 = vmatpush3.bf16.msra.mxu0 %v6685_v54  ;;  %5812 = vmatprep.mubr.bf16.mxu1 %v459_v11  ;;  %v1937_v49 = vor.u32 %v1936_v45, %v1933_v44  ;;  %v7070_v54 = vld [vmem:[%s6942_s20 + $0x38] sm:$0xff]   ;;  %v1951_v11 = vrot.slane %v1949_v4, 1  ;;  %v516_v51 = vshrl.u32 %v7113_v40, 16 }
  0x32   : > { %6054 = vmatprep.subr.bf16.mxu0 %v6686_v7  ;;  %5846 = vmatprep.subr.bf16.mxu1 %v6692_v10  ;;  %v1946_v59 = vor.u32 %v1945_v52, %v1942_v48  ;;  %v488_v0 = vshll.u32 %v7070_v54, 16  ;;  %v492_v6 = vshrl.u32 %v7070_v54, 16  ;;  %v512_v48 = vshll.u32 %v7113_v40, 16 }
  0x33   : > { %6020 = vmatprep.mubr.bf16.mxu0 %v1920_v26  ;;  %v1938_v58 = vsel %vm1885_vm1, %v1928_v27, %v1937_v49 }
  0x34   : > { %5847 = vmatpush3.bf16.msra.mxu1 %v6692_v10  ;;  %v1947_v8 = vsel %vm1885_vm1, %v1937_v49, %v1946_v59  ;;  %v490_v9 = vrot.slane %v488_v0, 1  ;;  %v496_v10 = vshll.u32 %v7079_v1, 16  ;;  %v6707_v49 = vld [vmem:[%s9422_s1 + $0x178] sm:$0xff]   ;;  %v514_v56 = vrot.slane %v512_v48, 1 }
  0x35   : > { %6055 = vmatpush3.bf16.msra.mxu0 %v6686_v7  ;;  %5848 = vmatprep.subr.bf16.mxu1 %v6699_v46  ;;  %v7089_v7 = vld [vmem:[%s6942_s20 + $0x48] sm:$0xff]   ;;  %v2359_v0 = vrot.slane %v6992_v41, 2  ;;  %v6728_v48 = vld [vmem:[%s9422_s1 + $0x198] sm:$0xff]  }
  0x36   : > { %6056 = vmatprep.subr.bf16.mxu0 %v6691_v21  ;;  %v1958_v13 = vshrl.u32 %v7089_v7, 16  ;;  %v1961_v17 = vshll.u32 %v7089_v7, 16  ;;  %v491_v18 = vsel %vm431_vm0, %v486_v63, %v490_v9  ;;  %v498_v20 = vrot.slane %v496_v10, 1 }
  0x37   : > { %5813 = vmatmul.mubr.bf16.gmra.mrb[4].mxu1 %v467_v34  ;;  %v494_v23 = vor.u32 %v492_v6, %v490_v9  ;;  %v518_v4 = vor.u32 %v516_v51, %v514_v56  ;;  %v6714_v6 = vld [vmem:[%s9422_s1 + $0x180] sm:$0xff]   ;;  %v2360_v57 = vsel %vm2355_vm2, %v2357_v39, %v2359_v0 }
  0x38   : > { %6021 = vmatmul.mubr.bf16.gmra.mrb[4].mxu0 %v1929_v35  ;;  %5816 = vmatprep.mubr.bf16.mxu1 %v475_v47  ;;  %v1960_v26 = vrot.slane %v1958_v13, 1  ;;  %v1963_v27 = vrot.slane %v1961_v17, 2  ;;  %v7106_v35 = vld [vmem:[%s6942_s20 + $0x48] sm:$0xff]   ;;  %v7122_v47 = vld [vmem:[%s6942_s20 + $0x58] sm:$0xff]   ;;  %v6719_v17 = vld [vmem:[%s9422_s1 + $0x30] sm:$0xff]  }
  0x39   : > { %6057 = vmatpush3.bf16.msra.mxu0 %v6691_v21  ;;  %5849 = vmatpush3.bf16.msra.mxu1 %v6699_v46  ;;  %v1955_v21 = vor.u32 %v1954_v12, %v1951_v11  ;;  %v499_v42 = vsel %vm431_vm0, %v494_v23, %v498_v20  ;;  %v504_v44 = vshll.u32 %v7106_v35, 16  ;;  %v508_v45 = vshrl.u32 %v7106_v35, 16  ;;  %v6711_v46 = vld [vmem:[%s9422_s1 + $0x20] sm:$0xff]   ;;  %v7163_v23 = vld [vmem:[%s6942_s20 + $0x70] sm:$0xff]  }
  0x3a   : > { %6058 = vmatprep.subr.bf16.mxu0 %v6693_v43  ;;  %6024 = vmatprep.mubr.bf16.mxu0 %v1938_v58  ;;  %v7103_v34 = vor.u32 %v1963_v27, %v1960_v26  ;;  %v520_v52 = vshll.u32 %v7122_v47, 16  ;;  %v7134_v58 = vld [vmem:[%s6942_s20 + $0x60] sm:$0xff]   ;;  %v524_v10 = vshrl.u32 %v7122_v47, 16  ;;  %v2363_v27 = vrot.slane %v7017_v62, 2 }
  0x3b   : > { %v1956_v32 = vsel %vm1885_vm1, %v1946_v59, %v1955_v21  ;;  %5850 = vmatprep.subr.bf16.mxu1 %v6706_v30  ;;  %v506_v50 = vrot.slane %v504_v44, 1  ;;  %v528_v41 = vshll.u32 %v7134_v58, 16  ;;  %v532_v11 = vshrl.u32 %v7134_v58, 16 }
  0x3c   : > { %v1965_v16 = vsel %vm1885_vm1, %v1955_v21, %v7103_v34  ;;  %v544_v38 = vshll.u32 %v7163_v23, 16  ;;  %v548_v44 = vshrl.u32 %v7163_v23, 16 }
  0x3d   : > { %6059 = vmatpush3.bf16.msra.mxu0 %v6693_v43  ;;  %5851 = vmatpush3.bf16.msra.mxu1 %v6706_v30  ;;  %v502_v43 = vor.u32 %v500_v36, %v498_v20  ;;  %v510_v63 = vor.u32 %v508_v45, %v506_v50  ;;  %v6718_v20 = vld [vmem:[%s9422_s1 + $0x188] sm:$0xff]   ;;  %v530_v21 = vrot.slane %v528_v41, 1  ;;  %v2365_v36 = vrot.slane %v7042_v28, 2  ;;  %v6725_v41 = vld [vmem:[%s6942_s20 + $0x50] sm:$0xff]  }
  0x3e   : > { %6060 = vmatprep.subr.bf16.mxu0 %v6698_v53  ;;  %5852 = vmatprep.subr.bf16.mxu1 %v6711_v46 }
  0x3f   : > { %5817 = vmatmul.mubr.bf16.gmra.mrb[8].mxu1 %v483_v2  ;;  %v507_v59 = vsel %vm431_vm0, %v502_v43, %v506_v50  ;;  %v522_v2 = vrot.slane %v520_v52, 1  ;;  %v515_v9 = vsel %vm431_vm0, %v510_v63, %v514_v56  ;;  %v2364_v43 = vsel %vm2355_vm2, %v2361_v5, %v2363_v27 }
  0x40   : > { %6025 = vmatmul.mubr.bf16.gmra.mrb[8].mxu0 %v1947_v8  ;;  %5820 = vmatprep.mubr.bf16.mxu1 %v491_v18  ;;  %v7146_v8 = vld [vmem:[%s6942_s20 + $0x68] sm:$0xff]   ;;  %v2362_v18 = vsel %vm2355_vm2, %v2359_v0, %v2361_v5  ;;  %v2367_v50 = vrot.slane %v7050_v33, 2  ;;  %v2369_v56 = vrot.slane %v7075_v61, 2  ;;  %v6732_v61 = vld [vmem:[%s9422_s1 + $0x1a0] sm:$0xff]  }
  0x41   : > { %6061 = vmatpush3.bf16.msra.mxu0 %v6698_v53  ;;  %6028 = vmatprep.mubr.bf16.mxu0 %v1956_v32  ;;  %v2358_v53 = vsel %vm2355_vm2, %v2356_v19, %v2357_v39  ;;  %v523_v12 = vsel %vm431_vm0, %v518_v4, %v522_v2  ;;  %v536_v13 = vshll.u32 %v7146_v8, 16  ;;  %v526_v26 = vor.u32 %v524_v10, %v522_v2  ;;  %v7167_v32 = vld [vmem:[%s6942_s20 + $0x78] sm:$0xff]  }
  0x42   : > { %6062 = vmatprep.subr.bf16.mxu0 %v6700_v3  ;;  %5853 = vmatpush3.bf16.msra.mxu1 %v6711_v46  ;;  %v540_v62 = vshrl.u32 %v7146_v8, 16  ;;  %v552_v45 = vshll.u32 %v7167_v32, 16  ;;  %v2366_v46 = vsel %vm2355_vm2, %v2363_v27, %v2365_v36  ;;  %v546_v19 = vrot.slane %v544_v38, 1  ;;  %v6740_v27 = vld [vmem:[%s9422_s1 + $0x1b0] sm:$0xff]  }
  0x43   : > { %v538_v30 = vrot.slane %v536_v13, 1  ;;  %v531_v39 = vsel %vm431_vm0, %v526_v26, %v530_v21  ;;  %v556_v0 = vshrl.u32 %v7167_v32, 16  ;;  %v2368_v2 = vsel %vm2355_vm2, %v2365_v36, %v2367_v50 }
  0x44   : > { %v550_v51 = vor.u32 %v548_v44, %v546_v19  ;;  %v554_v52 = vrot.slane %v552_v45, 1  ;;  %v6731_v45 = vld [vmem:[%s6942_s20 + $0x68] sm:$0xff]  }
  0x45   : > { %6063 = vmatpush3.bf16.msra.mxu0 %v6700_v3  ;;  %v6715_v3 = vld [vmem:[%s9422_s1 + $0x28] sm:$0xff]  }
  0x46   : > { %6064 = vmatprep.subr.bf16.mxu0 %v6705_v29  ;;  %5854 = vmatprep.subr.bf16.mxu1 %v6715_v3 }
  0x47   : > { %5821 = vmatmul.mubr.bf16.gmra.mrb[12].mxu1 %v499_v42  ;;  %v6724_v42 = vld [vmem:[%s9422_s1 + $0x38] sm:$0xff]  }
  0x48   : > { %6029 = vmatmul.mubr.bf16.gmra.mrb[12].mxu0 %v1965_v16  ;;  %5824 = vmatprep.mubr.bf16.mxu1 %v507_v59  ;;  %v7185_v16 = vld [vmem:[%s6942_s20 + $0x80] sm:$0xff]  }
  0x49   : > { %6065 = vmatpush3.bf16.msra.mxu0 %v6705_v29  ;;  %6068 = vmatprep.mubr.bf16.mxu0 %v2358_v53  ;;  %v534_v29 = vor.u32 %v532_v11, %v530_v21  ;;  %v7192_v53 = vld [vmem:[%s6942_s20 + $0x88] sm:$0xff]   ;;  %v7198_v59 = vld [vmem:[%s9422_s1 + $0x80] sm:$0xff]   ;;  %v560_v63 = vshll.u32 %v7185_v16, 16  ;;  %v564_v4 = vshrl.u32 %v7185_v16, 16  ;;  %v558_v11 = vor.u32 %v556_v0, %v554_v52  ;;  %v6739_v0 = vld [vmem:[%s9422_s1 + $0x90] sm:$0xff]  }
  0x4a   : > { %6066 = vmatprep.subr.bf16.mxu0 %v6707_v49  ;;  %5855 = vmatpush3.bf16.msra.mxu1 %v6715_v3  ;;  %v555_v3 = vsel %vm431_vm0, %v550_v51, %v554_v52  ;;  %v568_v5 = vshll.u32 %v7192_v53, 16  ;;  %v6734_v51 = vld [vmem:[%s6942_s20 + $0x78] sm:$0xff]  }
  0x4b   : > { %5856 = vmatprep.subr.bf16.mxu1 %v6719_v17  ;;  %v539_v28 = vsel %vm431_vm0, %v534_v29, %v538_v30  ;;  %v562_v10 = vrot.slane %v560_v63, 1 }
  0x4d   : > { %6067 = vmatpush3.bf16.msra.mxu0 %v6707_v49  ;;  %v542_v49 = vor.u32 %v540_v62, %v538_v30  ;;  %v566_v13 = vor.u32 %v564_v4, %v562_v10  ;;  %v563_v21 = vsel %vm431_vm0, %v558_v11, %v562_v10  ;;  %v6744_v62 = vld [vmem:[%s9422_s1 + $0x1b8] sm:$0xff]   ;;  %v6748_v10 = vld [vmem:[%s9422_s1 + $0xa0] sm:$0xff]  }
  0x4e   : > { %6104 = vmatprep.subr.bf16.mxu0 %v6714_v6  ;;  %5857 = vmatpush3.bf16.msra.mxu1 %v6719_v17  ;;  %v570_v17 = vrot.slane %v568_v5, 1  ;;  %v6743_v4 = vld [vmem:[%s9422_s1 + $0x98] sm:$0xff]   ;;  %v2672_v5 = vld [vmem:[%s6942_s20 + $0x10] sm:$0xc] }
  0x4f   : > { %5825 = vmatmul.mubr.bf16.gmra.mrb[16].mxu1 %v515_v9  ;;  %5858 = vmatprep.subr.bf16.mxu1 %v6724_v42  ;;  %v547_v33 = vsel %vm431_vm0, %v542_v49, %v546_v19  ;;  %v7214_v9 = vld [vmem:[%s6942_s20 + $0x90] ss:$0 sps:$4 sm:$0x11]   ;;  %v2379_v49 = vrot.slane %v6731_v45, 2  ;;  %v6763_v45 = vld [vmem:[%s9422_s1 + $0x1d8] sm:$0xff]  }
  0x50   : > { %6069 = vmatmul.mubr.bf16.vlgmr.msra.gmra.mrb[0].mxu0 %v2360_v57  ;;  %5828 = vmatprep.mubr.bf16.mxu1 %v523_v12  ;;  %v6736_v57 = vld [vmem:[%s9422_s1 + $0x1a8] sm:$0xff]   ;;  %v2371_v12 = vrot.slane %v7089_v7, 2  ;;  %v576_v26 = vshll.u32 %v7214_v9, 16  ;;  %v571_v30 = vsel %vm431_vm0, %v566_v13, %v570_v17  ;;  %v6727_v7 = vld [vmem:[%s6942_s20 + $0x58] sm:$0xff]   ;;  %v6733_v19 = vld [vmem:[%s6942_s20 + $0x70] sm:$0xff]  }
  0x51   : > { %6072 = vmatprep.mubr.bf16.mxu0 %v2362_v18  ;;  %6105 = vmatpush3.bf16.msra.mxu0 %v6714_v6  ;;  %v2370_v6 = vsel %vm2355_vm2, %v2367_v50, %v2369_v56  ;;  %v2373_v18 = vrot.slane %v6725_v41, 2  ;;  %v2381_v50 = vrot.slane %v6733_v19, 2  ;;  %v6742_v11 = vld [vmem:[%s6942_s20 + $0x98] ss:$0 sps:$4 sm:$0x33]   ;;  %v6752_v13 = vld [vmem:[%s9422_s1 + $0xa8] sm:$0xff]  }
  0x52   : > { %6106 = vmatprep.subr.bf16.mxu0 %v6718_v20  ;;  %5859 = vmatpush3.bf16.msra.mxu1 %v6724_v42  ;;  %v2372_v29 = vsel %vm2355_vm2, %v2369_v56, %v2371_v12  ;;  %v2375_v42 = vrot.slane %v6727_v7, 2  ;;  %v6735_v56 = vld [vmem:[%s9422_s1 + $0x88] sm:$0xff]  }
  0x53   : > { %5896 = vmatprep.subr.bf16.mxu1 %v7198_v59  ;;  %v2374_v36 = vsel %vm2355_vm2, %v2371_v12, %v2373_v18  ;;  %v2382_v63 = vsel %vm2355_vm2, %v2379_v49, %v2381_v50 }
  0x54   : > { %v2376_v44 = vsel %vm2355_vm2, %v2373_v18, %v2375_v42 }
  0x55   : > { %6107 = vmatpush3.bf16.msra.mxu0 %v6718_v20  ;;  %v572_v20 = vshrl.u32 %v7192_v53, 16 }
  0x56   : > { %6108 = vmatprep.subr.bf16.mxu0 %v6722_v37 }
  0x57   : > { %5829 = vmatmul.mubr.bf16.gmra.mrb[20].mxu1 %v531_v39  ;;  %v574_v38 = vor.u32 %v572_v20, %v570_v17  ;;  %v578_v39 = vrot.slane %v576_v26, 1  ;;  %v2391_v17 = vrot.slane %v6742_v11, 2 }
  0x58   : > { %6073 = vmatmul.mubr.bf16.gmra.mrb[4].mxu0 %v2364_v43  ;;  %5832 = vmatprep.mubr.bf16.mxu1 %v539_v28 }
  0x59   : > { %6076 = vmatprep.mubr.bf16.mxu0 %v2366_v46  ;;  %6109 = vmatpush3.bf16.msra.mxu0 %v6722_v37  ;;  %v6729_v37 = vld [vmem:[%s6942_s20 + $0x60] sm:$0xff]   ;;  %v579_v28 = vsel %vm431_vm0, %v574_v38, %v578_v39  ;;  %v7316_v38 = vld [vmem:[%s6942_s20 + $0x30] sm:$0xff]   ;;  %v6755_v39 = vld [vmem:[%s9422_s1 + $0x1c8] sm:$0xff]  }
  0x5a   : > { %6110 = vmatprep.subr.bf16.mxu0 %v6728_v48  ;;  %v2377_v43 = vrot.slane %v6729_v37, 2 }
  0x5c   : > { %v2378_v46 = vsel %vm2355_vm2, %v2375_v42, %v2377_v43  ;;  %v2380_v52 = vsel %vm2355_vm2, %v2377_v43, %v2379_v49  ;;  %v6759_v43 = vld [vmem:[%s9422_s1 + $0x1d0] sm:$0xff]  }
  0x5d   : > { %6111 = vmatpush3.bf16.msra.mxu0 %v6728_v48  ;;  %v7242_v48 = vld [vmem:[%s9422_s1 + $0x1c0] sm:$0xff]  }
  0x5e   : > { %6112 = vmatprep.subr.bf16.mxu0 %v6732_v61 }
  0x5f   : > { %5833 = vmatmul.mubr.bf16.gmra.mrb[24].mxu1 %v547_v33  ;;  %v6737_v33 = vld [vmem:[%s6942_s20 + $0x80] sm:$0xff]  }
  0x60   : > { %6077 = vmatmul.mubr.bf16.gmra.mrb[8].mxu0 %v2368_v2  ;;  %5836 = vmatprep.mubr.bf16.mxu1 %v555_v3  ;;  %v6738_v2 = vld [vmem:[%s6942_s20 + $0x88] sm:$0xff]  }
  0x61   : > { %6080 = vmatprep.mubr.bf16.mxu0 %v2370_v6  ;;  %6113 = vmatpush3.bf16.msra.mxu0 %v6732_v61  ;;  %v2385_v61 = vrot.slane %v6737_v33, 2  ;;  %v7270_v6 = vld [vmem:[%s6942_s20 + $0x14] sm:$0xf] }
  0x62   : > { %6114 = vmatprep.subr.bf16.mxu0 %v6736_v57  ;;  %v6776_v33 = vld [vmem:[%s9422_s1 + $0x1f0] sm:$0xff]  }
  0x65   : > { %6115 = vmatpush3.bf16.msra.mxu0 %v6736_v57 }
  0x66   : > { %6116 = vmatprep.subr.bf16.mxu0 %v6740_v27 }
  0x67   : > { %5837 = vmatmul.mubr.bf16.gmra.mrb[28].mxu1 %v563_v21  ;;  %v6756_v21 = vld [vmem:[%s9422_s1 + $0xb0] sm:$0xff]  }
  0x68   : > { %6081 = vmatmul.mubr.bf16.gmra.mrb[12].mxu0 %v2372_v29  ;;  %5840 = vmatprep.mubr.bf16.mxu1 %v571_v30  ;;  %v6760_v29 = vld [vmem:[%s9422_s1 + $0xb8] sm:$0xff]  }
  0x69   : > { %6084 = vmatprep.mubr.bf16.mxu0 %v2374_v36  ;;  %6117 = vmatpush3.bf16.msra.mxu0 %v6740_v27  ;;  %v7296_v27 = vld [vmem:[%s6942_s20 + $0x20] sm:$0xff]  }
  0x6a   : > { %6118 = vmatprep.subr.bf16.mxu0 %v6744_v62  ;;  %v2821_v30 = vrot.slane %v7296_v27, 2  ;;  %v7312_v36 = vld [vmem:[%s9422_s1 + $0xc0] sm:$0xff]  }
  0x6d   : > { %6119 = vmatpush3.bf16.msra.mxu0 %v6744_v62  ;;  %v2825_v62 = vrot.slane %v7316_v38, 2 }
  0x6e   : > { %6156 = vmatprep.subr.bf16.mxu0 %v7242_v48 }
  0x6f   : > { %5841 = vmatmul.mubr.bf16.gmra.mrb[32].mxu1 %v579_v28 }
  0x70   : > { %6085 = vmatmul.mubr.bf16.gmra.mrb[16].mxu0 %v2376_v44  ;;  %5860 = vmatprep.mubr.bf16.mxu1 %v6952_v14  ;;  %v2383_v14 = vrot.slane %v6734_v51, 2  ;;  %v7336_v44 = vld [vmem:[%s6942_s20 + $0x40] sm:$0xff]   ;;  %v6772_v51 = vld [vmem:[%s9422_s1 + $0x1e8] sm:$0xff]  }
  0x71   : > { %6088 = vmatprep.mubr.bf16.mxu0 %v2378_v46  ;;  %v2829_v46 = vrot.slane %v7336_v44, 2 }
  0x72   : > { %v2384_v3 = vsel %vm2355_vm2, %v2381_v50, %v2383_v14  ;;  %v7354_v50 = vld [vmem:[%s6942_s20 + $0x50] sm:$0xff]  }
  0x77   : > { %5861 = vmatmul.mubr.bf16.vlgmr.msra.gmra.mrb[0].mxu1 %v6955_v15  ;;  %v2386_v15 = vsel %vm2355_vm2, %v2383_v14, %v2385_v61 }
  0x78   : > { %6089 = vmatmul.mubr.bf16.gmra.mrb[20].mxu0 %v2380_v52  ;;  %5897 = vmatpush3.bf16.msra.mxu1 %v7198_v59  ;;  %v2387_v59 = vrot.slane %v6738_v2, 2  ;;  %v2833_v52 = vrot.slane %v7354_v50, 2  ;;  %v7378_v2 = vld [vmem:[%s6942_s20 + $0x68] sm:$0xff]  }
  0x79   : > { %5864 = vmatprep.mubr.bf16.mxu1 %v6977_v25  ;;  %6092 = vmatprep.mubr.bf16.mxu0 %v2382_v63  ;;  %v6741_v25 = vld [vmem:[%s6942_s20 + $0x90] sm:$0xff]   ;;  %v1066_v63 = vld [vmem:[%s6942_s20] sm:$0xe] }
  0x7a   : > { %5898 = vmatprep.subr.bf16.mxu1 %v6735_v56  ;;  %v2389_v41 = vrot.slane %v6741_v25, 2  ;;  %v2388_v57 = vsel %vm2355_vm2, %v2385_v61, %v2387_v59  ;;  %v6797_v25 = vld [vmem:[%s6942_s20 + $0x8] sm:$0xff]  }
  0x7c   : > { %5899 = vmatpush3.bf16.msra.mxu1 %v6735_v56  ;;  %v2390_v12 = vsel %vm2355_vm2, %v2387_v59, %v2389_v41  ;;  %v2392_v26 = vsel %vm2355_vm2, %v2389_v41, %v2391_v17 }
  0x7d   : > { %5900 = vmatprep.subr.bf16.mxu1 %v6739_v0 }
  0x7f   : > { %5865 = vmatmul.mubr.bf16.gmra.mrb[4].mxu1 %v7006_v55  ;;  %v7278_v55 = vcombine.low %v2672_v5, %v7270_v6  ;;  %v2839_v5 = vrot.slane %v7378_v2, 2 }
  0x80   : > { %6093 = vmatmul.mubr.bf16.gmra.mrb[24].mxu0 %v2384_v3  ;;  %5868 = vmatprep.mubr.bf16.mxu1 %v7013_v60  ;;  %v7281_v60 = vld [vmem:[%s6942_s20 + $0x18] sm:$0xff]  }
  0x81   : > { %6096 = vmatprep.mubr.bf16.mxu0 %v2386_v15  ;;  %5901 = vmatpush3.bf16.msra.mxu1 %v6739_v0  ;;  %v2818_v18 = vrot.slane %v7278_v55, 2  ;;  %v2819_v20 = vrot.slane %v7281_v60, 2  ;;  %v6796_v0 = vld [vmem:[%s6942_s20 + $0x4] sm:$0xf]  ;;  %v6780_v3 = vld [vmem:[%s9422_s1 + $0x1f8] sm:$0xff]  }
  0x82   : > { %5902 = vmatprep.subr.bf16.mxu1 %v6743_v4  ;;  %v5278_v61 = vcombine.low %v1066_v63, %v6796_v0  ;;  %v3156_v0 = vshrl.u32 %v7278_v55, 16 }
  0x83   : > { %v2822_v37 = vsel %vm2355_vm2, %v2819_v20, %v2821_v30 }
  0x84   : > { %v1087_v59 = vrot.slane %v5278_v61, 1 }
  0x85   : > { %5903 = vmatpush3.bf16.msra.mxu1 %v6743_v4  ;;  %v1088_v4 = vrot.slane %v6797_v25, 1 }
  0x86   : > { %5904 = vmatprep.subr.bf16.mxu1 %v6748_v10 }
  0x87   : > { %5869 = vmatmul.mubr.bf16.gmra.mrb[8].mxu1 %v7037_v22  ;;  %v2820_v22 = vsel %vm2355_vm2, %v2818_v18, %v2819_v20  ;;  %v1089_v41 = vsel %vm1086_vm3, %v1087_v59, %v1088_v4  ;;  %v6799_v18 = vld [vmem:[%s6942_s20 + $0x18] sm:$0xff]   ;;  %v6781_v59 = vld [vmem:[%s9422_s1 + $0xe0] sm:$0xff]  }
  0x88   : > { %6097 = vmatmul.mubr.bf16.gmra.mrb[28].mxu0 %v2388_v57  ;;  %5872 = vmatprep.mubr.bf16.mxu1 %v7046_v31  ;;  %v7300_v31 = vld [vmem:[%s6942_s20 + $0x28] sm:$0xff]   ;;  %v7400_v57 = vld [vmem:[%s6942_s20 + $0x78] sm:$0xff]   ;;  %v1092_v20 = vrot.slane %v6799_v18, 1  ;;  %v6804_v18 = vld [vmem:[%s6942_s20 + $0x40] sm:$0xff]  }
  0x89   : > { %6100 = vmatprep.mubr.bf16.mxu0 %v2390_v12  ;;  %5905 = vmatpush3.bf16.msra.mxu1 %v6748_v10  ;;  %v2823_v7 = vrot.slane %v7300_v31, 2  ;;  %v7396_v10 = vld [vmem:[%s6942_s20 + $0x70] sm:$0xff]  }
  0x8a   : > { %5906 = vmatprep.subr.bf16.mxu1 %v6752_v13  ;;  %v6798_v12 = vld [vmem:[%s6942_s20 + $0x10] sm:$0xff]   ;;  %v2841_v17 = vrot.slane %v7396_v10, 2 }
  0x8b   : > { %v2826_v28 = vsel %vm2355_vm2, %v2823_v7, %v2825_v62 }
  0x8d   : > { %5907 = vmatpush3.bf16.msra.mxu1 %v6752_v13  ;;  %v1090_v13 = vrot.slane %v6798_v12, 1 }
  0x8e   : > { %5908 = vmatprep.subr.bf16.mxu1 %v6756_v21 }
  0x8f   : > { %5873 = vmatmul.mubr.bf16.gmra.mrb[12].mxu1 %v7070_v54  ;;  %v2824_v54 = vsel %vm2355_vm2, %v2821_v30, %v2823_v7  ;;  %v1093_v30 = vsel %vm1086_vm3, %v1090_v13, %v1092_v20 }
  0x90   : > { %6101 = vmatmul.mubr.bf16.gmra.mrb[32].mxu0 %v2392_v26  ;;  %5876 = vmatprep.mubr.bf16.mxu1 %v7079_v1  ;;  %v7320_v1 = vld [vmem:[%s6942_s20 + $0x38] sm:$0xff]   ;;  %v1091_v26 = vsel %vm1086_vm3, %v1088_v4, %v1090_v13 }
  0x91   : > { %6120 = vmatprep.mubr.bf16.mxu0 %v2820_v22  ;;  %5909 = vmatpush3.bf16.msra.mxu1 %v6756_v21  ;;  %v2827_v42 = vrot.slane %v7320_v1, 2  ;;  %v2843_v21 = vrot.slane %v7400_v57, 2  ;;  %v2842_v22 = vsel %vm2355_vm2, %v2839_v5, %v2841_v17 }
  0x92   : > { %5910 = vmatprep.subr.bf16.mxu1 %v6760_v29 }
  0x93   : > { %v2830_v49 = vsel %vm2355_vm2, %v2827_v42, %v2829_v46  ;;  %v2844_v7 = vsel %vm2355_vm2, %v2841_v17, %v2843_v21  ;;  %v6783_v17 = vld [vmem:[%s9422_s1 + $0xe8] sm:$0xff]  }
  0x95   : > { %5911 = vmatpush3.bf16.msra.mxu1 %v6760_v29  ;;  %v7411_v29 = vld [vmem:[%s6942_s20 + $0x80] sm:$0xff]  }
  0x96   : > { %5948 = vmatprep.subr.bf16.mxu1 %v7312_v36 }
  0x97   : > { %5877 = vmatmul.mubr.bf16.gmra.mrb[16].mxu1 %v7106_v35  ;;  %v7339_v35 = vld [vmem:[%s6942_s20 + $0x48] sm:$0xff]  }
  0x98   : > { %6121 = vmatmul.mubr.bf16.vlgmr.msra.gmra.mrb[0].mxu0 %v2822_v37  ;;  %5880 = vmatprep.mubr.bf16.mxu1 %v7113_v40  ;;  %v2828_v40 = vsel %vm2355_vm2, %v2825_v62, %v2827_v42  ;;  %v2831_v19 = vrot.slane %v7339_v35, 2  ;;  %v6771_v37 = vld [vmem:[%s9422_s1 + $0xc8] sm:$0xff]   ;;  %v2845_v42 = vrot.slane %v7411_v29, 2 }
  0x99   : > { %6124 = vmatprep.mubr.bf16.mxu0 %v2824_v54  ;;  %6157 = vmatpush3.bf16.msra.mxu0 %v7242_v48  ;;  %v6768_v48 = vld [vmem:[%s9422_s1 + $0x1e0] sm:$0xff]   ;;  %v7419_v54 = vld [vmem:[%s6942_s20 + $0x88] sm:$0xff]  }
  0x9a   : > { %6158 = vmatprep.subr.bf16.mxu0 %v6755_v39  ;;  %v2834_v14 = vsel %vm2355_vm2, %v2831_v19, %v2833_v52 }
  0x9d   : > { %6159 = vmatpush3.bf16.msra.mxu0 %v6755_v39  ;;  %v6800_v39 = vld [vmem:[%s6942_s20 + $0x20] sm:$0xff]  }
  0x9e   : > { %6160 = vmatprep.subr.bf16.mxu0 %v6759_v43  ;;  %v1094_v62 = vrot.slane %v6800_v39, 1 }
  0x9f   : > { %5881 = vmatmul.mubr.bf16.gmra.mrb[20].mxu1 %v7122_v47  ;;  %v2832_v47 = vsel %vm2355_vm2, %v2829_v46, %v2831_v19 }
  0xa0   : > { %6125 = vmatmul.mubr.bf16.gmra.mrb[4].mxu0 %v2826_v28  ;;  %5884 = vmatprep.mubr.bf16.mxu1 %v7134_v58  ;;  %v7358_v58 = vld [vmem:[%s6942_s20 + $0x58] sm:$0xff]   ;;  %v1095_v46 = vsel %vm1086_vm3, %v1092_v20, %v1094_v62  ;;  %v1102_v20 = vrot.slane %v6804_v18, 1  ;;  %v6809_v18 = vld [vmem:[%s6942_s20 + $0x60] sm:$0xff]  }
  0xa1   : > { %6128 = vmatprep.mubr.bf16.mxu0 %v2828_v40  ;;  %6161 = vmatpush3.bf16.msra.mxu0 %v6759_v43  ;;  %v2835_v56 = vrot.slane %v7358_v58, 2  ;;  %v6801_v43 = vld [vmem:[%s6942_s20 + $0x28] sm:$0xff]   ;;  %v6775_v40 = vld [vmem:[%s9422_s1 + $0xd0] sm:$0xff]  }
  0xa2   : > { %6162 = vmatprep.subr.bf16.mxu0 %v6763_v45  ;;  %v1096_v28 = vrot.slane %v6801_v43, 1  ;;  %v6785_v43 = vld [vmem:[%s9422_s1 + $0xf0] sm:$0xff]  }
  0xa4   : > { %v1097_v19 = vsel %vm1086_vm3, %v1094_v62, %v1096_v28  ;;  %v3182_v62 = vshrl.u32 %v7300_v31, 16 }
  0xa5   : > { %6163 = vmatpush3.bf16.msra.mxu0 %v6763_v45  ;;  %v2847_v45 = vrot.slane %v7419_v54, 2 }
  0xa6   : > { %6164 = vmatprep.subr.bf16.mxu0 %v6768_v48 }
  0xa7   : > { %5885 = vmatmul.mubr.bf16.gmra.mrb[24].mxu1 %v7146_v8  ;;  %v7373_v8 = vld [vmem:[%s6942_s20 + $0x60] sm:$0xff]  }
  0xa8   : > { %6129 = vmatmul.mubr.bf16.gmra.mrb[8].mxu0 %v2830_v49  ;;  %5888 = vmatprep.mubr.bf16.mxu1 %v7163_v23  ;;  %v2836_v23 = vsel %vm2355_vm2, %v2833_v52, %v2835_v56  ;;  %v2837_v15 = vrot.slane %v7373_v8, 2  ;;  %v2848_v49 = vsel %vm2355_vm2, %v2845_v42, %v2847_v45  ;;  %v6802_v52 = vld [vmem:[%s6942_s20 + $0x30] sm:$0xff]  }
  0xa9   : > { %6132 = vmatprep.mubr.bf16.mxu0 %v2832_v47  ;;  %6165 = vmatpush3.bf16.msra.mxu0 %v6768_v48  ;;  %v7433_v48 = vld [vmem:[%s6942_s20 + $0x90] sm:$0xff]   ;;  %v7437_v47 = vld [vmem:[%s6942_s20 + $0x98] sm:$0xff]  }
  0xaa   : > { %6166 = vmatprep.subr.bf16.mxu0 %v6772_v51  ;;  %v2840_v11 = vsel %vm2355_vm2, %v2837_v15, %v2839_v5  ;;  %v2849_v63 = vrot.slane %v7433_v48, 2  ;;  %v2851_v61 = vrot.slane %v7437_v47, 2 }
  0xac   : > { %v2850_v4 = vsel %vm2355_vm2, %v2847_v45, %v2849_v63 }
  0xad   : > { %6167 = vmatpush3.bf16.msra.mxu0 %v6772_v51  ;;  %v6779_v51 = vld [vmem:[%s9422_s1 + $0xd8] sm:$0xff]  }
  0xae   : > { %6168 = vmatprep.subr.bf16.mxu0 %v6776_v33 }
  0xaf   : > { %5889 = vmatmul.mubr.bf16.gmra.mrb[28].mxu1 %v7167_v32  ;;  %v7391_v32 = vld [vmem:[%s9422_s1 + $0x200] sm:$0xff]  }
  0xb0   : > { %6133 = vmatmul.mubr.bf16.gmra.mrb[12].mxu0 %v2834_v14  ;;  %5892 = vmatprep.mubr.bf16.mxu1 %v7185_v16  ;;  %v2838_v16 = vsel %vm2355_vm2, %v2835_v56, %v2837_v15  ;;  %v1098_v56 = vrot.slane %v6802_v52, 1  ;;  %v3167_v15 = vshll.u32 %v7281_v60, 16  ;;  %v6787_v52 = vld [vmem:[%s9422_s1 + $0xf8] sm:$0xff]  }
  0xb1   : > { %6136 = vmatprep.mubr.bf16.mxu0 %v2836_v23  ;;  %6169 = vmatpush3.bf16.msra.mxu0 %v6776_v33  ;;  %v6803_v33 = vld [vmem:[%s6942_s20 + $0x38] sm:$0xff]   ;;  %v3159_v23 = vshll.u32 %v7278_v55, 16  ;;  %v2852_v55 = vsel %vm2355_vm2, %v2849_v63, %v2851_v61 }
  0xb2   : > { %6170 = vmatprep.subr.bf16.mxu0 %v6780_v3  ;;  %v1100_v14 = vrot.slane %v6803_v33, 1  ;;  %v1099_v25 = vsel %vm1086_vm3, %v1096_v28, %v1098_v56  ;;  %v3169_v13 = vrot.slane %v3167_v15, 3  ;;  %v3200_v15 = vshrl.u32 %v7320_v1, 16 }
  0xb4   : > { %v1101_v5 = vsel %vm1086_vm3, %v1098_v56, %v1100_v14  ;;  %v1103_v28 = vsel %vm1086_vm3, %v1100_v14, %v1102_v20  ;;  %v6806_v56 = vld [vmem:[%s6942_s20 + $0x50] sm:$0xff]   ;;  %v6807_v14 = vld [vmem:[%s6942_s20 + $0x58] sm:$0xff]  }
  0xb5   : > { %6171 = vmatpush3.bf16.msra.mxu0 %v6780_v3  ;;  %v3164_v3 = vshrl.u32 %v7281_v60, 16  ;;  %v1106_v63 = vrot.slane %v6806_v56, 1  ;;  %v6788_v56 = vld [vmem:[%s9422_s1 + $0x218] sm:$0xff]  }
  0xb6   : > { %6208 = vmatprep.subr.bf16.mxu0 %v7391_v32 }
  0xb7   : > { %5893 = vmatmul.mubr.bf16.gmra.mrb[32].mxu1 %v7192_v53  ;;  %v3166_v12 = vrot.slane %v3164_v3, 2 }
  0xb8   : > { %6137 = vmatmul.mubr.bf16.gmra.mrb[16].mxu0 %v2838_v16  ;;  %5912 = vmatprep.mubr.bf16.mxu1 %v1089_v41  ;;  %v6778_v16 = vld [vmem:[%s6942_s20 + $0xa0] ss:$0 sps:$4 sm:$0x33]   ;;  %v3158_v41 = vrot.slane %v3156_v0, 2  ;;  %v1108_v0 = vrot.slane %v6807_v14, 1 }
  0xb9   : > { %6140 = vmatprep.mubr.bf16.mxu0 %v2840_v11  ;;  %v3161_v11 = vrot.slane %v3159_v23, 3  ;;  %v3170_v39 = vor.u32 %v3169_v13, %v3166_v12  ;;  %v3194_v23 = vshll.u32 %v7316_v38, 16  ;;  %v6784_v13 = vld [vmem:[%s9422_s1 + $0x208] sm:$0xff]  }
  0xbf   : > { %5913 = vmatmul.mubr.bf16.vlgmr.msra.gmra.mrb[0].mxu1 %v1091_v26  ;;  %v6805_v26 = vld [vmem:[%s6942_s20 + $0x48] sm:$0xff]  }
  0xc0   : > { %6141 = vmatmul.mubr.bf16.gmra.mrb[20].mxu0 %v2842_v22  ;;  %5949 = vmatpush3.bf16.msra.mxu1 %v7312_v36  ;;  %v2846_v36 = vsel %vm2355_vm2, %v2843_v21, %v2845_v42  ;;  %v2853_v21 = vrot.slane %v6778_v16, 2  ;;  %v1104_v22 = vrot.slane %v6805_v26, 1  ;;  %v3185_v42 = vshll.u32 %v7300_v31, 16 }
  0xc1   : > { %5916 = vmatprep.mubr.bf16.mxu1 %v1093_v30  ;;  %6144 = vmatprep.mubr.bf16.mxu0 %v2844_v7  ;;  %v3173_v30 = vshrl.u32 %v7296_v27, 16  ;;  %v3176_v7 = vshll.u32 %v7296_v27, 16 }
  0xc2   : > { %5950 = vmatprep.subr.bf16.mxu1 %v6771_v37  ;;  %v1105_v45 = vsel %vm1086_vm3, %v1102_v20, %v1104_v22  ;;  %v1110_v20 = vrot.slane %v6809_v18, 1 }
  0xc4   : > { %5951 = vmatpush3.bf16.msra.mxu1 %v6771_v37  ;;  %v3162_v37 = vor.u32 %v3161_v11, %v3158_v41  ;;  %v3196_v41 = vrot.slane %v3194_v23, 3  ;;  %v3202_v11 = vrot.slane %v3200_v15, 2  ;;  %v3230_v15 = vshll.u32 %v7354_v50, 16 }
  0xc5   : > { %5952 = vmatprep.subr.bf16.mxu1 %v6775_v40 }
  0xc7   : > { %5917 = vmatmul.mubr.bf16.gmra.mrb[4].mxu1 %v1095_v46  ;;  %v3175_v46 = vrot.slane %v3173_v30, 2  ;;  %v3209_v30 = vshrl.u32 %v7336_v44, 16 }
  0xc8   : > { %6145 = vmatmul.mubr.bf16.gmra.mrb[24].mxu0 %v2846_v36  ;;  %5920 = vmatprep.mubr.bf16.mxu1 %v1097_v19  ;;  %v3178_v36 = vrot.slane %v3176_v7, 3  ;;  %v3171_v19 = vsel %vm3154_vm4, %v3162_v37, %v3170_v39  ;;  %v3212_v7 = vshll.u32 %v7336_v44, 16 }
  0xc9   : > { %6148 = vmatprep.mubr.bf16.mxu0 %v2848_v49  ;;  %5953 = vmatpush3.bf16.msra.mxu1 %v6775_v40  ;;  %v2854_v40 = vsel %vm2355_vm2, %v2851_v61, %v2853_v21  ;;  %v3184_v49 = vrot.slane %v3182_v62, 2  ;;  %v3191_v61 = vshrl.u32 %v7316_v38, 16  ;;  %v6810_v21 = vld [vmem:[%s6942_s20 + $0x68] sm:$0xff]   ;;  %v3221_v62 = vshll.u32 %v7339_v35, 16 }
  0xca   : > { %5954 = vmatprep.subr.bf16.mxu1 %v6779_v51  ;;  %v3179_v33 = vor.u32 %v3178_v36, %v3175_v46  ;;  %v1112_v26 = vrot.slane %v6810_v21, 1  ;;  %v3211_v46 = vrot.slane %v3209_v30, 2  ;;  %v3214_v36 = vrot.slane %v3212_v7, 3  ;;  %v6790_v21 = vld [vmem:[%s9422_s1 + $0x228] sm:$0xff]  }
  0xcb   : > { %v3193_v16 = vrot.slane %v3191_v61, 2  ;;  %v6812_v61 = vld [vmem:[%s6942_s20 + $0x78] sm:$0xff]   ;;  %v1120_v7 = vrot.slane %v7192_v53, 1 }
  0xcc   : > { %v1116_v23 = vrot.slane %v6812_v61, 1  ;;  %v6814_v61 = vld [vmem:[%s6942_s20 + $0x10] sm:$0xff]  }
  0xcd   : > { %5955 = vmatpush3.bf16.msra.mxu1 %v6779_v51  ;;  %v3187_v51 = vrot.slane %v3185_v42, 3  ;;  %v6786_v42 = vld [vmem:[%s9422_s1 + $0x210] sm:$0xff]  }
  0xce   : > { %5956 = vmatprep.subr.bf16.mxu1 %v6781_v59 }
  0xcf   : > { %5921 = vmatmul.mubr.bf16.gmra.mrb[8].mxu1 %v1099_v25  ;;  %v3188_v3 = vor.u32 %v3187_v51, %v3184_v49  ;;  %v1107_v25 = vsel %vm1086_vm3, %v1104_v22, %v1106_v63  ;;  %v3197_v22 = vor.u32 %v3196_v41, %v3193_v16 }
  0xd0   : > { %6149 = vmatmul.mubr.bf16.gmra.mrb[28].mxu0 %v2850_v4  ;;  %5924 = vmatprep.mubr.bf16.mxu1 %v1101_v5  ;;  %v3180_v4 = vsel %vm3154_vm4, %v3170_v39, %v3179_v33  ;;  %v1109_v5 = vsel %vm1086_vm3, %v1106_v63, %v1108_v0  ;;  %v3218_v39 = vshrl.u32 %v7339_v35, 16 }
  0xd1   : > { %6152 = vmatprep.mubr.bf16.mxu0 %v2852_v55  ;;  %5957 = vmatpush3.bf16.msra.mxu1 %v6781_v59  ;;  %v3203_v59 = vshll.u32 %v7320_v1, 16  ;;  %v3189_v55 = vsel %vm3154_vm4, %v3179_v33, %v3188_v3  ;;  %v6811_v33 = vld [vmem:[%s6942_s20 + $0x70] sm:$0xff]  }
  0xd2   : > { %5958 = vmatprep.subr.bf16.mxu1 %v6783_v17  ;;  %v3220_v51 = vrot.slane %v3218_v39, 2  ;;  %v1114_v14 = vrot.slane %v6811_v33, 1  ;;  %v3248_v39 = vshll.u32 %v7373_v8, 16  ;;  %v1122_v33 = vrot.slane %v7214_v9, 1 }
  0xd3   : > { %v3205_v12 = vrot.slane %v3203_v59, 3 }
  0xd4   : > { %v1115_v16 = vsel %vm1086_vm3, %v1112_v26, %v1114_v14  ;;  %v1123_v9 = vsel %vm1086_vm3, %v1120_v7, %v1122_v33  ;;  %v3299_v33 = vshrl.u32 %v7433_v48, 16 }
  0xd5   : > { %5959 = vmatpush3.bf16.msra.mxu1 %v6783_v17  ;;  %v7493_v17 = vld [vmem:[%s9422_s1 + $0x100] sm:$0xff]   ;;  %v3206_v37 = vor.u32 %v3205_v12, %v3202_v11  ;;  %v3232_v12 = vrot.slane %v3230_v15, 3  ;;  %v3266_v15 = vshll.u32 %v7396_v10, 16 }
  0xd6   : > { %5960 = vmatprep.subr.bf16.mxu1 %v6785_v43 }
  0xd7   : > { %5925 = vmatmul.mubr.bf16.gmra.mrb[12].mxu1 %v1103_v28  ;;  %v3658_v28 = vrot.slane %v7437_v47, 3  ;;  %v3207_v49 = vsel %vm3154_vm4, %v3197_v22, %v3206_v37 }
  0xd8   : > { %6153 = vmatmul.mubr.bf16.gmra.mrb[32].mxu0 %v2854_v40  ;;  %5928 = vmatprep.mubr.bf16.mxu1 %v1105_v45  ;;  %v1113_v40 = vsel %vm1086_vm3, %v1110_v20, %v1112_v26  ;;  %v3198_v45 = vsel %vm3154_vm4, %v3188_v3, %v3197_v22  ;;  %v3227_v3 = vshrl.u32 %v7354_v50, 16  ;;  %v6813_v26 = vld [vmem:[%s6942_s20 + $0x80] sm:$0xff]  }
  0xd9   : > { %6172 = vmatprep.mubr.bf16.mxu0 %v3171_v19  ;;  %5961 = vmatpush3.bf16.msra.mxu1 %v6785_v43  ;;  %v7507_v43 = vld [vmem:[%s6942_s20 + $0xa0] ss:$0 sps:$4 sm:$0x77]   ;;  %v1118_v22 = vrot.slane %v6813_v26, 1  ;;  %v3284_v26 = vshll.u32 %v7411_v29, 16 }
  0xda   : > { %5962 = vmatprep.subr.bf16.mxu1 %v6787_v52  ;;  %v3660_v19 = vrot.slane %v7507_v43, 3  ;;  %v3229_v11 = vrot.slane %v3227_v3, 2  ;;  %v3263_v3 = vshrl.u32 %v7396_v10, 16 }
  0xdb   : > { %v1121_v53 = vsel %vm1086_vm3, %v1118_v22, %v1120_v7 }
  0xdc   : > { %v7521_v63 = vsel %vm3624_vm5, %v3658_v28, %v3660_v19  ;;  %v3233_v30 = vor.u32 %v3232_v12, %v3229_v11  ;;  %v3250_v19 = vrot.slane %v3248_v39, 3  ;;  %v3293_v39 = vshll.u32 %v7419_v54, 16 }
  0xdd   : > { %5963 = vmatpush3.bf16.msra.mxu1 %v6787_v52  ;;  %v3223_v52 = vrot.slane %v3221_v62, 3 }
  0xde   : > { %6260 = vmatprep.subr.bf16.mxu1 %v7493_v17 }
  0xdf   : > { %5929 = vmatmul.mubr.bf16.gmra.mrb[16].mxu1 %v1107_v25  ;;  %v3224_v59 = vor.u32 %v3223_v52, %v3220_v51  ;;  %v3236_v25 = vshrl.u32 %v7358_v58, 16 }
  0xe0   : > { %6173 = vmatmul.mubr.bf16.vlgmr.msra.gmra.mrb[0].mxu0 %v3180_v4  ;;  %5932 = vmatprep.mubr.bf16.mxu1 %v1109_v5  ;;  %v3239_v4 = vshll.u32 %v7358_v58, 16  ;;  %v6789_v5 = vld [vmem:[%s9422_s1 + $0x220] sm:$0xff]  }
  0xe1   : > { %6176 = vmatprep.mubr.bf16.mxu0 %v3189_v55  ;;  %6209 = vmatpush3.bf16.msra.mxu0 %v7391_v32  ;;  %v1111_v32 = vsel %vm1086_vm3, %v1108_v0, %v1110_v20  ;;  %v3215_v0 = vor.u32 %v3214_v36, %v3211_v46  ;;  %v1117_v55 = vsel %vm1086_vm3, %v1114_v14, %v1116_v23  ;;  %v3238_v18 = vrot.slane %v3236_v25, 2 }
  0xe2   : > { %6210 = vmatprep.subr.bf16.mxu0 %v6784_v13  ;;  %v3241_v20 = vrot.slane %v3239_v4, 3  ;;  %v3234_v46 = vsel %vm3154_vm4, %v3224_v59, %v3233_v30  ;;  %v1549_v14 = vrot.slane %v6974_v24, 1  ;;  %v3272_v25 = vshrl.u32 %v7400_v57, 16 }
  0xe3   : > { %v3216_v41 = vsel %vm3154_vm4, %v3206_v37, %v3215_v0  ;;  %v3245_v37 = vshrl.u32 %v7373_v8, 16  ;;  %v3275_v4 = vshll.u32 %v7400_v57, 16 }
  0xe4   : > { %v3242_v62 = vor.u32 %v3241_v20, %v3238_v18  ;;  %v3274_v11 = vrot.slane %v3272_v25, 2  ;;  %v3301_v25 = vrot.slane %v3299_v33, 2 }
  0xe5   : > { %6211 = vmatpush3.bf16.msra.mxu0 %v6784_v13  ;;  %v3225_v13 = vsel %vm3154_vm4, %v3215_v0, %v3224_v59  ;;  %v3247_v36 = vrot.slane %v3245_v37, 2  ;;  %v3277_v12 = vrot.slane %v3275_v4, 3  ;;  %v3290_v37 = vshrl.u32 %v7419_v54, 16 }
  0xe6   : > { %6212 = vmatprep.subr.bf16.mxu0 %v6786_v42 }
  0xe7   : > { %5933 = vmatmul.mubr.bf16.gmra.mrb[20].mxu1 %v1111_v32  ;;  %v3257_v32 = vshll.u32 %v7378_v2, 16  ;;  %v3251_v0 = vor.u32 %v3250_v19, %v3247_v36  ;;  %v3278_v7 = vor.u32 %v3277_v12, %v3274_v11  ;;  %v3295_v36 = vrot.slane %v3293_v39, 3  ;;  %v6817_v19 = vld [vmem:[%s6942_s20 + $0x28] sm:$0xff]   ;;  %v6822_v12 = vld [vmem:[%s6942_s20 + $0x40] sm:$0xff]  }
  0xe8   : > { %6177 = vmatmul.mubr.bf16.gmra.mrb[4].mxu0 %v3198_v45  ;;  %5936 = vmatprep.mubr.bf16.mxu1 %v1113_v40  ;;  %v6791_v40 = vld [vmem:[%s9422_s1 + $0x230] sm:$0xff]   ;;  %v1119_v45 = vsel %vm1086_vm3, %v1116_v23, %v1118_v22  ;;  %v1550_v23 = vrot.slane %v6814_v61, 1  ;;  %v6816_v22 = vld [vmem:[%s6942_s20 + $0x20] sm:$0xff]  }
  0xe9   : > { %6180 = vmatprep.mubr.bf16.mxu0 %v3207_v49  ;;  %6213 = vmatpush3.bf16.msra.mxu0 %v6786_v42  ;;  %v3254_v42 = vshrl.u32 %v7378_v2, 16  ;;  %v3243_v49 = vsel %vm3154_vm4, %v3233_v30, %v3242_v62  ;;  %v3259_v52 = vrot.slane %v3257_v32, 3  ;;  %v3252_v24 = vsel %vm3154_vm4, %v3242_v62, %v3251_v0 }
  0xea   : > { %6214 = vmatprep.subr.bf16.mxu0 %v6788_v56  ;;  %v1554_v30 = vrot.slane %v6816_v22, 1  ;;  %v3604_v22 = vld [vmem:[%s6942_s20 + $0x10] sm:$0x8] }
  0xeb   : > { %v3256_v51 = vrot.slane %v3254_v42, 2 }
  0xed   : > { %6215 = vmatpush3.bf16.msra.mxu0 %v6788_v56  ;;  %v6793_v56 = vld [vmem:[%s9422_s1 + $0x238] sm:$0xff]   ;;  %v3260_v59 = vor.u32 %v3259_v52, %v3256_v51  ;;  %v6818_v52 = vld [vmem:[%s6942_s20 + $0x30] sm:$0xff]  }
  0xee   : > { %6216 = vmatprep.subr.bf16.mxu0 %v6789_v5 }
  0xef   : > { %5937 = vmatmul.mubr.bf16.gmra.mrb[24].mxu1 %v1115_v16  ;;  %v3265_v16 = vrot.slane %v3263_v3, 2 }
  0xf0   : > { %6181 = vmatmul.mubr.bf16.gmra.mrb[8].mxu0 %v3216_v41  ;;  %5940 = vmatprep.mubr.bf16.mxu1 %v1117_v55  ;;  %v3268_v41 = vrot.slane %v3266_v15, 3  ;;  %v3261_v55 = vsel %vm3154_vm4, %v3251_v0, %v3260_v59  ;;  %v6819_v0 = vld [vmem:[%s9422_s1 + $0x108] sm:$0xff]  }
  0xf1   : > { %6184 = vmatprep.mubr.bf16.mxu0 %v3225_v13  ;;  %6217 = vmatpush3.bf16.msra.mxu0 %v6789_v5  ;;  %v1551_v5 = vsel %vm1086_vm3, %v1549_v14, %v1550_v23  ;;  %v6815_v13 = vld [vmem:[%s6942_s20 + $0x18] sm:$0xff]   ;;  %v3302_v14 = vshll.u32 %v7433_v48, 16 }
  0xf2   : > { %6218 = vmatprep.subr.bf16.mxu0 %v6790_v21  ;;  %v1552_v18 = vrot.slane %v6815_v13, 1  ;;  %v3269_v20 = vor.u32 %v3268_v41, %v3265_v16  ;;  %v6821_v41 = vld [vmem:[%s6942_s20 + $0x38] sm:$0xff]   ;;  %v1562_v13 = vrot.slane %v6822_v12, 1 }
  0xf3   : > { %v3304_v4 = vrot.slane %v3302_v14, 3  ;;  %v6828_v14 = vld [vmem:[%s9422_s1 + $0x130] sm:$0xff]  }
  0xf4   : > { %v1553_v62 = vsel %vm1086_vm3, %v1550_v23, %v1552_v18  ;;  %v3270_v42 = vsel %vm3154_vm4, %v3260_v59, %v3269_v20  ;;  %v3308_v23 = vshrl.u32 %v7437_v47, 16 }
  0xf5   : > { %6219 = vmatpush3.bf16.msra.mxu0 %v6790_v21  ;;  %v3281_v21 = vshrl.u32 %v7411_v29, 16  ;;  %v3305_v11 = vor.u32 %v3304_v4, %v3301_v25 }
  0xf6   : > { %6220 = vmatprep.subr.bf16.mxu0 %v6791_v40 }
  0xf7   : > { %5941 = vmatmul.mubr.bf16.gmra.mrb[28].mxu1 %v1119_v45  ;;  %v3283_v32 = vrot.slane %v3281_v21, 2  ;;  %v1555_v45 = vsel %vm1086_vm3, %v1552_v18, %v1554_v30  ;;  %v3317_v18 = vshrl.u32 %v7507_v43, 16 }
  0xf8   : > { %6185 = vmatmul.mubr.bf16.gmra.mrb[12].mxu0 %v3234_v46  ;;  %5944 = vmatprep.mubr.bf16.mxu1 %v1121_v53  ;;  %v3279_v46 = vsel %vm3154_vm4, %v3269_v20, %v3278_v7  ;;  %v3292_v53 = vrot.slane %v3290_v37, 2  ;;  %v3320_v20 = vshll.u32 %v7507_v43, 16 }
  0xf9   : > { %6188 = vmatprep.mubr.bf16.mxu0 %v3243_v49  ;;  %6221 = vmatpush3.bf16.msra.mxu0 %v6791_v40  ;;  %v3286_v40 = vrot.slane %v3284_v26, 3  ;;  %v1556_v49 = vrot.slane %v6817_v19, 1  ;;  %v6823_v26 = vld [vmem:[%s9422_s1 + $0x118] sm:$0xff]   ;;  %v3319_v39 = vrot.slane %v3317_v18, 2 }
  0xfa   : > { %6222 = vmatprep.subr.bf16.mxu0 %v6793_v56  ;;  %v3296_v61 = vor.u32 %v3295_v36, %v3292_v53  ;;  %v7611_v53 = vld [vmem:[%s6942_s20 + $0x50] sm:$0xff]   ;;  %v7657_v18 = vld [vmem:[%s6942_s20 + $0x78] sm:$0xff]  }
  0xfb   : > { %v3287_v51 = vor.u32 %v3286_v40, %v3283_v32  ;;  %v1557_v3 = vsel %vm1086_vm3, %v1554_v30, %v1556_v49  ;;  %v6824_v32 = vld [vmem:[%s9422_s1 + $0x120] sm:$0xff]   ;;  %v6825_v40 = vld [vmem:[%s6942_s20 + $0x48] sm:$0xff]   ;;  %v1566_v36 = vrot.slane %v7611_v53, 1 }
  0xfd   : > { %6223 = vmatpush3.bf16.msra.mxu0 %v6793_v56  ;;  %v1558_v56 = vrot.slane %v6818_v52, 1  ;;  %v3288_v15 = vsel %vm3154_vm4, %v3278_v7, %v3287_v51  ;;  %v3306_v7 = vsel %vm3154_vm4, %v3296_v61, %v3305_v11 }
  0xff   : > { %5945 = vmatmul.mubr.bf16.gmra.mrb[32].mxu1 %v1123_v9  ;;  %v1559_v59 = vsel %vm1086_vm3, %v1556_v49, %v1558_v56  ;;  %v6820_v9 = vld [vmem:[%s9422_s1 + $0x110] sm:$0xff]   ;;  %v6827_v49 = vld [vmem:[%s9422_s1 + $0x128] sm:$0xff]  }
 0x100   : > { %6189 = vmatmul.mubr.bf16.gmra.mrb[16].mxu0 %v3252_v24  ;;  %5964 = vmatprep.mubr.bf16.mxu1 %v1551_v5  ;;  %v3297_v24 = vsel %vm3154_vm4, %v3287_v51, %v3296_v61  ;;  %v3310_v5 = vrot.slane %v3308_v23, 2  ;;  %v3628_v61 = vrot.slane %v7296_v27, 3  ;;  %v7631_v23 = vld [vmem:[%s6942_s20 + $0x60] sm:$0xff]  }
 0x101   : > { %6192 = vmatprep.mubr.bf16.mxu0 %v3261_v55  ;;  %v1560_v55 = vrot.slane %v6821_v41, 1  ;;  %v3634_v41 = vrot.slane %v7320_v1, 3  ;;  %v3636_v1 = vrot.slane %v7336_v44, 3 }
 0x103   : > { %v1561_v30 = vsel %vm1086_vm3, %v1558_v56, %v1560_v55  ;;  %v1563_v37 = vsel %vm1086_vm3, %v1560_v55, %v1562_v13 }
 0x107   : > { %5965 = vmatmul.mubr.bf16.vlgmr.msra.gmra.mrb[0].mxu1 %v1553_v62  ;;  %v3322_v62 = vrot.slane %v3320_v20, 3  ;;  %v7662_v20 = vld [vmem:[%s6942_s20 + $0x80] sm:$0xff]  }
 0x108   : > { %6193 = vmatmul.mubr.bf16.gmra.mrb[20].mxu0 %v3270_v42  ;;  %6268 = vmatpush3.bf16.msra.mxu1 %v7493_v17  ;;  %v3311_v17 = vshll.u32 %v7437_v47, 16  ;;  %v5368_v42 = vcombine.low %v3604_v22, %v7270_v6  ;;  %v3626_v6 = vrot.slane %v7281_v60, 3  ;;  %v7626_v60 = vld [vmem:[%s6942_s20 + $0x58] sm:$0xff]  }
 0x109   : > { %5968 = vmatprep.mubr.bf16.mxu1 %v1555_v45  ;;  %6196 = vmatprep.mubr.bf16.mxu0 %v3279_v46  ;;  %v1564_v45 = vrot.slane %v6825_v40, 1  ;;  %v3323_v46 = vor.u32 %v3322_v62, %v3319_v39  ;;  %v7671_v39 = vld [vmem:[%s6942_s20 + $0x88] sm:$0xff]   ;;  %v3640_v62 = vrot.slane %v7354_v50, 3  ;;  %v3642_v40 = vrot.slane %v7358_v58, 3 }
 0x10a   : > { %6261 = vmatprep.subr.bf16.mxu1 %v6819_v0  ;;  %v3313_v16 = vrot.slane %v3311_v17, 3  ;;  %v3625_v19 = vrot.slane %v5368_v42, 3  ;;  %v1570_v17 = vrot.slane %v7631_v23, 1  ;;  %v3629_v25 = vsel %vm3624_vm5, %v3626_v6, %v3628_v61 }
 0x10b   : > { %v1565_v51 = vsel %vm1086_vm3, %v1562_v13, %v1564_v45  ;;  %v1567_v56 = vsel %vm1086_vm3, %v1564_v45, %v1566_v36  ;;  %v1580_v44 = vrot.slane %v7671_v39, 1  ;;  %v1967_v42 = vshrl.u32 %v7611_v53, 16 }
 0x10c   : > { %6269 = vmatpush3.bf16.msra.mxu1 %v6819_v0  ;;  %v3314_v21 = vor.u32 %v3313_v16, %v3310_v5  ;;  %v3627_v33 = vsel %vm3624_vm5, %v3625_v19, %v3626_v6  ;;  %v1568_v0 = vrot.slane %v7626_v60, 1  ;;  %v7648_v5 = vld [vmem:[%s6942_s20 + $0x70] sm:$0xff]   ;;  %v3643_v50 = vsel %vm3624_vm5, %v3640_v62, %v3642_v40 }
 0x10d   : > { %6262 = vmatprep.subr.bf16.mxu1 %v6820_v9  ;;  %v1574_v16 = vrot.slane %v7648_v5, 1  ;;  %v1969_v6 = vrot.slane %v1967_v42, 1  ;;  %v3644_v58 = vrot.slane %v7373_v8, 3 }
 0x10e   : > { %v3315_v43 = vsel %vm3154_vm4, %v3305_v11, %v3314_v21  ;;  %v3324_v52 = vsel %vm3154_vm4, %v3314_v21, %v3323_v46  ;;  %v1571_v4 = vsel %vm1086_vm3, %v1568_v0, %v1570_v17  ;;  %v1578_v21 = vrot.slane %v7662_v20, 1  ;;  %v6795_v46 = vld [vmem:[%s6942_s20 + $0x98] ss:$0 sps:$4 sm:$0x11]  }
 0x10f   : > { %5969 = vmatmul.mubr.bf16.gmra.mrb[4].mxu1 %v1557_v3  ;;  %v3630_v3 = vrot.slane %v7300_v31, 3 }
 0x110   : > { %6197 = vmatmul.mubr.bf16.gmra.mrb[24].mxu0 %v3288_v15  ;;  %5972 = vmatprep.mubr.bf16.mxu1 %v1559_v59  ;;  %v6831_v15 = vld [vmem:[%s9422_s1 + $0x138] sm:$0xff]   ;;  %v1569_v59 = vsel %vm1086_vm3, %v1566_v36, %v1568_v0  ;;  %v1581_v45 = vsel %vm1086_vm3, %v1578_v21, %v1580_v44  ;;  %v3646_v0 = vrot.slane %v7378_v2, 3 }
 0x111   : > { %6200 = vmatprep.mubr.bf16.mxu0 %v3297_v24  ;;  %6270 = vmatpush3.bf16.msra.mxu1 %v6820_v9  ;;  %v3631_v27 = vsel %vm3624_vm5, %v3628_v61, %v3630_v3  ;;  %v7643_v9 = vld [vmem:[%s6942_s20 + $0x68] sm:$0xff]   ;;  %v3632_v24 = vrot.slane %v7316_v38, 3  ;;  %v1576_v38 = vrot.slane %v7657_v18, 1 }
 0x112   : > { %6263 = vmatprep.subr.bf16.mxu1 %v6823_v26  ;;  %v1572_v31 = vrot.slane %v7643_v9, 1  ;;  %v3647_v8 = vsel %vm3624_vm5, %v3644_v58, %v3646_v0  ;;  %v1997_v2 = vshll.u32 %v7643_v9, 16 }
 0x113   : > { %v3633_v11 = vsel %vm3624_vm5, %v3630_v3, %v3632_v24  ;;  %v3635_v13 = vsel %vm3624_vm5, %v3632_v24, %v3634_v41  ;;  %v1577_v22 = vsel %vm1086_vm3, %v1574_v16, %v1576_v38  ;;  %v2003_v24 = vshrl.u32 %v7648_v5, 16 }
 0x114   : > { %v1573_v55 = vsel %vm1086_vm3, %v1570_v17, %v1572_v31  ;;  %v1575_v12 = vsel %vm1086_vm3, %v1572_v31, %v1574_v16  ;;  %v3650_v16 = vrot.slane %v7400_v57, 3  ;;  %v2015_v57 = vshll.u32 %v7657_v18, 16 }
 0x115   : > { %6271 = vmatpush3.bf16.msra.mxu1 %v6823_v26  ;;  %v3638_v26 = vrot.slane %v7339_v35, 3  ;;  %v7676_v35 = vld [vmem:[%s6942_s20 + $0x90] sm:$0xff]  }
 0x116   : > { %6264 = vmatprep.subr.bf16.mxu1 %v6824_v32 }
 0x117   : > { %5973 = vmatmul.mubr.bf16.gmra.mrb[8].mxu1 %v1561_v30  ;;  %v3637_v30 = vsel %vm3624_vm5, %v3634_v41, %v3636_v1  ;;  %v3641_v36 = vsel %vm3624_vm5, %v3638_v26, %v3640_v62  ;;  %v2017_v62 = vrot.slane %v2015_v57, 2 }
 0x118   : > { %6201 = vmatmul.mubr.bf16.gmra.mrb[28].mxu0 %v3306_v7  ;;  %5976 = vmatprep.mubr.bf16.mxu1 %v1563_v37  ;;  %v1579_v7 = vsel %vm1086_vm3, %v1576_v38, %v1578_v21  ;;  %v3639_v37 = vsel %vm3624_vm5, %v3636_v1, %v3638_v26  ;;  %v2005_v38 = vrot.slane %v2003_v24, 1  ;;  %v3652_v21 = vrot.slane %v7411_v29, 3 }
 0x119   : > { %6204 = vmatprep.mubr.bf16.mxu0 %v3315_v43  ;;  %6272 = vmatpush3.bf16.msra.mxu1 %v6824_v32  ;;  %v1582_v43 = vrot.slane %v7676_v35, 1  ;;  %v1970_v32 = vshll.u32 %v7611_v53, 16  ;;  %v1979_v53 = vshll.u32 %v7626_v60, 16 }
 0x11a   : > { %6265 = vmatprep.subr.bf16.mxu1 %v6827_v49 }
 0x11b   : > { %v1583_v19 = vsel %vm1086_vm3, %v1580_v44, %v1582_v43  ;;  %v1981_v3 = vrot.slane %v1979_v53, 2 }
 0x11d   : > { %6273 = vmatpush3.bf16.msra.mxu1 %v6827_v49  ;;  %v1972_v49 = vrot.slane %v1970_v32, 2 }
 0x11e   : > { %6266 = vmatprep.subr.bf16.mxu1 %v6828_v14 }
 0x11f   : > { %5977 = vmatmul.mubr.bf16.gmra.mrb[12].mxu1 %v1565_v51  ;;  %v1584_v51 = vrot.slane %v6795_v46, 1 }
 0x120   : > { %6205 = vmatmul.mubr.bf16.gmra.mrb[32].mxu0 %v3324_v52  ;;  %5980 = vmatprep.mubr.bf16.mxu1 %v1567_v56  ;;  %v1976_v52 = vshrl.u32 %v7626_v60, 16  ;;  %v1973_v56 = vor.u32 %v1972_v49, %v1969_v6 }
 0x121   : > { %6224 = vmatprep.mubr.bf16.mxu0 %v3627_v33  ;;  %6274 = vmatpush3.bf16.msra.mxu1 %v6828_v14  ;;  %v1985_v33 = vshrl.u32 %v7631_v23, 16  ;;  %v1988_v14 = vshll.u32 %v7631_v23, 16  ;;  %v1585_v61 = vsel %vm1086_vm3, %v1582_v43, %v1584_v51  ;;  %v1994_v23 = vshrl.u32 %v7643_v9, 16 }
 0x122   : > { %6267 = vmatprep.subr.bf16.mxu1 %v6831_v15  ;;  %v1978_v17 = vrot.slane %v1976_v52, 1  ;;  %v3653_v43 = vsel %vm3624_vm5, %v3650_v16, %v3652_v21 }
 0x123   : > { %v1987_v60 = vrot.slane %v1985_v33, 1 }
 0x125   : > { %6275 = vmatpush3.bf16.msra.mxu1 %v6831_v15  ;;  %v3645_v15 = vsel %vm3624_vm5, %v3642_v40, %v3644_v58 }
 0x127   : > { %5981 = vmatmul.mubr.bf16.gmra.mrb[16].mxu1 %v1569_v59  ;;  %v1974_v59 = vsel %vm1885_vm1, %v7103_v34, %v1973_v56  ;;  %v2006_v34 = vshll.u32 %v7648_v5, 16  ;;  %v2012_v5 = vshrl.u32 %v7657_v18, 16 }
 0x128   : > { %6225 = vmatmul.mubr.bf16.vlgmr.msra.gmra.mrb[0].mxu0 %v3629_v25  ;;  %5984 = vmatprep.mubr.bf16.mxu1 %v1571_v4  ;;  %v1990_v25 = vrot.slane %v1988_v14, 2  ;;  %v1982_v4 = vor.u32 %v1981_v3, %v1978_v17 }
 0x129   : > { %6228 = vmatprep.mubr.bf16.mxu0 %v3631_v27  ;;  %v3648_v27 = vrot.slane %v7396_v10, 3  ;;  %v2008_v9 = vrot.slane %v2006_v34, 2  ;;  %v2014_v44 = vrot.slane %v2012_v5, 1 }
 0x12a   : > { %v1991_v31 = vor.u32 %v1990_v25, %v1987_v60  ;;  %v1983_v41 = vsel %vm1885_vm1, %v1973_v56, %v1982_v4  ;;  %v6838_v56 = vld [vmem:[%s6942_s20 + $0x98] ss:$0 sps:$4 sm:$0x33]   ;;  %s6565_s20 = smul.u32 144, %s9815_s15 }
 0x12b   : > { %v3651_v1 = vsel %vm3624_vm5, %v3648_v27, %v3650_v16  ;;  %v2009_v26 = vor.u32 %v2008_v9, %v2005_v38  ;;  %v2018_v29 = vor.u32 %v2017_v62, %v2014_v44  ;;  %v2051_v33 = vshll.u32 %v6838_v56, 16 }
 0x12c   : > { %s8383_s11 = scalar_lea.vmem %s9423_s2, %s6565_s20 }
 0x12d   : > { %v2019_v6 = vsel %vm1885_vm1, %v2009_v26, %v2018_v29  ;;  %v2053_v17 = vrot.slane %v2051_v33, 2 }
 0x12f   : > { %5985 = vmatmul.mubr.bf16.gmra.mrb[20].mxu1 %v1573_v55  ;;  %v1996_v55 = vrot.slane %v1994_v23, 1 }
 0x130   : > { %6229 = vmatmul.mubr.bf16.gmra.mrb[4].mxu0 %v3633_v11  ;;  %5988 = vmatprep.mubr.bf16.mxu1 %v1575_v12  ;;  %v1999_v11 = vrot.slane %v1997_v2, 2  ;;  %v3649_v12 = vsel %vm3624_vm5, %v3646_v0, %v3648_v27 }
 0x131   : > { %6232 = vmatprep.mubr.bf16.mxu0 %v3635_v13  ;;  %v1992_v13 = vsel %vm1885_vm1, %v1982_v4, %v1991_v31 }
 0x132   : > { %v2000_v10 = vor.u32 %v1999_v11, %v1996_v55 }
 0x134   : > { %v2010_v42 = vsel %vm1885_vm1, %v2000_v10, %v2009_v26 }
 0x137   : > { %5989 = vmatmul.mubr.bf16.gmra.mrb[24].mxu1 %v1577_v22  ;;  %v2021_v22 = vshrl.u32 %v7662_v20, 16 }
 0x138   : > { %6233 = vmatmul.mubr.bf16.gmra.mrb[8].mxu0 %v3637_v30  ;;  %5992 = vmatprep.mubr.bf16.mxu1 %v1579_v7  ;;  %v2024_v30 = vshll.u32 %v7662_v20, 16  ;;  %v3654_v7 = vrot.slane %v7419_v54, 3  ;;  %v2030_v20 = vshrl.u32 %v7671_v39, 16  ;;  %v2033_v54 = vshll.u32 %v7671_v39, 16 }
 0x139   : > { %6236 = vmatprep.mubr.bf16.mxu0 %v3639_v37  ;;  %v2001_v37 = vsel %vm1885_vm1, %v1991_v31, %v2000_v10  ;;  %v2023_v32 = vrot.slane %v2021_v22, 1 }
 0x13a   : > { %v2026_v18 = vrot.slane %v2024_v30, 2  ;;  %v3655_v40 = vsel %vm3624_vm5, %v3652_v21, %v3654_v7  ;;  %v2032_v49 = vrot.slane %v2030_v20, 1 }
 0x13c   : > { %v2027_v46 = vor.u32 %v2026_v18, %v2023_v32 }
 0x13e   : > { %v2028_v52 = vsel %vm1885_vm1, %v2018_v29, %v2027_v46 }
 0x13f   : > { %5993 = vmatmul.mubr.bf16.gmra.mrb[28].mxu1 %v1581_v45  ;;  %v3656_v45 = vrot.slane %v7433_v48, 3 }
 0x140   : > { %6237 = vmatmul.mubr.bf16.gmra.mrb[12].mxu0 %v3641_v36  ;;  %5996 = vmatprep.mubr.bf16.mxu1 %v1583_v19  ;;  %v2039_v36 = vshrl.u32 %v7676_v35, 16  ;;  %v2042_v19 = vshll.u32 %v7676_v35, 16  ;;  %v2048_v35 = vshrl.u32 %v6838_v56, 16 }
 0x141   : > { %6240 = vmatprep.mubr.bf16.mxu0 %v3643_v50  ;;  %v2035_v50 = vrot.slane %v2033_v54, 2  ;;  %v3657_v51 = vsel %vm3624_vm5, %v3654_v7, %v3656_v45  ;;  %v3659_v48 = vsel %vm3624_vm5, %v3656_v45, %v3658_v28 }
 0x142   : > { %v2041_v53 = vrot.slane %v2039_v36, 1  ;;  %v2044_v58 = vrot.slane %v2042_v19, 2 }
 0x143   : > { %v2036_v39 = vor.u32 %v2035_v50, %v2032_v49 }
 0x144   : > { %v2045_v14 = vor.u32 %v2044_v58, %v2041_v53 }
 0x145   : > { %v2037_v0 = vsel %vm1885_vm1, %v2027_v46, %v2036_v39 }
 0x146   : > { %v2046_v3 = vsel %vm1885_vm1, %v2036_v39, %v2045_v14 }
 0x147   : > { %5997 = vmatmul.mubr.bf16.gmra.mrb[32].mxu1 %v1585_v61  ;;  %v2050_v61 = vrot.slane %v2048_v35, 1 }
 0x148   : > { %6241 = vmatmul.mubr.bf16.gmra.mrb[16].mxu0 %v3645_v15  ;;  %6032 = vmatprep.mubr.bf16.mxu1 %v1974_v59  ;;  %v3941_v15 = vlaneseq }
 0x149   : > { %6244 = vmatprep.mubr.bf16.mxu0 %v3647_v8  ;;  %v2054_v47 = vor.u32 %v2053_v17, %v2050_v61 }
 0x14a   : > { %v7734_v59 = vshrl.u32 %v3941_v15, 7 }
 0x14b   : > { %v2055_v28 = vsel %vm1885_vm1, %v2045_v14, %v2054_v47 }
 0x14c   : > { %v3944_v60 = vadd.s32 16, %v7734_v59  ;;  %v3945_v25 = vadd.s32 24, %v7734_v59  ;;  %v7742_v23 = vmul.u32.u64.low 3817748708, %v7734_v59  ;;  %v7743_v2 = vmul.u32.u64.high 3817748708, %v7734_v59, %v7742_v23 }
 0x14d   : > { %v3948_v24 = vadd.s32 48, %v7734_v59  ;;  %v3949_v38 = vadd.s32 56, %v7734_v59  ;;  %v7764_v10 = vadd.s32 40, %v7734_v59  ;;  %v7768_v57 = vadd.s32 80, %v7734_v59 }
 0x14e   : > { %v7738_v8 = vmul.u32.u64.low 3817748708, %v3944_v60  ;;  %v7739_v4 = vmul.u32.u64.high 3817748708, %v3944_v60, %v7738_v8  ;;  %v7746_v27 = vmul.u32.u64.low 3817748708, %v3945_v25  ;;  %v7747_v31 = vmul.u32.u64.high 3817748708, %v3945_v25, %v7746_v27 }
 0x14f   : > { %6033 = vmatmul.mubr.bf16.vlgmr.msra.gmra.mrb[16].mxu1 %v1983_v41  ;;  %v3946_v41 = vadd.s32 32, %v7734_v59  ;;  %v7771_v30 = vmul.u32.u64.low 3817748708, %v3949_v38  ;;  %v7772_v7 = vmul.u32.u64.high 3817748708, %v3949_v38, %v7771_v30  ;;  %v7790_v54 = vadd.s32 64, %v7734_v59 }
 0x150   : > { %6245 = vmatmul.mubr.bf16.gmra.mrb[20].mxu0 %v3649_v12  ;;  %6036 = vmatprep.mubr.bf16.mxu1 %v1992_v13  ;;  %v4006_v55 = vshrl.u32 %v7739_v4, 4  ;;  %v7755_v11 = vmul.u32.u64.low 3817748708, %v3948_v24  ;;  %v7756_v12 = vmul.u32.u64.high 3817748708, %v3948_v24, %v7755_v11  ;;  %v3984_v13 = vshrl.u32 %v7743_v2, 4 }
 0x151   : > { %6248 = vmatprep.mubr.bf16.mxu0 %v3651_v1  ;;  %v7760_v9 = vmul.u32.u64.low 3817748708, %v3946_v41  ;;  %v7761_v1 = vmul.u32.u64.high 3817748708, %v3946_v41, %v7760_v9  ;;  %v4017_v5 = vshrl.u32 %v7747_v31, 4  ;;  %v7824_v35 = vadd.s32 72, %v7734_v59 }
 0x152   : > { %v4007_v21 = vmul.u32 18, %v4006_v55  ;;  %v3985_v26 = vmul.u32 18, %v3984_v13  ;;  %v4050_v18 = vshrl.u32 %v7756_v12, 4  ;;  %v7850_v4 = vadd.s32 120, %v7734_v59 }
 0x153   : > { %v4018_v62 = vmul.u32 18, %v4017_v5  ;;  %v4028_v20 = vshrl.u32 %v7761_v1, 4  ;;  %v7893_v1 = vadd.s32 144, %v7734_v59 }
 0x154   : > { %v7782_v32 = vsub.s32 %v3944_v60, %v4007_v21  ;;  %v4051_v36 = vmul.u32 18, %v4050_v18 }
 0x155   : > { %v7792_v45 = vsub.s32 %v3945_v25, %v4018_v62  ;;  %v4029_v49 = vmul.u32 18, %v4028_v20 }
 0x156   : > { %vm4376_vm6 = vcmp.ne.s32.totalorder %v7782_v32, 0  ;;  %vm4412_vm7 = vcmp.lt.s32.totalorder %v7782_v32, 0  ;;  %v7797_v46 = vadd.s32 18, %v7782_v32  ;;  %v7821_v56 = vsub.s32 %v3948_v24, %v4051_v36 }
 0x157   : > { %6037 = vmatmul.mubr.bf16.gmra.mrb[20].mxu1 %v2001_v37  ;;  %v7775_v37 = vmul.u32.u64.low 3817748708, %v7764_v10  ;;  %v7776_v44 = vmul.u32.u64.high 3817748708, %v7764_v10, %v7775_v37  ;;  %vm4377_vm10 = vcmp.ne.s32.totalorder %v7792_v45, 0  ;;  %vm4413_vm11 = vcmp.lt.s32.totalorder %v7792_v45, 0  ;;  %vm7881_vm0 = vmand %vm4412_vm7, %vm4376_vm6 }
 0x158   : > { %6249 = vmatmul.mubr.bf16.gmra.mrb[24].mxu0 %v3653_v43  ;;  %6040 = vmatprep.mubr.bf16.mxu1 %v2010_v42  ;;  %v7779_v43 = vmul.u32.u64.low 3817748708, %v7768_v57  ;;  %v7780_v42 = vmul.u32.u64.high 3817748708, %v7768_v57, %v7779_v43  ;;  %v7819_v39 = vadd.s32 18, %v7792_v45  ;;  %vm4380_vm14 = vcmp.ne.s32.totalorder %v7821_v56, 0  ;;  %vm7917_vm4 = vmand %vm4413_vm11, %vm4377_vm10 }
 0x159   : > { %6252 = vmatprep.mubr.bf16.mxu0 %v3655_v40  ;;  %v7786_v40 = vsub.s32 %v7734_v59, %v3985_v26  ;;  %v4039_v50 = vshrl.u32 %v7776_v44, 4  ;;  %vm4416_vm15 = vcmp.lt.s32.totalorder %v7821_v56, 0  ;;  %v7904_v5 = vadd.s32 18, %v7821_v56 }
 0x15a   : > { %v4094_v58 = vshrl.u32 %v7780_v42, 4  ;;  %vm7948_vm10 = vmand %vm4416_vm15, %vm4380_vm14  ;;  %v9540_v26 = vmov 0 }
 0x15b   : > { %vm4374_vm8 = vcmp.ne.s32.totalorder %v7786_v40, 0  ;;  %vm4410_vm9 = vcmp.lt.s32.totalorder %v7786_v40, 0  ;;  %v7810_v53 = vadd.s32 18, %v7786_v40  ;;  %v4040_v47 = vmul.u32 18, %v4039_v50 }
 0x15c   : > { %v4095_v60 = vmul.u32 18, %v4094_v58  ;;  %vm7899_vm1 = vmand %vm4410_vm9, %vm4374_vm8 }
 0x15e   : > { %v7886_v13 = vsub.s32 %v7768_v57, %v4095_v60  ;;  %v7909_v57 = vadd.s32 128, %v7734_v59 }
 0x15f   : > { %6041 = vmatmul.mubr.bf16.gmra.mrb[24].mxu1 %v2019_v6  ;;  %v4061_v6 = vshrl.u32 %v7772_v7, 4 }
 0x160   : > { %6253 = vmatmul.mubr.bf16.gmra.mrb[28].mxu0 %v3657_v51  ;;  %6044 = vmatprep.mubr.bf16.mxu1 %v2028_v52  ;;  %v7806_v51 = vmul.u32.u64.low 3817748708, %v7790_v54  ;;  %v7807_v52 = vmul.u32.u64.high 3817748708, %v7790_v54, %v7806_v51  ;;  %vm4384_vm11 = vcmp.ne.s32.totalorder %v7886_v13, 0 }
 0x161   : > { %6256 = vmatprep.mubr.bf16.mxu0 %v3659_v48  ;;  %v7815_v48 = vadd.s32 88, %v7734_v59  ;;  %v4062_v14 = vmul.u32 18, %v4061_v6  ;;  %v7971_v50 = vmul.u32.u64.low 3817748708, %v7909_v57  ;;  %v7972_v51 = vmul.u32.u64.high 3817748708, %v7909_v57, %v7971_v50 }
 0x163   : > { %v7846_v25 = vmul.u32.u64.low 3817748708, %v7815_v48  ;;  %v7847_v8 = vmul.u32.u64.high 3817748708, %v7815_v48, %v7846_v25  ;;  %v7860_v27 = vsub.s32 %v3949_v38, %v4062_v14 }
 0x164   : > { %v7889_v38 = vmul.u32.u64.low 3817748708, %v7850_v4  ;;  %v7890_v9 = vmul.u32.u64.high 3817748708, %v7850_v4, %v7889_v38  ;;  %v9504_v25 = vmov 0 }
 0x165   : > { %vm4381_vm5 = vcmp.ne.s32.totalorder %v7860_v27, 0  ;;  %vm4417_vm7 = vcmp.lt.s32.totalorder %v7860_v27, 0  ;;  %v4105_v18 = vshrl.u32 %v7847_v8, 4  ;;  %v7987_v14 = vadd.s32 18, %v7860_v27 }
 0x166   : > { %vm7982_vm14 = vmand %vm4417_vm7, %vm4381_vm5  ;;  %v4149_v38 = vshrl.u32 %v7890_v9, 4 }
 0x167   : > { %6045 = vmatmul.mubr.bf16.gmra.mrb[28].mxu1 %v2037_v0  ;;  %v7831_v0 = vadd.s32 112, %v7734_v59 }
 0x168   : > { %6257 = vmatmul.mubr.bf16.gmra.mrb[32].mxu0 %v7521_v63  ;;  %6048 = vmatprep.mubr.bf16.mxu1 %v2046_v3  ;;  %v3943_v63 = vadd.s32 8, %v7734_v59  ;;  %v7838_v3 = vsub.s32 %v3946_v41, %v4029_v49  ;;  %v4072_v41 = vshrl.u32 %v7807_v52, 4 }
 0x169   : > { %v7863_v31 = vmul.u32.u64.low 3817748708, %v7831_v0  ;;  %v7864_v24 = vmul.u32.u64.high 3817748708, %v7831_v0, %v7863_v31 }
 0x16a   : > { %v7750_v34 = vmul.u32.u64.low 3817748708, %v3943_v63  ;;  %v7751_v16 = vmul.u32.u64.high 3817748708, %v3943_v63, %v7750_v34  ;;  %vm4378_vm2 = vcmp.ne.s32.totalorder %v7838_v3, 0  ;;  %vm4414_vm3 = vcmp.lt.s32.totalorder %v7838_v3, 0 }
 0x16b   : > { %v7867_v34 = vadd.s32 104, %v7734_v59  ;;  %v4073_v62 = vmul.u32 18, %v4072_v41  ;;  %v4150_v31 = vmul.u32 18, %v4149_v38 }
 0x16c   : > { %v3995_v22 = vshrl.u32 %v7751_v16, 4  ;;  %v7870_v16 = vsub.s32 %v7764_v10, %v4040_v47  ;;  %v4138_v47 = vshrl.u32 %v7864_v24, 4  ;;  %v9506_v24 = vmov 0 }
 0x16d   : > { %v7926_v30 = vmul.u32.u64.low 3817748708, %v7867_v34  ;;  %v7927_v7 = vmul.u32.u64.high 3817748708, %v7867_v34, %v7926_v30  ;;  %v8020_v41 = vsub.s32 %v7790_v54, %v4073_v62 }
 0x16e   : > { %v3996_v29 = vmul.u32 18, %v3995_v22  ;;  %v7922_v22 = vadd.s32 18, %v7838_v3  ;;  %vm4379_vm8 = vcmp.ne.s32.totalorder %v7870_v16, 0  ;;  %vm4415_vm9 = vcmp.lt.s32.totalorder %v7870_v16, 0 }
 0x16f   : > { %6049 = vmatmul.mubr.bf16.gmra.mrb[32].mxu1 %v2055_v28  ;;  %v7841_v28 = vadd.s32 96, %v7734_v59  ;;  %vm7998_vm15 = vmand %vm4415_vm9, %vm4379_vm8  ;;  %v8003_v8 = vadd.s32 18, %v7870_v16  ;;  %v4127_v50 = vshrl.u32 %v7927_v7, 4  ;;  %vm4418_vm5 = vcmp.lt.s32.totalorder %v8020_v41, 0 }
 0x170   : > { %v7801_v19 = vsub.s32 %v3943_v63, %v3996_v29  ;;  %v7857_v2 = vmul.u32.u64.low 3817748708, %v7824_v35  ;;  %v7858_v63 = vmul.u32.u64.high 3817748708, %v7824_v35, %v7857_v2  ;;  %v9505_v25 = vsel %vm7998_vm15, 4294967295, %v9504_v25 }
 0x171   : > { %v7874_v55 = vmul.u32.u64.low 3817748708, %v7841_v28  ;;  %v7875_v11 = vmul.u32.u64.high 3817748708, %v7841_v28, %v7874_v55  ;;  %v7955_v29 = vmul.u32.u64.low 3817748708, %v7893_v1  ;;  %v7956_v20 = vmul.u32.u64.high 3817748708, %v7893_v1, %v7955_v29 }
 0x172   : > { %vm4375_vm12 = vcmp.ne.s32.totalorder %v7801_v19, 0  ;;  %vm4411_vm13 = vcmp.lt.s32.totalorder %v7801_v19, 0  ;;  %v7836_v17 = vadd.s32 18, %v7801_v19  ;;  %v4083_v49 = vshrl.u32 %v7858_v63, 4 }
 0x173   : > { %vm7935_vm6 = vmand %vm4411_vm13, %vm4375_vm12  ;;  %vm4420_vm13 = vcmp.lt.s32.totalorder %v7886_v13, 0  ;;  %v8006_v2 = vadd.s32 18, %v7886_v13  ;;  %v4116_v63 = vshrl.u32 %v7875_v11, 4  ;;  %v4106_v55 = vmul.u32 18, %v4105_v18 }
 0x174   : > { %vm7964_vm12 = vmand %vm4414_vm3, %vm4378_vm2  ;;  %v4084_v54 = vmul.u32 18, %v4083_v49  ;;  %v4139_v18 = vmul.u32 18, %v4138_v47  ;;  %v8043_v11 = vadd.s32 152, %v7734_v59  ;;  %v8056_v47 = vadd.s32 136, %v7734_v59 }
 0x175   : > { %vm8015_vm2 = vmand %vm4420_vm13, %vm4384_vm11  ;;  %v4117_v60 = vmul.u32 18, %v4116_v63  ;;  %vm4382_vm3 = vcmp.ne.s32.totalorder %v8020_v41, 0  ;;  %v8062_v9 = vsub.s32 %v7815_v48, %v4106_v55  ;;  %v4182_v52 = vshrl.u32 %v7956_v20, 4 }
 0x176   : > { %v9507_v24 = vsel %vm8015_vm2, 4294967295, %v9506_v24  ;;  %v8069_v29 = vadd.s32 18, %v8020_v41  ;;  %v8072_v63 = vsub.s32 %v7824_v35, %v4084_v54  ;;  %v4128_v48 = vmul.u32 18, %v4127_v50  ;;  %vm8120_vm9 = vmand %vm4418_vm5, %vm4382_vm3 }
 0x177   : > { %v8079_v55 = vmul.u32.u64.low 3817748708, %v8043_v11  ;;  %v8080_v38 = vmul.u32.u64.high 3817748708, %v8043_v11, %v8079_v55  ;;  %v8083_v20 = vsub.s32 %v7841_v28, %v4117_v60  ;;  %v8090_v35 = vadd.s32 176, %v7734_v59 }
 0x178   : > { %9512 = vst [vmem:[#allocation8_spill] sm:$0xff] %v8072_v63  ;;  %vm4385_vm7 = vcmp.ne.s32.totalorder %v8062_v9, 0  ;;  %v8098_v54 = vadd.s32 18, %v8062_v9  ;;  %v8102_v60 = vadd.s32 160, %v7734_v59  ;;  %v8108_v50 = vadd.s32 18, %v8072_v63 }
 0x179   : > { %9514 = vst [vmem:[#allocation10_spill] sm:$0xff] %v8090_v35  ;;  %vm9522_vm13 = vcmp.lt.s32.totalorder %v8062_v9, 0  ;;  %vm9535_vm5 = vcmp.ne.s32.totalorder %v8072_v63, 0  ;;  %vm9536_vm3 = vcmp.lt.s32.totalorder %v8072_v63, 0 }
 0x17a   : > { %9515 = vst [vmem:[#allocation11_spill] sm:$0xff] %v8102_v60  ;;  %9517 = vst [vmem:[#allocation13_spill] sm:$0xff] %v8108_v50 }
 0x17b   : > { %vm8136_vm2 = vmand %vm9522_vm13, %vm4385_vm7 }
 0x17c   : > { %vm8172_vm8 = vmand %vm9536_vm3, %vm9535_vm5 }
 0x1da   : > { %v7826_v33 = vpop.f32.mrb[0].mxu1 }
 0x1db   : > { %v7833_v61 = vpop.f32.mrb[1].mxu1 }
 0x1dc   : > { %v7843_v15 = vpop.f32.mrb[2].mxu1 }
 0x1dd   : > { %v7852_v23 = vpop.f32.mrb[3].mxu1 }
 0x1e2   : > { %v7911_v21 = vpop.f32.mrb[4].mxu1 }
 0x1e3   : > { %v7929_v37 = vpop.f32.mrb[5].mxu1 }
 0x1e4   : > { %v7942_v43 = vpop.f32.mrb[6].mxu1 }
 0x1e5   : > { %9496 = vst [vmem:[#allocation2_spill] sm:$0xff] %v7942_v43  ;;  %v7958_v36 = vpop.f32.mrb[7].mxu1 }
 0x1e6   : > { %9499 = vst [vmem:[#allocation3_spill] sm:$0xff] %v7958_v36 }
 0x1ea   : > { %v8035_v62 = vpop.f32.mrb[8].mxu1 }
 0x1eb   : > { %9508 = vst [vmem:[#allocation4_spill] sm:$0xff] %v8035_v62  ;;  %v8045_v30 = vpop.f32.mrb[9].mxu1 }
 0x1ec   : > { %9509 = vst [vmem:[#allocation5_spill] sm:$0xff] %v8045_v30  ;;  %v8058_v7 = vpop.f32.mrb[10].mxu1  ;;  %v8076_v30 = vsub.s32 %v7831_v0, %v4139_v18  ;;  %v8095_v0 = vsub.s32 %v7850_v4, %v4150_v31  ;;  %v8112_v4 = vsub.s32 %v7867_v34, %v4128_v48  ;;  %v9591_v31 = vmov 0 }
 0x1ed   : > { %9510 = vst [vmem:[#allocation6_spill] sm:$0xff] %v8058_v7  ;;  %v8065_v49 = vpop.f32.mrb[11].mxu1  ;;  %v4160_v7 = vshrl.u32 %v7972_v51, 4  ;;  %v4183_v51 = vmul.u32 18, %v4182_v52 }
 0x1ee   : > { %9511 = vst [vmem:[#allocation7_spill] sm:$0xff] %v8065_v49  ;;  %9513 = vst [vmem:[#allocation9_spill] sm:$0xff] %v8076_v30  ;;  %v8086_v49 = vmul.u32.u64.low 3817748708, %v8056_v47  ;;  %v8087_v62 = vmul.u32.u64.high 3817748708, %v8056_v47, %v8086_v49  ;;  %vm4424_vm11 = vcmp.lt.s32.totalorder %v8076_v30, 0  ;;  %vm9545_vm5 = vcmp.ne.s32.totalorder %v8076_v30, 0 }
 0x1ef   : > { %v4161_v28 = vmul.u32 18, %v4160_v7  ;;  %v8127_v49 = vmul.u32.u64.low 3817748708, %v8090_v35  ;;  %v8128_v7 = vmul.u32.u64.high 3817748708, %v8090_v35, %v8127_v49  ;;  %v8143_v55 = vsub.s32 %v7893_v1, %v4183_v51 }
 0x1f0   : > { %v9531_v1 = vsel %vm7917_vm4, %v7819_v39, %v7792_v45  ;;  %v9532_v51 = vmov 0  ;;  %v9539_v39 = vsel %vm7899_vm1, %v7810_v53, %v7786_v40  ;;  %v8211_v40 = vadd.s32 18, %v8076_v30 }
 0x1f1   : > { %vm8164_vm13 = vcmp.lt.s32.totalorder %v9531_v1, 16  ;;  %vm8189_vm4 = vcmp.lt.s32.totalorder %v9539_v39, 16  ;;  %vm4387_vm1 = vcmp.ne.s32.totalorder %v8112_v4, 0  ;;  %v8228_v44 = vadd.s32 18, %v8095_v0 }
 0x1f2   : > { %v8104_v18 = vpop.f32.mrb[12].mxu1  ;;  %v9533_v51 = vsel %vm8164_vm13, 4294967295, %v9532_v51  ;;  %v9541_v26 = vsel %vm8189_vm4, 4294967295, %v9540_v26  ;;  %vm4423_vm4 = vcmp.lt.s32.totalorder %v8112_v4, 0  ;;  %v4171_v1 = vshrl.u32 %v8087_v62, 4 }
 0x1f3   : > { %9516 = vst [vmem:[#allocation12_spill] sm:$0xff] %v8104_v18  ;;  %v8114_v52 = vpop.f32.mrb[13].mxu1  ;;  %v9528_v18 = vmov 0  ;;  %9534 = vst [vmem:[#allocation19_spill] sm:$0xff] %v9533_v51  ;;  %v9558_v35 = vmov 0  ;;  %v4226_v63 = vshrl.u32 %v8128_v7, 4 }
 0x1f4   : > { %9518 = vst [vmem:[#allocation14_spill] sm:$0xff] %v8114_v52  ;;  %v8130_v34 = vpop.f32.mrb[14].mxu1  ;;  %v8146_v52 = vadd.s32 184, %v7734_v59  ;;  %vm8252_vm15 = vmand %vm4423_vm4, %vm4387_vm1  ;;  %v4172_v62 = vmul.u32 18, %v4171_v1  ;;  %v9561_v30 = vmov 0  ;;  %v9567_v7 = vmov 0 }
 0x1f5   : > { %9521 = vst [vmem:[#allocation15_spill] sm:$0xff] %v8130_v34  ;;  %v8148_v49 = vpop.f32.mrb[15].mxu1  ;;  %v9527_v34 = vsel %vm7881_vm0, %v7797_v46, %v7782_v32  ;;  %v8178_v32 = vsub.s32 %v7909_v57, %v4161_v28  ;;  %v8181_v46 = vmul.u32.u64.low 3817748708, %v8102_v60  ;;  %v8182_v45 = vmul.u32.u64.high 3817748708, %v8102_v60, %v8181_v46  ;;  %vm8206_vm0 = vmand %vm4424_vm11, %vm9545_vm5  ;;  %v9623_v53 = vld [vmem:[#allocation9_spill] sm:$0xff] }
 0x1f6   : > { %9525 = vst [vmem:[#allocation16_spill] sm:$0xff] %v8146_v52  ;;  %9526 = vst [vmem:[#allocation17_spill] sm:$0xff] %v8148_v49  ;;  %vm8155_vm7 = vcmp.lt.s32.totalorder %v9527_v34, 16  ;;  %v9542_v34 = vsel %vm7935_vm6, %v7836_v17, %v7801_v19  ;;  %v9543_v57 = vmov 0  ;;  %v4193_v19 = vshrl.u32 %v8080_v38, 4 }
 0x1f7   : > { %v9529_v18 = vsel %vm8155_vm7, 4294967295, %v9528_v18  ;;  %vm8198_vm3 = vcmp.lt.s32.totalorder %v9542_v34, 16  ;;  %vm9548_vm6 = vcmp.ne.s32.totalorder %v8083_v20, 0  ;;  %v8225_v17 = vadd.s32 18, %v8083_v20 }
 0x1f8   : > { %9530 = vst [vmem:[#allocation18_spill] sm:$0xff] %v9529_v18  ;;  %v9544_v57 = vsel %vm8198_vm3, 4294967295, %v9543_v57  ;;  %vm9549_vm3 = vcmp.lt.s32.totalorder %v8083_v20, 0  ;;  %v8231_v28 = vadd.s32 18, %v8112_v4  ;;  %vm9552_vm11 = vcmp.ne.s32.totalorder %v8095_v0, 0 }
 0x1f9   : > { %vm8220_vm13 = vmand %vm9549_vm3, %vm9548_vm6  ;;  %vm9553_vm5 = vcmp.lt.s32.totalorder %v8095_v0, 0  ;;  %vm4392_vm3 = vcmp.ne.s32.totalorder %v8143_v55, 0  ;;  %vm4428_vm6 = vcmp.lt.s32.totalorder %v8143_v55, 0  ;;  %v8259_v49 = vadd.s32 168, %v7734_v59 }
 0x1fa   : > { %vm8238_vm7 = vmand %vm9553_vm5, %vm9552_vm11  ;;  %v8245_v46 = vmul.u32.u64.low 3817748708, %v8146_v52  ;;  %v8246_v39 = vmul.u32.u64.high 3817748708, %v8146_v52, %v8245_v46  ;;  %vm4390_vm11 = vcmp.ne.s32.totalorder %v8178_v32, 0  ;;  %vm4426_vm5 = vcmp.lt.s32.totalorder %v8178_v32, 0 }
 0x1fb   : > { %v8270_v52 = vadd.s32 18, %v8143_v55  ;;  %v4194_v36 = vmul.u32 18, %v4193_v19  ;;  %v6226_v43 = vpop.f32.mrb[0].mxu0  ;;  %vm8278_vm4 = vmand %vm4428_vm6, %vm4392_vm3  ;;  %v8283_v46 = vadd.s32 18, %v8178_v32  ;;  %v9560_v60 = vsel %vm7964_vm12, %v7922_v22, %v7838_v3 }
 0x1fc   : > { %v9559_v35 = vsel %vm8278_vm4, 4294967295, %v9558_v35  ;;  %v8287_v19 = vadd.f32 %v6226_v43, %v7826_v33  ;;  %v3762_v50 = vpop.f32.mrb[1].mxu0  ;;  %vm8295_vm1 = vcmp.lt.s32.totalorder %v9560_v60, 16  ;;  %vm8315_vm12 = vmand %vm4426_vm5, %vm4390_vm11  ;;  %v9566_v60 = vsel %vm7948_vm10, %v7904_v5, %v7821_v56 }
 0x1fd   : > { %v9562_v30 = vsel %vm8295_vm1, 4294967295, %v9561_v30  ;;  %v8320_v22 = vadd.f32 %v3762_v50, %v7833_v61  ;;  %v6227_v6 = vpop.f32.mrb[2].mxu0  ;;  %vm8327_vm3 = vcmp.lt.s32.totalorder %v9566_v60, 16  ;;  %v9570_v43 = vsel %vm7982_vm14, %v7987_v14, %v7860_v27 }
 0x1fe   : > { %9563 = vst [vmem:[#allocation20_spill] sm:$0xff] %v9562_v30  ;;  %v9568_v7 = vsel %vm8327_vm3, 4294967295, %v9567_v7  ;;  %vm8336_vm6 = vcmp.lt.s32.totalorder %v9570_v43, 16  ;;  %v9571_v33 = vmov 0  ;;  %v4204_v61 = vshrl.u32 %v8182_v45, 4  ;;  %v3765_v5 = vpop.f32.mrb[3].mxu0 }
 0x1ff   : > { %9569 = vst [vmem:[#allocation21_spill] sm:$0xff] %v9568_v7  ;;  %v9572_v33 = vsel %vm8336_vm6, 4294967295, %v9571_v33  ;;  %v8342_v42 = vmul.u32.u64.low 3817748708, %v8259_v49  ;;  %v8343_v50 = vmul.u32.u64.high 3817748708, %v8259_v49, %v8342_v42  ;;  %v8346_v56 = vadd.f32 %v6227_v6, %v7843_v15 }
 0x200   : > { %9573 = vst [vmem:[#allocation22_spill] sm:$0xff] %v9572_v33  ;;  %vm9574_vm10 = vnez %v9505_v25  ;;  %v9576_v27 = vmov 0  ;;  %v8362_v45 = vsub.s32 %v8043_v11, %v4194_v36  ;;  %v8365_v15 = vadd.s32 208, %v7734_v59 }
 0x201   : > { %v9575_v58 = vsel %vm9574_vm10, %v8003_v8, %v7870_v16  ;;  %v8368_v25 = vadd.f32 %v3765_v5, %v7852_v23  ;;  %v8375_v8 = vsub.s32 %v8056_v47, %v4172_v62  ;;  %v4227_v43 = vmul.u32 18, %v4226_v63 }
 0x202   : > { %vm8353_vm14 = vcmp.lt.s32.totalorder %v9575_v58, 16  ;;  %vm9579_vm11 = vnez %v9529_v18  ;;  %vm9580_vm5 = vnez %v9533_v51  ;;  %v4237_v11 = vshrl.u32 %v8246_v39, 4 }
 0x203   : > { %v9577_v27 = vsel %vm8353_vm14, 4294967295, %v9576_v27  ;;  %v4664_v36 = vsel %vm9579_vm11, %v8287_v19, 0.0  ;;  %v4665_v23 = vsel %vm9580_vm5, %v8346_v56, 0.0  ;;  %v8390_v47 = vadd.s32 192, %v7734_v59  ;;  %v6230_v39 = vpop.f32.mrb[4].mxu0 }
 0x204   : > { %9578 = vst [vmem:[#allocation23_spill] sm:$0xff] %v9577_v27  ;;  %vm9581_vm10 = vnez %v9541_v26  ;;  %v5459_v62 = vpack.c.bf16 %v4665_v23, %v4664_v36  ;;  %vm9582_vm11 = vnez %v9544_v57  ;;  %v4205_v60 = vmul.u32 18, %v4204_v61 }
 0x205   : > { %v4662_v63 = vsel %vm9581_vm10, %v8320_v22, 0.0  ;;  %v4663_v6 = vsel %vm9582_vm11, %v8368_v25, 0.0  ;;  %v8402_v58 = vadd.s32 18, %v8362_v45  ;;  %v8409_v1 = vadd.s32 216, %v7734_v59 }
 0x206   : > { %v4698_v42 = vadd.f32 %v4663_v6, %v4662_v63  ;;  %v5454_v5 = vpack.c.bf16 %v4663_v6, %v4662_v63  ;;  %5541 = vst [vmem:[%s8383_s11 + $0x8] sm:$0xff] %v5459_v62   ;;  %v8405_v14 = vmul.u32.u64.low 3817748708, %v8365_v15  ;;  %v8406_v16 = vmul.u32.u64.high 3817748708, %v8365_v15, %v8405_v14  ;;  %v3778_v63 = vpop.f32.mrb[5].mxu0 }
 0x207   : > { %v8413_v61 = vadd.f32 %v6230_v39, %v7911_v21  ;;  %v9584_v62 = vsel %vm8120_vm9, %v8069_v29, %v8020_v41  ;;  %v9585_v6 = vmov 0  ;;  %v8425_v14 = vadd.s32 18, %v8375_v8  ;;  %v9600_v39 = vld [vmem:[#allocation2_spill] sm:$0xff] }
 0x208   : > { %v4699_v51 = vadd.f32 %v4698_v42, %v4664_v36  ;;  %5455 = vst [vmem:[%s8383_s11] sm:$0xff] %v5454_v5   ;;  %vm8420_vm4 = vcmp.lt.s32.totalorder %v9584_v62, 16  ;;  %v4238_v18 = vmul.u32 18, %v4237_v11  ;;  %v8428_v36 = vadd.f32 %v3778_v63, %v7929_v37  ;;  %v6231_v42 = vpop.f32.mrb[6].mxu0  ;;  %v9598_v37 = vld [vmem:[#allocation10_spill] sm:$0xff] }
 0x209   : > { %9583 = vst [vmem:[#allocation24_spill] sm:$0xff] %v8413_v61  ;;  %v9586_v6 = vsel %vm8420_vm4, 4294967295, %v9585_v6  ;;  %vm9589_vm5 = vnez %v9507_v24  ;;  %v9594_v41 = vsel %vm8136_vm2, %v8098_v54, %v8062_v9  ;;  %v9595_v29 = vmov 0  ;;  %v9599_v24 = vld [vmem:[#allocation11_spill] sm:$0xff]  ;;  %v3781_v48 = vpop.f32.mrb[7].mxu0  ;;  %v9602_v9 = vld [vmem:[#allocation13_spill] sm:$0xff] }
 0x20a   : > { %9587 = vst [vmem:[#allocation25_spill] sm:$0xff] %v9586_v6  ;;  %9588 = vst [vmem:[#allocation26_spill] sm:$0xff] %v8428_v36  ;;  %v9590_v21 = vsel %vm9589_vm5, %v8006_v2, %v7886_v13  ;;  %vm8444_vm9 = vcmp.lt.s32.totalorder %v9594_v41, 16  ;;  %v8449_v11 = vsub.s32 %v9598_v37, %v4227_v43  ;;  %v8452_v5 = vsub.s32 %v9599_v24, %v4205_v60  ;;  %v9603_v54 = vld [vmem:[#allocation8_spill] sm:$0xff] }
 0x20b   : > { %vm8435_vm11 = vcmp.lt.s32.totalorder %v9590_v21, 16  ;;  %v9596_v29 = vsel %vm8444_vm9, 4294967295, %v9595_v29  ;;  %v4215_v13 = vshrl.u32 %v8343_v50, 4  ;;  %v4700_v2 = vadd.f32 %v4699_v51, %v4665_v23  ;;  %v9608_v50 = vld [vmem:[#allocation3_spill] sm:$0xff] }
 0x20c   : > { %v9592_v31 = vsel %vm8435_vm11, 4294967295, %v9591_v31  ;;  %9597 = vst [vmem:[#allocation28_spill] sm:$0xff] %v9596_v29  ;;  %v8456_v63 = vadd.f32 %v6231_v42, %v9600_v39  ;;  %v9604_v62 = vsel %vm8172_vm8, %v9602_v9, %v9603_v54  ;;  %v9605_v21 = vmov 0 }
 0x20d   : > { %9593 = vst [vmem:[#allocation27_spill] sm:$0xff] %v9592_v31  ;;  %vm8463_vm2 = vcmp.lt.s32.totalorder %v9604_v62, 16  ;;  %v8468_v43 = vmul.u32.u64.low 3817748708, %v8390_v47  ;;  %v8469_v60 = vmul.u32.u64.high 3817748708, %v8390_v47, %v8468_v43  ;;  %v4666_v51 = vsel %vm8295_vm1, %v8428_v36, 0.0 }
 0x20e   : > { %9601 = vst [vmem:[#allocation10_spill] sm:$0xff] %v8456_v63  ;;  %v9606_v21 = vsel %vm8463_vm2, 4294967295, %v9605_v21  ;;  %v8475_v23 = vadd.f32 %v3781_v48, %v9608_v50  ;;  %vm9610_vm5 = vcmp.ne.s32.totalorder %v8362_v45, 0  ;;  %vm9611_vm10 = vcmp.lt.s32.totalorder %v8362_v45, 0  ;;  %v9614_v48 = vld [vmem:[#allocation16_spill] sm:$0xff] }
 0x20f   : > { %9607 = vst [vmem:[#allocation11_spill] sm:$0xff] %v9606_v21  ;;  %vm8481_vm8 = vmand %vm9611_vm10, %vm9610_vm5  ;;  %v8486_v42 = vmul.u32.u64.low 3817748708, %v8409_v1  ;;  %v8487_v41 = vmul.u32.u64.high 3817748708, %v8409_v1, %v8486_v42  ;;  %v4668_v37 = vsel %vm8327_vm3, %v8413_v61, 0.0  ;;  %v4701_v24 = vadd.f32 %v4700_v2, %v4666_v51 }
 0x210   : > { %9609 = vst [vmem:[#allocation2_spill] sm:$0xff] %v8475_v23  ;;  %v4669_v39 = vsel %vm8336_vm6, %v8456_v63, 0.0  ;;  %v8496_v9 = vsub.s32 %v9614_v48, %v4238_v18  ;;  %v4667_v62 = vsel %vm8353_vm14, %v8475_v23, 0.0  ;;  %v4216_v43 = vmul.u32 18, %v4215_v13  ;;  %v6234_v48 = vpop.f32.mrb[8].mxu0 }
 0x211   : > { %v5469_v54 = vpack.c.bf16 %v4669_v39, %v4668_v37  ;;  %v8502_v50 = vadd.s32 200, %v7734_v59  ;;  %v4702_v42 = vadd.f32 %v4701_v24, %v4667_v62  ;;  %v5464_v7 = vpack.c.bf16 %v4667_v62, %v4666_v51  ;;  %v9615_v62 = vld [vmem:[#allocation4_spill] sm:$0xff]  ;;  %v3794_v33 = vpop.f32.mrb[9].mxu0 }
 0x212   : > { %vm4391_vm10 = vcmp.ne.s32.totalorder %v8375_v8, 0  ;;  %v8511_v18 = vadd.s32 240, %v7734_v59  ;;  %v8517_v13 = vadd.s32 18, %v8449_v11  ;;  %v4270_v51 = vshrl.u32 %v8406_v16, 4 }
 0x213   : > { %5543 = vst [vmem:[%s8383_s11 + $0x18] sm:$0xff] %v5469_v54   ;;  %v4703_v24 = vadd.f32 %v4702_v42, %v4668_v37  ;;  %5542 = vst [vmem:[%s8383_s11 + $0x10] sm:$0xff] %v5464_v7   ;;  %v8522_v2 = vadd.f32 %v6234_v48, %v9615_v62  ;;  %v9617_v54 = vsel %vm8220_vm13, %v8225_v17, %v8083_v20  ;;  %v9618_v27 = vmov 0  ;;  %v9621_v7 = vld [vmem:[#allocation5_spill] sm:$0xff]  ;;  %v6235_v42 = vpop.f32.mrb[10].mxu0 }
 0x214   : > { %vm8529_vm5 = vcmp.lt.s32.totalorder %v9617_v54, 16  ;;  %v8536_v16 = vadd.s32 18, %v8452_v5  ;;  %v8539_v37 = vadd.f32 %v3794_v33, %v9621_v7  ;;  %v9624_v20 = vsel %vm8206_vm0, %v8211_v40, %v9623_v53  ;;  %v9632_v7 = vld [vmem:[#allocation6_spill] sm:$0xff]  ;;  %v3797_v38 = vpop.f32.mrb[11].mxu0 }
 0x215   : > { %9616 = vst [vmem:[#allocation13_spill] sm:$0xff] %v8522_v2  ;;  %v9619_v27 = vsel %vm8529_vm5, 4294967295, %v9618_v27  ;;  %vm8546_vm13 = vcmp.lt.s32.totalorder %v9624_v20, 16  ;;  %v9625_v17 = vmov 0  ;;  %v9628_v48 = vsel %vm8238_vm7, %v8228_v44, %v8095_v0 }
 0x216   : > { %9620 = vst [vmem:[#allocation8_spill] sm:$0xff] %v9619_v27  ;;  %9622 = vst [vmem:[#allocation3_spill] sm:$0xff] %v8539_v37  ;;  %v9626_v17 = vsel %vm8546_vm13, 4294967295, %v9625_v17  ;;  %vm8555_vm6 = vcmp.lt.s32.totalorder %v9628_v48, 16  ;;  %v9629_v62 = vmov 0  ;;  %v8561_v10 = vsub.s32 %v8259_v49, %v4216_v43 }
 0x217   : > { %9627 = vst [vmem:[#allocation16_spill] sm:$0xff] %v9626_v17  ;;  %v9630_v62 = vsel %vm8555_vm6, 4294967295, %v9629_v62  ;;  %v8564_v40 = vmul.u32.u64.low 3817748708, %v8502_v50  ;;  %v8565_v33 = vmul.u32.u64.high 3817748708, %v8502_v50, %v8564_v40  ;;  %v4704_v54 = vadd.f32 %v4703_v24, %v4669_v39  ;;  %v9638_v24 = vld [vmem:[#allocation7_spill] sm:$0xff] }
 0x218   : > { %9631 = vst [vmem:[#allocation4_spill] sm:$0xff] %v9630_v62  ;;  %v8568_v53 = vadd.f32 %v6235_v42, %v9632_v7  ;;  %v9634_v0 = vsel %vm8252_vm15, %v8231_v28, %v8112_v4  ;;  %v9635_v44 = vmov 0  ;;  %v4670_v39 = vsel %vm8420_vm4, %v8539_v37, 0.0 }
 0x219   : > { %vm8575_vm7 = vcmp.lt.s32.totalorder %v9634_v0, 16  ;;  %v8580_v49 = vmul.u32.u64.low 3817748708, %v8511_v18  ;;  %v8581_v43 = vmul.u32.u64.high 3817748708, %v8511_v18, %v8580_v49  ;;  %v8587_v42 = vadd.f32 %v3797_v38, %v9638_v24 }
 0x21a   : > { %9633 = vst [vmem:[#allocation5_spill] sm:$0xff] %v8568_v53  ;;  %v9636_v44 = vsel %vm8575_vm7, 4294967295, %v9635_v44  ;;  %v4271_v34 = vmul.u32 18, %v4270_v51  ;;  %v4672_v4 = vsel %vm8435_vm11, %v8522_v2, 0.0  ;;  %v4705_v28 = vadd.f32 %v4704_v54, %v4670_v39 }
 0x21b   : > { %9637 = vst [vmem:[#allocation9_spill] sm:$0xff] %v9636_v44  ;;  %9639 = vst [vmem:[#allocation6_spill] sm:$0xff] %v8587_v42  ;;  %v4673_v20 = vsel %vm8444_vm9, %v8568_v53, 0.0  ;;  %v4248_v48 = vshrl.u32 %v8469_v60, 4  ;;  %v4671_v7 = vsel %vm8463_vm2, %v8587_v42, 0.0  ;;  %v8601_v38 = vadd.s32 18, %v8496_v9 }
 0x21c   : > { %v5479_v40 = vpack.c.bf16 %v4673_v20, %v4672_v4  ;;  %v8604_v51 = vadd.s32 224, %v7734_v59  ;;  %v4706_v0 = vadd.f32 %v4705_v28, %v4671_v7  ;;  %v5474_v54 = vpack.c.bf16 %v4671_v7, %v4670_v39  ;;  %v6238_v60 = vpop.f32.mrb[12].mxu0  ;;  %v9640_v39 = vld [vmem:[#allocation12_spill] sm:$0xff]  ;;  %v9642_v53 = vld [vmem:[#allocation14_spill] sm:$0xff] }
 0x21d   : > { %v4281_v49 = vshrl.u32 %v8487_v41, 4  ;;  %v8611_v24 = vadd.s32 18, %v8561_v10  ;;  %v8614_v29 = vsub.s32 %v8365_v15, %v4271_v34  ;;  %v8617_v31 = vadd.s32 248, %v7734_v59  ;;  %v3810_v7 = vpop.f32.mrb[13].mxu0 }
 0x21e   : > { %5545 = vst [vmem:[%s8383_s11 + $0x28] sm:$0xff] %v5479_v40   ;;  %v4707_v21 = vadd.f32 %v4706_v0, %v4672_v4  ;;  %5544 = vst [vmem:[%s8383_s11 + $0x20] sm:$0xff] %v5474_v54   ;;  %v8621_v28 = vadd.f32 %v6238_v60, %v9640_v39  ;;  %v4249_v41 = vmul.u32 18, %v4248_v48  ;;  %v8624_v40 = vadd.s32 232, %v7734_v59  ;;  %v6239_v2 = vpop.f32.mrb[14].mxu0  ;;  %v9647_v54 = vld [vmem:[#allocation15_spill] sm:$0xff] }
 0x21f   : > { %v8627_v6 = vadd.f32 %v3810_v7, %v9642_v53  ;;  %vm9644_vm0 = vcmp.lt.s32.totalorder %v8375_v8, 0  ;;  %v4259_v34 = vshrl.u32 %v8565_v33, 4  ;;  %v8643_v60 = vadd.f32 %v6239_v2, %v9647_v54  ;;  %v3813_v53 = vpop.f32.mrb[15].mxu0 }
 0x220   : > { %9641 = vst [vmem:[#allocation7_spill] sm:$0xff] %v8621_v28  ;;  %vm8633_vm15 = vmand %vm9644_vm0, %vm4391_vm10  ;;  %v8639_v4 = vmul.u32.u64.low 3817748708, %v8604_v51  ;;  %v8640_v48 = vmul.u32.u64.high 3817748708, %v8604_v51, %v8639_v4  ;;  %v4708_v0 = vadd.f32 %v4707_v21, %v4673_v20  ;;  %vm9649_vm3 = vcmp.ne.s32.totalorder %v8449_v11, 0  ;;  %v9653_v21 = vld [vmem:[#allocation17_spill] sm:$0xff]  ;;  %v6242_v44 = vpop.f32.mrb[16].mxu0 }
 0x221   : > { %9643 = vst [vmem:[#allocation12_spill] sm:$0xff] %v8627_v6  ;;  %9648 = vst [vmem:[#allocation14_spill] sm:$0xff] %v8643_v60  ;;  %vm9650_vm9 = vcmp.lt.s32.totalorder %v8449_v11, 0  ;;  %v4282_v7 = vmul.u32 18, %v4281_v49  ;;  %v4314_v33 = vshrl.u32 %v8581_v43, 4  ;;  %v4674_v4 = vsel %vm8529_vm5, %v8627_v6, 0.0 }
 0x222   : > { %vm8649_vm11 = vmand %vm9650_vm9, %vm9649_vm3  ;;  %v8658_v2 = vadd.f32 %v3813_v53, %v9653_v21  ;;  %vm9655_vm10 = vcmp.ne.s32.totalorder %v8452_v5, 0  ;;  %vm9656_vm0 = vcmp.lt.s32.totalorder %v8452_v5, 0  ;;  %v4676_v43 = vsel %vm8546_vm13, %v8621_v28, 0.0  ;;  %v3826_v3 = vpop.f32.mrb[17].mxu0 }
 0x223   : > { %vm8664_vm2 = vmand %vm9656_vm0, %vm9655_vm10  ;;  %v8669_v49 = vmul.u32.u64.low 3817748708, %v8617_v31  ;;  %v8670_v54 = vmul.u32.u64.high 3817748708, %v8617_v31, %v8669_v49  ;;  %v8678_v53 = vsel %vm8555_vm6, %v8643_v60, 0.0  ;;  %vm9659_vm3 = vcmp.ne.s32.totalorder %v8496_v9, 0 }
 0x224   : > { %9654 = vst [vmem:[#allocation15_spill] sm:$0xff] %v8658_v2  ;;  %vm9660_vm9 = vcmp.lt.s32.totalorder %v8496_v9, 0  ;;  %v8689_v49 = vmul.u32.u64.low 3817748708, %v8624_v40  ;;  %v8690_v27 = vmul.u32.u64.high 3817748708, %v8624_v40, %v8689_v49  ;;  %v4709_v17 = vadd.f32 %v4708_v0, %v4674_v4 }
 0x225   : > { %vm8684_vm10 = vmand %vm9660_vm9, %vm9659_vm3  ;;  %v5489_v28 = vpack.c.bf16 %v8678_v53, %v4676_v43  ;;  %v4675_v62 = vsel %vm8575_vm7, %v8658_v2, 0.0  ;;  %vm9663_vm0 = vcmp.ne.s32.totalorder %v8561_v10, 0  ;;  %vm9664_vm6 = vcmp.lt.s32.totalorder %v8561_v10, 0 }
 0x226   : > { %vm8700_vm3 = vmand %vm9664_vm6, %vm9663_vm0  ;;  %v4260_v6 = vmul.u32 18, %v4259_v34  ;;  %v5484_v42 = vpack.c.bf16 %v4675_v62, %v4674_v4  ;;  %v4535_v0 = vsel %vm8633_vm15, %v8425_v14, %v8375_v8  ;;  %v8709_v49 = vsub.s32 %v8390_v47, %v4249_v41 }
 0x227   : > { %5547 = vst [vmem:[%s8383_s11 + $0x38] sm:$0xff] %v5489_v28   ;;  %v9667_v2 = vsel %vm8315_vm12, %v8283_v46, %v8178_v32  ;;  %v9668_v37 = vmov 0  ;;  %v4540_v15 = vsel %vm8649_vm11, %v8517_v13, %v8449_v11  ;;  %v4538_v8 = vsel %vm8664_vm2, %v8536_v16, %v8452_v5  ;;  %v6034_v28 = vpop.f32.mrb[16].mxu1 }
 0x228   : > { %vm8717_vm6 = vcmp.lt.s32.totalorder %v9667_v2, 16  ;;  %v4315_v47 = vmul.u32 18, %v4314_v33  ;;  %5546 = vst [vmem:[%s8383_s11 + $0x30] sm:$0xff] %v5484_v42   ;;  %vm9671_vm15 = vnez %v9559_v35  ;;  %v9673_v46 = vmov 0  ;;  %v2220_v39 = vpop.f32.mrb[17].mxu1 }
 0x229   : > { %v9669_v37 = vsel %vm8717_vm6, 4294967295, %v9668_v37  ;;  %v9672_v32 = vsel %vm9671_vm15, %v8270_v52, %v8143_v55  ;;  %v9676_v14 = vsel %vm8481_vm8, %v8402_v58, %v8362_v45  ;;  %v9677_v11 = vmov 0  ;;  %v6243_v58 = vpop.f32.mrb[18].mxu0  ;;  %v6035_v2 = vpop.f32.mrb[18].mxu1 }
 0x22a   : > { %9670 = vst [vmem:[#allocation17_spill] sm:$0xff] %v9669_v37  ;;  %vm8735_vm12 = vcmp.lt.s32.totalorder %v9672_v32, 16  ;;  %vm8744_vm11 = vcmp.lt.s32.totalorder %v9676_v14, 16  ;;  %v4541_v35 = vsel %vm8684_vm10, %v8601_v38, %v8496_v9  ;;  %v4539_v52 = vsel %vm8700_vm3, %v8611_v24, %v8561_v10  ;;  %v3829_v13 = vpop.f32.mrb[19].mxu0 }
 0x22b   : > { %v9674_v46 = vsel %vm8735_vm12, 4294967295, %v9673_v46  ;;  %v9678_v11 = vsel %vm8744_vm11, 4294967295, %v9677_v11  ;;  %vm4400_vm2 = vcmp.ne.s32.totalorder %v8614_v29, 0  ;;  %v8758_v55 = vsub.s32 %v8409_v1, %v4282_v7 }
 0x22c   : > { %9675 = vst [vmem:[#allocation29_spill] sm:$0xff] %v9674_v46  ;;  %9679 = vst [vmem:[#allocation30_spill] sm:$0xff] %v9678_v11  ;;  %v4710_v45 = vadd.f32 %v4709_v17, %v4675_v62  ;;  %vm8760_vm8 = vcmp.lt.s32.totalorder %v4535_v0, 16  ;;  %v9680_v5 = vmov 0  ;;  %v8766_v12 = vadd.s32 18, %v8614_v29 }
 0x22d   : > { %v9681_v5 = vsel %vm8760_vm8, 4294967295, %v9680_v5  ;;  %v8769_v9 = vsub.s32 %v8502_v50, %v4260_v6  ;;  %v8774_v1 = vadd.s32 272, %v7734_v59  ;;  %v8777_v16 = vadd.s32 256, %v7734_v59 }
 0x22e   : > { %9682 = vst [vmem:[#allocation31_spill] sm:$0xff] %v9681_v5  ;;  %v8780_v17 = vadd.s32 18, %v8709_v49  ;;  %v8783_v62 = vsub.s32 %v8511_v18, %v4315_v47  ;;  %v4292_v6 = vshrl.u32 %v8640_v48, 4  ;;  %v8787_v50 = vadd.s32 280, %v7734_v59 }
 0x22f   : > { %v8792_v10 = vadd.s32 18, %v8758_v55  ;;  %v8795_v42 = vadd.s32 264, %v7734_v59  ;;  %v4711_v38 = vadd.f32 %v4710_v45, %v4676_v43  ;;  %v4325_v18 = vshrl.u32 %v8670_v54, 4  ;;  %v6246_v59 = vpop.f32.mrb[20].mxu0 }
 0x230   : > { %v4303_v24 = vshrl.u32 %v8690_v27, 4  ;;  %v8802_v41 = vadd.s32 18, %v8769_v9  ;;  %v8805_v34 = vmul.u32.u64.low 3817748708, %v8774_v1  ;;  %v8806_v48 = vmul.u32.u64.high 3817748708, %v8774_v1, %v8805_v34  ;;  %v3842_v4 = vpop.f32.mrb[21].mxu0 }
 0x231   : > { %v8808_v60 = vadd.f32 %v6242_v44, %v6034_v28  ;;  %vm8810_vm15 = vcmp.lt.s32.totalorder %v4538_v8, 16  ;;  %v4293_v27 = vmul.u32 18, %v4292_v6  ;;  %v8816_v33 = vadd.f32 %v3826_v3, %v2220_v39  ;;  %v6247_v47 = vpop.f32.mrb[22].mxu0  ;;  %v2223_v3 = vpop.f32.mrb[19].mxu1 }
 0x232   : > { %vm8818_vm10 = vcmp.lt.s32.totalorder %v4540_v15, 16  ;;  %vm8822_vm9 = vcmp.lt.s32.totalorder %v4541_v35, 16  ;;  %vm9689_vm13 = vcmp.lt.s32.totalorder %v8614_v29, 0  ;;  %v8835_v43 = vadd.s32 18, %v8783_v62  ;;  %v6038_v5 = vpop.f32.mrb[20].mxu1 }
 0x233   : > { %vm8830_vm0 = vmand %vm9689_vm13, %vm4400_vm2  ;;  %v8838_v21 = vmul.u32.u64.low 3817748708, %v8777_v16  ;;  %v8839_v0 = vmul.u32.u64.high 3817748708, %v8777_v16, %v8838_v21  ;;  %v4712_v15 = vadd.f32 %v4711_v38, %v8678_v53  ;;  %v8842_v8 = vadd.f32 %v6243_v58, %v6035_v2  ;;  %v2236_v14 = vpop.f32.mrb[21].mxu1 }
 0x234   : > { %vm8844_vm3 = vcmp.lt.s32.totalorder %v4539_v52, 16  ;;  %vm9694_vm13 = vcmp.ne.s32.totalorder %v8709_v49, 0  ;;  %vm9695_vm2 = vcmp.lt.s32.totalorder %v8709_v49, 0  ;;  %v4326_v35 = vmul.u32 18, %v4325_v18  ;;  %v3845_v52 = vpop.f32.mrb[23].mxu0 }
 0x235   : > { %vm8852_vm7 = vmand %vm9695_vm2, %vm9694_vm13  ;;  %v4304_v45 = vmul.u32 18, %v4303_v24  ;;  %v4678_v53 = vsel %vm8717_vm6, %v8816_v33, 0.0  ;;  %v8859_v58 = vadd.f32 %v3829_v13, %v2223_v3  ;;  %vm9698_vm5 = vcmp.ne.s32.totalorder %v8758_v55, 0 }
 0x236   : > { %vm9699_vm4 = vcmp.lt.s32.totalorder %v8758_v55, 0  ;;  %v8870_v38 = vmul.u32.u64.low 3817748708, %v8787_v50  ;;  %v8871_v18 = vmul.u32.u64.high 3817748708, %v8787_v50, %v8870_v38  ;;  %v4680_v24 = vsel %vm8735_vm12, %v8808_v60, 0.0 }
 0x237   : > { %vm8865_vm14 = vmand %vm9699_vm4, %vm9698_vm5  ;;  %v4713_v13 = vadd.f32 %v4712_v15, %v4678_v53  ;;  %v4681_v28 = vsel %vm8744_vm11, %v8842_v8, 0.0  ;;  %vm9702_vm13 = vcmp.ne.s32.totalorder %v8769_v9, 0  ;;  %vm9703_vm4 = vcmp.lt.s32.totalorder %v8769_v9, 0 }
 0x238   : > { %vm8883_vm5 = vmand %vm9703_vm4, %vm9702_vm13  ;;  %v8888_v39 = vsub.s32 %v8604_v51, %v4293_v27  ;;  %v5499_v2 = vpack.c.bf16 %v4681_v28, %v4680_v24  ;;  %v4679_v21 = vsel %vm8760_vm8, %v8859_v58, 0.0  ;;  %vm9706_vm2 = vcmp.ne.s32.totalorder %v8783_v62, 0 }
 0x239   : > { %vm9707_vm11 = vcmp.lt.s32.totalorder %v8783_v62, 0  ;;  %v8902_v3 = vmul.u32.u64.low 3817748708, %v8795_v42  ;;  %v8903_v38 = vmul.u32.u64.high 3817748708, %v8795_v42, %v8902_v3  ;;  %v4714_v51 = vadd.f32 %v4713_v13, %v4679_v21 }
 0x23a   : > { %vm8897_vm12 = vmand %vm9707_vm11, %vm9706_vm2  ;;  %v5494_v27 = vpack.c.bf16 %v4679_v21, %v4678_v53  ;;  %v4544_v11 = vsel %vm8830_vm0, %v8766_v12, %v8614_v29  ;;  %v8910_v46 = vsub.s32 %v8617_v31, %v4326_v35  ;;  %5549 = vst [vmem:[%s8383_s11 + $0x48] sm:$0xff] %v5499_v2   ;;  %v4542_v37 = vsel %vm8852_vm7, %v8780_v17, %v8709_v49  ;;  %v6250_v35 = vpop.f32.mrb[24].mxu0 }
 0x23b   : > { %v4545_v53 = vsel %vm8865_vm14, %v8792_v10, %v8758_v55  ;;  %v4543_v29 = vsel %vm8883_vm5, %v8802_v41, %v8769_v9  ;;  %v8926_v31 = vsub.s32 %v8624_v40, %v4304_v45  ;;  %v4715_v12 = vadd.f32 %v4714_v51, %v4680_v24  ;;  %v3858_v17 = vpop.f32.mrb[25].mxu0  ;;  %v6039_v9 = vpop.f32.mrb[22].mxu1 }
 0x23c   : > { %5548 = vst [vmem:[%s8383_s11 + $0x40] sm:$0xff] %v5494_v27   ;;  %v8929_v54 = vadd.f32 %v6246_v59, %v6038_v5  ;;  %v4548_v49 = vsel %vm8897_vm12, %v8835_v43, %v8783_v62  ;;  %vm4402_vm14 = vcmp.ne.s32.totalorder %v8888_v39, 0  ;;  %v8936_v55 = vadd.f32 %v3842_v4, %v2236_v14  ;;  %v6251_v62 = vpop.f32.mrb[26].mxu0  ;;  %v2239_v43 = vpop.f32.mrb[23].mxu1 }
 0x23d   : > { %vm8938_vm7 = vcmp.lt.s32.totalorder %v4544_v11, 16  ;;  %v9710_v40 = vmov 0  ;;  %vm4438_vm11 = vcmp.lt.s32.totalorder %v8888_v39, 0  ;;  %v8944_v5 = vadd.s32 18, %v8888_v39  ;;  %v3861_v45 = vpop.f32.mrb[27].mxu0  ;;  %v6042_v3 = vpop.f32.mrb[24].mxu1 }
 0x23e   : > { %v9711_v40 = vsel %vm8938_vm7, 4294967295, %v9710_v40  ;;  %v4358_v10 = vshrl.u32 %v8806_v48, 4  ;;  %v4716_v41 = vadd.f32 %v4715_v12, %v4681_v28  ;;  %v8947_v59 = vadd.f32 %v6247_v47, %v6039_v9  ;;  %vm8974_vm5 = vmand %vm4438_vm11, %vm4402_vm14 }
 0x23f   : > { %vm4405_vm12 = vcmp.ne.s32.totalorder %v8910_v46, 0  ;;  %vm4441_vm0 = vcmp.lt.s32.totalorder %v8910_v46, 0  ;;  %v4682_v11 = vsel %vm8810_vm15, %v8936_v55, 0.0  ;;  %v8954_v4 = vadd.f32 %v3845_v52, %v2239_v43 }
 0x240   : > { %vm4403_vm13 = vcmp.ne.s32.totalorder %v8926_v31, 0  ;;  %v4336_v48 = vshrl.u32 %v8839_v0, 4  ;;  %v4684_v47 = vsel %vm8818_vm10, %v8929_v54, 0.0  ;;  %v4717_v6 = vadd.f32 %v4716_v41, %v4682_v11  ;;  %vm8992_vm14 = vmand %vm4441_vm0, %vm4405_vm12 }
 0x241   : > { %v4685_v24 = vsel %vm8822_vm9, %v8947_v59, 0.0  ;;  %v4369_v13 = vshrl.u32 %v8871_v18, 4  ;;  %v4683_v52 = vsel %vm8844_vm3, %v8954_v4, 0.0  ;;  %v4347_v0 = vshrl.u32 %v8903_v38, 4 }
 0x242   : > { %v5509_v28 = vpack.c.bf16 %v4685_v24, %v4684_v47  ;;  %v4718_v34 = vadd.f32 %v4717_v6, %v4683_v52  ;;  %v5504_v2 = vpack.c.bf16 %v4683_v52, %v4682_v11  ;;  %v4513_v18 = vadd.s32 18, %v8910_v46 }
 0x243   : > { %v4359_v15 = vmul.u32 18, %v4358_v10  ;;  %vm8980_vm2 = vcmp.lt.s32.totalorder %v4542_v37, 16  ;;  %vm8984_vm4 = vcmp.lt.s32.totalorder %v4545_v53, 16  ;;  %v9716_v38 = vmov 0  ;;  %v6254_v10 = vpop.f32.mrb[28].mxu0  ;;  %v2252_v53 = vpop.f32.mrb[25].mxu1 }
 0x244   : > { %5551 = vst [vmem:[%s8383_s11 + $0x58] sm:$0xff] %v5509_v28   ;;  %v9717_v38 = vsel %vm8984_vm4, 4294967295, %v9716_v38  ;;  %v4511_v12 = vadd.s32 18, %v8926_v31  ;;  %v4337_v14 = vmul.u32 18, %v4336_v48  ;;  %v4719_v9 = vadd.f32 %v4718_v34, %v4684_v47  ;;  %5550 = vst [vmem:[%s8383_s11 + $0x50] sm:$0xff] %v5504_v2   ;;  %v3874_v47 = vpop.f32.mrb[29].mxu0 }
 0x245   : > { %v8998_v37 = vadd.f32 %v6250_v35, %v6042_v3  ;;  %vm9000_vm11 = vcmp.lt.s32.totalorder %v4543_v29, 16  ;;  %v9720_v41 = vmov 0  ;;  %vm9722_vm12 = vcmp.lt.s32.totalorder %v8926_v31, 0  ;;  %v6043_v35 = vpop.f32.mrb[26].mxu1  ;;  %v6255_v2 = vpop.f32.mrb[30].mxu0 }
 0x246   : > { %v9721_v41 = vsel %vm9000_vm11, 4294967295, %v9720_v41  ;;  %vm9008_vm0 = vmand %vm9722_vm12, %vm4403_vm13  ;;  %v4370_v11 = vmul.u32 18, %v4369_v13  ;;  %v9012_v48 = vadd.f32 %v3858_v17, %v2252_v53  ;;  %vm9014_vm8 = vcmp.lt.s32.totalorder %v4548_v49, 16  ;;  %v2255_v3 = vpop.f32.mrb[27].mxu1 }
 0x247   : > { %v4546_v29 = vsel %vm8974_vm5, %v8944_v5, %v8888_v39  ;;  %v4348_v28 = vmul.u32 18, %v4347_v0  ;;  %v4720_v52 = vadd.f32 %v4719_v9, %v4685_v24  ;;  %v9022_v34 = vadd.f32 %v6251_v62, %v6043_v35  ;;  %v3877_v39 = vpop.f32.mrb[31].mxu0 }
 0x248   : > { %v4549_v17 = vsel %vm8992_vm14, %v4513_v18, %v8910_v46  ;;  %v9028_v49 = vsub.s32 %v8774_v1, %v4359_v15  ;;  %v4686_v13 = vsel %vm8980_vm2, %v9012_v48, 0.0  ;;  %v9033_v53 = vadd.f32 %v3861_v45, %v2255_v3  ;;  %v6258_v9 = vpop.f32.mrb[32].mxu0 }
 0x249   : > { %v4547_v5 = vsel %vm9008_vm0, %v4511_v12, %v8926_v31  ;;  %v9039_v62 = vsub.s32 %v8777_v16, %v4337_v14  ;;  %v4688_v46 = vsel %vm8938_vm7, %v8998_v37, 0.0  ;;  %v4721_v1 = vadd.f32 %v4720_v52, %v4686_v13  ;;  %v3890_v35 = vpop.f32.mrb[33].mxu0 }
 0x24a   : > { %v4689_v24 = vsel %vm8984_vm4, %v9022_v34, 0.0  ;;  %v9048_v45 = vsub.s32 %v8787_v50, %v4370_v11  ;;  %v4687_v31 = vsel %vm9000_vm11, %v9033_v53, 0.0  ;;  %vm9053_vm13 = vcmp.lt.s32.totalorder %v4546_v29, 16  ;;  %v6046_v50 = vpop.f32.mrb[28].mxu1 }
 0x24b   : > { %v5519_v0 = vpack.c.bf16 %v4689_v24, %v4688_v46  ;;  %v9058_v21 = vsub.s32 %v8795_v42, %v4348_v28  ;;  %v4722_v18 = vadd.f32 %v4721_v1, %v4687_v31  ;;  %v5514_v15 = vpack.c.bf16 %v4687_v31, %v4686_v13  ;;  %v2268_v43 = vpop.f32.mrb[29].mxu1 }
 0x24c   : > { %vm9063_vm12 = vcmp.lt.s32.totalorder %v4549_v17, 16  ;;  %vm9067_vm0 = vcmp.lt.s32.totalorder %v4547_v5, 16  ;;  %v9074_v14 = vadd.f32 %v6254_v10, %v6046_v50  ;;  %v9078_v11 = vadd.f32 %v3874_v47, %v2268_v43  ;;  %v6047_v29 = vpop.f32.mrb[30].mxu1  ;;  %v6259_v47 = vpop.f32.mrb[34].mxu0 }
 0x24d   : > { %5553 = vst [vmem:[%s8383_s11 + $0x68] sm:$0xff] %v5519_v0   ;;  %v4723_v42 = vadd.f32 %v4722_v18, %v4688_v46  ;;  %5552 = vst [vmem:[%s8383_s11 + $0x60] sm:$0xff] %v5514_v15   ;;  %vm9733_vm4 = vcmp.ne.s32.totalorder %v9028_v49, 0  ;;  %vm9734_vm6 = vcmp.lt.s32.totalorder %v9028_v49, 0  ;;  %v4514_v10 = vadd.s32 18, %v9039_v62  ;;  %v2271_v17 = vpop.f32.mrb[31].mxu1 }
 0x24e   : > { %vm9084_vm7 = vmand %vm9734_vm6, %vm9733_vm4  ;;  %v9091_v3 = vadd.f32 %v6255_v2, %v6047_v29  ;;  %v4516_v13 = vadd.s32 18, %v9028_v49  ;;  %vm9737_vm5 = vcmp.ne.s32.totalorder %v9039_v62, 0  ;;  %vm9738_vm6 = vcmp.lt.s32.totalorder %v9039_v62, 0  ;;  %v6050_v61 = vpop.f32.mrb[32].mxu1 }
 0x24f   : > { %v4724_v52 = vadd.f32 %v4723_v42, %v4689_v24  ;;  %vm9098_vm4 = vmand %vm9738_vm6, %vm9737_vm5  ;;  %v4517_v46 = vadd.s32 18, %v9048_v45  ;;  %v4690_v1 = vsel %vm9053_vm13, %v9078_v11, 0.0  ;;  %v9106_v2 = vadd.f32 %v3877_v39, %v2271_v17  ;;  %v3893_v24 = vpop.f32.mrb[35].mxu0 }
 0x250   : > { %vm9741_vm14 = vcmp.ne.s32.totalorder %v9048_v45, 0  ;;  %vm9742_vm1 = vcmp.lt.s32.totalorder %v9048_v45, 0  ;;  %v4515_v31 = vadd.s32 18, %v9058_v21  ;;  %v4692_v18 = vsel %vm9014_vm8, %v9074_v14, 0.0 }
 0x251   : > { %vm9112_vm11 = vmand %vm9742_vm1, %vm9741_vm14  ;;  %v4725_v15 = vadd.f32 %v4724_v52, %v4690_v1  ;;  %v4693_v39 = vsel %vm9063_vm12, %v9091_v3, 0.0  ;;  %vm9745_vm5 = vcmp.ne.s32.totalorder %v9058_v21, 0  ;;  %vm9746_vm6 = vcmp.lt.s32.totalorder %v9058_v21, 0 }
 0x252   : > { %vm9127_vm1 = vmand %vm9746_vm6, %vm9745_vm5  ;;  %v5529_v42 = vpack.c.bf16 %v4693_v39, %v4692_v18  ;;  %v4691_v43 = vsel %vm9067_vm0, %v9106_v2, 0.0  ;;  %v4550_v29 = vsel %vm9098_vm4, %v4514_v10, %v9039_v62  ;;  %v4552_v63 = vsel %vm9084_vm7, %v4516_v13, %v9028_v49  ;;  %v2284_v62 = vpop.f32.mrb[33].mxu1  ;;  %v9763_v13 = vld [vmem:[#allocation18_spill] sm:$0xff] }
 0x253   : > { %v4726_v52 = vadd.f32 %v4725_v15, %v4691_v43  ;;  %v5524_v17 = vpack.c.bf16 %v4691_v43, %v4690_v1  ;;  %v4553_v30 = vsel %vm9112_vm11, %v4517_v46, %v9048_v45  ;;  %v4551_v23 = vsel %vm9127_vm1, %v4515_v31, %v9058_v21  ;;  %v6051_v28 = vpop.f32.mrb[34].mxu1 }
 0x254   : > { %5555 = vst [vmem:[%s8383_s11 + $0x78] sm:$0xff] %v5529_v42   ;;  %v9148_v5 = vadd.f32 %v6258_v9, %v6050_v61  ;;  %vm9150_vm14 = vcmp.lt.s32.totalorder %v4550_v29, 16  ;;  %vm9154_vm7 = vcmp.lt.s32.totalorder %v4552_v63, 16  ;;  %v9158_v45 = vadd.f32 %v3890_v35, %v2284_v62  ;;  %v2287_v9 = vpop.f32.mrb[35].mxu1 }
 0x255   : > { %v4727_v36 = vadd.f32 %v4726_v52, %v4692_v18  ;;  %5554 = vst [vmem:[%s8383_s11 + $0x70] sm:$0xff] %v5524_v17   ;;  %vm9160_vm11 = vcmp.lt.s32.totalorder %v4553_v30, 16  ;;  %v9164_v21 = vadd.f32 %v6259_v47, %v6051_v28  ;;  %vm9166_vm4 = vcmp.lt.s32.totalorder %v4551_v23, 16 }
 0x256   : > { %v4694_v63 = vsel %vm9150_vm14, %v9158_v45, 0.0  ;;  %v6311_v35 = vadd.f32 %v3893_v24, %v2287_v9  ;;  %v4696_v30 = vsel %vm9154_vm7, %v9148_v5, 0.0  ;;  %vm9757_vm5 = vnez %v9721_v41 }
 0x257   : > { %v4728_v61 = vadd.f32 %v4727_v36, %v4693_v39  ;;  %v4697_v36 = vsel %vm9160_vm11, %v9164_v21, 0.0 }
 0x258   : > { %v5539_v47 = vpack.c.bf16 %v4697_v36, %v4696_v30  ;;  %v4695_v23 = vsel %vm9166_vm4, %v6311_v35, 0.0 }
 0x259   : > { %v4729_v1 = vadd.f32 %v4728_v61, %v4694_v63  ;;  %v5534_v31 = vpack.c.bf16 %v4695_v23, %v4694_v63 }
 0x25a   : > { %5557 = vst [vmem:[%s8383_s11 + $0x88] sm:$0xff] %v5539_v47  }
 0x25b   : > { %v4730_v0 = vadd.f32 %v4729_v1, %v4695_v23  ;;  %5556 = vst [vmem:[%s8383_s11 + $0x80] sm:$0xff] %v5534_v31  }
 0x25d   : > { %v4731_v18 = vadd.f32 %v4730_v0, %v4696_v30  ;;  %v9762_v0 = vld [vmem:[#allocation26_spill] sm:$0xff] }
 0x25f   : > { %v4732_v24 = vadd.f32 %v4731_v18, %v4697_v36 }
 0x261   : > { %v4733_v15 = vrot.slane %v4732_v24, 4 }
 0x263   : > { %v4734_v39 = vadd.f32 %v4733_v15, %v4732_v24  ;;  %v9765_v24 = vld [vmem:[#allocation2_spill] sm:$0xff]  ;;  %v9766_v15 = vld [vmem:[#allocation19_spill] sm:$0xff] }
 0x265   : > { %v4735_v50 = vrot.slane %v4734_v39, 2 }
 0x267   : > { %v4736_v42 = vadd.f32 %v4735_v50, %v4734_v39  ;;  %v9768_v50 = vld [vmem:[#allocation24_spill] sm:$0xff] }
 0x269   : > { %v4737_v43 = vrot.slane %v4736_v42, 1 }
 0x26b   : > { %v4738_v29 = vadd.f32 %v4737_v43, %v4736_v42 }
 0x26d   : > { %5070 = vst [vmem:[%s261_s14] sm:$0x1] %v4738_v29  ;;  %v9187_v52 = vmul.f32 0.00390625, %v4738_v29 }
 0x26f   : > { %v4757_v17 = vsub.f32 %v8816_v33, %v9187_v52  ;;  %v4758_v62 = vsub.f32 %v8859_v58, %v9187_v52  ;;  %v4759_v28 = vsub.f32 %v8808_v60, %v9187_v52  ;;  %v4760_v61 = vsub.f32 %v8842_v8, %v9187_v52 }
 0x270   : > { %v4761_v9 = vsub.f32 %v8936_v55, %v9187_v52  ;;  %v4762_v63 = vsub.f32 %v8954_v4, %v9187_v52  ;;  %v4763_v30 = vsub.f32 %v8929_v54, %v9187_v52  ;;  %v4764_v1 = vsub.f32 %v8947_v59, %v9187_v52 }
 0x271   : > { %v4765_v36 = vsub.f32 %v9012_v48, %v9187_v52  ;;  %v4766_v47 = vsub.f32 %v9033_v53, %v9187_v52  ;;  %v4767_v23 = vsub.f32 %v8998_v37, %v9187_v52  ;;  %v4768_v55 = vsub.f32 %v9022_v34, %v9187_v52 }
 0x272   : > { %v4769_v4 = vsub.f32 %v9078_v11, %v9187_v52  ;;  %v4770_v54 = vsub.f32 %v9106_v2, %v9187_v52  ;;  %v4771_v59 = vsub.f32 %v9074_v14, %v9187_v52  ;;  %v4772_v48 = vsub.f32 %v9091_v3, %v9187_v52 }
 0x273   : > { %v4773_v53 = vsub.f32 %v9158_v45, %v9187_v52  ;;  %v4774_v37 = vsub.f32 %v6311_v35, %v9187_v52  ;;  %v4775_v34 = vsub.f32 %v9148_v5, %v9187_v52  ;;  %v4776_v11 = vsub.f32 %v9164_v21, %v9187_v52 }
 0x274   : > { %v4741_v2 = vsub.f32 %v8320_v22, %v9187_v52  ;;  %v4742_v14 = vsub.f32 %v8368_v25, %v9187_v52  ;;  %v9234_v3 = vsel %vm8810_vm15, %v4761_v9, 0.0  ;;  %v9238_v45 = vsel %vm8844_vm3, %v4762_v63, 0.0  ;;  %v9771_v63 = vld [vmem:[#allocation10_spill] sm:$0xff] }
 0x275   : > { %v9242_v5 = vsel %vm8818_vm10, %v4763_v30, 0.0  ;;  %v9246_v21 = vsel %vm8822_vm9, %v4764_v1, 0.0  ;;  %v9250_v22 = vsel %vm8980_vm2, %v4765_v36, 0.0  ;;  %v9254_v25 = vsel %vm9757_vm5, %v4766_v47, 0.0  ;;  %v9772_v1 = vld [vmem:[#allocation23_spill] sm:$0xff] }
 0x276   : > { %vm9758_vm15 = vnez %v9711_v40  ;;  %vm9759_vm3 = vnez %v9717_v38  ;;  %v9266_v44 = vsel %vm9053_vm13, %v4769_v4, 0.0  ;;  %v9270_v32 = vsel %vm9067_vm0, %v4770_v54, 0.0  ;;  %v9775_v54 = vld [vmem:[#allocation21_spill] sm:$0xff] }
 0x277   : > { %v9258_v7 = vsel %vm9758_vm15, %v4767_v23, 0.0  ;;  %v9262_v20 = vsel %vm9759_vm3, %v4768_v55, 0.0  ;;  %v9274_v51 = vsel %vm9014_vm8, %v4771_v59, 0.0  ;;  %v9278_v40 = vsel %vm9063_vm12, %v4772_v48, 0.0  ;;  %v9774_v55 = vld [vmem:[#allocation3_spill] sm:$0xff] }
 0x278   : > { %v9282_v38 = vsel %vm9150_vm14, %v4773_v53, 0.0  ;;  %v9286_v41 = vsel %vm9166_vm4, %v4774_v37, 0.0  ;;  %v9290_v16 = vsel %vm9154_vm7, %v4775_v34, 0.0  ;;  %v9294_v6 = vsel %vm9160_vm11, %v4776_v11, 0.0  ;;  %v9777_v37 = vld [vmem:[#allocation6_spill] sm:$0xff] }
 0x279   : > { %v4743_v27 = vsub.f32 %v8287_v19, %v9187_v52  ;;  %vm9760_vm8 = vnez %v9541_v26  ;;  %vm9761_vm9 = vnez %v9544_v57  ;;  %v4744_v46 = vsub.f32 %v8346_v56, %v9187_v52  ;;  %v9769_v56 = vld [vmem:[#allocation20_spill] sm:$0xff]  ;;  %v9778_v11 = vld [vmem:[#allocation22_spill] sm:$0xff] }
 0x27a   : > { %v4777_v12 = vsel %vm9760_vm8, %v4741_v2, 0.0  ;;  %v4778_v10 = vsel %vm9761_vm9, %v4742_v14, 0.0  ;;  %v4745_v31 = vsub.f32 %v9762_v0, %v9187_v52  ;;  %vm9764_vm10 = vnez %v9763_v13 }
 0x27b   : > { %v4813_v35 = vmul.f32 %v4777_v12, %v4777_v12  ;;  %v4814_v49 = vmul.f32 %v4778_v10, %v4778_v10  ;;  %v4779_v18 = vsel %vm9764_vm10, %v4743_v27, 0.0  ;;  %v4746_v19 = vsub.f32 %v9765_v24, %v9187_v52  ;;  %v9780_v12 = vld [vmem:[#allocation13_spill] sm:$0xff] }
 0x27c   : > { %vm9767_vm2 = vnez %v9766_v15  ;;  %v4815_v39 = vmul.f32 %v4779_v18, %v4779_v18  ;;  %v4747_v42 = vsub.f32 %v9768_v50, %v9187_v52  ;;  %vm9770_vm13 = vnez %v9769_v56  ;;  %v9784_v18 = vld [vmem:[#allocation11_spill] sm:$0xff] }
 0x27d   : > { %v4780_v26 = vsel %vm9767_vm2, %v4744_v46, 0.0  ;;  %v4849_v57 = vadd.f32 %v4814_v49, %v4813_v35  ;;  %v4781_v43 = vsel %vm9770_vm13, %v4745_v31, 0.0  ;;  %v4748_v30 = vsub.f32 %v9771_v63, %v9187_v52  ;;  %v9781_v46 = vld [vmem:[#allocation25_spill] sm:$0xff] }
 0x27e   : > { %v4816_v29 = vmul.f32 %v4780_v26, %v4780_v26  ;;  %vm9773_vm12 = vnez %v9772_v1  ;;  %v4817_v47 = vmul.f32 %v4781_v43, %v4781_v43  ;;  %v4749_v4 = vsub.f32 %v9774_v55, %v9187_v52  ;;  %v9783_v31 = vld [vmem:[#allocation5_spill] sm:$0xff]  ;;  %v9786_v26 = vld [vmem:[#allocation12_spill] sm:$0xff]  ;;  %v9789_v43 = vld [vmem:[#allocation15_spill] sm:$0xff] }
 0x27f   : > { %v4850_v9 = vadd.f32 %v4849_v57, %v4815_v39  ;;  %v4782_v36 = vsel %vm9773_vm12, %v4746_v19, 0.0  ;;  %vm9776_vm0 = vnez %v9775_v54  ;;  %v4750_v34 = vsub.f32 %v9777_v37, %v9187_v52  ;;  %v9787_v57 = vld [vmem:[#allocation27_spill] sm:$0xff] }
 0x280   : > { %v4783_v59 = vsel %vm9776_vm0, %v4747_v42, 0.0  ;;  %v4818_v48 = vmul.f32 %v4782_v36, %v4782_v36  ;;  %vm9779_vm6 = vnez %v9778_v11  ;;  %v4751_v10 = vsub.f32 %v9780_v12, %v9187_v52  ;;  %v9792_v36 = vld [vmem:[#allocation7_spill] sm:$0xff] }
 0x281   : > { %v4851_v23 = vadd.f32 %v4850_v9, %v4816_v29  ;;  %v4784_v2 = vsel %vm9779_vm6, %v4748_v30, 0.0  ;;  %v4819_v14 = vmul.f32 %v4783_v59, %v4783_v59  ;;  %vm9782_vm1 = vnez %v9781_v46  ;;  %v9790_v9 = vld [vmem:[#allocation28_spill] sm:$0xff]  ;;  %v9795_v59 = vld [vmem:[#allocation14_spill] sm:$0xff] }
 0x282   : > { %v4785_v35 = vsel %vm9782_vm1, %v4749_v4, 0.0  ;;  %v4820_v49 = vmul.f32 %v4784_v2, %v4784_v2  ;;  %v4752_v13 = vsub.f32 %v9783_v31, %v9187_v52  ;;  %vm9785_vm14 = vnez %v9784_v18  ;;  %v9798_v2 = vld [vmem:[#allocation16_spill] sm:$0xff] }
 0x283   : > { %v4852_v53 = vadd.f32 %v4851_v23, %v4817_v47  ;;  %v4786_v24 = vsel %vm9785_vm14, %v4750_v34, 0.0  ;;  %v4821_v19 = vmul.f32 %v4785_v35, %v4785_v35  ;;  %v4753_v39 = vsub.f32 %v9786_v26, %v9187_v52  ;;  %v9793_v23 = vld [vmem:[#allocation8_spill] sm:$0xff] }
 0x284   : > { %vm9788_vm7 = vnez %v9787_v57  ;;  %v4822_v42 = vmul.f32 %v4786_v24, %v4786_v24  ;;  %v4754_v29 = vsub.f32 %v9789_v43, %v9187_v52  ;;  %vm9791_vm11 = vnez %v9790_v9  ;;  %v9804_v24 = vld [vmem:[#allocation31_spill] sm:$0xff] }
 0x285   : > { %v4853_v27 = vadd.f32 %v4852_v53, %v4818_v48  ;;  %v4787_v50 = vsel %vm9788_vm7, %v4751_v10, 0.0  ;;  %v4788_v63 = vsel %vm9791_vm11, %v4752_v13, 0.0  ;;  %v4755_v47 = vsub.f32 %v9792_v36, %v9187_v52  ;;  %v9796_v53 = vld [vmem:[#allocation9_spill] sm:$0xff]  ;;  %v9800_v10 = vld [vmem:[#allocation4_spill] sm:$0xff] }
 0x286   : > { %v4823_v30 = vmul.f32 %v4787_v50, %v4787_v50  ;;  %vm9794_vm4 = vnez %v9793_v23  ;;  %v4824_v4 = vmul.f32 %v4788_v63, %v4788_v63  ;;  %v4756_v48 = vsub.f32 %v9795_v59, %v9187_v52 }
 0x287   : > { %v4854_v0 = vadd.f32 %v4853_v27, %v4819_v14  ;;  %v4789_v55 = vsel %vm9794_vm4, %v4753_v39, 0.0  ;;  %vm9797_vm5 = vnez %v9796_v53  ;;  %vm9799_vm15 = vnez %v9798_v2  ;;  %v9806_v39 = vld [vmem:[#allocation29_spill] sm:$0xff] }
 0x288   : > { %v4790_v37 = vsel %vm9797_vm5, %v4754_v29, 0.0  ;;  %v4825_v34 = vmul.f32 %v4789_v55, %v4789_v55  ;;  %v4791_v14 = vsel %vm9799_vm15, %v4755_v47, 0.0  ;;  %vm9801_vm3 = vnez %v9800_v10 }
 0x289   : > { %v4855_v15 = vadd.f32 %v4854_v0, %v4820_v49  ;;  %v4826_v27 = vmul.f32 %v4790_v37, %v4790_v37  ;;  %v4792_v46 = vsel %vm9801_vm3, %v4756_v48, 0.0  ;;  %v4827_v35 = vmul.f32 %v4791_v14, %v4791_v14  ;;  %v9802_v0 = vld [vmem:[#allocation17_spill] sm:$0xff] }
 0x28a   : > { %vm9803_vm8 = vnez %v9802_v0  ;;  %v4828_v13 = vmul.f32 %v4792_v46, %v4792_v46  ;;  %vm9805_vm9 = vnez %v9804_v24  ;;  %vm9807_vm10 = vnez %v9806_v39 }
 0x28b   : > { %v4856_v56 = vadd.f32 %v4855_v15, %v4821_v19  ;;  %v4793_v31 = vsel %vm9803_vm8, %v4757_v17, 0.0  ;;  %v4794_v19 = vsel %vm9805_vm9, %v4758_v62, 0.0  ;;  %v4795_v57 = vsel %vm9807_vm10, %v4759_v28, 0.0  ;;  %v9808_v17 = vld [vmem:[#allocation30_spill] sm:$0xff] }
 0x28c   : > { %v4829_v15 = vmul.f32 %v4793_v31, %v4793_v31  ;;  %v4830_v33 = vmul.f32 %v4794_v19, %v4794_v19  ;;  %vm9809_vm2 = vnez %v9808_v17  ;;  %v4831_v58 = vmul.f32 %v4795_v57, %v4795_v57 }
 0x28d   : > { %v4857_v1 = vadd.f32 %v4856_v56, %v4822_v42  ;;  %v4796_v42 = vsel %vm9809_vm2, %v4760_v61, 0.0  ;;  %v4833_v29 = vmul.f32 %v9234_v3, %v9234_v3  ;;  %v4834_v60 = vmul.f32 %v9238_v45, %v9238_v45 }
 0x28e   : > { %v4832_v43 = vmul.f32 %v4796_v42, %v4796_v42  ;;  %v4835_v63 = vmul.f32 %v9242_v5, %v9242_v5  ;;  %v4836_v8 = vmul.f32 %v9246_v21, %v9246_v21  ;;  %v4837_v61 = vmul.f32 %v9250_v22, %v9250_v22 }
 0x28f   : > { %v4858_v54 = vadd.f32 %v4857_v1, %v4823_v30  ;;  %v4838_v3 = vmul.f32 %v9254_v25, %v9254_v25  ;;  %v4839_v45 = vmul.f32 %v9258_v7, %v9258_v7  ;;  %v4840_v5 = vmul.f32 %v9262_v20, %v9262_v20 }
 0x290   : > { %v4841_v21 = vmul.f32 %v9266_v44, %v9266_v44  ;;  %v4842_v22 = vmul.f32 %v9270_v32, %v9270_v32  ;;  %v4843_v25 = vmul.f32 %v9274_v51, %v9274_v51  ;;  %v4844_v7 = vmul.f32 %v9278_v40, %v9278_v40 }
 0x291   : > { %v4859_v11 = vadd.f32 %v4858_v54, %v4824_v4  ;;  %v4845_v20 = vmul.f32 %v9282_v38, %v9282_v38  ;;  %v4846_v44 = vmul.f32 %v9286_v41, %v9286_v41  ;;  %v4847_v32 = vmul.f32 %v9290_v16, %v9290_v16 }
 0x292   : > { %v4848_v51 = vmul.f32 %v9294_v6, %v9294_v6 }
 0x293   : > { %v4860_v12 = vadd.f32 %v4859_v11, %v4825_v34 }
 0x295   : > { %v4861_v49 = vadd.f32 %v4860_v12, %v4826_v27 }
 0x297   : > { %v4862_v18 = vadd.f32 %v4861_v49, %v4827_v35 }
 0x299   : > { %v4863_v26 = vadd.f32 %v4862_v18, %v4828_v13 }
 0x29b   : > { %v4864_v50 = vadd.f32 %v4863_v26, %v4829_v15 }
 0x29d   : > { %v4865_v56 = vadd.f32 %v4864_v50, %v4830_v33 }
 0x29f   : > { %v4866_v62 = vadd.f32 %v4865_v56, %v4831_v58 }
 0x2a1   : > { %v4867_v9 = vadd.f32 %v4866_v62, %v4832_v43 }
 0x2a3   : > { %v4868_v28 = vadd.f32 %v4867_v9, %v4833_v29 }
 0x2a5   : > { %v4869_v30 = vadd.f32 %v4868_v28, %v4834_v60 }
 0x2a7   : > { %v4870_v52 = vadd.f32 %v4869_v30, %v4835_v63 }
 0x2a9   : > { %v4871_v1 = vadd.f32 %v4870_v52, %v4836_v8 }
 0x2ab   : > { %v4872_v36 = vadd.f32 %v4871_v1, %v4837_v61 }
 0x2ad   : > { %v4873_v47 = vadd.f32 %v4872_v36, %v4838_v3 }
 0x2af   : > { %v4874_v23 = vadd.f32 %v4873_v47, %v4839_v45 }
 0x2b1   : > { %v4875_v55 = vadd.f32 %v4874_v23, %v4840_v5 }
 0x2b3   : > { %v4876_v4 = vadd.f32 %v4875_v55, %v4841_v21 }
 0x2b5   : > { %v4877_v54 = vadd.f32 %v4876_v4, %v4842_v22 }
 0x2b7   : > { %v4878_v59 = vadd.f32 %v4877_v54, %v4843_v25 }
 0x2b9   : > { %v4879_v48 = vadd.f32 %v4878_v59, %v4844_v7 }
 0x2bb   : > { %v4880_v53 = vadd.f32 %v4879_v48, %v4845_v20 }
 0x2bd   : > { %v4881_v37 = vadd.f32 %v4880_v53, %v4846_v44 }
 0x2bf   : > { %v4882_v34 = vadd.f32 %v4881_v37, %v4847_v32 }
 0x2c1   : > { %v4883_v11 = vadd.f32 %v4882_v34, %v4848_v51 }
 0x2c3   : > { %v4884_v40 = vrot.slane %v4883_v11, 4 }
 0x2c5   : > { %v4885_v2 = vadd.f32 %v4884_v40, %v4883_v11 }
 0x2c7   : > { %v4886_v14 = vrot.slane %v4885_v2, 2 }
 0x2c9   : > { %v4887_v27 = vadd.f32 %v4886_v14, %v4885_v2 }
 0x2cb   : > { %v4888_v12 = vrot.slane %v4887_v27, 1 }
 0x2cd   : > { %v4889_v38 = vadd.f32 %v4888_v12, %v4887_v27 }
 0x2cf   : > { %5071 = vst [vmem:[%s267_s22] sm:$0x1] %v4889_v38 }
 0x2d0 PF: > { %s15_s17 = sadd.s32 1, %s6861_s17   ;;  %s9810_s15 = smov %s6857_s16 }
 0x2d1   : > { %p12_p5 = scmp.ge.s32.totalorder %s15_s17, 4   ;;  %s9811_s16 = smov %s9813_s18 }
 0x2d3   :  { %14 = sbr.rel (!%p12_p5) target bundleno = 2 (0x2), region = 85 }

// kernel: basic_block_pallas.4
= control target key start
LH: loop header
LB: loop body
LE: loop exit
PB: predicated region body
PF: predicated region fallthrough
CT: control target
= control target key end

     0   :  { %s7157_s21 = smov 0   ;;  %s7159_s22 = smov 0   ;;  %s9508_s0 = inlined_call_operand.vmem [shape: bf16[2,288,128], index: 0, kind: input, shape index: {}]   ;;  %s9509_s1 = inlined_call_operand.vmem [shape: bf16[1152,128], index: 1, kind: input, shape index: {}]   ;;  %s9510_s2 = inlined_call_operand.vmem [shape: f32[1,128], index: 2, kind: input, shape index: {}]   ;;  %s9511_s3 = inlined_call_operand.vmem [shape: f32[1,128], index: 3, kind: input, shape index: {}]   ;;  %s9512_s4 = inlined_call_operand.vmem [shape: bf16[2,288,128], index: 4, kind: output, shape index: {0}]   ;;  %s9513_s5 = inlined_call_operand.vmem [shape: f32[2,1,128], index: 5, kind: output, shape index: {1}]   ;;  %s9514_s6 = inlined_call_operand.vmem [shape: f32[2,1,128], index: 6, kind: output, shape index: {2}]  }
   0x1   :  { %s7161_s23 = smov 0  }
   0x2 LB: > { %s26_s24 = sadd.s32 1, %s7115_s22  ;;  %p5551_p0 = scmp.ge.s32.totalorder %s7119_s23, 1  ;;  %s7119_s23 = sphi %s7161_s23, %s17_s23   ;;  %s7115_s22 = sphi %s7159_s22, %s10117_s22   ;;  %s7111_s21 = sphi %s7157_s21, %s10116_s21  }
   0x3   : > { %p27_p1 = scmp.ge.s32.totalorder %s26_s24, 2  ;;  %p244_p2 = scmp.lt.s32.totalorder %s7119_s23, 3 }
   0x5   : > { %s10119_s24 = smov (%p27_p1, %s26_s24), 0  ;;  %p245_p3 = pnand %p5551_p0, %p244_p2 }
   0x7   : > { %248 = sbr.rel (%p245_p3) target bundleno = 827 (0x33b), region = 36 }
   0xe   : > { %v7002_v0 = vld [vmem:[%s9509_s1 + $0x40] sm:$0xff]   ;;  %p293_p4 = scmp.lt.s32.totalorder %s7111_s21, 1  ;;  %v7004_v2 = vld [vmem:[%s9509_s1 + $0x48] sm:$0xff]   ;;  %v7121_v3 = vmov 0   ;;  %v327_v5 = vlaneseq  ;;  %v7006_v6 = vld [vmem:[%s9509_s1 + $0x50] sm:$0xff]   ;;  %vm9515_vm10 = vcmask 1043456  }
   0xf   : > { %v7003_v1 = vld [vmem:[%s9509_s1 + $0x100] sm:$0xff]   ;;  %6132 = vmatprep.subr.bf16.mxu1 %v7002_v0  ;;  %323 = vst [vmem:[#allocation2] sm:$0xff] %v7121_v3  ;;  %324 = vst [vmem:[#allocation2 + $0x8] sm:$0xf] %v7121_v3  ;;  %v7005_v4 = vld [vmem:[%s9509_s1 + $0x108] sm:$0xff]  }
  0x10   : > { %325 = vst [vmem:[#allocation2 + $0x98] sm:$0xf0] %v7121_v3  ;;  %326 = vst [vmem:[#allocation2 + $0xa0] sm:$0xff] %v7121_v3  ;;  %6133 = vmatpush3.bf16.msra.mxu1 %v7002_v0  ;;  %6340 = vmatprep.subr.bf16.mxu0 %v7003_v1  ;;  %v7007_v7 = vld [vmem:[%s9509_s1 + $0x110] sm:$0xff]   ;;  %s10121_s21 = smov (!%p293_p4, %s7111_s21), 1  ;;  %v7196_v8 = vshrl.u32 %v327_v5, 7 }
  0x11   : > { %6341 = vmatpush3.bf16.msra.mxu0 %v7003_v1  ;;  %6134 = vmatprep.subr.bf16.mxu1 %v7004_v2  ;;  %v7008_v9 = vld [vmem:[%s9509_s1 + $0x58] sm:$0xff]   ;;  %s6904_s17 = smul.u32 144, %s10121_s21  ;;  %v7010_v12 = vld [vmem:[%s9509_s1 + $0x60] sm:$0xff]   ;;  %v7012_v16 = vld [vmem:[%s9509_s1 + $0x68] sm:$0xff]   ;;  %s315_s10 = scalar_lea.vmem %s9513_s5, %s10121_s21 }
  0x12   : > { %6342 = vmatprep.subr.bf16.mxu0 %v7005_v4  ;;  %v7009_v10 = vld [vmem:[%s9509_s1 + $0x118] sm:$0xff]   ;;  %v7206_v11 = vadd.s32 8, %v7196_v8  ;;  %v7212_v13 = vadd.s32 16, %v7196_v8  ;;  %v7011_v14 = vld [vmem:[%s9509_s1 + $0x120] sm:$0xff]   ;;  %v7225_v15 = vadd.s32 24, %v7196_v8  ;;  %v7231_v17 = vadd.s32 32, %v7196_v8  ;;  %s321_s13 = scalar_lea.vmem %s9514_s6, %s10121_s21 }
  0x13   : > { %s7222_s28 = scalar_lea.vmem %s9508_s0, %s6904_s17  ;;  %v7234_v18 = vadd.s32 40, %v7196_v8  ;;  %v7237_v19 = vadd.s32 48, %v7196_v8  ;;  %v7013_v20 = vld [vmem:[%s9509_s1 + $0x128] sm:$0xff]   ;;  %v7243_v21 = vmul.u32.u64.low 3817748708, %v7196_v8  ;;  %v7244_v22 = vmul.u32.u64.high 3817748708, %v7196_v8, %v7243_v21  ;;  %v7014_v34 = vld [vmem:[%s9509_s1 + $0x70] sm:$0xff]   ;;  %s9093_s8 = scalar_lea.vmem %s9512_s4, %s6904_s17 }
  0x14   : > { %6135 = vmatpush3.bf16.msra.mxu1 %v7004_v2  ;;  %v7247_v23 = vmul.u32.u64.low 3817748708, %v7206_v11  ;;  %v7248_v24 = vmul.u32.u64.high 3817748708, %v7206_v11, %v7247_v23  ;;  %v5703_v25 = vld [vmem:[%s7222_s28] sm:$0xff]   ;;  %v7262_v30 = vadd.s32 56, %v7196_v8  ;;  %v7265_v31 = vadd.s32 64, %v7196_v8  ;;  %v5864_v32 = vld [vmem:[%s7222_s28 + $0x8] sm:$0xff]  }
  0x15   : > { %6343 = vmatpush3.bf16.msra.mxu0 %v7005_v4  ;;  %6136 = vmatprep.subr.bf16.mxu1 %v7006_v6  ;;  %v5704_v26 = vunpack.c.l.bf16 %v5703_v25  ;;  %v5705_v27 = vunpack.c.h.bf16 %v5703_v25  ;;  %v7254_v28 = vld [vmem:[%s9510_s2] ss:$0 sm:$0xff]  ;;  %v7269_v33 = vadd.s32 72, %v7196_v8  ;;  %v7281_v39 = vld [vmem:[%s7222_s28 + $0x10] sm:$0xff]   ;;  %v370_v40 = vshrl.u32 %v7244_v22, 4  ;;  %v7016_v57 = vld [vmem:[%s9509_s1 + $0x78] sm:$0xff]  }
  0x16   : > { %6344 = vmatprep.subr.bf16.mxu0 %v7007_v7  ;;  %v7259_v29 = vld [vmem:[%s9511_s3] ss:$0 sm:$0xff]  ;;  %v7277_v37 = vmul.u32.u64.low 3817748708, %v7212_v13  ;;  %v7278_v38 = vmul.u32.u64.high 3817748708, %v7212_v13, %v7277_v37  ;;  %v381_v41 = vshrl.u32 %v7248_v24, 4  ;;  %v7015_v44 = vld [vmem:[%s9509_s1 + $0x130] sm:$0xff]   ;;  %v5708_v47 = vunpack.c.l.bf16 %v5864_v32 }
  0x17   : > { %v1055_v35 = vmul.f32 %v5704_v26, %v7254_v28  ;;  %v1056_v36 = vmul.f32 %v5705_v27, %v7254_v28  ;;  %v7286_v42 = vmul.u32.u64.low 3817748708, %v7225_v15  ;;  %v7287_v43 = vmul.u32.u64.high 3817748708, %v7225_v15, %v7286_v42  ;;  %v7017_v62 = vld [vmem:[%s9509_s1 + $0x138] sm:$0xff]   ;;  %v7334_v21 = vld [vmem:[%s9509_s1 + $0x140] sm:$0xff]  }
  0x18   : > { %6137 = vmatpush3.bf16.msra.mxu1 %v7006_v6  ;;  %v5709_v48 = vunpack.c.h.bf16 %v5864_v32  ;;  %v371_v49 = vmul.u32 18, %v370_v40  ;;  %v382_v50 = vmul.u32 18, %v381_v41  ;;  %v5712_v51 = vunpack.c.l.bf16 %v7281_v39  ;;  %v1423_v41 = vld [vmem:[#allocation2] sm:$0xf8] }
  0x19   : > { %6345 = vmatpush3.bf16.msra.mxu0 %v7007_v7  ;;  %6138 = vmatprep.subr.bf16.mxu1 %v7008_v9  ;;  %v1098_v45 = vadd.f32 %v7259_v29, %v1055_v35  ;;  %v1099_v46 = vadd.f32 %v7259_v29, %v1056_v36  ;;  %v5713_v52 = vunpack.c.h.bf16 %v7281_v39  ;;  %v392_v55 = vshrl.u32 %v7278_v38, 4 }
  0x1a   : > { %6346 = vmatprep.subr.bf16.mxu0 %v7009_v10  ;;  %v1057_v56 = vmul.f32 %v5708_v47, %v7254_v28  ;;  %v372_v58 = vsub.s32 %v7196_v8, %v371_v49  ;;  %v383_v59 = vsub.s32 %v7206_v11, %v382_v50  ;;  %v403_v60 = vshrl.u32 %v7287_v43, 4 }
  0x1b   : > { %v1134_v53 = vmax.f32 %v1098_v45, 0.0  ;;  %v1135_v54 = vmax.f32 %v1099_v46, 0.0  ;;  %v1058_v61 = vmul.f32 %v5709_v48, %v7254_v28  ;;  %v393_v63 = vmul.u32 18, %v392_v55  ;;  %v7369_v48 = vld [vmem:[%s7222_s28 + $0x18] sm:$0xff]  }
  0x1c   : > { %6139 = vmatpush3.bf16.msra.mxu1 %v7008_v9  ;;  %v1100_v0 = vadd.f32 %v7259_v29, %v1057_v56  ;;  %v7310_v1 = vmul.u32.u64.low 3817748708, %v7231_v17  ;;  %v7311_v2 = vmul.u32.u64.high 3817748708, %v7231_v17, %v7310_v1  ;;  %vm760_vm0 = vcmp.ne.s32.totalorder %v372_v58, 0  ;;  %v7321_v9 = vld [vmem:[%s9509_s1] sm:$0xff]  }
  0x1d   : > { %6347 = vmatpush3.bf16.msra.mxu0 %v7009_v10  ;;  %6140 = vmatprep.subr.bf16.mxu1 %v7010_v12  ;;  %vm761_vm1 = vcmp.ne.s32.totalorder %v383_v59, 0  ;;  %vm796_vm2 = vcmp.lt.s32.totalorder %v372_v58, 0  ;;  %vm797_vm3 = vcmp.lt.s32.totalorder %v383_v59, 0  ;;  %v868_v4 = vadd.s32 18, %v372_v58 }
  0x1e   : > { %6348 = vmatprep.subr.bf16.mxu0 %v7011_v14  ;;  %vm7313_vm4 = vmand %vm796_vm2, %vm760_vm0  ;;  %v869_v5 = vadd.s32 18, %v383_v59  ;;  %v394_v6 = vsub.s32 %v7212_v13, %v393_v63  ;;  %v404_v7 = vmul.u32 18, %v403_v60  ;;  %v1101_v10 = vadd.f32 %v7259_v29, %v1058_v61  ;;  %v7387_v60 = vld [vmem:[%s7222_s28 + $0x20] sm:$0xff]  }
  0x1f   : > { %vm833_vm5 = vmand %vm797_vm3, %vm761_vm1  ;;  %v1136_v11 = vmax.f32 %v1100_v0, 0.0  ;;  %v904_v13 = vsel %vm7313_vm4, %v868_v4, %v372_v58  ;;  %v9708_v22 = vmov 0  ;;  %v9711_v23 = vmov 0 }
  0x20   : > { %6141 = vmatpush3.bf16.msra.mxu1 %v7010_v12  ;;  %vm762_vm6 = vcmp.ne.s32.totalorder %v394_v6, 0  ;;  %vm7336_vm7 = vcmp.lt.s32.totalorder %v904_v13, 16  ;;  %vm798_vm9 = vcmp.lt.s32.totalorder %v394_v6, 0  ;;  %v870_v24 = vadd.s32 18, %v394_v6 }
  0x21   : > { %6349 = vmatpush3.bf16.msra.mxu0 %v7011_v14  ;;  %6142 = vmatprep.subr.bf16.mxu1 %v7012_v16  ;;  %v7325_v12 = vmul.u32.u64.low 3817748708, %v7234_v18  ;;  %v7326_v14 = vmul.u32.u64.high 3817748708, %v7234_v18, %v7325_v12  ;;  %v9709_v22 = vsel %vm7336_vm7, 4294967295, %v9708_v22  ;;  %vm834_vm13 = vmand %vm798_vm9, %vm762_vm6  ;;  %v9714_v35 = vmov 0 }
  0x22   : > { %6350 = vmatprep.subr.bf16.mxu0 %v7013_v20  ;;  %9710 = vst [vmem:[#allocation3_spill] sm:$0xff] %v9709_v22  ;;  %v906_v32 = vsel %vm834_vm13, %v870_v24, %v394_v6  ;;  %v414_v36 = vshrl.u32 %v7311_v2, 4  ;;  %v1059_v38 = vmul.f32 %v5712_v51, %v7254_v28  ;;  %vm9516_vm0 = vcmask 1044480  }
  0x23   : > { %vm7349_vm15 = vcmp.lt.s32.totalorder %v906_v32, 16  ;;  %v425_v37 = vshrl.u32 %v7326_v14, 4  ;;  %v9717_v45 = vmov 0  ;;  %v1460_v56 = vrot.slane %v1423_v41, 3 }
  0x24   : > { %6143 = vmatpush3.bf16.msra.mxu1 %v7012_v16  ;;  %v905_v16 = vsel %vm833_vm5, %v869_v5, %v383_v59  ;;  %v9715_v35 = vsel %vm7349_vm15, 4294967295, %v9714_v35  ;;  %v1244_v43 = vsel %vm7349_vm15, %v1136_v11, 0.0  ;;  %v415_v46 = vmul.u32 18, %v414_v36 }
  0x25   : > { %6351 = vmatpush3.bf16.msra.mxu0 %v7013_v20  ;;  %6144 = vmatprep.subr.bf16.mxu1 %v7014_v34  ;;  %v405_v20 = vsub.s32 %v7225_v15, %v404_v7  ;;  %vm7340_vm8 = vcmp.lt.s32.totalorder %v905_v16, 16  ;;  %v1242_v15 = vsel %vm7336_vm7, %v1134_v53, 0.0  ;;  %9716 = vst [vmem:[#allocation5_spill] sm:$0xff] %v9715_v35  ;;  %v426_v47 = vmul.u32 18, %v425_v37 }
  0x26   : > { %6352 = vmatprep.subr.bf16.mxu0 %v7015_v44  ;;  %v9712_v23 = vsel %vm7340_vm8, 4294967295, %v9711_v23  ;;  %v1243_v25 = vsel %vm7340_vm8, %v1135_v54, 0.0  ;;  %v1102_v50 = vadd.f32 %v7259_v29, %v1059_v38  ;;  %v416_v53 = vsub.s32 %v7231_v17, %v415_v46 }
  0x27   : > { %9713 = vst [vmem:[#allocation4_spill] sm:$0xff] %v9712_v23  ;;  %vm763_vm11 = vcmp.ne.s32.totalorder %v405_v20, 0  ;;  %vm799_vm12 = vcmp.lt.s32.totalorder %v405_v20, 0  ;;  %v1278_v26 = vpack.c.bf16 %v1243_v25, %v1242_v15  ;;  %v871_v27 = vadd.s32 18, %v405_v20 }
  0x28   : > { %6145 = vmatpush3.bf16.msra.mxu1 %v7014_v34  ;;  %vm835_vm14 = vmand %vm799_vm12, %vm763_vm11  ;;  %v1137_v34 = vmax.f32 %v1101_v10, 0.0  ;;  %v7375_v51 = vmul.u32.u64.low 3817748708, %v7237_v19  ;;  %v7376_v39 = vmul.u32.u64.high 3817748708, %v7237_v19, %v7375_v51  ;;  %v427_v54 = vsub.s32 %v7234_v18, %v426_v47 }
  0x29   : > { %6353 = vmatpush3.bf16.msra.mxu0 %v7015_v44  ;;  %6146 = vmatprep.subr.bf16.mxu1 %v7016_v57  ;;  %v1315_v40 = vrot.slane %v1278_v26, 4  ;;  %v907_v42 = vsel %vm835_vm14, %v871_v27, %v405_v20  ;;  %v1060_v44 = vmul.f32 %v5713_v52, %v7254_v28  ;;  %v5716_v59 = vunpack.c.l.bf16 %v7369_v48  ;;  %v7024_v51 = vld [vmem:[%s9509_s1 + $0x10] sm:$0xff]  }
  0x2a   : > { %6354 = vmatprep.subr.bf16.mxu0 %v7017_v62  ;;  %vm7364_vm1 = vcmp.lt.s32.totalorder %v907_v42, 16  ;;  %vm764_vm2 = vcmp.ne.s32.totalorder %v416_v53, 0  ;;  %vm765_vm3 = vcmp.ne.s32.totalorder %v427_v54, 0  ;;  %vm800_vm4 = vcmp.lt.s32.totalorder %v416_v53, 0  ;;  %v7021_v42 = vld [vmem:[%s9509_s1 + $0x8] sm:$0xff]  }
  0x2b   : > { %v9718_v45 = vsel %vm7364_vm1, 4294967295, %v9717_v45  ;;  %1369 = vst [vmem:[#allocation2 + $0x8] sm:$0xf0] %v1315_v40  ;;  %v1245_v49 = vsel %vm7364_vm1, %v1137_v34, 0.0  ;;  %v1103_v55 = vadd.f32 %v7259_v29, %v1060_v44  ;;  %vm801_vm5 = vcmp.lt.s32.totalorder %v427_v54, 0  ;;  %vm7391_vm6 = vmand %vm800_vm4, %vm764_vm2 }
  0x2c   : > { %6147 = vmatpush3.bf16.msra.mxu1 %v7016_v57  ;;  %9719 = vst [vmem:[#allocation6_spill] sm:$0xff] %v9718_v45  ;;  %v1279_v52 = vpack.c.bf16 %v1245_v49, %v1244_v43  ;;  %v7382_v57 = vmul.u32.u64.low 3817748708, %v7262_v30  ;;  %v7383_v58 = vmul.u32.u64.high 3817748708, %v7262_v30, %v7382_v57  ;;  %v872_v18 = vadd.s32 18, %v416_v53  ;;  %vm7400_vm9 = vmand %vm801_vm5, %vm765_vm3 }
  0x2d   : > { %6355 = vmatpush3.bf16.msra.mxu0 %v7017_v62  ;;  %6184 = vmatprep.subr.bf16.mxu1 %v7321_v9  ;;  %v873_v62 = vadd.s32 18, %v427_v54  ;;  %v436_v63 = vshrl.u32 %v7376_v39, 4  ;;  %v1138_v2 = vmax.f32 %v1102_v50, 0.0  ;;  %v1139_v3 = vmax.f32 %v1103_v55, 0.0 }
  0x2e   : > { %6392 = vmatprep.subr.bf16.mxu0 %v7334_v21  ;;  %v7389_v61 = vrot.slane %v1279_v52, 4  ;;  %v5717_v4 = vunpack.c.h.bf16 %v7369_v48  ;;  %v1061_v7 = vmul.f32 %v5716_v59, %v7254_v28  ;;  %v5720_v10 = vunpack.c.l.bf16 %v7387_v60  ;;  %v7020_v59 = vld [vmem:[%s9509_s1 + $0x148] sm:$0xff]  }
  0x2f   : > { %v908_v14 = vsel %vm7391_vm6, %v872_v18, %v416_v53  ;;  %v909_v13 = vsel %vm7400_vm9, %v873_v62, %v427_v54  ;;  %v437_v16 = vmul.u32 18, %v436_v63  ;;  %v447_v20 = vshrl.u32 %v7383_v58, 4  ;;  %v5868_v62 = vld [vmem:[%s7222_s28 + $0x28] sm:$0xff]  }
  0x30   : > { %v7398_v0 = vsel %vm9515_vm10, %v1315_v40, %v7389_v61  ;;  %vm7424_vm11 = vcmp.lt.s32.totalorder %v908_v14, 16  ;;  %v9724_v27 = vmov 0  ;;  %vm7428_vm12 = vcmp.lt.s32.totalorder %v909_v13, 16  ;;  %v7028_v14 = vld [vmem:[%s9509_s1 + $0x18] sm:$0xff]  }
  0x31   : > { %1370 = vst [vmem:[#allocation2 + $0x10] sm:$0xff] %v7398_v0  ;;  %v1463_v5 = vrot.slane %v7398_v0, 3  ;;  %v3057_v6 = vrot.slane %v7398_v0, 4  ;;  %v7418_v15 = vshrl.u32 %v7398_v0, 16  ;;  %v7421_v25 = vshll.u32 %v7398_v0, 16 }
  0x32   : > { %v1389_v11 = vld [vmem:[#allocation2 + $0x8] sm:$0xff]  ;;  %v9725_v27 = vsel %vm7424_vm11, 4294967295, %v9724_v27  ;;  %v9727_v32 = vmov 0  ;;  %v438_v34 = vsub.s32 %v7237_v19, %v437_v16  ;;  %v448_v36 = vmul.u32 18, %v447_v20 }
  0x33   : > { %v7410_v12 = vld [vmem:[#allocation2 + $0x8] sm:$0xf0]  ;;  %v1461_v24 = vrot.slane %v1389_v11, 3  ;;  %9726 = vst [vmem:[#allocation7_spill] sm:$0xff] %v9725_v27  ;;  %v9728_v32 = vsel %vm7428_vm12, 4294967295, %v9727_v32  ;;  %v1246_v41 = vsel %vm7424_vm11, %v1138_v2, 0.0  ;;  %v1062_v48 = vmul.f32 %v5717_v4, %v7254_v28 }
  0x34   : > { %v3056_v26 = vrot.slane %v7410_v12, 4  ;;  %9729 = vst [vmem:[#allocation8_spill] sm:$0xff] %v9728_v32  ;;  %v1247_v19 = vsel %vm7428_vm12, %v1139_v3, 0.0  ;;  %v449_v43 = vsub.s32 %v7262_v30, %v448_v36  ;;  %vm766_vm13 = vcmp.ne.s32.totalorder %v438_v34, 0 }
  0x35   : > { %v1462_v37 = vsel %vm9516_vm0, %v1460_v56, %v1461_v24  ;;  %v1464_v38 = vsel %vm9516_vm0, %v1461_v24, %v1463_v5  ;;  %vm802_vm14 = vcmp.lt.s32.totalorder %v438_v34, 0  ;;  %v1280_v44 = vpack.c.bf16 %v1247_v19, %v1246_v41 }
  0x36   : > { %v3058_v40 = vsel %vm9515_vm10, %v3056_v26, %v3057_v6  ;;  %6148 = vmatprep.mubr.bf16.mxu1 %v1462_v37  ;;  %vm7448_vm2 = vmand %vm802_vm14, %vm766_vm13  ;;  %v874_v47 = vadd.s32 18, %v438_v34  ;;  %v1104_v49 = vadd.f32 %v7259_v29, %v1061_v7  ;;  %vm767_vm3 = vcmp.ne.s32.totalorder %v449_v43, 0 }
  0x37   : > { %6356 = vmatprep.mubr.bf16.mxu0 %v3058_v40  ;;  %6149 = vmatmul.mubr.bf16.vlgmr.msra.gmra.mrb[0].mxu1 %v1464_v38  ;;  %vm803_vm4 = vcmp.lt.s32.totalorder %v449_v43, 0  ;;  %v875_v50 = vadd.s32 18, %v449_v43  ;;  %v5721_v30 = vunpack.c.h.bf16 %v7387_v60  ;;  %v1318_v39 = vrot.slane %v1280_v44, 4 }
  0x38   : > { %6185 = vmatpush3.bf16.msra.mxu1 %v7321_v9  ;;  %vm839_vm5 = vmand %vm803_vm4, %vm767_vm3  ;;  %v910_v52 = vsel %vm7448_vm2, %v874_v47, %v438_v34  ;;  %v1105_v53 = vadd.f32 %v7259_v29, %v1062_v48  ;;  %v1140_v54 = vmax.f32 %v1104_v49, 0.0  ;;  %v9732_v55 = vmov 0  ;;  %v7022_v34 = vld [vmem:[%s9509_s1 + $0x150] sm:$0xff]  }
  0x39   : > { %6186 = vmatprep.subr.bf16.mxu1 %v7021_v42  ;;  %v911_v9 = vsel %vm839_vm5, %v875_v50, %v449_v43  ;;  %vm7462_vm6 = vcmp.lt.s32.totalorder %v910_v52, 16  ;;  %v7467_v56 = vmul.u32.u64.low 3817748708, %v7265_v31  ;;  %v7468_v57 = vmul.u32.u64.high 3817748708, %v7265_v31, %v7467_v56  ;;  %v7032_v52 = vld [vmem:[%s9509_s1 + $0x28] sm:$0xff]  }
  0x3a   : > { %v9733_v55 = vsel %vm7462_vm6, 4294967295, %v9732_v55  ;;  %v7472_v58 = vsel %vm9515_vm10, %v7389_v61, %v1318_v39  ;;  %vm7477_vm9 = vcmp.lt.s32.totalorder %v911_v9, 16  ;;  %v9736_v60 = vmov 0 }
  0x3b   : > { %9734 = vst [vmem:[#allocation9_spill] sm:$0xff] %v9733_v55  ;;  %9735 = vst [vmem:[#allocation10_spill] sm:$0xff] %v7472_v58  ;;  %v9737_v60 = vsel %vm7477_vm9, 4294967295, %v9736_v60  ;;  %v1141_v17 = vmax.f32 %v1105_v53, 0.0  ;;  %v1248_v18 = vsel %vm7462_vm6, %v1140_v54, 0.0  ;;  %v9545_v63 = vshrl.u32 %v7472_v58, 16 }
  0x3c   : > { %9738 = vst [vmem:[#allocation11_spill] sm:$0xff] %v9737_v60  ;;  %1371 = vst [vmem:[#allocation2 + $0x18] sm:$0xff] %v7472_v58  ;;  %v9536_v61 = vshll.u32 %v7472_v58, 16  ;;  %v3059_v1 = vrot.slane %v7472_v58, 4  ;;  %v1465_v2 = vrot.slane %v7472_v58, 3  ;;  %6187 = vmatpush3.bf16.msra.mxu1 %v7021_v42  ;;  %v1063_v11 = vmul.f32 %v5720_v10, %v7254_v28 }
  0x3d   : > { %v1249_v3 = vsel %vm7477_vm9, %v1141_v17, 0.0  ;;  %v7492_v4 = vmul.u32.u64.low 3817748708, %v7269_v33  ;;  %v7493_v7 = vmul.u32.u64.high 3817748708, %v7269_v33, %v7492_v4  ;;  %6188 = vmatprep.subr.bf16.mxu1 %v7024_v51  ;;  %v458_v24 = vshrl.u32 %v7468_v57, 4 }
  0x3e   : > { %v3060_v13 = vsel %vm9515_vm10, %v3057_v6, %v3059_v1  ;;  %v1466_v16 = vsel %vm9516_vm0, %v1463_v5, %v1465_v2  ;;  %v1281_v20 = vpack.c.bf16 %v1249_v3, %v1248_v18  ;;  %v1064_v10 = vmul.f32 %v5721_v30, %v7254_v28 }
  0x3f   : > { %6357 = vmatmul.mubr.bf16.vlgmr.msra.gmra.mrb[0].mxu0 %v3060_v13  ;;  %6152 = vmatprep.mubr.bf16.mxu1 %v1466_v16  ;;  %v1106_v26 = vadd.f32 %v7259_v29, %v1063_v11  ;;  %v7512_v36 = vadd.s32 80, %v7196_v8  ;;  %v7515_v0 = vadd.s32 88, %v7196_v8  ;;  %v459_v6 = vmul.u32 18, %v458_v24 }
  0x40   : > { %6393 = vmatpush3.bf16.msra.mxu0 %v7334_v21  ;;  %v7518_v5 = vrot.slane %v1281_v20, 4  ;;  %v5724_v37 = vunpack.c.l.bf16 %v5868_v62  ;;  %v5725_v38 = vunpack.c.h.bf16 %v5868_v62  ;;  %6189 = vmatpush3.bf16.msra.mxu1 %v7024_v51  ;;  %v469_v40 = vshrl.u32 %v7493_v7, 4  ;;  %v7030_v21 = vld [vmem:[%s9509_s1 + $0x20] sm:$0xff]   ;;  %v7034_v20 = vld [vmem:[%s9509_s1 + $0x30] sm:$0xff]  }
  0x41   : > { %6394 = vmatprep.subr.bf16.mxu0 %v7020_v59  ;;  %v1107_v41 = vadd.f32 %v7259_v29, %v1064_v10  ;;  %v1142_v42 = vmax.f32 %v1106_v26, 0.0  ;;  %v7523_v19 = vadd.s32 96, %v7196_v8  ;;  %6190 = vmatprep.subr.bf16.mxu1 %v7028_v14  ;;  %v460_v44 = vsub.s32 %v7265_v31, %v459_v6  ;;  %v7023_v31 = vld [vmem:[%s9509_s1 + $0x158] sm:$0xff]   ;;  %v5869_v6 = vld [vmem:[%s7222_s28 + $0x30] sm:$0xff]  }
  0x42   : > { %v7530_v43 = vsel %vm9515_vm10, %v1318_v39, %v7518_v5  ;;  %v7534_v46 = vmul.u32.u64.low 3817748708, %v7512_v36  ;;  %v7535_v47 = vmul.u32.u64.high 3817748708, %v7512_v36, %v7534_v46  ;;  %v470_v50 = vmul.u32 18, %v469_v40 }
  0x43   : > { %1372 = vst [vmem:[#allocation2 + $0x20] sm:$0xff] %v7530_v43  ;;  %v1467_v48 = vrot.slane %v7530_v43, 3  ;;  %v3061_v49 = vrot.slane %v7530_v43, 4  ;;  %v1143_v30 = vmax.f32 %v1107_v41, 0.0  ;;  %vm768_vm13 = vcmp.ne.s32.totalorder %v460_v44, 0 }
  0x44   : > { %6395 = vmatpush3.bf16.msra.mxu0 %v7020_v59  ;;  %vm804_vm14 = vcmp.lt.s32.totalorder %v460_v44, 0  ;;  %v876_v51 = vadd.s32 18, %v460_v44  ;;  %v1065_v39 = vmul.f32 %v5724_v37, %v7254_v28  ;;  %6191 = vmatpush3.bf16.msra.mxu1 %v7028_v14  ;;  %v471_v9 = vsub.s32 %v7269_v33, %v470_v50  ;;  %v7025_v33 = vld [vmem:[%s9509_s1 + $0x160] sm:$0xff]  }
  0x45   : > { %v1468_v53 = vsel %vm9516_vm0, %v1465_v2, %v1467_v48  ;;  %v3062_v54 = vsel %vm9515_vm10, %v3059_v1, %v3061_v49  ;;  %vm840_vm2 = vmand %vm804_vm14, %vm768_vm13  ;;  %6396 = vmatprep.subr.bf16.mxu0 %v7022_v34  ;;  %v1066_v56 = vmul.f32 %v5725_v38, %v7254_v28  ;;  %v480_v59 = vshrl.u32 %v7535_v47, 4  ;;  %6192 = vmatprep.subr.bf16.mxu1 %v7030_v21 }
  0x46   : > { %6153 = vmatmul.mubr.bf16.gmra.mrb[4].mxu1 %v1468_v53  ;;  %6360 = vmatprep.mubr.bf16.mxu0 %v3062_v54  ;;  %v912_v57 = vsel %vm840_vm2, %v876_v51, %v460_v44  ;;  %v7557_v17 = vmul.u32.u64.low 3817748708, %v7515_v0  ;;  %v7558_v18 = vmul.u32.u64.high 3817748708, %v7515_v0, %v7557_v17  ;;  %vm769_vm3 = vcmp.ne.s32.totalorder %v471_v9, 0  ;;  %v7036_v44 = vld [vmem:[%s9509_s1 + $0x38] sm:$0xff]  }
  0x47   : > { %vm805_vm4 = vcmp.lt.s32.totalorder %v471_v9, 0  ;;  %v877_v62 = vadd.s32 18, %v471_v9  ;;  %vm7560_vm5 = vcmp.lt.s32.totalorder %v912_v57, 16  ;;  %v9739_v1 = vmov 0  ;;  %v5870_v17 = vld [vmem:[%s7222_s28 + $0x38] sm:$0xff]  }
  0x48   : > { %v9740_v1 = vsel %vm7560_vm5, 4294967295, %v9739_v1  ;;  %vm841_vm13 = vmand %vm805_vm4, %vm769_vm3  ;;  %v1250_v2 = vsel %vm7560_vm5, %v1142_v42, 0.0  ;;  %6397 = vmatpush3.bf16.msra.mxu0 %v7022_v34  ;;  %v481_v3 = vmul.u32 18, %v480_v59  ;;  %v1108_v4 = vadd.f32 %v7259_v29, %v1065_v39  ;;  %6193 = vmatpush3.bf16.msra.mxu1 %v7030_v21  ;;  %v7026_v42 = vld [vmem:[%s9509_s1 + $0x168] sm:$0xff]  }
  0x49   : > { %9741 = vst [vmem:[#allocation12_spill] sm:$0xff] %v9740_v1  ;;  %v7571_v7 = vadd.f32 %v7259_v29, %v1066_v56  ;;  %v913_v11 = vsel %vm841_vm13, %v877_v62, %v471_v9  ;;  %6398 = vmatprep.subr.bf16.mxu0 %v7023_v31  ;;  %v7574_v14 = vadd.s32 104, %v7196_v8  ;;  %6194 = vmatprep.subr.bf16.mxu1 %v7032_v52  ;;  %v9742_v24 = vmov 0 }
  0x4a   : > { %v7577_v13 = vmul.u32.u64.low 3817748708, %v7523_v19  ;;  %v7578_v16 = vmul.u32.u64.high 3817748708, %v7523_v19, %v7577_v13  ;;  %vm7583_vm14 = vcmp.lt.s32.totalorder %v913_v11, 16  ;;  %v482_v10 = vsub.s32 %v7512_v36, %v481_v3 }
  0x4b   : > { %v9743_v24 = vsel %vm7583_vm14, 4294967295, %v9742_v24  ;;  %v491_v26 = vshrl.u32 %v7558_v18, 4  ;;  %v1144_v34 = vmax.f32 %v1108_v4, 0.0  ;;  %v1251_v37 = vsel %vm7583_vm14, %v1143_v30, 0.0 }
  0x4c   : > { %9744 = vst [vmem:[#allocation13_spill] sm:$0xff] %v9743_v24  ;;  %v1145_v38 = vmax.f32 %v7571_v7, 0.0  ;;  %v7594_v40 = vmul.u32.u64.low 3817748708, %v7574_v14  ;;  %v7595_v41 = vmul.u32.u64.high 3817748708, %v7574_v14, %v7594_v40  ;;  %v1282_v21 = vpack.c.bf16 %v1251_v37, %v1250_v2  ;;  %6399 = vmatpush3.bf16.msra.mxu0 %v7023_v31  ;;  %6195 = vmatpush3.bf16.msra.mxu1 %v7032_v52 }
  0x4d   : > { %v492_v36 = vmul.u32 18, %v491_v26  ;;  %vm770_vm2 = vcmp.ne.s32.totalorder %v482_v10, 0  ;;  %vm806_vm3 = vcmp.lt.s32.totalorder %v482_v10, 0  ;;  %v878_v47 = vadd.s32 18, %v482_v10  ;;  %6400 = vmatprep.subr.bf16.mxu0 %v7025_v33  ;;  %6196 = vmatprep.subr.bf16.mxu1 %v7034_v20 }
  0x4e   : > { %vm7603_vm4 = vmand %vm806_vm3, %vm770_vm2  ;;  %v502_v50 = vshrl.u32 %v7578_v16, 4  ;;  %v5728_v30 = vunpack.c.l.bf16 %v5869_v6  ;;  %v5729_v51 = vunpack.c.h.bf16 %v5869_v6  ;;  %v1322_v31 = vrot.slane %v1282_v21, 4 }
  0x4f   : > { %v493_v39 = vsub.s32 %v7515_v0, %v492_v36  ;;  %v7610_v52 = vadd.s32 112, %v7196_v8  ;;  %v7613_v53 = vadd.s32 120, %v7196_v8  ;;  %v914_v54 = vsel %vm7603_vm4, %v878_v47, %v482_v10 }
  0x50   : > { %v503_v9 = vmul.u32 18, %v502_v50  ;;  %v513_v56 = vshrl.u32 %v7595_v41, 4  ;;  %v1067_v57 = vmul.f32 %v5728_v30, %v7254_v28  ;;  %v7621_v59 = vsel %vm9515_vm10, %v7518_v5, %v1322_v31  ;;  %6401 = vmatpush3.bf16.msra.mxu0 %v7025_v33  ;;  %6197 = vmatpush3.bf16.msra.mxu1 %v7034_v20  ;;  %v7027_v33 = vld [vmem:[%s9509_s1 + $0x170] sm:$0xff]  }
  0x51   : > { %vm771_vm13 = vcmp.ne.s32.totalorder %v493_v39, 0  ;;  %vm807_vm2 = vcmp.lt.s32.totalorder %v493_v39, 0  ;;  %v879_v0 = vadd.s32 18, %v493_v39  ;;  %1373 = vst [vmem:[#allocation2 + $0x28] sm:$0xff] %v7621_v59  ;;  %v3063_v18 = vrot.slane %v7621_v59, 4  ;;  %6402 = vmatprep.subr.bf16.mxu0 %v7026_v42  ;;  %6198 = vmatprep.subr.bf16.mxu1 %v7036_v44 }
  0x52   : > { %v1469_v62 = vrot.slane %v7621_v59, 3  ;;  %vm843_vm3 = vmand %vm807_vm2, %vm771_vm13  ;;  %vm7627_vm4 = vcmp.lt.s32.totalorder %v914_v54, 16  ;;  %v9747_v2 = vmov 0  ;;  %v504_v5 = vsub.s32 %v7523_v19, %v503_v9  ;;  %v5871_v54 = vld [vmem:[%s7222_s28 + $0x40] sm:$0xff]  }
  0x53   : > { %v9748_v2 = vsel %vm7627_vm4, 4294967295, %v9747_v2  ;;  %v915_v3 = vsel %vm843_vm3, %v879_v0, %v493_v39  ;;  %v1252_v4 = vsel %vm7627_vm4, %v1144_v34, 0.0  ;;  %v514_v7 = vmul.u32 18, %v513_v56  ;;  %v7684_v0 = vld [vmem:[%s9509_s1 + $0x180] sm:$0xff]  }
  0x54   : > { %9749 = vst [vmem:[#allocation14_spill] sm:$0xff] %v9748_v2  ;;  %v1068_v11 = vmul.f32 %v5729_v51, %v7254_v28  ;;  %v3064_v13 = vsel %vm9515_vm10, %v3061_v49, %v3063_v18  ;;  %v1470_v19 = vsel %vm9516_vm0, %v1467_v48, %v1469_v62  ;;  %vm7644_vm13 = vcmp.lt.s32.totalorder %v915_v3, 16  ;;  %6403 = vmatpush3.bf16.msra.mxu0 %v7026_v42 }
  0x55   : > { %v9750_v16 = vmov 0  ;;  %vm772_vm2 = vcmp.ne.s32.totalorder %v504_v5, 0  ;;  %6361 = vmatmul.mubr.bf16.gmra.mrb[4].mxu0 %v3064_v13  ;;  %6156 = vmatprep.mubr.bf16.mxu1 %v1470_v19  ;;  %v1253_v20 = vsel %vm7644_vm13, %v1145_v38, 0.0  ;;  %v515_v10 = vsub.s32 %v7574_v14, %v514_v7  ;;  %v7029_v14 = vld [vmem:[%s9509_s1 + $0x178] sm:$0xff]  }
  0x56   : > { %v9751_v16 = vsel %vm7644_vm13, 4294967295, %v9750_v16  ;;  %vm808_vm3 = vcmp.lt.s32.totalorder %v504_v5, 0  ;;  %v880_v26 = vadd.s32 18, %v504_v5  ;;  %v1283_v34 = vpack.c.bf16 %v1253_v20, %v1252_v4  ;;  %6199 = vmatpush3.bf16.msra.mxu1 %v7036_v44  ;;  %6404 = vmatprep.subr.bf16.mxu0 %v7027_v33 }
  0x57   : > { %9752 = vst [vmem:[#allocation15_spill] sm:$0xff] %v9751_v16  ;;  %vm844_vm10 = vmand %vm808_vm3, %vm772_vm2  ;;  %v1110_v49 = vadd.f32 %v7259_v29, %v1067_v57  ;;  %v1111_v48 = vadd.f32 %v7259_v29, %v1068_v11  ;;  %v5732_v6 = vunpack.c.l.bf16 %v5870_v17  ;;  %vm773_vm0 = vcmp.ne.s32.totalorder %v515_v10, 0 }
  0x58   : > { %vm809_vm14 = vcmp.lt.s32.totalorder %v515_v10, 0  ;;  %v881_v37 = vadd.s32 18, %v515_v10  ;;  %v916_v40 = vsel %vm844_vm10, %v880_v26, %v504_v5  ;;  %v1324_v38 = vrot.slane %v1283_v34, 4  ;;  %6405 = vmatpush3.bf16.msra.mxu0 %v7027_v33 }
  0x59   : > { %vm845_vm5 = vmand %vm809_vm14, %vm773_vm0  ;;  %vm7656_vm2 = vcmp.lt.s32.totalorder %v916_v40, 16  ;;  %v9753_v41 = vmov 0  ;;  %v1146_v21 = vmax.f32 %v1110_v49, 0.0  ;;  %v1147_v42 = vmax.f32 %v1111_v48, 0.0  ;;  %6406 = vmatprep.subr.bf16.mxu0 %v7029_v14 }
  0x5a   : > { %v9754_v41 = vsel %vm7656_vm2, 4294967295, %v9753_v41  ;;  %v917_v36 = vsel %vm845_vm5, %v881_v37, %v515_v10  ;;  %v7661_v44 = vmul.u32.u64.low 3817748708, %v7610_v52  ;;  %v7662_v46 = vmul.u32.u64.high 3817748708, %v7610_v52, %v7661_v44 }
  0x5b   : > { %9755 = vst [vmem:[#allocation16_spill] sm:$0xff] %v9754_v41  ;;  %v5733_v47 = vunpack.c.h.bf16 %v5870_v17  ;;  %vm9756_vm10 = vcmask 1043456   ;;  %vm7667_vm3 = vcmp.lt.s32.totalorder %v917_v36, 16  ;;  %v9757_v30 = vmov 0 }
  0x5c   : > { %v7665_v50 = vsel %vm9756_vm10, %v1322_v31, %v1324_v38  ;;  %v9758_v30 = vsel %vm7667_vm3, 4294967295, %v9757_v30  ;;  %v1254_v51 = vsel %vm7656_vm2, %v1146_v21, 0.0  ;;  %v1069_v39 = vmul.f32 %v5732_v6, %v7254_v28  ;;  %vm9761_vm5 = vmmov %vm9756_vm10  ;;  %6407 = vmatpush3.bf16.msra.mxu0 %v7029_v14 }
  0x5d   : > { %9759 = vst [vmem:[#allocation17_spill] sm:$0xff] %v9758_v30  ;;  %1374 = vst [vmem:[#allocation2 + $0x30] sm:$0xff] %v7665_v50  ;;  %v1471_v9 = vrot.slane %v7665_v50, 3  ;;  %v3065_v56 = vrot.slane %v7665_v50, 4  ;;  %v1255_v31 = vsel %vm7667_vm3, %v1147_v42, 0.0  ;;  %v1070_v57 = vmul.f32 %v5733_v47, %v7254_v28  ;;  %6444 = vmatprep.subr.bf16.mxu0 %v7684_v0 }
  0x5e   : > { %v1284_v17 = vpack.c.bf16 %v1255_v31, %v1254_v51  ;;  %v7687_v5 = vmul.u32.u64.low 3817748708, %v7613_v53  ;;  %v7688_v33 = vmul.u32.u64.high 3817748708, %v7613_v53, %v7687_v5  ;;  %v1112_v3 = vadd.f32 %v7259_v29, %v1069_v39  ;;  %vm9762_vm14 = vmmov %vm9761_vm5  ;;  %v5872_v51 = vld [vmem:[%s7222_s28 + $0x48] sm:$0xff]  }
  0x5f   : > { %vm9760_vm0 = vcmask 1044480   ;;  %v3066_v7 = vsel %vm9761_vm5, %v3063_v18, %v3065_v56  ;;  %v524_v11 = vshrl.u32 %v7662_v46, 4  ;;  %v7695_v13 = vadd.f32 %v7259_v29, %v1070_v57  ;;  %vm9763_vm10 = vmmov %vm9761_vm5 }
  0x60   : > { %v1472_v4 = vsel %vm9760_vm0, %v1469_v62, %v1471_v9  ;;  %6364 = vmatprep.mubr.bf16.mxu0 %v3066_v7  ;;  %v7697_v19 = vrot.slane %v1284_v17, 4  ;;  %v1148_v20 = vmax.f32 %v1112_v3, 0.0  ;;  %v344_v10 = vadd.s32 128, %v7196_v8 }
  0x61   : > { %6157 = vmatmul.mubr.bf16.gmra.mrb[8].mxu1 %v1472_v4  ;;  %v345_v26 = vadd.s32 136, %v7196_v8  ;;  %v525_v34 = vmul.u32 18, %v524_v11  ;;  %v1149_v49 = vmax.f32 %v7695_v13, 0.0  ;;  %v5736_v62 = vunpack.c.l.bf16 %v5871_v54 }
  0x62   : > { %v5737_v18 = vunpack.c.h.bf16 %v5871_v54  ;;  %v7704_v48 = vsel %vm9762_vm14, %v1324_v38, %v7697_v19  ;;  %v535_v6 = vshrl.u32 %v7688_v33, 4  ;;  %v7744_v33 = vadd.s32 144, %v7196_v8 }
  0x63   : > { %v7707_v37 = vmul.u32.u64.low 3817748708, %v344_v10  ;;  %v7708_v40 = vmul.u32.u64.high 3817748708, %v344_v10, %v7707_v37  ;;  %1375 = vst [vmem:[#allocation2 + $0x38] sm:$0xff] %v7704_v48  ;;  %v3067_v21 = vrot.slane %v7704_v48, 4  ;;  %v1473_v42 = vrot.slane %v7704_v48, 3 }
  0x64   : > { %v526_v36 = vsub.s32 %v7610_v52, %v525_v34  ;;  %v1071_v14 = vmul.f32 %v5736_v62, %v7254_v28  ;;  %v536_v44 = vmul.u32 18, %v535_v6  ;;  %v1072_v47 = vmul.f32 %v5737_v18, %v7254_v28  ;;  %v7038_v52 = vld [vmem:[%s9509_s1 + $0x80] sm:$0xff]  }
  0x65   : > { %v7716_v38 = vmul.u32.u64.low 3817748708, %v345_v26  ;;  %v7717_v46 = vmul.u32.u64.high 3817748708, %v345_v26, %v7716_v38  ;;  %v3068_v39 = vsel %vm9763_vm10, %v3065_v56, %v3067_v21  ;;  %v1474_v54 = vsel %vm9760_vm0, %v1471_v9, %v1473_v42  ;;  %v7740_v9 = vld [vmem:[%s9511_s3] ss:$0 sm:$0xff]  ;;  %6236 = vmatprep.subr.bf16.mxu1 %v7038_v52 }
  0x66   : > { %vm774_vm5 = vcmp.ne.s32.totalorder %v526_v36, 0  ;;  %vm810_vm14 = vcmp.lt.s32.totalorder %v526_v36, 0  ;;  %6365 = vmatmul.mubr.bf16.gmra.mrb[8].mxu0 %v3068_v39  ;;  %6160 = vmatprep.mubr.bf16.mxu1 %v1474_v54  ;;  %v537_v31 = vsub.s32 %v7613_v53, %v536_v44  ;;  %v882_v57 = vadd.s32 18, %v526_v36  ;;  %v7765_v44 = vld [vmem:[%s9510_s2] ss:$0 sm:$0xff] }
  0x67   : > { %vm7731_vm3 = vmand %vm810_vm14, %vm774_vm5  ;;  %v546_v56 = vshrl.u32 %v7708_v40, 4  ;;  %v1114_v17 = vadd.f32 %v7259_v29, %v1071_v14  ;;  %v1115_v5 = vadd.f32 %v7740_v9, %v1072_v47  ;;  %v7747_v53 = vadd.s32 152, %v7196_v8 }
  0x68   : > { %v5740_v3 = vunpack.c.l.bf16 %v5872_v51  ;;  %vm775_vm10 = vcmp.ne.s32.totalorder %v537_v31, 0  ;;  %vm811_vm0 = vcmp.lt.s32.totalorder %v537_v31, 0  ;;  %v883_v4 = vadd.s32 18, %v537_v31 }
  0x69   : > { %v918_v29 = vsel %vm7731_vm3, %v882_v57, %v526_v36  ;;  %vm847_vm5 = vmand %vm811_vm0, %vm775_vm10  ;;  %v9766_v7 = vmov 0  ;;  %v547_v11 = vmul.u32 18, %v546_v56  ;;  %v557_v13 = vshrl.u32 %v7717_v46, 4 }
  0x6a   : > { %vm7751_vm14 = vcmp.lt.s32.totalorder %v918_v29, 16  ;;  %v1150_v34 = vmax.f32 %v1114_v17, 0.0  ;;  %v919_v62 = vsel %vm847_vm5, %v883_v4, %v537_v31  ;;  %v1151_v6 = vmax.f32 %v1115_v5, 0.0 }
  0x6b   : > { %v9767_v7 = vsel %vm7751_vm14, 4294967295, %v9766_v7  ;;  %v1256_v18 = vsel %vm7751_vm14, %v1148_v20, 0.0  ;;  %v5741_v37 = vunpack.c.h.bf16 %v5872_v51  ;;  %vm7758_vm2 = vcmp.lt.s32.totalorder %v919_v62, 16 }
  0x6c   : > { %9768 = vst [vmem:[#allocation18_spill] sm:$0xff] %v9767_v7  ;;  %v9769_v40 = vmov 0  ;;  %v548_v36 = vsub.s32 %v344_v10, %v547_v11  ;;  %v558_v14 = vmul.u32 18, %v557_v13  ;;  %v1073_v38 = vmul.f32 %v7765_v44, %v5740_v3 }
  0x6d   : > { %v9770_v40 = vsel %vm7758_vm2, 4294967295, %v9769_v40  ;;  %v1257_v46 = vsel %vm7758_vm2, %v1149_v49, 0.0  ;;  %v7771_v20 = vmul.u32.u64.low 3817748708, %v7744_v33  ;;  %v7772_v47 = vmul.u32.u64.high 3817748708, %v7744_v33, %v7771_v20 }
  0x6e   : > { %9771 = vst [vmem:[#allocation19_spill] sm:$0xff] %v9770_v40  ;;  %v1074_v51 = vmul.f32 %v7765_v44, %v5741_v37  ;;  %v1285_v39 = vpack.c.bf16 %v1257_v46, %v1256_v18  ;;  %v559_v54 = vsub.s32 %v345_v26, %v558_v14  ;;  %vm776_vm3 = vcmp.ne.s32.totalorder %v548_v36, 0 }
  0x6f   : > { %vm812_vm10 = vcmp.lt.s32.totalorder %v548_v36, 0  ;;  %v884_v52 = vadd.s32 18, %v548_v36  ;;  %v7780_v31 = vmul.u32.u64.low 3817748708, %v7747_v53  ;;  %v7781_v28 = vmul.u32.u64.high 3817748708, %v7747_v53, %v7780_v31 }
  0x70   : > { %vm7775_vm0 = vmand %vm812_vm10, %vm776_vm3  ;;  %v7784_v49 = vadd.f32 %v7740_v9, %v1073_v38  ;;  %v1328_v57 = vrot.slane %v1285_v39, 4  ;;  %vm777_vm5 = vcmp.ne.s32.totalorder %v559_v54, 0  ;;  %vm813_vm2 = vcmp.lt.s32.totalorder %v559_v54, 0 }
  0x71   : > { %v885_v56 = vadd.s32 18, %v559_v54  ;;  %vm849_vm14 = vmand %vm813_vm2, %vm777_vm5  ;;  %v920_v26 = vsel %vm7775_vm0, %v884_v52, %v548_v36  ;;  %v568_v17 = vshrl.u32 %v7772_v47, 4  ;;  %v7790_v5 = vadd.f32 %v7740_v9, %v1074_v51 }
  0x72   : > { %v1152_v3 = vmax.f32 %v7784_v49, 0.0  ;;  %vm9774_vm3 = vcmask 1043456   ;;  %vm7797_vm10 = vcmp.lt.s32.totalorder %v920_v26, 16  ;;  %v9775_v11 = vmov 0 }
  0x73   : > { %v7795_v4 = vsel %vm9774_vm3, %v7697_v19, %v1328_v57  ;;  %v921_v29 = vsel %vm849_vm14, %v885_v56, %v559_v54  ;;  %v9776_v11 = vsel %vm7797_vm10, 4294967295, %v9775_v11  ;;  %v9778_v18 = vmov 0  ;;  %vm9782_vm5 = vmmov %vm9774_vm3 }
  0x74   : > { %9777 = vst [vmem:[#allocation20_spill] sm:$0xff] %v9776_v11  ;;  %1376 = vst [vmem:[#allocation2 + $0x40] sm:$0xff] %v7795_v4  ;;  %v1475_v13 = vrot.slane %v7795_v4, 3  ;;  %v3069_v62 = vrot.slane %v7795_v4, 4  ;;  %vm7804_vm0 = vcmp.lt.s32.totalorder %v921_v29, 16  ;;  %v1258_v19 = vsel %vm7797_vm10, %v1150_v34, 0.0 }
  0x75   : > { %v9779_v18 = vsel %vm7804_vm0, 4294967295, %v9778_v18  ;;  %v1259_v37 = vsel %vm7804_vm0, %v1151_v6, 0.0  ;;  %v569_v36 = vmul.u32 18, %v568_v17  ;;  %v579_v14 = vshrl.u32 %v7781_v28, 4 }
  0x76   : > { %9780 = vst [vmem:[#allocation21_spill] sm:$0xff] %v9779_v18  ;;  %v1153_v38 = vmax.f32 %v7790_v5, 0.0  ;;  %vm9781_vm14 = vcmask 1044480   ;;  %v3070_v20 = vsel %vm9782_vm5, %v3067_v21, %v3069_v62  ;;  %v1286_v47 = vpack.c.bf16 %v1259_v37, %v1258_v19 }
  0x77   : > { %v1476_v46 = vsel %vm9781_vm14, %v1473_v42, %v1475_v13  ;;  %v3391_v51 = vshrl.u32 %v7410_v12, 16  ;;  %6368 = vmatprep.mubr.bf16.mxu0 %v3070_v20  ;;  %v570_v34 = vsub.s32 %v7744_v33, %v569_v36  ;;  %v580_v6 = vmul.u32 18, %v579_v14 }
  0x78   : > { %6161 = vmatmul.mubr.bf16.gmra.mrb[12].mxu1 %v1476_v46  ;;  %v3394_v39 = vshll.u32 %v7410_v12, 16  ;;  %v3398_v54 = vrot.slane %v7418_v15, 4  ;;  %v1330_v10 = vrot.slane %v1286_v47, 4  ;;  %v3399_v42 = vrot.slane %v7421_v25, 5  ;;  %v5873_v47 = vld [vmem:[%s7222_s28 + $0x50] sm:$0xff]  }
  0x79   : > { %v3393_v52 = vrot.slane %v3391_v51, 4  ;;  %v3402_v31 = vrot.slane %v9545_v63, 4  ;;  %v581_v21 = vsub.s32 %v7747_v53, %v580_v6  ;;  %vm778_vm3 = vcmp.ne.s32.totalorder %v570_v34, 0 }
  0x7a   : > { %vm814_vm14 = vcmp.lt.s32.totalorder %v570_v34, 0  ;;  %v886_v28 = vadd.s32 18, %v570_v34  ;;  %v7829_v49 = vsel %vm9782_vm5, %v1328_v57, %v1330_v10  ;;  %v3396_v12 = vrot.slane %v3394_v39, 5 }
  0x7b   : > { %9783 = vst [vmem:[#allocation22_spill] sm:$0xff] %v7829_v49  ;;  %vm7831_vm2 = vmand %vm814_vm14, %vm778_vm3  ;;  %v3400_v56 = vor.u32 %v3399_v42, %v3398_v54  ;;  %v3403_v26 = vrot.slane %v9536_v61, 5  ;;  %v9535_v53 = vrot.slane %v7829_v49, 4  ;;  %v1477_v17 = vrot.slane %v7829_v49, 3 }
  0x7c   : > { %1377 = vst [vmem:[#allocation2 + $0x48] sm:$0xff] %v7829_v49  ;;  %vm779_vm0 = vcmp.ne.s32.totalorder %v581_v21, 0  ;;  %vm815_vm10 = vcmp.lt.s32.totalorder %v581_v21, 0  ;;  %v887_v5 = vadd.s32 18, %v581_v21  ;;  %v922_v29 = vsel %vm7831_vm2, %v886_v28, %v570_v34 }
  0x7d   : > { %vm7840_vm5 = vmand %vm815_vm10, %vm779_vm0  ;;  %v3397_v19 = vor.u32 %v3396_v12, %v3393_v52  ;;  %v7846_v37 = vor.u32 %v3403_v26, %v3402_v31  ;;  %vm9788_vm3 = vcmask 1043456   ;;  %vm9789_vm14 = vcmask 1044480   ;;  %v5874_v26 = vld [vmem:[%s7222_s28 + $0x58] sm:$0xff]  }
  0x7e   : > { %v3072_v36 = vsel %vm9788_vm3, %v3069_v62, %v9535_v53  ;;  %v1478_v14 = vsel %vm9789_vm14, %v1475_v13, %v1477_v17  ;;  %vm7852_vm13 = vcmp.lt.s32.totalorder %v922_v29, 16  ;;  %v9790_v46 = vmov 0 }
  0x7f   : > { %v9791_v46 = vsel %vm7852_vm13, 4294967295, %v9790_v46  ;;  %v348_v20 = vadd.s32 160, %v7196_v8  ;;  %6369 = vmatmul.mubr.bf16.gmra.mrb[12].mxu0 %v3072_v36  ;;  %6164 = vmatprep.mubr.bf16.mxu1 %v1478_v14  ;;  %v923_v51 = vsel %vm7840_vm5, %v887_v5, %v581_v21  ;;  %v1260_v34 = vsel %vm7852_vm13, %v1152_v3, 0.0  ;;  %vm9798_vm5 = vmmov %vm9788_vm3 }
  0x80   : > { %9792 = vst [vmem:[#allocation23_spill] sm:$0xff] %v9791_v46  ;;  %vm9793_vm10 = vsmask.f32 3328  ;;  %vm7865_vm0 = vcmp.lt.s32.totalorder %v923_v51, 16  ;;  %v9795_v6 = vmov 0  ;;  %v349_v39 = vadd.s32 168, %v7196_v8  ;;  %vm9799_vm3 = vmmov %vm9789_vm14 }
  0x81   : > { %v3401_v62 = vsel %vm9793_vm10, %v3397_v19, %v3400_v56  ;;  %vm9794_vm2 = vmmov %vm9793_vm10  ;;  %v9796_v6 = vsel %vm7865_vm0, 4294967295, %v9795_v6  ;;  %v7870_v54 = vmul.u32.u64.low 3817748708, %v348_v20  ;;  %v7871_v52 = vmul.u32.u64.high 3817748708, %v348_v20, %v7870_v54 }
  0x82   : > { %v3405_v13 = vsel %vm9794_vm2, %v3400_v56, %v7846_v37  ;;  %9797 = vst [vmem:[#allocation24_spill] sm:$0xff] %v9796_v6  ;;  %6408 = vmatprep.mubr.bf16.mxu0 %v3401_v62  ;;  %v1261_v42 = vsel %vm7865_vm0, %v1153_v38, 0.0  ;;  %v5744_v31 = vunpack.c.l.bf16 %v5873_v47  ;;  %v5745_v3 = vunpack.c.h.bf16 %v5873_v47 }
  0x83   : > { %v350_v21 = vadd.s32 176, %v7196_v8  ;;  %v1287_v28 = vpack.c.bf16 %v1261_v42, %v1260_v34  ;;  %v7876_v33 = vmul.u32.u64.low 3817748708, %v349_v39  ;;  %v7877_v12 = vmul.u32.u64.high 3817748708, %v349_v39, %v7876_v33  ;;  %v7033_v42 = vld [vmem:[%s9509_s1 + $0x188] sm:$0xff]  }
  0x84   : > { %v351_v56 = vadd.s32 184, %v7196_v8  ;;  %v1075_v57 = vmul.f32 %v7765_v44, %v5744_v31  ;;  %v1076_v5 = vmul.f32 %v7765_v44, %v5745_v3  ;;  %v590_v38 = vshrl.u32 %v7871_v52, 4 }
  0x85   : > { %v7883_v29 = vmul.u32.u64.low 3817748708, %v350_v21  ;;  %v7884_v19 = vmul.u32.u64.high 3817748708, %v350_v21, %v7883_v29  ;;  %v7886_v36 = vrot.slane %v1287_v28, 4  ;;  %v5748_v62 = vunpack.c.l.bf16 %v5874_v26 }
  0x86   : > { %v7889_v14 = vmul.u32.u64.low 3817748708, %v351_v56  ;;  %v7890_v47 = vmul.u32.u64.high 3817748708, %v351_v56, %v7889_v14  ;;  %v1118_v51 = vadd.f32 %v7740_v9, %v1075_v57  ;;  %v1119_v34 = vadd.f32 %v7740_v9, %v1076_v5 }
  0x87   : > { %v5749_v54 = vunpack.c.h.bf16 %v5874_v26  ;;  %v7899_v31 = vsel %vm9798_vm5, %v1330_v10, %v7886_v36  ;;  %v591_v3 = vmul.u32 18, %v590_v38  ;;  %v601_v52 = vshrl.u32 %v7877_v12, 4  ;;  %6409 = vmatmul.mubr.bf16.vlgmr.msra.gmra.mrb[0].mxu0 %v3405_v13 }
  0x88   : > { %v7903_v28 = vshrl.u32 %v7530_v43, 16  ;;  %1378 = vst [vmem:[#allocation2 + $0x50] sm:$0xff] %v7899_v31  ;;  %v1479_v33 = vrot.slane %v7899_v31, 3  ;;  %v1154_v26 = vmax.f32 %v1118_v51, 0.0  ;;  %v1155_v57 = vmax.f32 %v1119_v34, 0.0  ;;  %6445 = vmatpush3.bf16.msra.mxu0 %v7684_v0 }
  0x89   : > { %v612_v5 = vshrl.u32 %v7884_v19, 4  ;;  %v592_v29 = vsub.s32 %v348_v20, %v591_v3  ;;  %v602_v14 = vmul.u32 18, %v601_v52  ;;  %v623_v10 = vshrl.u32 %v7890_v47, 4  ;;  %6446 = vmatprep.subr.bf16.mxu0 %v7033_v42  ;;  %v7035_v20 = vld [vmem:[%s9509_s1 + $0x190] sm:$0xff]  }
  0x8a   : > { %v1077_v38 = vmul.f32 %v7765_v44, %v5748_v62  ;;  %v1480_v12 = vsel %vm9799_vm3, %v1477_v17, %v1479_v33  ;;  %v1078_v61 = vmul.f32 %v7765_v44, %v5749_v54  ;;  %v7916_v13 = vshll.u32 %v7530_v43, 16 }
  0x8b   : > { %v613_v53 = vmul.u32 18, %v612_v5  ;;  %6165 = vmatmul.mubr.bf16.gmra.mrb[16].mxu1 %v1480_v12  ;;  %v603_v19 = vsub.s32 %v349_v39, %v602_v14  ;;  %vm780_vm14 = vcmp.ne.s32.totalorder %v592_v29, 0  ;;  %vm816_vm10 = vcmp.lt.s32.totalorder %v592_v29, 0 }
  0x8c   : > { %v888_v0 = vadd.s32 18, %v592_v29  ;;  %vm852_vm2 = vmand %vm816_vm10, %vm780_vm14  ;;  %v624_v51 = vmul.u32 18, %v623_v10  ;;  %v1120_v17 = vadd.f32 %v7740_v9, %v1077_v38  ;;  %v1121_v34 = vadd.f32 %v7740_v9, %v1078_v61  ;;  %6447 = vmatpush3.bf16.msra.mxu0 %v7033_v42 }
  0x8d   : > { %v614_v47 = vsub.s32 %v350_v21, %v613_v53  ;;  %vm781_vm5 = vcmp.ne.s32.totalorder %v603_v19, 0  ;;  %vm817_vm3 = vcmp.lt.s32.totalorder %v603_v19, 0  ;;  %v889_v43 = vadd.s32 18, %v603_v19  ;;  %6448 = vmatprep.subr.bf16.mxu0 %v7035_v20  ;;  %v7037_v53 = vld [vmem:[%s9509_s1 + $0x198] sm:$0xff]  }
  0x8e   : > { %v924_v62 = vsel %vm852_vm2, %v888_v0, %v592_v29  ;;  %vm853_vm0 = vmand %vm817_vm3, %vm781_vm5  ;;  %v9800_v54 = vmov 0  ;;  %v625_v39 = vsub.s32 %v351_v56, %v624_v51  ;;  %v1156_v42 = vmax.f32 %v1120_v17, 0.0 }
  0x8f   : > { %vm7923_vm13 = vcmp.lt.s32.totalorder %v924_v62, 16  ;;  %vm782_vm4 = vcmp.ne.s32.totalorder %v614_v47, 0  ;;  %vm818_vm12 = vcmp.lt.s32.totalorder %v614_v47, 0  ;;  %v925_v21 = vsel %vm853_vm0, %v889_v43, %v603_v19 }
  0x90   : > { %v9801_v54 = vsel %vm7923_vm13, 4294967295, %v9800_v54  ;;  %v1262_v61 = vsel %vm7923_vm13, %v1154_v26, 0.0  ;;  %vm854_vm14 = vmand %vm818_vm12, %vm782_vm4  ;;  %v890_v3 = vadd.s32 18, %v614_v47  ;;  %vm7932_vm10 = vcmp.lt.s32.totalorder %v925_v21, 16  ;;  %6449 = vmatpush3.bf16.msra.mxu0 %v7035_v20 }
  0x91   : > { %9802 = vst [vmem:[#allocation25_spill] sm:$0xff] %v9801_v54  ;;  %v9803_v52 = vmov 0  ;;  %vm783_vm2 = vcmp.ne.s32.totalorder %v625_v39, 0  ;;  %vm819_vm5 = vcmp.lt.s32.totalorder %v625_v39, 0  ;;  %v891_v56 = vadd.s32 18, %v625_v39  ;;  %6450 = vmatprep.subr.bf16.mxu0 %v7037_v53 }
  0x92   : > { %v9804_v52 = vsel %vm7932_vm10, 4294967295, %v9803_v52  ;;  %v1263_v5 = vsel %vm7932_vm10, %v1155_v57, 0.0  ;;  %vm855_vm3 = vmand %vm819_vm5, %vm783_vm2  ;;  %v926_v29 = vsel %vm854_vm14, %v890_v3, %v614_v47  ;;  %v1157_v14 = vmax.f32 %v1121_v34, 0.0  ;;  %v7039_v57 = vld [vmem:[%s9509_s1 + $0x1a0] sm:$0xff]  }
  0x93   : > { %9805 = vst [vmem:[#allocation26_spill] sm:$0xff] %v9804_v52  ;;  %v3406_v10 = vrot.slane %v7903_v28, 4  ;;  %v1288_v26 = vpack.c.bf16 %v1263_v5, %v1262_v61  ;;  %v927_v38 = vsel %vm855_vm3, %v891_v56, %v625_v39  ;;  %vm7939_vm12 = vcmp.lt.s32.totalorder %v926_v29, 16  ;;  %v5875_v39 = vld [vmem:[%s7222_s28 + $0x60] sm:$0xff]  }
  0x94   : > { %v9806_v12 = vmov 0  ;;  %v3407_v19 = vrot.slane %v7916_v13, 5  ;;  %vm7947_vm4 = vcmp.lt.s32.totalorder %v927_v38, 16  ;;  %v9809_v0 = vmov 0  ;;  %6451 = vmatpush3.bf16.msra.mxu0 %v7037_v53 }
  0x95   : > { %v9807_v12 = vsel %vm7939_vm12, 4294967295, %v9806_v12  ;;  %v9810_v0 = vsel %vm7947_vm4, 4294967295, %v9809_v0  ;;  %v1264_v20 = vsel %vm7939_vm12, %v1156_v42, 0.0  ;;  %v7954_v47 = vshrl.u32 %v7621_v59, 16  ;;  %6452 = vmatprep.subr.bf16.mxu0 %v7039_v57 }
  0x96   : > { %9808 = vst [vmem:[#allocation27_spill] sm:$0xff] %v9807_v12  ;;  %9811 = vst [vmem:[#allocation28_spill] sm:$0xff] %v9810_v0  ;;  %v7957_v51 = vshll.u32 %v7621_v59, 16  ;;  %v1334_v17 = vrot.slane %v1288_v26, 4  ;;  %v1265_v34 = vsel %vm7947_vm4, %v1157_v14, 0.0  ;;  %v3408_v43 = vor.u32 %v3407_v19, %v3406_v10 }
  0x97   : > { %v352_v62 = vadd.s32 192, %v7196_v8  ;;  %v1289_v21 = vpack.c.bf16 %v1265_v34, %v1264_v20  ;;  %v3410_v61 = vrot.slane %v7954_v47, 4  ;;  %v353_v42 = vadd.s32 200, %v7196_v8  ;;  %v5876_v34 = vld [vmem:[%s7222_s28 + $0x68] sm:$0xff]  }
  0x98   : > { %v3411_v3 = vrot.slane %v7957_v51, 5  ;;  %vm9812_vm0 = vcmask 1043456   ;;  %vm9813_vm14 = vsmask.f32 3328  ;;  %v5752_v53 = vunpack.c.l.bf16 %v5875_v39  ;;  %6453 = vmatpush3.bf16.msra.mxu0 %v7039_v57 }
  0x99   : > { %v7968_v59 = vsel %vm9812_vm0, %v7886_v36, %v1334_v17  ;;  %v3409_v56 = vsel %vm9813_vm14, %v7846_v37, %v3408_v43  ;;  %v7972_v5 = vmul.u32.u64.low 3817748708, %v352_v62  ;;  %v7973_v29 = vmul.u32.u64.high 3817748708, %v352_v62, %v7972_v5  ;;  %v7041_v36 = vld [vmem:[%s9509_s1 + $0x1a8] sm:$0xff]   ;;  %vm9815_vm5 = vmmov %vm9812_vm0 }
  0x9a   : > { %1379 = vst [vmem:[#allocation2 + $0x58] sm:$0xff] %v7968_v59  ;;  %v1481_v14 = vrot.slane %v7968_v59, 3  ;;  %v7977_v10 = vrot.slane %v1289_v21, 4  ;;  %6412 = vmatprep.mubr.bf16.mxu0 %v3409_v56  ;;  %v7979_v26 = vor.u32 %v3411_v3, %v3410_v61  ;;  %v5753_v19 = vunpack.c.h.bf16 %v5875_v39  ;;  %vm9816_vm3 = vmmov %vm9813_vm14  ;;  %6454 = vmatprep.subr.bf16.mxu0 %v7041_v36 }
  0x9b   : > { %v7984_v38 = vmul.u32.u64.low 3817748708, %v353_v42  ;;  %v7985_v37 = vmul.u32.u64.high 3817748708, %v353_v42, %v7984_v38  ;;  %v354_v20 = vadd.s32 208, %v7196_v8  ;;  %vm9814_vm2 = vcmask 1044480  }
  0x9c   : > { %v1482_v21 = vsel %vm9814_vm2, %v1479_v33, %v1481_v14  ;;  %v7994_v61 = vsel %vm9815_vm5, %v1334_v17, %v7977_v10  ;;  %v3413_v3 = vsel %vm9816_vm3, %v3408_v43, %v7979_v26  ;;  %v1079_v56 = vmul.f32 %v7765_v44, %v5752_v53  ;;  %v7043_v17 = vld [vmem:[%s9509_s1 + $0x1b0] sm:$0xff]   ;;  %vm9817_vm0 = vmmov %vm9814_vm2  ;;  %6455 = vmatpush3.bf16.msra.mxu0 %v7041_v36 }
  0x9d   : > { %6168 = vmatprep.mubr.bf16.mxu1 %v1482_v21  ;;  %1380 = vst [vmem:[#allocation2 + $0x60] sm:$0xff] %v7994_v61  ;;  %v9564_v39 = vrot.slane %v7994_v61, 3  ;;  %6413 = vmatmul.mubr.bf16.gmra.mrb[4].mxu0 %v3413_v3  ;;  %v634_v5 = vshrl.u32 %v7973_v29, 4  ;;  %v1080_v33 = vmul.f32 %v7765_v44, %v5753_v19  ;;  %v355_v38 = vadd.s32 216, %v7196_v8 }
  0x9e   : > { %v1122_v43 = vadd.f32 %v7740_v9, %v1079_v56  ;;  %v8008_v53 = vmul.u32.u64.low 3817748708, %v354_v20  ;;  %v8009_v57 = vmul.u32.u64.high 3817748708, %v354_v20, %v8008_v53  ;;  %v5756_v21 = vunpack.c.l.bf16 %v5876_v34  ;;  %6456 = vmatprep.subr.bf16.mxu0 %v7043_v17 }
  0x9f   : > { %v1484_v3 = vsel %vm9817_vm0, %v1481_v14, %v9564_v39  ;;  %v635_v29 = vmul.u32 18, %v634_v5  ;;  %v645_v19 = vshrl.u32 %v7985_v37, 4  ;;  %v1123_v63 = vadd.f32 %v7740_v9, %v1080_v33  ;;  %v7045_v14 = vld [vmem:[%s9509_s1 + $0x1b8] sm:$0xff]  }
  0xa0   : > { %6169 = vmatmul.mubr.bf16.gmra.mrb[20].mxu1 %v1484_v3  ;;  %v1158_v52 = vmax.f32 %v1122_v43, 0.0  ;;  %v8016_v0 = vmul.u32.u64.low 3817748708, %v355_v38  ;;  %v8017_v12 = vmul.u32.u64.high 3817748708, %v355_v38, %v8016_v0  ;;  %v5757_v56 = vunpack.c.h.bf16 %v5876_v34  ;;  %6457 = vmatpush3.bf16.msra.mxu0 %v7043_v17 }
  0xa1   : > { %v636_v54 = vsub.s32 %v352_v62, %v635_v29  ;;  %v646_v53 = vmul.u32 18, %v645_v19  ;;  %v1159_v18 = vmax.f32 %v1123_v63, 0.0  ;;  %v1081_v6 = vmul.f32 %v7765_v44, %v5756_v21  ;;  %6458 = vmatprep.subr.bf16.mxu0 %v7045_v14 }
  0xa2   : > { %v656_v37 = vshrl.u32 %v8009_v57, 4  ;;  %v1082_v5 = vmul.f32 %v7765_v44, %v5757_v56  ;;  %v8026_v33 = vshrl.u32 %v7665_v50, 16  ;;  %v8029_v0 = vshll.u32 %v7665_v50, 16  ;;  %v8037_v50 = vld [vmem:[%s9509_s1 + $0x1c0] sm:$0xff]  }
  0xa3   : > { %v647_v62 = vsub.s32 %v353_v42, %v646_v53  ;;  %vm784_vm14 = vcmp.ne.s32.totalorder %v636_v54, 0  ;;  %vm820_vm2 = vcmp.lt.s32.totalorder %v636_v54, 0  ;;  %v892_v63 = vadd.s32 18, %v636_v54 }
  0xa4   : > { %vm856_vm5 = vmand %vm820_vm2, %vm784_vm14  ;;  %v657_v36 = vmul.u32 18, %v656_v37  ;;  %v667_v34 = vshrl.u32 %v8017_v12, 4  ;;  %v1124_v43 = vadd.f32 %v7740_v9, %v1081_v6  ;;  %v1125_v57 = vadd.f32 %v7740_v9, %v1082_v5  ;;  %6459 = vmatpush3.bf16.msra.mxu0 %v7045_v14 }
  0xa5   : > { %vm785_vm3 = vcmp.ne.s32.totalorder %v647_v62, 0  ;;  %vm821_vm0 = vcmp.lt.s32.totalorder %v647_v62, 0  ;;  %v893_v21 = vadd.s32 18, %v647_v62  ;;  %v928_v3 = vsel %vm856_vm5, %v892_v63, %v636_v54  ;;  %6496 = vmatprep.subr.bf16.mxu0 %v8037_v50 }
  0xa6   : > { %vm857_vm10 = vmand %vm821_vm0, %vm785_vm3  ;;  %vm8039_vm14 = vcmp.lt.s32.totalorder %v928_v3, 16  ;;  %v9818_v42 = vmov 0  ;;  %v658_v12 = vsub.s32 %v354_v20, %v657_v36  ;;  %v668_v6 = vmul.u32 18, %v667_v34 }
  0xa7   : > { %v9819_v42 = vsel %vm8039_vm14, 4294967295, %v9818_v42  ;;  %v1160_v29 = vmax.f32 %v1124_v43, 0.0  ;;  %v929_v19 = vsel %vm857_vm10, %v893_v21, %v647_v62  ;;  %v1266_v17 = vsel %vm8039_vm14, %v1158_v52, 0.0 }
  0xa8   : > { %9820 = vst [vmem:[#allocation29_spill] sm:$0xff] %v9819_v42  ;;  %v1161_v56 = vmax.f32 %v1125_v57, 0.0  ;;  %v3414_v54 = vrot.slane %v8026_v33, 4  ;;  %vm8046_vm2 = vcmp.lt.s32.totalorder %v929_v19, 16  ;;  %v9821_v53 = vmov 0  ;;  %v5877_v57 = vld [vmem:[%s7222_s28 + $0x70] sm:$0xff]  }
  0xa9   : > { %v9822_v53 = vsel %vm8046_vm2, 4294967295, %v9821_v53  ;;  %v669_v37 = vsub.s32 %v355_v38, %v668_v6  ;;  %vm786_vm5 = vcmp.ne.s32.totalorder %v658_v12, 0  ;;  %vm822_vm3 = vcmp.lt.s32.totalorder %v658_v12, 0 }
  0xaa   : > { %9823 = vst [vmem:[#allocation30_spill] sm:$0xff] %v9822_v53  ;;  %v1267_v20 = vsel %vm8046_vm2, %v1159_v18, 0.0  ;;  %vm8052_vm0 = vmand %vm822_vm3, %vm786_vm5  ;;  %v894_v52 = vadd.s32 18, %v658_v12  ;;  %v3415_v62 = vrot.slane %v8029_v0, 5  ;;  %v8058_v63 = vshrl.u32 %v7704_v48, 16 }
  0xab   : > { %v1290_v38 = vpack.c.bf16 %v1267_v20, %v1266_v17  ;;  %vm787_vm10 = vcmp.ne.s32.totalorder %v669_v37, 0  ;;  %vm823_vm14 = vcmp.lt.s32.totalorder %v669_v37, 0  ;;  %v895_v14 = vadd.s32 18, %v669_v37 }
  0xac   : > { %vm859_vm4 = vmand %vm823_vm14, %vm787_vm10  ;;  %v930_v18 = vsel %vm8052_vm0, %v894_v52, %v658_v12  ;;  %v3416_v36 = vor.u32 %v3415_v62, %v3414_v54  ;;  %v8064_v34 = vshll.u32 %v7704_v48, 16  ;;  %v3418_v43 = vrot.slane %v8058_v63, 4 }
  0xad   : > { %v1338_v21 = vrot.slane %v1290_v38, 4  ;;  %v931_v3 = vsel %vm859_vm4, %v895_v14, %v669_v37  ;;  %vm8068_vm5 = vcmp.lt.s32.totalorder %v930_v18, 16  ;;  %v9826_v6 = vmov 0  ;;  %v5878_v14 = vld [vmem:[%s7222_s28 + $0x78] sm:$0xff]  }
  0xae   : > { %v9827_v6 = vsel %vm8068_vm5, 4294967295, %v9826_v6  ;;  %v356_v19 = vadd.s32 224, %v7196_v8  ;;  %vm8073_vm14 = vcmp.lt.s32.totalorder %v931_v3, 16  ;;  %v9829_v17 = vmov 0 }
  0xaf   : > { %9828 = vst [vmem:[#allocation31_spill] sm:$0xff] %v9827_v6  ;;  %v9830_v17 = vsel %vm8073_vm14, 4294967295, %v9829_v17  ;;  %v1268_v48 = vsel %vm8068_vm5, %v1160_v29, 0.0  ;;  %vm9832_vm3 = vsmask.f32 3328  ;;  %v3419_v54 = vrot.slane %v8064_v34, 5 }
  0xb0   : > { %9831 = vst [vmem:[#allocation32_spill] sm:$0xff] %v9830_v17  ;;  %v3417_v12 = vsel %vm9832_vm3, %v7979_v26, %v3416_v36  ;;  %vm9833_vm4 = vcmask 1043456   ;;  %v1269_v20 = vsel %vm8073_vm14, %v1161_v56, 0.0  ;;  %v357_v5 = vadd.s32 232, %v7196_v8  ;;  %vm9836_vm10 = vmmov %vm9832_vm3 }
  0xb1   : > { %v8084_v37 = vsel %vm9833_vm4, %v7977_v10, %v1338_v21  ;;  %6416 = vmatprep.mubr.bf16.mxu0 %v3417_v12  ;;  %v5760_v52 = vunpack.c.l.bf16 %v5877_v57  ;;  %v1291_v62 = vpack.c.bf16 %v1269_v20, %v1268_v48  ;;  %v8091_v38 = vor.u32 %v3419_v54, %v3418_v43  ;;  %vm9837_vm3 = vmmov %vm9833_vm4 }
  0xb2   : > { %1381 = vst [vmem:[#allocation2 + $0x68] sm:$0xff] %v8084_v37  ;;  %v1485_v29 = vrot.slane %v8084_v37, 3  ;;  %v5761_v26 = vunpack.c.h.bf16 %v5877_v57  ;;  %v8094_v18 = vmul.u32.u64.low 3817748708, %v356_v19  ;;  %v8095_v3 = vmul.u32.u64.high 3817748708, %v356_v19, %v8094_v18 }
  0xb3   : > { %v8097_v10 = vmul.u32.u64.low 3817748708, %v357_v5  ;;  %v8098_v39 = vmul.u32.u64.high 3817748708, %v357_v5, %v8097_v10  ;;  %v9834_v56 = vrot.slane %v7994_v61, 3  ;;  %vm9835_vm0 = vcmask 1044480  }
  0xb4   : > { %v8103_v53 = vrot.slane %v1291_v62, 4  ;;  %v3421_v17 = vsel %vm9836_vm10, %v3416_v36, %v8091_v38  ;;  %v1083_v43 = vmul.f32 %v7765_v44, %v5760_v52  ;;  %v1084_v57 = vmul.f32 %v7765_v44, %v5761_v26  ;;  %vm9838_vm4 = vmmov %vm9835_vm0 }
  0xb5   : > { %v1486_v12 = vsel %vm9835_vm0, %v9834_v56, %v1485_v29  ;;  %6417 = vmatmul.mubr.bf16.gmra.mrb[8].mxu0 %v3421_v17  ;;  %v358_v48 = vadd.s32 240, %v7196_v8  ;;  %v359_v54 = vadd.s32 248, %v7196_v8  ;;  %v5764_v20 = vunpack.c.l.bf16 %v5878_v14 }
  0xb6   : > { %6172 = vmatprep.mubr.bf16.mxu1 %v1486_v12  ;;  %v8113_v18 = vsel %vm9837_vm3, %v1338_v21, %v8103_v53  ;;  %v1126_v62 = vadd.f32 %v7740_v9, %v1083_v43  ;;  %v5765_v10 = vunpack.c.h.bf16 %v5878_v14  ;;  %v8117_v36 = vshrl.u32 %v7795_v4, 16 }
  0xb7   : > { %1382 = vst [vmem:[#allocation2 + $0x70] sm:$0xff] %v8113_v18  ;;  %v9585_v17 = vrot.slane %v8113_v18, 3  ;;  %v678_v52 = vshrl.u32 %v8095_v3, 4  ;;  %v689_v26 = vshrl.u32 %v8098_v39, 4  ;;  %v1127_v56 = vadd.f32 %v7740_v9, %v1084_v57 }
  0xb8   : > { %v1162_v12 = vmax.f32 %v1126_v62, 0.0  ;;  %v8124_v6 = vmul.u32.u64.low 3817748708, %v358_v48  ;;  %v8125_v21 = vmul.u32.u64.high 3817748708, %v358_v48, %v8124_v6  ;;  %v1085_v43 = vmul.f32 %v7765_v44, %v5764_v20 }
  0xb9   : > { %v1488_v14 = vsel %vm9838_vm4, %v1485_v29, %v9585_v17  ;;  %v679_v42 = vmul.u32 18, %v678_v52  ;;  %v690_v46 = vmul.u32 18, %v689_v26  ;;  %v1163_v11 = vmax.f32 %v1127_v56, 0.0 }
  0xba   : > { %6173 = vmatmul.mubr.bf16.gmra.mrb[24].mxu1 %v1488_v14  ;;  %v8131_v30 = vmul.u32.u64.low 3817748708, %v359_v54  ;;  %v8132_v3 = vmul.u32.u64.high 3817748708, %v359_v54, %v8131_v30  ;;  %v1086_v39 = vmul.f32 %v7765_v44, %v5765_v10  ;;  %v1128_v57 = vadd.f32 %v7740_v9, %v1085_v43 }
  0xbb   : > { %v680_v62 = vsub.s32 %v356_v19, %v679_v42  ;;  %v691_v41 = vsub.s32 %v357_v5, %v690_v46  ;;  %v8137_v6 = vshll.u32 %v7795_v4, 16  ;;  %v3422_v20 = vrot.slane %v8117_v36, 4 }
  0xbc   : > { %v700_v29 = vshrl.u32 %v8125_v21, 4  ;;  %v1129_v52 = vadd.f32 %v7740_v9, %v1086_v39  ;;  %v1164_v26 = vmax.f32 %v1128_v57, 0.0  ;;  %v8143_v56 = vshrl.u32 %v7829_v49, 16 }
  0xbd   : > { %9839 = vst [vmem:[#allocation33_spill] sm:$0xff] %v8137_v6  ;;  %vm788_vm0 = vcmp.ne.s32.totalorder %v680_v62, 0  ;;  %vm789_vm10 = vcmp.ne.s32.totalorder %v691_v41, 0  ;;  %vm824_vm3 = vcmp.lt.s32.totalorder %v680_v62, 0  ;;  %vm825_vm4 = vcmp.lt.s32.totalorder %v691_v41, 0 }
  0xbe   : > { %vm860_vm2 = vmand %vm824_vm3, %vm788_vm0  ;;  %v896_v30 = vadd.s32 18, %v680_v62  ;;  %v897_v46 = vadd.s32 18, %v691_v41  ;;  %v701_v42 = vmul.u32 18, %v700_v29  ;;  %v711_v4 = vshrl.u32 %v8132_v3, 4 }
  0xbf   : > { %vm861_vm14 = vmand %vm825_vm4, %vm789_vm10  ;;  %v1165_v19 = vmax.f32 %v1129_v52, 0.0  ;;  %v3423_v5 = vrot.slane %v8137_v6, 5  ;;  %v8148_v10 = vshll.u32 %v7829_v49, 16  ;;  %v3426_v21 = vrot.slane %v8143_v56, 4 }
  0xc0   : > { %v932_v43 = vsel %vm860_vm2, %v896_v30, %v680_v62  ;;  %v933_v14 = vsel %vm861_vm14, %v897_v46, %v691_v41  ;;  %v702_v39 = vsub.s32 %v358_v48, %v701_v42  ;;  %v712_v57 = vmul.u32 18, %v711_v4  ;;  %v5879_v42 = vld [vmem:[%s7222_s28 + $0x80] sm:$0xff]  }
  0xc1   : > { %vm8151_vm0 = vcmp.lt.s32.totalorder %v932_v43, 16  ;;  %v9840_v17 = vmov 0  ;;  %vm8155_vm3 = vcmp.lt.s32.totalorder %v933_v14, 16  ;;  %v9843_v3 = vmov 0 }
  0xc2   : > { %v9841_v17 = vsel %vm8151_vm0, 4294967295, %v9840_v17  ;;  %v9844_v3 = vsel %vm8155_vm3, 4294967295, %v9843_v3  ;;  %v3424_v29 = vor.u32 %v3423_v5, %v3422_v20  ;;  %v3427_v52 = vrot.slane %v8148_v10, 5 }
  0xc3   : > { %9842 = vst [vmem:[#allocation34_spill] sm:$0xff] %v9841_v17  ;;  %9845 = vst [vmem:[#allocation35_spill] sm:$0xff] %v9844_v3  ;;  %v1270_v40 = vsel %vm8151_vm0, %v1162_v12, 0.0  ;;  %v1271_v62 = vsel %vm8155_vm3, %v1163_v11, 0.0  ;;  %v713_v41 = vsub.s32 %v359_v54, %v712_v57  ;;  %vm790_vm2 = vcmp.ne.s32.totalorder %v702_v39, 0 }
  0xc4   : > { %v1292_v48 = vpack.c.bf16 %v1271_v62, %v1270_v40  ;;  %vm826_vm14 = vcmp.lt.s32.totalorder %v702_v39, 0  ;;  %v898_v30 = vadd.s32 18, %v702_v39  ;;  %vm9846_vm10 = vsmask.f32 3328 }
  0xc5   : > { %v3425_v46 = vsel %vm9846_vm10, %v8091_v38, %v3424_v29  ;;  %vm791_vm4 = vcmp.ne.s32.totalorder %v713_v41, 0  ;;  %vm827_vm5 = vcmp.lt.s32.totalorder %v713_v41, 0  ;;  %vm862_vm12 = vmand %vm826_vm14, %vm790_vm2  ;;  %v899_v20 = vadd.s32 18, %v713_v41 }
  0xc6   : > { %6420 = vmatprep.mubr.bf16.mxu0 %v3425_v46  ;;  %v8167_v4 = vor.u32 %v3427_v52, %v3426_v21  ;;  %v1342_v12 = vrot.slane %v1292_v48, 4  ;;  %vm863_vm0 = vmand %vm827_vm5, %vm791_vm4  ;;  %v934_v5 = vsel %vm862_vm12, %v898_v30, %v702_v39  ;;  %v360_v11 = vadd.s32 256, %v7196_v8 }
  0xc7   : > { %v361_v40 = vadd.s32 264, %v7196_v8  ;;  %v935_v54 = vsel %vm863_vm0, %v899_v20, %v713_v41  ;;  %vm8171_vm3 = vcmp.lt.s32.totalorder %v934_v5, 16  ;;  %v9847_v43 = vmov 0 }
  0xc8   : > { %v9848_v43 = vsel %vm8171_vm3, 4294967295, %v9847_v43  ;;  %v3429_v38 = vsel %vm9846_vm10, %v3424_v29, %v8167_v4  ;;  %v5768_v14 = vunpack.c.l.bf16 %v5879_v42  ;;  %vm9850_vm2 = vcmask 1043456  }
  0xc9   : > { %9849 = vst [vmem:[#allocation36_spill] sm:$0xff] %v9848_v43  ;;  %v8179_v21 = vsel %vm9850_vm2, %v8103_v53, %v1342_v12  ;;  %vm8181_vm5 = vcmp.lt.s32.totalorder %v935_v54, 16  ;;  %v9851_v39 = vmov 0  ;;  %v1272_v57 = vsel %vm8171_vm3, %v1164_v26, 0.0  ;;  %6421 = vmatmul.mubr.bf16.gmra.mrb[12].mxu0 %v3429_v38  ;;  %v5880_v53 = vld [vmem:[%s7222_s28 + $0x88] sm:$0xff]   ;;  %vm9856_vm0 = vmmov %vm9850_vm2 }
  0xca   : > { %v9852_v39 = vsel %vm8181_vm5, 4294967295, %v9851_v39  ;;  %v5769_v52 = vunpack.c.h.bf16 %v5879_v42  ;;  %1383 = vst [vmem:[#allocation2 + $0x78] sm:$0xff] %v8179_v21  ;;  %v1489_v62 = vrot.slane %v8179_v21, 3  ;;  %v1273_v29 = vsel %vm8181_vm5, %v1165_v19, 0.0 }
  0xcb   : > { %9853 = vst [vmem:[#allocation37_spill] sm:$0xff] %v9852_v39  ;;  %v8191_v41 = vmul.u32.u64.low 3817748708, %v360_v11  ;;  %v8192_v48 = vmul.u32.u64.high 3817748708, %v360_v11, %v8191_v41  ;;  %v1293_v30 = vpack.c.bf16 %v1273_v29, %v1272_v57  ;;  %v1087_v5 = vmul.f32 %v7765_v44, %v5768_v14 }
  0xcc   : > { %v8195_v46 = vmul.u32.u64.low 3817748708, %v361_v40  ;;  %v8196_v20 = vmul.u32.u64.high 3817748708, %v361_v40, %v8195_v46  ;;  %v9854_v26 = vrot.slane %v8113_v18, 3  ;;  %vm9855_vm12 = vcmask 1044480  }
  0xcd   : > { %v1088_v54 = vmul.f32 %v7765_v44, %v5769_v52  ;;  %v362_v38 = vadd.s32 272, %v7196_v8  ;;  %v363_v19 = vadd.s32 280, %v7196_v8  ;;  %v8205_v3 = vrot.slane %v1293_v30, 4  ;;  %vm9857_vm14 = vmmov %vm9855_vm12 }
  0xce   : > { %v1490_v42 = vsel %vm9855_vm12, %v9854_v26, %v1489_v62  ;;  %v1130_v57 = vadd.f32 %v7740_v9, %v1087_v5  ;;  %v5772_v29 = vunpack.c.l.bf16 %v5880_v53  ;;  %v5773_v41 = vunpack.c.h.bf16 %v5880_v53 }
  0xcf   : > { %6176 = vmatprep.mubr.bf16.mxu1 %v1490_v42  ;;  %v722_v46 = vshrl.u32 %v8192_v48, 4  ;;  %v1131_v14 = vadd.f32 %v7740_v9, %v1088_v54  ;;  %v8210_v39 = vmul.u32.u64.low 3817748708, %v362_v38  ;;  %v8211_v43 = vmul.u32.u64.high 3817748708, %v362_v38, %v8210_v39 }
  0xd0   : > { %v8215_v52 = vsel %vm9856_vm0, %v1342_v12, %v8205_v3  ;;  %v733_v8 = vshrl.u32 %v8196_v20, 4  ;;  %v1089_v30 = vmul.f32 %v7765_v44, %v5772_v29  ;;  %v1166_v26 = vmax.f32 %v1130_v57, 0.0 }
  0xd1   : > { %1384 = vst [vmem:[#allocation2 + $0x80] sm:$0xff] %v8215_v52  ;;  %v1491_v5 = vrot.slane %v8215_v52, 3  ;;  %v723_v53 = vmul.u32 18, %v722_v46  ;;  %v1090_v48 = vmul.f32 %v7765_v44, %v5773_v41  ;;  %v1167_v54 = vmax.f32 %v1131_v14, 0.0 }
  0xd2   : > { %v734_v42 = vmul.u32 18, %v733_v8  ;;  %v8222_v17 = vmul.u32.u64.low 3817748708, %v363_v19  ;;  %v8223_v39 = vmul.u32.u64.high 3817748708, %v363_v19, %v8222_v17  ;;  %v744_v29 = vshrl.u32 %v8211_v43, 4 }
  0xd3   : > { %v1492_v12 = vsel %vm9857_vm14, %v1489_v62, %v1491_v5  ;;  %v724_v20 = vsub.s32 %v360_v11, %v723_v53  ;;  %v1132_v7 = vadd.f32 %v7740_v9, %v1089_v30  ;;  %v1133_v57 = vadd.f32 %v7740_v9, %v1090_v48 }
  0xd4   : > { %6177 = vmatmul.mubr.bf16.gmra.mrb[28].mxu1 %v1492_v12  ;;  %v735_v24 = vsub.s32 %v361_v40, %v734_v42  ;;  %v8232_v44 = vshrl.u32 %v7899_v31, 16  ;;  %v8235_v41 = vshll.u32 %v7899_v31, 16  ;;  %v745_v46 = vmul.u32 18, %v744_v29 }
  0xd5   : > { %vm792_vm4 = vcmp.ne.s32.totalorder %v724_v20, 0  ;;  %vm828_vm10 = vcmp.lt.s32.totalorder %v724_v20, 0  ;;  %v900_v17 = vadd.s32 18, %v724_v20  ;;  %v755_v43 = vshrl.u32 %v8223_v39, 4 }
  0xd6   : > { %9858 = vst [vmem:[#allocation38_spill] sm:$0xff] %v8235_v41  ;;  %vm793_vm2 = vcmp.ne.s32.totalorder %v735_v24, 0  ;;  %vm829_vm12 = vcmp.lt.s32.totalorder %v735_v24, 0  ;;  %vm864_vm0 = vmand %vm828_vm10, %vm792_vm4  ;;  %v901_v11 = vadd.s32 18, %v735_v24  ;;  %v746_v62 = vsub.s32 %v362_v38, %v745_v46 }
  0xd7   : > { %vm865_vm14 = vmand %vm829_vm12, %vm793_vm2  ;;  %v936_v40 = vsel %vm864_vm0, %v900_v17, %v724_v20  ;;  %v1168_v9 = vmax.f32 %v1132_v7, 0.0  ;;  %v3430_v14 = vrot.slane %v8232_v44, 4  ;;  %v9859_v31 = vmov 0 }
  0xd8   : > { %v937_v8 = vsel %vm865_vm14, %v901_v11, %v735_v24  ;;  %vm8239_vm5 = vcmp.lt.s32.totalorder %v936_v40, 16  ;;  %v756_v30 = vmul.u32 18, %v755_v43  ;;  %v3431_v53 = vrot.slane %v8235_v41, 5  ;;  %v1388_v11 = vld [vmem:[#allocation2] sm:$0xfc] }
  0xd9   : > { %v9860_v31 = vsel %vm8239_vm5, 4294967295, %v9859_v31  ;;  %vm8244_vm3 = vcmp.lt.s32.totalorder %v937_v8, 16  ;;  %v9862_v48 = vmov 0  ;;  %v1274_v42 = vsel %vm8239_vm5, %v1166_v26, 0.0 }
  0xda   : > { %9861 = vst [vmem:[#allocation39_spill] sm:$0xff] %v9860_v31  ;;  %v9863_v48 = vsel %vm8244_vm3, 4294967295, %v9862_v48  ;;  %vm794_vm4 = vcmp.ne.s32.totalorder %v746_v62, 0  ;;  %vm830_vm10 = vcmp.lt.s32.totalorder %v746_v62, 0  ;;  %v1275_v7 = vsel %vm8244_vm3, %v1167_v54, 0.0 }
  0xdb   : > { %9864 = vst [vmem:[#allocation40_spill] sm:$0xff] %v9863_v48  ;;  %v757_v24 = vsub.s32 %v363_v19, %v756_v30  ;;  %vm866_vm2 = vmand %vm830_vm10, %vm794_vm4  ;;  %v902_v38 = vadd.s32 18, %v746_v62  ;;  %v3432_v39 = vor.u32 %v3431_v53, %v3430_v14  ;;  %v1294_v12 = vpack.c.bf16 %v1275_v7, %v1274_v42  ;;  %v8280_v7 = vld [vmem:[#allocation2 + $0x8] sm:$0xff] }
  0xdc   : > { %v1169_v20 = vmax.f32 %v1133_v57, 0.0  ;;  %v8253_v29 = vshrl.u32 %v7968_v59, 16  ;;  %v8256_v17 = vshll.u32 %v7968_v59, 16  ;;  %v9867_v19 = vmov 0 }
  0xdd   : > { %vm795_vm12 = vcmp.ne.s32.totalorder %v757_v24, 0  ;;  %vm831_vm0 = vcmp.lt.s32.totalorder %v757_v24, 0  ;;  %v903_v26 = vadd.s32 18, %v757_v24  ;;  %v938_v46 = vsel %vm866_vm2, %v902_v38, %v746_v62 }
  0xde   : > { %9865 = vst [vmem:[#allocation41_spill] sm:$0xff] %v8253_v29  ;;  %9866 = vst [vmem:[#allocation42_spill] sm:$0xff] %v8256_v17  ;;  %v1346_v43 = vrot.slane %v1294_v12, 4  ;;  %vm8258_vm3 = vcmp.lt.s32.totalorder %v938_v46, 16  ;;  %vm9870_vm4 = vsmask.f32 3328 }
  0xdf   : > { %vm867_vm14 = vmand %vm831_vm0, %vm795_vm12  ;;  %v9868_v19 = vsel %vm8258_vm3, 4294967295, %v9867_v19  ;;  %v3433_v54 = vsel %vm9870_vm4, %v8167_v4, %v3432_v39  ;;  %v3434_v57 = vrot.slane %v8253_v29, 4  ;;  %v1276_v59 = vsel %vm8258_vm3, %v1168_v9, 0.0 }
  0xe0   : > { %9869 = vst [vmem:[#allocation43_spill] sm:$0xff] %v9868_v19  ;;  %v939_v40 = vsel %vm867_vm14, %v903_v26, %v757_v24  ;;  %6424 = vmatprep.mubr.bf16.mxu0 %v3433_v54  ;;  %v3435_v14 = vrot.slane %v8256_v17, 5  ;;  %vm9871_vm10 = vcmask 1043456   ;;  %v9872_v8 = vmov 0  ;;  %vm9876_vm0 = vmmov %vm9870_vm4 }
  0xe1   : > { %v8270_v62 = vsel %vm9871_vm10, %v8205_v3, %v1346_v43  ;;  %vm8272_vm2 = vcmp.lt.s32.totalorder %v939_v40, 16  ;;  %v1742_v30 = vshrl.u32 %v1388_v11, 16  ;;  %v1745_v42 = vshll.u32 %v1388_v11, 16  ;;  %vm9879_vm14 = vmmov %vm9871_vm10 }
  0xe2   : > { %v9873_v8 = vsel %vm8272_vm2, 4294967295, %v9872_v8  ;;  %1385 = vst [vmem:[#allocation2 + $0x88] sm:$0xff] %v8270_v62  ;;  %v9616_v4 = vrot.slane %v8270_v62, 3  ;;  %v1277_v53 = vsel %vm8272_vm2, %v1169_v20, 0.0  ;;  %v3436_v9 = vor.u32 %v3435_v14, %v3434_v57  ;;  %vm9880_vm4 = vmmov %vm9876_vm0 }
  0xe3   : > { %9874 = vst [vmem:[#allocation44_spill] sm:$0xff] %v9873_v8  ;;  %v9615_v24 = vshrl.u32 %v8280_v7, 16  ;;  %v9614_v3 = vshll.u32 %v8280_v7, 16  ;;  %v1295_v38 = vpack.c.bf16 %v1277_v53, %v1276_v59  ;;  %vm9875_vm12 = vcmask 1044480  }
  0xe4   : > { %v1494_v12 = vsel %vm9875_vm12, %v1491_v5, %v9616_v4  ;;  %v3437_v26 = vsel %vm9876_vm0, %v3432_v39, %v3436_v9  ;;  %v8291_v46 = vshrl.u32 %v7994_v61, 16  ;;  %v1744_v11 = vrot.slane %v1742_v30, 2  ;;  %vm9882_vm12 = vmmov %vm9876_vm0 }
  0xe5   : > { %6180 = vmatprep.mubr.bf16.mxu1 %v1494_v12  ;;  %v1348_v20 = vrot.slane %v1295_v38, 4  ;;  %6425 = vmatmul.mubr.bf16.gmra.mrb[16].mxu0 %v3437_v26  ;;  %v8294_v54 = vshll.u32 %v7994_v61, 16  ;;  %v1747_v57 = vrot.slane %v1745_v42, 3  ;;  %v8298_v59 = vshrl.u32 %v8084_v37, 16 }
  0xe6   : > { %v3438_v40 = vrot.slane %v8291_v46, 4  ;;  %v8301_v5 = vshll.u32 %v8084_v37, 16  ;;  %v1752_v14 = vrot.slane %v9615_v24, 2  ;;  %v1755_v61 = vrot.slane %v9614_v3, 3 }
  0xe7   : > { %9877 = vst [vmem:[#allocation45_spill] sm:$0xff] %v8298_v59  ;;  %v8304_v39 = vsel %vm9879_vm14, %v1346_v43, %v1348_v20  ;;  %1387 = vst [vmem:[#allocation2 + $0x98] sm:$0xf] %v1348_v20  ;;  %v3439_v30 = vrot.slane %v8294_v54, 5  ;;  %v3442_v53 = vrot.slane %v8298_v59, 4  ;;  %v1748_v38 = vor.u32 %v1747_v57, %v1744_v11 }
  0xe8   : > { %9878 = vst [vmem:[#allocation46_spill] sm:$0xff] %v8301_v5  ;;  %1386 = vst [vmem:[#allocation2 + $0x90] sm:$0xff] %v8304_v39  ;;  %v3443_v42 = vrot.slane %v8301_v5, 5  ;;  %v8315_v43 = vshrl.u32 %v8113_v18, 16  ;;  %v8318_v26 = vshll.u32 %v8113_v18, 16  ;;  %v1756_v20 = vor.u32 %v1755_v61, %v1752_v14  ;;  %v8330_v18 = vld [vmem:[#allocation2 + $0x18] sm:$0xff] }
  0xe9   : > { %v3440_v37 = vor.u32 %v3439_v30, %v3438_v40  ;;  %v8322_v24 = vshrl.u32 %v8179_v21, 16  ;;  %v8325_v4 = vshll.u32 %v8179_v21, 16  ;;  %vm1740_vm10 = vsmask.f32 5376  ;;  %vm9888_vm14 = vmmov %vm9876_vm0 }
  0xea   : > { %v3444_v12 = vor.u32 %v3443_v42, %v3442_v53  ;;  %v3446_v57 = vrot.slane %v8315_v43, 4  ;;  %v3447_v40 = vrot.slane %v8318_v26, 5  ;;  %v1761_v30 = vrot.slane %v7418_v15, 2 }
  0xeb   : > { %v3441_v3 = vsel %vm9880_vm4, %v3436_v9, %v3440_v37  ;;  %9881 = vst [vmem:[#allocation47_spill] sm:$0xff] %v8325_v4  ;;  %v3450_v61 = vrot.slane %v8322_v24, 4  ;;  %v3451_v21 = vrot.slane %v8325_v4, 5  ;;  %v1757_v42 = vsel %vm1740_vm10, %v1748_v38, %v1756_v20 }
  0xec   : > { %6428 = vmatprep.mubr.bf16.mxu0 %v3441_v3  ;;  %v3445_v11 = vsel %vm9882_vm12, %v3440_v37, %v3444_v12  ;;  %v3448_v3 = vor.u32 %v3447_v40, %v3446_v57  ;;  %v1764_v37 = vrot.slane %v7421_v25, 3  ;;  %v8342_v48 = vshrl.u32 %v8215_v52, 16  ;;  %vm9894_vm12 = vmmov %vm9876_vm0 }
  0xed   : > { %6429 = vmatmul.mubr.bf16.gmra.mrb[20].mxu0 %v3445_v11  ;;  %v3452_v11 = vor.u32 %v3451_v21, %v3450_v61  ;;  %v8347_v8 = vshll.u32 %v8215_v52, 16  ;;  %v8350_v19 = vshrl.u32 %v8270_v62, 16  ;;  %v9886_v57 = vshrl.u32 %v8330_v18, 16 }
  0xee   : > { %9883 = vst [vmem:[#allocation48_spill] sm:$0xff] %v8342_v48  ;;  %v3449_v9 = vsel %vm9876_vm0, %v3444_v12, %v3448_v3  ;;  %v9887_v38 = vshll.u32 %v8330_v18, 16  ;;  %v3454_v21 = vrot.slane %v8342_v48, 4  ;;  %v9889_v1 = vrot.slane %v8270_v62, 3 }
  0xef   : > { %v8337_v53 = vld [vmem:[#allocation2 + $0x90] sm:$0x7]  ;;  %9884 = vst [vmem:[#allocation49_spill] sm:$0xff] %v8347_v8  ;;  %9885 = vst [vmem:[#allocation50_spill] sm:$0xff] %v8350_v19  ;;  %v1770_v40 = vrot.slane %v9886_v57, 2  ;;  %6432 = vmatprep.mubr.bf16.mxu0 %v3449_v9  ;;  %v3453_v61 = vsel %vm9888_vm14, %v3448_v3, %v3452_v11  ;;  %vm9890_vm4 = vcmask 1044480   ;;  %v1765_v32 = vor.u32 %v1764_v37, %v1761_v30 }
  0xf0   : > { %v1495_v14 = vrot.slane %v8337_v53, 3  ;;  %v1773_v31 = vrot.slane %v9887_v38, 3  ;;  %v3455_v52 = vrot.slane %v8347_v8, 5  ;;  %v8363_v16 = vshll.u32 %v8270_v62, 16  ;;  %v3372_v57 = vld [vmem:[#allocation2 + $0x98] sm:$0x1f]  ;;  %vm9895_vm14 = vmmov %vm9876_vm0 }
  0xf1   : > { %v3458_v2 = vrot.slane %v8350_v19, 4  ;;  %v1779_v9 = vrot.slane %v7903_v28, 2  ;;  %v1782_v3 = vrot.slane %v7916_v13, 3  ;;  %v8373_v62 = vshll.u32 %v8304_v39, 16 }
  0xf2   : > { %v1496_v12 = vsel %vm9890_vm4, %v9889_v1, %v1495_v14  ;;  %9891 = vst [vmem:[#allocation51_spill] sm:$0xff] %v8363_v16  ;;  %v3456_v38 = vor.u32 %v3455_v52, %v3454_v21  ;;  %v3459_v60 = vrot.slane %v8363_v16, 5  ;;  %v8370_v1 = vshrl.u32 %v8304_v39, 16  ;;  %v8378_v52 = vld [vmem:[#allocation2 + $0x18] sm:$0xff]  ;;  %vm9897_vm4 = vmmov %vm9876_vm0 }
  0xf3   : > { %6181 = vmatmul.mubr.bf16.gmra.mrb[32].mxu1 %v1496_v12  ;;  %v1774_v14 = vor.u32 %v1773_v31, %v1770_v40  ;;  %9893 = vst [vmem:[#allocation53_spill] sm:$0xff] %v8373_v62  ;;  %v3467_v55 = vshrl.u32 %v3372_v57, 16  ;;  %v3470_v27 = vshll.u32 %v3372_v57, 16  ;;  %v3463_v21 = vrot.slane %v8373_v62, 5  ;;  %v3754_v12 = vld [vmem:[#allocation2 + $0x10] sm:$0xf0] }
  0xf4   : > { %6200 = vmatprep.mubr.bf16.mxu1 %v1757_v42  ;;  %9892 = vst [vmem:[#allocation52_spill] sm:$0xff] %v8370_v1  ;;  %v3457_v30 = vsel %vm9894_vm12, %v3452_v11, %v3456_v38  ;;  %v3460_v37 = vor.u32 %v3459_v60, %v3458_v2  ;;  %v3462_v42 = vrot.slane %v8370_v1, 4  ;;  %v1766_v23 = vsel %vm1740_vm10, %v1756_v20, %v1765_v32  ;;  %v7040_v60 = vld [vmem:[%s9509_s1 + $0x88] sm:$0xff]   ;;  %vm9898_vm12 = vmmov %vm9876_vm0 }
  0xf5   : > { %6433 = vmatmul.mubr.bf16.gmra.mrb[24].mxu0 %v3453_v61  ;;  %v1783_v31 = vor.u32 %v1782_v3, %v1779_v9  ;;  %v1788_v40 = vrot.slane %v7954_v47, 2  ;;  %v1791_v61 = vrot.slane %v7957_v51, 3  ;;  %v1775_v57 = vsel %vm1740_vm10, %v1765_v32, %v1774_v14  ;;  %v8394_v3 = vld [vmem:[#allocation2 + $0x20] sm:$0xff] }
  0xf6   : > { %6436 = vmatprep.mubr.bf16.mxu0 %v3457_v30  ;;  %v8387_v2 = vor.u32 %v3463_v21, %v3462_v42  ;;  %v3469_v11 = vrot.slane %v3467_v55, 4  ;;  %v3472_v30 = vrot.slane %v3470_v27, 5  ;;  %v3461_v22 = vsel %vm9876_vm0, %v3456_v38, %v3460_v37  ;;  %9896 = vst [vmem:[#allocation54_spill] sm:$0xff] %v8394_v3  ;;  %v7078_v42 = vld [vmem:[%s9509_s1 + $0x80] sm:$0xff]  }
  0xf7   : > { %v3790_v45 = vshrl.u32 %v3754_v12, 16  ;;  %v3793_v35 = vshll.u32 %v3754_v12, 16  ;;  %v9647_v20 = vshrl.u32 %v8378_v52, 16  ;;  %v9649_v32 = vshll.u32 %v8378_v52, 16  ;;  %v8406_v12 = vld [vmem:[#allocation2 + $0x28] sm:$0xff] }
  0xf8   : > { %v3465_v9 = vsel %vm9895_vm14, %v3460_v37, %v8387_v2  ;;  %v7042_v37 = vld [vmem:[%s9509_s1 + $0x90] sm:$0xff]   ;;  %v9659_v58 = vshrl.u32 %v8406_v12, 16  ;;  %v1818_v1 = vrot.slane %v8137_v6, 3  ;;  %v1827_v6 = vrot.slane %v8148_v10, 3  ;;  %vm9900_vm14 = vmmov %vm9876_vm0 }
  0xf9   : > { %v3792_v27 = vrot.slane %v3790_v45, 4  ;;  %v3795_v55 = vrot.slane %v3793_v35, 5  ;;  %v3800_v38 = vrot.slane %v9647_v20, 4  ;;  %v3803_v21 = vrot.slane %v9649_v32, 5 }
  0xfa   : > { %v3473_v45 = vor.u32 %v3472_v30, %v3469_v11  ;;  %v9654_v35 = vshrl.u32 %v8394_v3, 16  ;;  %v1809_v32 = vrot.slane %v8064_v34, 3  ;;  %v7044_v30 = vld [vmem:[%s9509_s1 + $0x98] sm:$0xff]  }
  0xfb   : > { %6201 = vmatmul.mubr.bf16.vlgmr.msra.gmra.mrb[0].mxu1 %v1766_v23  ;;  %v1792_v23 = vor.u32 %v1791_v61, %v1788_v40  ;;  %v1797_v40 = vrot.slane %v8026_v33, 2  ;;  %v1800_v61 = vrot.slane %v8029_v0, 3  ;;  %v3796_v20 = vor.u32 %v3795_v55, %v3792_v27  ;;  %v8427_v55 = vld [vmem:[#allocation2 + $0x30] sm:$0xff] }
  0xfc   : > { %6237 = vmatpush3.bf16.msra.mxu1 %v7078_v42  ;;  %6204 = vmatprep.mubr.bf16.mxu1 %v1775_v57  ;;  %v1784_v42 = vsel %vm1740_vm10, %v1774_v14, %v1783_v31  ;;  %v9657_v57 = vshll.u32 %v8394_v3, 16  ;;  %v3804_v49 = vor.u32 %v3803_v21, %v3800_v38  ;;  %v9658_v14 = vshll.u32 %v8406_v12, 16 }
  0xfd   : > { %6238 = vmatprep.subr.bf16.mxu1 %v7040_v60  ;;  %6437 = vmatmul.mubr.bf16.gmra.mrb[28].mxu0 %v3461_v22  ;;  %v1806_v22 = vrot.slane %v8058_v63, 2  ;;  %v1793_v11 = vsel %vm1740_vm10, %v1783_v31, %v1792_v23  ;;  %v3818_v31 = vrot.slane %v9659_v58, 4  ;;  %v1801_v62 = vor.u32 %v1800_v61, %v1797_v40 }
  0xfe   : > { %6440 = vmatprep.mubr.bf16.mxu0 %v3465_v9  ;;  %v3474_v9 = vsel %vm9897_vm4, %v8387_v2, %v3473_v45  ;;  %v3812_v27 = vrot.slane %v9657_v57, 5  ;;  %v3805_v38 = vsel %vm9898_vm12, %v3796_v20, %v3804_v49  ;;  %v3821_v21 = vrot.slane %v9658_v14, 5  ;;  %v8436_v57 = vld [vmem:[#allocation2 + $0x38] sm:$0xff]  ;;  %v7046_v20 = vld [vmem:[%s9509_s1 + $0xa0] sm:$0xff]   ;;  %vm9902_vm4 = vmmov %vm9876_vm0 }
  0xff   : > { %v1810_v45 = vor.u32 %v1809_v32, %v1806_v22  ;;  %9899 = vst [vmem:[#allocation55_spill] sm:$0xff] %v8436_v57  ;;  %v9661_v14 = vshll.u32 %v8427_v55, 16  ;;  %v9663_v32 = vshrl.u32 %v8436_v57, 16  ;;  %v9662_v61 = vshll.u32 %v8436_v57, 16  ;;  %vm9905_vm12 = vmmov %vm9876_vm0 }
 0x100   : > { %6239 = vmatpush3.bf16.msra.mxu1 %v7040_v60  ;;  %v3809_v60 = vrot.slane %v9654_v35, 4  ;;  %v1815_v35 = vrot.slane %v8117_v36, 2  ;;  %v1802_v22 = vsel %vm1740_vm10, %v1792_v23, %v1801_v62  ;;  %v1824_v58 = vrot.slane %v8143_v56, 2 }
 0x101   : > { %6240 = vmatprep.subr.bf16.mxu1 %v7042_v37 }
 0x102   : > { %v3813_v40 = vor.u32 %v3812_v27, %v3809_v60  ;;  %v3830_v60 = vrot.slane %v9661_v14, 5  ;;  %v7048_v27 = vld [vmem:[%s9509_s1 + $0xa8] sm:$0xff]   ;;  %v8470_v14 = vor.u32 %v1827_v6, %v1824_v58  ;;  %v1903_v58 = vshrl.u32 %v8337_v53, 16 }
 0x103   : > { %6205 = vmatmul.mubr.bf16.gmra.mrb[4].mxu1 %v1784_v42  ;;  %v9664_v42 = vshrl.u32 %v8427_v55, 16  ;;  %v1906_v6 = vshll.u32 %v8337_v53, 16 }
 0x104   : > { %6208 = vmatprep.mubr.bf16.mxu1 %v1793_v11  ;;  %6241 = vmatpush3.bf16.msra.mxu1 %v7042_v37  ;;  %v3822_v37 = vor.u32 %v3821_v21, %v3818_v31  ;;  %v1811_v11 = vsel %vm1740_vm10, %v1801_v62, %v1810_v45  ;;  %v3814_v23 = vsel %vm9876_vm0, %v3804_v49, %v3813_v40  ;;  %v8457_v62 = vld [vmem:[#allocation2 + $0x40] sm:$0xff]  ;;  %v7049_v31 = vld [vmem:[%s9509_s1 + $0x1c8] sm:$0xff]  }
 0x105   : > { %6441 = vmatmul.mubr.bf16.gmra.mrb[32].mxu0 %v3474_v9  ;;  %6242 = vmatprep.subr.bf16.mxu1 %v7044_v30  ;;  %v1819_v9 = vor.u32 %v1818_v1, %v1815_v35  ;;  %v3836_v35 = vrot.slane %v9663_v32, 4  ;;  %v8468_v49 = vld [vmem:[#allocation2 + $0x48] sm:$0xff]  ;;  %v1896_v32 = vrot.slane %v8350_v19, 2 }
 0x106   : > { %6460 = vmatprep.mubr.bf16.mxu0 %v3805_v38  ;;  %v3827_v38 = vrot.slane %v9664_v42, 4  ;;  %v3823_v1 = vsel %vm9900_vm14, %v3813_v40, %v3822_v37  ;;  %9901 = vst [vmem:[#allocation56_spill] sm:$0xff] %v8468_v49  ;;  %vm9913_vm14 = vmmov %vm9876_vm0 }
 0x107   : > { %v1820_v21 = vsel %vm1740_vm10, %v1810_v45, %v1819_v9  ;;  %v1905_v45 = vrot.slane %v1903_v58, 2  ;;  %v1829_v53 = vsel %vm1740_vm10, %v1819_v9, %v8470_v14 }
 0x108   : > { %6243 = vmatpush3.bf16.msra.mxu1 %v7044_v30  ;;  %v3839_v30 = vrot.slane %v9662_v61, 5  ;;  %v3831_v40 = vor.u32 %v3830_v60, %v3827_v38  ;;  %v7050_v61 = vld [vmem:[%s9509_s1 + $0xb0] sm:$0xff]  }
 0x109   : > { %6244 = vmatprep.subr.bf16.mxu1 %v7046_v20 }
 0x10a   : > { %v3840_v38 = vor.u32 %v3839_v30, %v3836_v35  ;;  %v1842_v35 = vrot.slane %v8253_v29, 2  ;;  %v1845_v30 = vrot.slane %v8256_v17, 3  ;;  %v3832_v60 = vsel %vm9902_vm4, %v3822_v37, %v3831_v40  ;;  %v7053_v37 = vld [vmem:[%s9509_s1 + $0x1d8] sm:$0xff]   ;;  %vm9915_vm4 = vmmov %vm9876_vm0 }
 0x10b   : > { %6209 = vmatmul.mubr.bf16.gmra.mrb[8].mxu1 %v1802_v22  ;;  %v1908_v22 = vrot.slane %v1906_v6, 3  ;;  %v9907_v17 = vshll.u32 %v8468_v49, 16 }
 0x10c   : > { %6212 = vmatprep.mubr.bf16.mxu1 %v1811_v11  ;;  %6245 = vmatpush3.bf16.msra.mxu1 %v7046_v20  ;;  %v1899_v20 = vrot.slane %v8363_v16, 3  ;;  %v1833_v11 = vrot.slane %v8232_v44, 2  ;;  %v3841_v9 = vsel %vm9905_vm12, %v3831_v40, %v3840_v38  ;;  %v9906_v16 = vshrl.u32 %v8468_v49, 16  ;;  %vm9917_vm12 = vmmov %vm9876_vm0 }
 0x10d   : > { %6461 = vmatmul.mubr.bf16.vlgmr.msra.gmra.mrb[0].mxu0 %v3814_v23  ;;  %6246 = vmatprep.subr.bf16.mxu1 %v7048_v27  ;;  %v7052_v23 = vld [vmem:[%s9509_s1 + $0xb8] sm:$0xff]   ;;  %v1909_v6 = vor.u32 %v1908_v22, %v1905_v45  ;;  %v3857_v29 = vrot.slane %v9907_v17, 5  ;;  %v9910_v17 = vshll.u32 %v8280_v7, 16  ;;  %v1846_v45 = vor.u32 %v1845_v30, %v1842_v35 }
 0x10e   : > { %6464 = vmatprep.mubr.bf16.mxu0 %v3823_v1  ;;  %6497 = vmatpush3.bf16.msra.mxu0 %v8037_v50  ;;  %v7051_v50 = vld [vmem:[%s9509_s1 + $0x1d0] sm:$0xff]   ;;  %v1836_v1 = vrot.slane %v8235_v41, 3  ;;  %v8489_v42 = vor.u32 %v1899_v20, %v1896_v32  ;;  %v9904_v20 = vshll.u32 %v8457_v62, 16  ;;  %v3854_v19 = vrot.slane %v9906_v16, 4  ;;  %v8519_v16 = vld [vmem:[#allocation2 + $0x58] sm:$0xff] }
 0x10f   : > { %6498 = vmatprep.subr.bf16.mxu0 %v7049_v31  ;;  %v8508_v41 = vld [vmem:[#allocation2 + $0x50] sm:$0xff]  ;;  %v2181_v22 = vrot.slane %v9910_v17, 4 }
 0x110   : > { %6247 = vmatpush3.bf16.msra.mxu1 %v7048_v27  ;;  %v9903_v27 = vshrl.u32 %v8457_v62, 16  ;;  %v3848_v58 = vrot.slane %v9904_v20, 5  ;;  %9908 = vst [vmem:[#allocation57_spill] sm:$0xff] %v8508_v41  ;;  %v8517_v40 = vsel %vm1740_vm10, %v8489_v42, %v1909_v6  ;;  %v1851_v20 = vrot.slane %v8291_v46, 2 }
 0x111   : > { %6248 = vmatprep.subr.bf16.mxu1 %v7050_v61  ;;  %v3858_v35 = vor.u32 %v3857_v29, %v3854_v19  ;;  %v1860_v29 = vrot.slane %v8298_v59, 2  ;;  %v1863_v19 = vrot.slane %v8301_v5, 3  ;;  %v9914_v5 = vshll.u32 %v8519_v16, 16  ;;  %v8559_v59 = vld [vmem:[#allocation2 + $0x60] sm:$0xff] }
 0x112   : > { %v3845_v32 = vrot.slane %v9903_v27, 4  ;;  %6499 = vmatpush3.bf16.msra.mxu0 %v7049_v31  ;;  %v9909_v27 = vshrl.u32 %v8280_v7, 16  ;;  %v1854_v7 = vrot.slane %v8294_v54, 3 }
 0x113   : > { %6213 = vmatmul.mubr.bf16.gmra.mrb[12].mxu1 %v1820_v21  ;;  %6500 = vmatprep.subr.bf16.mxu0 %v7051_v50  ;;  %v1837_v21 = vor.u32 %v1836_v1, %v1833_v11  ;;  %v9676_v11 = vshrl.u32 %v8508_v41, 16  ;;  %v9673_v1 = vshll.u32 %v8508_v41, 16 }
 0x114   : > { %v2180_v31 = vrot.slane %v9909_v27, 3  ;;  %6216 = vmatprep.mubr.bf16.mxu1 %v1829_v53  ;;  %6249 = vmatpush3.bf16.msra.mxu1 %v7050_v61  ;;  %v8527_v53 = vld [vmem:[%s9509_s1 + $0xc0] sm:$0xff]   ;;  %v3849_v61 = vor.u32 %v3848_v58, %v3845_v32 }
 0x115   : > { %6465 = vmatmul.mubr.bf16.gmra.mrb[4].mxu0 %v3832_v60  ;;  %6250 = vmatprep.subr.bf16.mxu1 %v7052_v23  ;;  %v9672_v60 = vshrl.u32 %v8519_v16, 16  ;;  %v1838_v32 = vsel %vm1740_vm10, %v8470_v14, %v1837_v21  ;;  %v1847_v27 = vsel %vm1740_vm10, %v1837_v21, %v1846_v45  ;;  %v3863_v17 = vrot.slane %v9676_v11, 4  ;;  %v8596_v11 = vld [vmem:[#allocation2 + $0x78] sm:$0xff] }
 0x116   : > { %6468 = vmatprep.mubr.bf16.mxu0 %v3841_v9  ;;  %6501 = vmatpush3.bf16.msra.mxu0 %v7051_v50  ;;  %v8531_v6 = vor.u32 %v2181_v22, %v2180_v31  ;;  %v7055_v9 = vld [vmem:[%s9509_s1 + $0x1e0] sm:$0xff]   ;;  %v9911_v50 = vshrl.u32 %v8330_v18, 16  ;;  %v3850_v31 = vsel %vm9876_vm0, %v3840_v38, %v3849_v61  ;;  %v3866_v14 = vrot.slane %v9673_v1, 5  ;;  %9918 = vst [vmem:[#allocation59_spill] sm:$0xff] %v8596_v11 }
 0x117   : > { %6502 = vmatprep.subr.bf16.mxu0 %v7053_v37  ;;  %v1855_v21 = vor.u32 %v1854_v7, %v1851_v20  ;;  %v3872_v30 = vrot.slane %v9672_v60, 4  ;;  %v3875_v38 = vrot.slane %v9914_v5, 5  ;;  %v1864_v20 = vor.u32 %v1863_v19, %v1860_v29 }
 0x118   : > { %6251 = vmatpush3.bf16.msra.mxu1 %v7052_v23  ;;  %v2188_v58 = vrot.slane %v9911_v50, 3  ;;  %v9912_v23 = vshll.u32 %v8330_v18, 16  ;;  %v3859_v50 = vsel %vm9913_vm14, %v3849_v61, %v3858_v35  ;;  %v8564_v18 = vld [vmem:[#allocation2 + $0x68] sm:$0xff]  ;;  %v3867_v61 = vor.u32 %v3866_v14, %v3863_v17  ;;  %vm9919_vm14 = vmmov %vm9915_vm4 }
 0x119   : > { %6288 = vmatprep.subr.bf16.mxu1 %v8527_v53  ;;  %v9674_v7 = vshrl.u32 %v8559_v59, 16  ;;  %v9675_v5 = vshll.u32 %v8559_v59, 16  ;;  %v3876_v60 = vor.u32 %v3875_v38, %v3872_v30  ;;  %v9677_v1 = vshrl.u32 %v8564_v18, 16 }
 0x11a   : > { %6503 = vmatpush3.bf16.msra.mxu0 %v7053_v37  ;;  %v2189_v22 = vrot.slane %v9912_v23, 4  ;;  %v7057_v37 = vld [vmem:[%s9509_s1 + $0x1e8] sm:$0xff]   ;;  %v1856_v23 = vsel %vm1740_vm10, %v1846_v45, %v1855_v21  ;;  %v1869_v29 = vrot.slane %v8315_v43, 2  ;;  %v1872_v19 = vrot.slane %v8318_v26, 3 }
 0x11b   : > { %6217 = vmatmul.mubr.bf16.gmra.mrb[16].mxu1 %v1838_v32  ;;  %6504 = vmatprep.subr.bf16.mxu0 %v7055_v9  ;;  %v1865_v45 = vsel %vm1740_vm10, %v1855_v21, %v1864_v20  ;;  %v3868_v30 = vsel %vm9915_vm4, %v3858_v35, %v3867_v61  ;;  %v3881_v17 = vrot.slane %v9674_v7, 4  ;;  %v3884_v14 = vrot.slane %v9675_v5, 5  ;;  %v7061_v35 = vld [vmem:[%s9509_s1 + $0x1f8] sm:$0xff]  }
 0x11c   : > { %6220 = vmatprep.mubr.bf16.mxu1 %v1847_v27  ;;  %v8566_v32 = vor.u32 %v2189_v22, %v2188_v58  ;;  %v9678_v27 = vshll.u32 %v8564_v18, 16  ;;  %v7059_v58 = vld [vmem:[%s9509_s1 + $0x1f0] sm:$0xff]   ;;  %v3890_v38 = vrot.slane %v9677_v1, 4  ;;  %v1873_v7 = vor.u32 %v1872_v19, %v1869_v29  ;;  %v8605_v29 = vld [vmem:[%s9509_s1 + $0x200] sm:$0xff]  }
 0x11d   : > { %6469 = vmatmul.mubr.bf16.gmra.mrb[8].mxu0 %v3850_v31  ;;  %v1878_v31 = vrot.slane %v8322_v24, 2  ;;  %v8586_v22 = vld [vmem:[#allocation2 + $0x70] sm:$0xff]  ;;  %vm4274_vm0 = vcmask 1042432  }
 0x11e   : > { %6472 = vmatprep.mubr.bf16.mxu0 %v3859_v50  ;;  %6505 = vmatpush3.bf16.msra.mxu0 %v7055_v9  ;;  %v1881_v9 = vrot.slane %v8325_v4, 3  ;;  %9916 = vst [vmem:[#allocation58_spill] sm:$0xff] %v8586_v22  ;;  %v3877_v50 = vsel %vm9917_vm12, %v3867_v61, %v3876_v60  ;;  %v3893_v21 = vrot.slane %v9678_v27, 5  ;;  %v9680_v61 = vshll.u32 %v8586_v22, 16  ;;  %vm9922_vm12 = vmmov %vm9915_vm4 }
 0x11f   : > { %6506 = vmatprep.subr.bf16.mxu0 %v7057_v37  ;;  %v9684_v27 = vshrl.u32 %v8596_v11, 16  ;;  %v9685_v4 = vshll.u32 %v8596_v11, 16  ;;  %v1874_v19 = vsel %vm1740_vm10, %v1864_v20, %v1873_v7  ;;  %v4278_v20 = vrot.slane %v8394_v3, 5 }
 0x120   : > { %v1882_v5 = vor.u32 %v1881_v9, %v1878_v31  ;;  %v3894_v1 = vor.u32 %v3893_v21, %v3890_v38  ;;  %v1887_v9 = vrot.slane %v8342_v48, 2  ;;  %v9921_v3 = vrot.slane %v8378_v52, 5 }
 0x121   : > { %v3908_v38 = vrot.slane %v9684_v27, 4  ;;  %v3911_v21 = vrot.slane %v9685_v4, 5  ;;  %v4280_v4 = vrot.slane %v8406_v12, 5 }
 0x122   : > { %6507 = vmatpush3.bf16.msra.mxu0 %v7057_v37  ;;  %v9681_v37 = vshrl.u32 %v8586_v22, 16  ;;  %v1883_v31 = vsel %vm1740_vm10, %v1873_v7, %v1882_v5 }
 0x123   : > { %6221 = vmatmul.mubr.bf16.gmra.mrb[20].mxu1 %v1856_v23  ;;  %6508 = vmatprep.subr.bf16.mxu0 %v7059_v58  ;;  %v3885_v23 = vor.u32 %v3884_v14, %v3881_v17  ;;  %v8640_v48 = vsel %vm4274_vm0, %v4278_v20, %v4280_v4 }
 0x124   : > { %6224 = vmatprep.mubr.bf16.mxu1 %v1865_v45  ;;  %v1890_v45 = vrot.slane %v8347_v8, 3  ;;  %v4282_v8 = vrot.slane %v8427_v55, 5 }
 0x125   : > { %6473 = vmatmul.mubr.bf16.gmra.mrb[12].mxu0 %v3868_v30  ;;  %v3902_v30 = vrot.slane %v9680_v61, 5  ;;  %v3886_v14 = vsel %vm9919_vm14, %v3876_v60, %v3885_v23  ;;  %v3895_v7 = vsel %vm9915_vm4, %v3885_v23, %v3894_v1  ;;  %v8625_v61 = vld [vmem:[#allocation2 + $0x88] sm:$0xff]  ;;  %vm2171_vm14 = vsmask.f32 4352 }
 0x126   : > { %6476 = vmatprep.mubr.bf16.mxu0 %v3877_v50  ;;  %6509 = vmatpush3.bf16.msra.mxu0 %v7059_v58  ;;  %v3899_v58 = vrot.slane %v9681_v37, 4  ;;  %v8617_v50 = vld [vmem:[#allocation2 + $0x80] sm:$0xff]  ;;  %v1891_v60 = vor.u32 %v1890_v45, %v1887_v9  ;;  %v3912_v45 = vor.u32 %v3911_v21, %v3908_v38 }
 0x127   : > { %6510 = vmatprep.subr.bf16.mxu0 %v7061_v35  ;;  %9920 = vst [vmem:[#allocation60_spill] sm:$0xff] %v8617_v50  ;;  %v7079_v37 = vld [vmem:[#allocation2] sm:$0xf8]  ;;  %v9690_v27 = vshrl.u32 %v8617_v50, 16 }
 0x128   : > { %v2173_v17 = vshrl.u32 %v7079_v37, 16  ;;  %v3903_v23 = vor.u32 %v3902_v30, %v3899_v58  ;;  %v4284_v58 = vrot.slane %v8436_v57, 5  ;;  %v1892_v30 = vsel %vm1740_vm10, %v1882_v5, %v1891_v60 }
 0x129   : > { %v9924_v5 = vshrl.u32 %v8625_v61, 16 }
 0x12a   : > { %6511 = vmatpush3.bf16.msra.mxu0 %v7061_v35  ;;  %v2176_v35 = vshll.u32 %v7079_v37, 16  ;;  %v3904_v37 = vsel %vm9922_vm12, %v3894_v1, %v3903_v23  ;;  %v8654_v38 = vsel %vm4274_vm0, %v4282_v8, %v4284_v58  ;;  %vm9927_vm12 = vmmov %vm9915_vm4 }
 0x12b   : > { %6225 = vmatmul.mubr.bf16.gmra.mrb[24].mxu1 %v1874_v19  ;;  %6548 = vmatprep.subr.bf16.mxu0 %v8605_v29  ;;  %v8631_v19 = vsel %vm4274_vm0, %v9921_v3, %v4278_v20  ;;  %v8643_v3 = vsel %vm4274_vm0, %v4280_v4, %v4282_v8  ;;  %v3917_v20 = vrot.slane %v9690_v27, 4  ;;  %v9923_v4 = vshll.u32 %v8617_v50, 16  ;;  %v8668_v27 = vld [vmem:[#allocation2 + $0x98] sm:$0xff] }
 0x12c   : > { %6228 = vmatprep.mubr.bf16.mxu1 %v1883_v31  ;;  %v4286_v31 = vrot.slane %v8457_v62, 5  ;;  %v2178_v9 = vrot.slane %v2176_v35, 4  ;;  %v3926_v57 = vrot.slane %v9924_v5, 4  ;;  %v4288_v35 = vrot.slane %v8468_v49, 5 }
 0x12d   : > { %6477 = vmatmul.mubr.bf16.gmra.mrb[16].mxu0 %v3886_v14  ;;  %v1901_v14 = vsel %vm1740_vm10, %v1891_v60, %v8489_v42  ;;  %v3920_v21 = vrot.slane %v9923_v4, 5  ;;  %v9925_v42 = vshll.u32 %v8625_v61, 16  ;;  %vm9926_vm10 = vmmov %vm9915_vm4  ;;  %v4290_v8 = vrot.slane %v8508_v41, 5 }
 0x12e   : > { %6480 = vmatprep.mubr.bf16.mxu0 %v3895_v7  ;;  %v2175_v7 = vrot.slane %v2173_v17, 3  ;;  %v8663_v60 = vsel %vm4274_vm0, %v4284_v58, %v4286_v31  ;;  %v3913_v1 = vsel %vm9926_vm10, %v3903_v23, %v3912_v45  ;;  %v8671_v5 = vsel %vm4274_vm0, %v4286_v31, %v4288_v35  ;;  %vm9928_vm10 = vmmov %vm9915_vm4 }
 0x12f   : > { %v3929_v17 = vrot.slane %v9925_v42, 5  ;;  %v8674_v42 = vsel %vm4274_vm0, %v4288_v35, %v4290_v8  ;;  %v4292_v58 = vrot.slane %v8519_v16, 5  ;;  %v3921_v23 = vor.u32 %v3920_v21, %v3917_v20  ;;  %v3772_v35 = vld [vmem:[#allocation2 + $0xa0] sm:$0x1f] }
 0x130   : > { %v2179_v4 = vor.u32 %v2178_v9, %v2175_v7  ;;  %v9695_v49 = vshrl.u32 %v8668_v27, 16  ;;  %v4294_v9 = vrot.slane %v8559_v59, 5  ;;  %v2184_v31 = vrot.slane %v7418_v15, 3 }
 0x131   : > { %v8680_v41 = vsel %vm4274_vm0, %v4290_v8, %v4292_v58  ;;  %v3922_v20 = vsel %vm9915_vm4, %v3912_v45, %v3921_v23  ;;  %v4298_v21 = vrot.slane %v8586_v22, 5 }
 0x132   : > { %v2183_v7 = vsel %vm2171_vm14, %v2179_v4, %v8531_v6  ;;  %v3944_v15 = vrot.slane %v9695_v49, 4  ;;  %v3954_v49 = vshll.u32 %v3772_v35, 16 }
 0x133   : > { %6229 = vmatmul.mubr.bf16.gmra.mrb[28].mxu1 %v1892_v30  ;;  %v3930_v30 = vor.u32 %v3929_v17, %v3926_v57  ;;  %v4296_v57 = vrot.slane %v8564_v18, 5 }
 0x134   : > { %6232 = vmatprep.mubr.bf16.mxu1 %v1901_v14  ;;  %v9696_v14 = vshll.u32 %v8668_v27, 16 }
 0x135   : > { %6481 = vmatmul.mubr.bf16.gmra.mrb[20].mxu0 %v3904_v37  ;;  %v2185_v37 = vrot.slane %v7421_v25, 4  ;;  %v3931_v17 = vsel %vm9927_vm12, %v3921_v23, %v3930_v30  ;;  %v8700_v8 = vsel %vm4274_vm0, %v4294_v9, %v4296_v57  ;;  %v8705_v45 = vsel %vm4274_vm0, %v4296_v57, %v4298_v21  ;;  %vm9929_vm12 = vmmov %vm9915_vm4 }
 0x136   : > { %6484 = vmatprep.mubr.bf16.mxu0 %v3913_v1  ;;  %v8688_v1 = vsel %vm4274_vm0, %v4292_v58, %v4294_v9  ;;  %v3947_v25 = vrot.slane %v9696_v14, 5  ;;  %v4302_v58 = vrot.slane %v8617_v50, 5  ;;  %v3951_v23 = vshrl.u32 %v3772_v35, 16 }
 0x137   : > { %v8702_v4 = vor.u32 %v2185_v37, %v2184_v31  ;;  %v4304_v31 = vrot.slane %v8625_v61, 5  ;;  %v2192_v57 = vrot.slane %v7903_v28, 3  ;;  %v3956_v28 = vrot.slane %v3954_v49, 5 }
 0x138   : > { %v3948_v22 = vor.u32 %v3947_v25, %v3944_v15  ;;  %v2197_v15 = vrot.slane %v7957_v51, 4  ;;  %v3940_v25 = vsel %vm9928_vm10, %v3930_v30, %v8387_v2  ;;  %v4308_v50 = vrot.slane %v8668_v27, 5  ;;  %v8743_v30 = vld [vmem:[#allocation2 + $0x10] sm:$0xe0] }
 0x139   : > { %v2187_v37 = vsel %vm2171_vm14, %v8531_v6, %v8702_v4  ;;  %v8734_v6 = vsel %vm4274_vm0, %v4302_v58, %v4304_v31  ;;  %vm4608_vm10 = vsmask.f32 2304 }
 0x13b   : > { %6233 = vmatmul.mubr.bf16.gmra.mrb[32].mxu1 %v8517_v40  ;;  %v4300_v40 = vrot.slane %v8596_v11, 5  ;;  %v4310_v11 = vrot.slane %v3772_v35, 5  ;;  %v4275_v35 = vrot.slane %v8743_v30, 5 }
 0x13c   : > { %6252 = vmatprep.mubr.bf16.mxu1 %v2183_v7  ;;  %v2191_v7 = vsel %vm2171_vm14, %v8702_v4, %v8566_v32 }
 0x13d   : > { %6485 = vmatmul.mubr.bf16.gmra.mrb[24].mxu0 %v3922_v20  ;;  %v8710_v14 = vsel %vm4274_vm0, %v4298_v21, %v4300_v40  ;;  %v8713_v9 = vsel %vm4274_vm0, %v4300_v40, %v4302_v58  ;;  %v2193_v20 = vrot.slane %v7916_v13, 4  ;;  %v7056_v21 = vld [vmem:[%s9509_s1 + $0xc8] sm:$0xff]   ;;  %v3953_v40 = vrot.slane %v3951_v23, 4  ;;  %v7058_v23 = vld [vmem:[%s9509_s1 + $0xd0] sm:$0xff]  }
 0x13e   : > { %6488 = vmatprep.mubr.bf16.mxu0 %v3931_v17  ;;  %v2196_v17 = vrot.slane %v7954_v47, 3  ;;  %v4306_v13 = vrot.slane %v8304_v39, 5  ;;  %v3949_v47 = vsel %vm9915_vm4, %v8387_v2, %v3948_v22  ;;  %v8754_v2 = vsel %vm4274_vm0, %v4308_v50, %v4310_v11  ;;  %v7081_v39 = vld [vmem:[%s9509_s1 + $0x108] sm:$0xff]  }
 0x13f   : > { %v8741_v51 = vor.u32 %v2193_v20, %v2192_v57  ;;  %v2201_v57 = vrot.slane %v8029_v0, 4  ;;  %v2204_v11 = vrot.slane %v8058_v63, 3  ;;  %v7062_v63 = vld [vmem:[%s9509_s1 + $0xe0] sm:$0xff]  }
 0x140   : > { %v8748_v49 = vsel %vm4274_vm0, %v4306_v13, %v4308_v50  ;;  %v2198_v58 = vor.u32 %v2197_v15, %v2196_v17  ;;  %v2205_v50 = vrot.slane %v8064_v34, 4  ;;  %v7060_v17 = vld [vmem:[%s9509_s1 + $0xd8] sm:$0xff]  }
 0x142   : > { %v8764_v20 = vsel %vm2171_vm14, %v8741_v51, %v2198_v58  ;;  %v2206_v15 = vor.u32 %v2205_v50, %v2204_v11  ;;  %v9933_v50 = vld [vmem:[#allocation41_spill] sm:$0xff] }
 0x143   : > { %6253 = vmatmul.mubr.bf16.vlgmr.msra.gmra.mrb[0].mxu1 %v2187_v37  ;;  %v2195_v37 = vsel %vm2171_vm14, %v8566_v32, %v8741_v51 }
 0x144   : > { %6289 = vmatpush3.bf16.msra.mxu1 %v8527_v53  ;;  %6256 = vmatprep.mubr.bf16.mxu1 %v2191_v7  ;;  %v3957_v53 = vor.u32 %v3956_v28, %v3953_v40  ;;  %v2200_v7 = vrot.slane %v8026_v33, 3  ;;  %v9930_v33 = vrot.slane %v8378_v52, 5 }
 0x145   : > { %6290 = vmatprep.subr.bf16.mxu1 %v7056_v21  ;;  %6489 = vmatmul.mubr.bf16.gmra.mrb[28].mxu0 %v3940_v25  ;;  %v9931_v25 = vld [vmem:[#allocation33_spill] sm:$0xff] }
 0x146   : > { %6492 = vmatprep.mubr.bf16.mxu0 %v3949_v47  ;;  %v3958_v32 = vsel %vm9929_vm12, %v3948_v22, %v3957_v53  ;;  %v4277_v0 = vsel %vm4274_vm0, %v4275_v35, %v9930_v33  ;;  %v2208_v22 = vrot.slane %v8117_v36, 3  ;;  %v2209_v40 = vrot.slane %v9931_v25, 4  ;;  %v7064_v53 = vld [vmem:[%s9509_s1 + $0xe8] sm:$0xff]  }
 0x147   : > { %v2212_v47 = vrot.slane %v8143_v56, 3  ;;  %v7065_v36 = vld [vmem:[%s9509_s1 + $0x208] sm:$0xff]   ;;  %v7066_v56 = vld [vmem:[%s9509_s1 + $0xf0] sm:$0xff]   ;;  %v9935_v25 = vshrl.u32 %v8625_v61, 16 }
 0x148   : > { %6291 = vmatpush3.bf16.msra.mxu1 %v7056_v21  ;;  %v2202_v21 = vor.u32 %v2201_v57, %v2200_v7  ;;  %v2216_v7 = vrot.slane %v8232_v44, 3  ;;  %v7069_v44 = vld [vmem:[%s9509_s1 + $0x218] sm:$0xff]  }
 0x149   : > { %6292 = vmatprep.subr.bf16.mxu1 %v7058_v23 }
 0x14a   : > { %v8780_v34 = vsel %vm2171_vm14, %v2198_v58, %v2202_v21  ;;  %v8785_v28 = vsel %vm2171_vm14, %v2202_v21, %v2206_v15  ;;  %v2210_v58 = vor.u32 %v2209_v40, %v2208_v22  ;;  %v7070_v21 = vld [vmem:[%s9509_s1 + $0x220] sm:$0xff]   ;;  %v2225_v22 = vrot.slane %v8294_v54, 4 }
 0x14b   : > { %6257 = vmatmul.mubr.bf16.gmra.mrb[4].mxu1 %v2195_v37 }
 0x14c   : > { %6260 = vmatprep.mubr.bf16.mxu1 %v8764_v20  ;;  %6293 = vmatpush3.bf16.msra.mxu1 %v7058_v23  ;;  %v2213_v23 = vrot.slane %v8148_v10, 4  ;;  %v7067_v10 = vld [vmem:[%s9509_s1 + $0x210] sm:$0xff]   ;;  %v8807_v37 = vsel %vm2171_vm14, %v2206_v15, %v2210_v58 }
 0x14d   : > { %6493 = vmatmul.mubr.bf16.gmra.mrb[32].mxu0 %v3958_v32  ;;  %6294 = vmatprep.subr.bf16.mxu1 %v7060_v17  ;;  %v7068_v32 = vld [vmem:[%s9509_s1 + $0xf8] sm:$0xff]  }
 0x14e   : > { %6512 = vmatprep.mubr.bf16.mxu0 %v4277_v0  ;;  %v2214_v35 = vor.u32 %v2213_v23, %v2212_v47  ;;  %v9937_v23 = vld [vmem:[#allocation46_spill] sm:$0xff] }
 0x150   : > { %6295 = vmatpush3.bf16.msra.mxu1 %v7060_v17  ;;  %v8812_v11 = vsel %vm2171_vm14, %v2210_v58, %v2214_v35  ;;  %v9934_v17 = vld [vmem:[#allocation42_spill] sm:$0xff]  ;;  %v7071_v58 = vld [vmem:[%s9509_s1 + $0x228] sm:$0xff]  }
 0x151   : > { %6296 = vmatprep.subr.bf16.mxu1 %v7062_v63 }
 0x153   : > { %6261 = vmatmul.mubr.bf16.gmra.mrb[8].mxu1 %v8780_v34 }
 0x154   : > { %6264 = vmatprep.mubr.bf16.mxu1 %v8785_v28  ;;  %6297 = vmatpush3.bf16.msra.mxu1 %v7062_v63  ;;  %v2224_v63 = vrot.slane %v8291_v46, 3  ;;  %v9938_v46 = vshll.u32 %v8625_v61, 16 }
 0x155   : > { %6513 = vmatmul.mubr.bf16.vlgmr.msra.gmra.mrb[0].mxu0 %v8631_v19  ;;  %6298 = vmatprep.subr.bf16.mxu1 %v7064_v53  ;;  %v9932_v19 = vld [vmem:[#allocation38_spill] sm:$0xff] }
 0x156   : > { %6516 = vmatprep.mubr.bf16.mxu0 %v8640_v48  ;;  %6549 = vmatpush3.bf16.msra.mxu0 %v8605_v29  ;;  %v2217_v57 = vrot.slane %v9932_v19, 4  ;;  %v2220_v48 = vrot.slane %v9933_v50, 3  ;;  %v2221_v29 = vrot.slane %v9934_v17, 4  ;;  %v4674_v54 = vrot.slane %v9938_v46, 6 }
 0x157   : > { %6550 = vmatprep.subr.bf16.mxu0 %v7065_v36  ;;  %v2226_v50 = vor.u32 %v2225_v22, %v2224_v63  ;;  %v7072_v63 = vld [vmem:[%s9509_s1 + $0x230] sm:$0xff]  }
 0x158   : > { %6299 = vmatpush3.bf16.msra.mxu1 %v7064_v53  ;;  %v2218_v33 = vor.u32 %v2217_v57, %v2216_v7  ;;  %v2222_v0 = vor.u32 %v2221_v29, %v2220_v48  ;;  %v2229_v53 = vrot.slane %v9937_v23, 4  ;;  %v9940_v7 = vld [vmem:[#allocation53_spill] sm:$0xff]  ;;  %v4591_v57 = vld [vmem:[#allocation2 + $0xa0] sm:$0x3f]  ;;  %v2232_v23 = vrot.slane %v8315_v43, 3 }
 0x159   : > { %6300 = vmatprep.subr.bf16.mxu1 %v7066_v56  ;;  %v4678_v19 = vrot.slane %v9940_v7, 6  ;;  %v4686_v48 = vshrl.u32 %v4591_v57, 16  ;;  %v4689_v17 = vshll.u32 %v4591_v57, 16  ;;  %v2236_v43 = vrot.slane %v8322_v24, 3 }
 0x15a   : > { %6551 = vmatpush3.bf16.msra.mxu0 %v7065_v36  ;;  %v8830_v15 = vsel %vm2171_vm14, %v2214_v35, %v2218_v33  ;;  %v8837_v40 = vsel %vm2171_vm14, %v2218_v33, %v2222_v0  ;;  %v8844_v36 = vld [vmem:[%s9509_s1 + $0x100] sm:$0xff]   ;;  %v9942_v33 = vshll.u32 %v8668_v27, 16 }
 0x15b   : > { %6265 = vmatmul.mubr.bf16.gmra.mrb[12].mxu1 %v8807_v37  ;;  %6552 = vmatprep.subr.bf16.mxu0 %v7067_v10 }
 0x15c   : > { %6268 = vmatprep.mubr.bf16.mxu1 %v8812_v11  ;;  %6301 = vmatpush3.bf16.msra.mxu1 %v7066_v56  ;;  %v9939_v56 = vld [vmem:[#allocation52_spill] sm:$0xff] }
 0x15d   : > { %6517 = vmatmul.mubr.bf16.gmra.mrb[4].mxu0 %v8643_v3  ;;  %6302 = vmatprep.subr.bf16.mxu1 %v7068_v32  ;;  %v4673_v3 = vrot.slane %v9935_v25, 5  ;;  %v4682_v25 = vrot.slane %v9942_v33, 6  ;;  %v9947_v33 = vld [vmem:[#allocation51_spill] sm:$0xff] }
 0x15e   : > { %6520 = vmatprep.mubr.bf16.mxu0 %v8654_v38  ;;  %6553 = vmatpush3.bf16.msra.mxu0 %v7067_v10  ;;  %v9936_v38 = vld [vmem:[#allocation45_spill] sm:$0xff]  ;;  %v4677_v10 = vrot.slane %v9939_v56, 5 }
 0x15f   : > { %6554 = vmatprep.subr.bf16.mxu0 %v7069_v44  ;;  %v2228_v47 = vrot.slane %v9936_v38, 3  ;;  %v8853_v35 = vor.u32 %v4674_v54, %v4673_v3  ;;  %v4688_v3 = vrot.slane %v4686_v48, 5  ;;  %v4691_v38 = vrot.slane %v4689_v17, 6 }
 0x160   : > { %6303 = vmatpush3.bf16.msra.mxu1 %v7068_v32  ;;  %v9941_v32 = vshrl.u32 %v8668_v27, 16  ;;  %v8868_v22 = vor.u32 %v4678_v19, %v4677_v10  ;;  %v2233_v27 = vrot.slane %v8318_v26, 4  ;;  %v7073_v26 = vld [vmem:[%s9509_s1 + $0x238] sm:$0xff]   ;;  %v9944_v19 = vld [vmem:[#allocation48_spill] sm:$0xff] }
 0x161   : > { %6600 = vmatprep.subr.bf16.mxu1 %v8844_v36  ;;  %v2230_v29 = vor.u32 %v2229_v53, %v2228_v47  ;;  %v8871_v47 = vsel %vm2171_vm14, %v2222_v0, %v2226_v50  ;;  %v9943_v53 = vld [vmem:[#allocation47_spill] sm:$0xff]  ;;  %v2240_v57 = vrot.slane %v9944_v19, 3 }
 0x162   : > { %6555 = vmatpush3.bf16.msra.mxu0 %v7069_v44  ;;  %v4681_v44 = vrot.slane %v9941_v32, 5  ;;  %v2237_v46 = vrot.slane %v9943_v53, 4  ;;  %v2234_v24 = vor.u32 %v2233_v27, %v2232_v23  ;;  %v9946_v32 = vld [vmem:[#allocation50_spill] sm:$0xff] }
 0x163   : > { %6269 = vmatmul.mubr.bf16.gmra.mrb[16].mxu1 %v8830_v15  ;;  %6556 = vmatprep.subr.bf16.mxu0 %v7070_v21 }
 0x164   : > { %6272 = vmatprep.mubr.bf16.mxu1 %v8837_v40  ;;  %v2238_v0 = vor.u32 %v2237_v46, %v2236_v43 }
 0x165   : > { %6521 = vmatmul.mubr.bf16.gmra.mrb[8].mxu0 %v8663_v60  ;;  %v4683_v60 = vor.u32 %v4682_v25, %v4681_v44  ;;  %v2244_v44 = vrot.slane %v9946_v32, 3  ;;  %v2245_v25 = vrot.slane %v9947_v33, 4 }
 0x166   : > { %6524 = vmatprep.mubr.bf16.mxu0 %v8671_v5  ;;  %6557 = vmatpush3.bf16.msra.mxu0 %v7070_v21  ;;  %v4692_v5 = vor.u32 %v4691_v38, %v4688_v3  ;;  %v8875_v21 = vsel %vm2171_vm14, %v2226_v50, %v2230_v29  ;;  %v9945_v50 = vld [vmem:[#allocation49_spill] sm:$0xff]  ;;  %v8899_v17 = vsel %vm2171_vm14, %v2234_v24, %v2238_v0  ;;  %v2154_v3 = vld [vmem:[#allocation2 + $0x90] sm:$0xf] }
 0x167   : > { %6558 = vmatprep.subr.bf16.mxu0 %v7071_v58  ;;  %v8881_v54 = vsel %vm4608_vm10, %v8868_v22, %v4683_v60  ;;  %v2241_v48 = vrot.slane %v9945_v50, 4  ;;  %v2252_v38 = vshll.u32 %v2154_v3, 16  ;;  %v8905_v23 = vor.u32 %v2245_v25, %v2244_v44 }
 0x168   : > { %v8884_v10 = vsel %vm4608_vm10, %v4683_v60, %v4692_v5 }
 0x169   : > { %v2254_v43 = vrot.slane %v2252_v38, 4 }
 0x16a   : > { %6559 = vmatpush3.bf16.msra.mxu0 %v7071_v58  ;;  %v8894_v58 = vsel %vm2171_vm14, %v2230_v29, %v2234_v24  ;;  %v2249_v29 = vshrl.u32 %v2154_v3, 16  ;;  %v4307_v3 = vsel %vm4274_vm0, %v4304_v31, %v4306_v13  ;;  %v7082_v31 = vld [vmem:[%s9509_s1 + $0x110] sm:$0xff]   ;;  %vm9988_vm0 = vcmask 1043456  }
 0x16b   : > { %6273 = vmatmul.mubr.bf16.gmra.mrb[20].mxu1 %v8871_v47  ;;  %6560 = vmatprep.subr.bf16.mxu0 %v7072_v63  ;;  %vm9989_vm4 = vmmov %vm9988_vm0 }
 0x16c   : > { %6276 = vmatprep.mubr.bf16.mxu1 %v8875_v21  ;;  %v2251_v5 = vrot.slane %v2249_v29, 3  ;;  %vm9991_vm12 = vmmov %vm9988_vm0 }
 0x16d   : > { %6525 = vmatmul.mubr.bf16.gmra.mrb[12].mxu0 %v8674_v42  ;;  %v2536_v42 = vld [vmem:[#allocation2 + $0x8] sm:$0xf8] }
 0x16e   : > { %6528 = vmatprep.mubr.bf16.mxu0 %v8680_v41  ;;  %6561 = vmatpush3.bf16.msra.mxu0 %v7072_v63  ;;  %v2242_v41 = vor.u32 %v2241_v48, %v2240_v57  ;;  %v2572_v63 = vshrl.u32 %v2536_v42, 16  ;;  %v2575_v60 = vshll.u32 %v2536_v42, 16 }
 0x16f   : > { %6562 = vmatprep.subr.bf16.mxu0 %v7073_v26 }
 0x170   : > { %v8910_v27 = vsel %vm2171_vm14, %v2238_v0, %v2242_v41  ;;  %v8914_v53 = vsel %vm2171_vm14, %v2242_v41, %v8905_v23  ;;  %v2574_v46 = vrot.slane %v2572_v63, 3  ;;  %v9948_v0 = vld [vmem:[#allocation10_spill] sm:$0xff] }
 0x171   : > { %v9949_v19 = vshrl.u32 %v9948_v0, 16  ;;  %v9950_v50 = vshll.u32 %v9948_v0, 16 }
 0x172   : > { %6563 = vmatpush3.bf16.msra.mxu0 %v7073_v26  ;;  %v2577_v26 = vrot.slane %v2575_v60, 4 }
 0x173   : > { %6277 = vmatmul.mubr.bf16.gmra.mrb[24].mxu1 %v8894_v58  ;;  %v2591_v57 = vrot.slane %v9949_v19, 3  ;;  %v2594_v48 = vrot.slane %v9950_v50, 4  ;;  %v9960_v19 = vld [vmem:[#allocation55_spill] sm:$0xff] }
 0x174   : > { %6280 = vmatprep.mubr.bf16.mxu1 %v8899_v17  ;;  %v2578_v24 = vor.u32 %v2577_v26, %v2574_v46  ;;  %v7083_v46 = vld [vmem:[%s9509_s1 + $0x118] sm:$0xff]  }
 0x175   : > { %6529 = vmatmul.mubr.bf16.gmra.mrb[16].mxu0 %v8688_v1  ;;  %v2255_v1 = vor.u32 %v2254_v43, %v2251_v5  ;;  %v2595_v44 = vor.u32 %v2594_v48, %v2591_v57  ;;  %v9957_v5 = vshll.u32 %v8406_v12, 16  ;;  %v9961_v57 = vshrl.u32 %v9960_v19, 16 }
 0x176   : > { %6532 = vmatprep.mubr.bf16.mxu0 %v8700_v8  ;;  %v2587_v32 = vsel %vm2171_vm14, %v2578_v24, %v8702_v4  ;;  %v9962_v48 = vshll.u32 %v9960_v19, 16  ;;  %v9977_v19 = vld [vmem:[#allocation58_spill] sm:$0xff] }
 0x177   : > { %v2256_v8 = vsel %vm2171_vm14, %v8905_v23, %v2255_v1  ;;  %v2596_v33 = vsel %vm2171_vm14, %v8702_v4, %v2595_v44  ;;  %v2605_v25 = vsel %vm2171_vm14, %v2595_v44, %v8741_v51  ;;  %v4626_v43 = vrot.slane %v9957_v5, 6  ;;  %v7084_v1 = vld [vmem:[%s9509_s1 + $0x120] sm:$0xff]   ;;  %v7085_v44 = vld [vmem:[%s9509_s1 + $0x128] sm:$0xff]  }
 0x178   : > { %v4633_v50 = vrot.slane %v9961_v57, 5  ;;  %v9978_v57 = vshrl.u32 %v9977_v19, 16 }
 0x17b   : > { %6281 = vmatmul.mubr.bf16.gmra.mrb[28].mxu1 %v8910_v27 }
 0x17c   : > { %6284 = vmatprep.mubr.bf16.mxu1 %v8914_v53 }
 0x17d   : > { %6533 = vmatmul.mubr.bf16.gmra.mrb[20].mxu0 %v8705_v45  ;;  %v4613_v45 = vshll.u32 %v8743_v30, 16 }
 0x17e   : > { %6536 = vmatprep.mubr.bf16.mxu0 %v8710_v14  ;;  %v4610_v14 = vshrl.u32 %v8743_v30, 16  ;;  %v9952_v30 = vshll.u32 %v8378_v52, 16 }
 0x17f   : > { %v4615_v42 = vrot.slane %v4613_v45, 6 }
 0x180   : > { %v4618_v29 = vrot.slane %v9952_v30, 6 }
 0x183   : > { %6285 = vmatmul.mubr.bf16.gmra.mrb[32].mxu1 %v2256_v8 }
 0x184   : > { %6304 = vmatprep.mubr.bf16.mxu1 %v2587_v32  ;;  %v4634_v32 = vrot.slane %v9962_v48, 6 }
 0x185   : > { %6537 = vmatmul.mubr.bf16.gmra.mrb[24].mxu0 %v8713_v9  ;;  %v4612_v9 = vrot.slane %v4610_v14, 5  ;;  %v7086_v14 = vld [vmem:[%s9509_s1 + $0x130] sm:$0xff]  }
 0x186   : > { %6540 = vmatprep.mubr.bf16.mxu0 %v8734_v6  ;;  %v9951_v6 = vshrl.u32 %v8378_v52, 16  ;;  %v9953_v52 = vld [vmem:[#allocation54_spill] sm:$0xff] }
 0x187   : > { %v4616_v61 = vor.u32 %v4615_v42, %v4612_v9  ;;  %v9954_v13 = vshrl.u32 %v9953_v52, 16  ;;  %v9965_v42 = vld [vmem:[#allocation56_spill] sm:$0xff] }
 0x188   : > { %v4617_v41 = vrot.slane %v9951_v6, 5  ;;  %v9966_v6 = vshrl.u32 %v9965_v42, 16  ;;  %v9967_v30 = vshll.u32 %v9965_v42, 16  ;;  %v9983_v42 = vld [vmem:[#allocation60_spill] sm:$0xff] }
 0x189   : > { %v4621_v51 = vrot.slane %v9954_v13, 5 }
 0x18a   : > { %v4619_v4 = vor.u32 %v4618_v29, %v4617_v41  ;;  %v4641_v41 = vrot.slane %v9966_v6, 5  ;;  %v4642_v29 = vrot.slane %v9967_v30, 6  ;;  %v9984_v6 = vshrl.u32 %v9983_v42, 16 }
 0x18b   : > { %6305 = vmatmul.mubr.bf16.vlgmr.msra.gmra.mrb[0].mxu1 %v2596_v33 }
 0x18c   : > { %6608 = vmatpush3.bf16.msra.mxu1 %v8844_v36  ;;  %6308 = vmatprep.mubr.bf16.mxu1 %v2605_v25  ;;  %v9955_v36 = vshll.u32 %v9953_v52, 16  ;;  %v4620_v63 = vsel %vm4608_vm10, %v4616_v61, %v4619_v4  ;;  %v9964_v25 = vshll.u32 %v8457_v62, 16 }
 0x18d   : > { %6601 = vmatprep.subr.bf16.mxu1 %v7081_v39  ;;  %6541 = vmatmul.mubr.bf16.gmra.mrb[28].mxu0 %v4307_v3 }
 0x18e   : > { %6544 = vmatprep.mubr.bf16.mxu0 %v8748_v49  ;;  %v4622_v38 = vrot.slane %v9955_v36, 6  ;;  %v9956_v49 = vshrl.u32 %v8406_v12, 16  ;;  %v4638_v3 = vrot.slane %v9964_v25, 6  ;;  %v9971_v36 = vshrl.u32 %v8519_v16, 16 }
 0x190   : > { %6609 = vmatpush3.bf16.msra.mxu1 %v7081_v39  ;;  %v4625_v60 = vrot.slane %v9956_v49, 5  ;;  %v7087_v39 = vld [vmem:[%s9509_s1 + $0x138] sm:$0xff]  }
 0x191   : > { %6602 = vmatprep.subr.bf16.mxu1 %v7082_v31 }
 0x192   : > { %v4627_v26 = vor.u32 %v4626_v43, %v4625_v60 }
 0x193   : > { %6309 = vmatmul.mubr.bf16.gmra.mrb[4].mxu1 %v8764_v20  ;;  %v4623_v20 = vor.u32 %v4622_v38, %v4621_v51  ;;  %v4649_v38 = vrot.slane %v9971_v36, 5  ;;  %v7090_v36 = vld [vmem:[#allocation2 + $0x60] sm:$0xff] }
 0x194   : > { %6312 = vmatprep.mubr.bf16.mxu1 %v8780_v34  ;;  %6610 = vmatpush3.bf16.msra.mxu1 %v7082_v31  ;;  %v9958_v34 = vshrl.u32 %v8427_v55, 16 }
 0x195   : > { %6545 = vmatmul.mubr.bf16.gmra.mrb[32].mxu0 %v8754_v2  ;;  %6603 = vmatprep.subr.bf16.mxu1 %v7083_v46  ;;  %v4624_v12 = vsel %vm4608_vm10, %v4619_v4, %v4623_v20  ;;  %v9959_v2 = vshll.u32 %v8427_v55, 16  ;;  %v4628_v0 = vsel %vm4608_vm10, %v4623_v20, %v4627_v26  ;;  %v9968_v4 = vld [vmem:[#allocation57_spill] sm:$0xff] }
 0x196   : > { %6564 = vmatprep.mubr.bf16.mxu0 %v4620_v63  ;;  %v4629_v24 = vrot.slane %v9958_v34, 5  ;;  %v9969_v31 = vshrl.u32 %v9968_v4, 16  ;;  %v9970_v13 = vshll.u32 %v9968_v4, 16  ;;  %v9972_v63 = vshll.u32 %v8519_v16, 16  ;;  %v9986_v4 = vld [vmem:[#allocation22_spill] sm:$0xff] }
 0x197   : > { %v4630_v8 = vrot.slane %v9959_v2, 6  ;;  %v9975_v16 = vshrl.u32 %v8564_v18, 16 }
 0x198   : > { %6611 = vmatpush3.bf16.msra.mxu1 %v7083_v46  ;;  %v4645_v52 = vrot.slane %v9969_v31, 5  ;;  %v4646_v51 = vrot.slane %v9970_v13, 6  ;;  %v4650_v49 = vrot.slane %v9972_v63, 6  ;;  %v9973_v46 = vshrl.u32 %v8559_v59, 16 }
 0x199   : > { %6604 = vmatprep.subr.bf16.mxu1 %v7084_v1  ;;  %v4631_v55 = vor.u32 %v4630_v8, %v4629_v24  ;;  %v2726_v8 = vrot.slane %v9939_v56, 3  ;;  %v9987_v31 = vrot.slane %v9986_v4, 4 }
 0x19a   : > { %v4647_v60 = vor.u32 %v4646_v51, %v4645_v52  ;;  %v4651_v5 = vor.u32 %v4650_v49, %v4649_v38  ;;  %v4653_v20 = vrot.slane %v9973_v46, 5  ;;  %v7089_v51 = vld [vmem:[#allocation2 + $0x58] sm:$0xff]  ;;  %v3077_v38 = vrot.slane %v7090_v36, 4  ;;  %v7092_v46 = vld [vmem:[#allocation2 + $0x70] sm:$0xff] }
 0x19b   : > { %6313 = vmatmul.mubr.bf16.gmra.mrb[8].mxu1 %v8785_v28  ;;  %v4635_v28 = vor.u32 %v4634_v32, %v4633_v50  ;;  %v4632_v45 = vsel %vm4608_vm10, %v4627_v26, %v4631_v55  ;;  %v4661_v50 = vrot.slane %v9978_v57, 5  ;;  %v9980_v32 = vld [vmem:[#allocation59_spill] sm:$0xff] }
 0x19c   : > { %6316 = vmatprep.mubr.bf16.mxu1 %v8807_v37  ;;  %6612 = vmatpush3.bf16.msra.mxu1 %v7084_v1  ;;  %v9963_v37 = vshrl.u32 %v8457_v62, 16  ;;  %v4652_v1 = vsel %vm4608_vm10, %v4647_v60, %v4651_v5  ;;  %v9982_v56 = vshll.u32 %v9980_v32, 16 }
 0x19d   : > { %6565 = vmatmul.mubr.bf16.vlgmr.msra.gmra.mrb[0].mxu0 %v4624_v12  ;;  %6605 = vmatprep.subr.bf16.mxu1 %v7085_v44  ;;  %v4636_v9 = vsel %vm4608_vm10, %v4631_v55, %v4635_v28  ;;  %v4657_v12 = vrot.slane %v9975_v16, 5 }
 0x19e   : > { %6568 = vmatprep.mubr.bf16.mxu0 %v4628_v0  ;;  %v4637_v33 = vrot.slane %v9963_v37, 5  ;;  %v9030_v0 = vld [vmem:[#allocation2 + $0x98] sm:$0xf] }
 0x1a0   : > { %6613 = vmatpush3.bf16.msra.mxu1 %v7085_v44  ;;  %v4639_v62 = vor.u32 %v4638_v3, %v4637_v33  ;;  %v9981_v44 = vshrl.u32 %v9980_v32, 16 }
 0x1a1   : > { %6606 = vmatprep.subr.bf16.mxu1 %v7086_v14 }
 0x1a2   : > { %v4640_v61 = vsel %vm4608_vm10, %v4635_v28, %v4639_v62  ;;  %v4665_v55 = vrot.slane %v9981_v44, 5  ;;  %v2733_v28 = vshrl.u32 %v9030_v0, 16 }
 0x1a3   : > { %6317 = vmatmul.mubr.bf16.gmra.mrb[12].mxu1 %v8812_v11  ;;  %v4643_v11 = vor.u32 %v4642_v29, %v4641_v41  ;;  %v4669_v41 = vrot.slane %v9984_v6, 5 }
 0x1a4   : > { %6320 = vmatprep.mubr.bf16.mxu1 %v8830_v15  ;;  %6614 = vmatpush3.bf16.msra.mxu1 %v7086_v14  ;;  %v2736_v14 = vshll.u32 %v9030_v0, 16 }
 0x1a5   : > { %6569 = vmatmul.mubr.bf16.gmra.mrb[4].mxu0 %v4632_v45  ;;  %6607 = vmatprep.subr.bf16.mxu1 %v7087_v39  ;;  %v4644_v15 = vsel %vm4608_vm10, %v4639_v62, %v4643_v11  ;;  %v4648_v43 = vsel %vm4608_vm10, %v4643_v11, %v4647_v60  ;;  %v7088_v62 = vld [vmem:[#allocation2 + $0x50] sm:$0xff]  ;;  %v4680_v60 = vsel %vm4608_vm10, %v8853_v35, %v8868_v22 }
 0x1a6   : > { %6572 = vmatprep.mubr.bf16.mxu0 %v4636_v9  ;;  %v2738_v25 = vrot.slane %v2736_v14, 4  ;;  %v3073_v11 = vrot.slane %v7088_v62, 4 }
 0x1a8   : > { %6615 = vmatpush3.bf16.msra.mxu1 %v7087_v39  ;;  %v3074_v52 = vsel %vm9988_vm0, %v9987_v31, %v3073_v11 }
 0x1ab   : > { %6321 = vmatmul.mubr.bf16.gmra.mrb[16].mxu1 %v8837_v40  ;;  %v9974_v40 = vshll.u32 %v8559_v59, 16  ;;  %v2729_v59 = vrot.slane %v9940_v7, 4  ;;  %v4666_v7 = vrot.slane %v9982_v56, 6 }
 0x1ac   : > { %6324 = vmatprep.mubr.bf16.mxu1 %v8871_v47  ;;  %v9976_v47 = vshll.u32 %v8564_v18, 16  ;;  %v9979_v18 = vshll.u32 %v9977_v19, 16 }
 0x1ad   : > { %6573 = vmatmul.mubr.bf16.gmra.mrb[8].mxu0 %v4640_v61  ;;  %v4654_v26 = vrot.slane %v9974_v40, 6  ;;  %v2730_v45 = vor.u32 %v2729_v59, %v2726_v8  ;;  %v4667_v33 = vor.u32 %v4666_v7, %v4665_v55 }
 0x1ae   : > { %6576 = vmatprep.mubr.bf16.mxu0 %v4644_v15  ;;  %v4658_v34 = vrot.slane %v9976_v47, 6  ;;  %v4662_v48 = vrot.slane %v9979_v18, 6  ;;  %v3075_v15 = vrot.slane %v7089_v51, 4 }
 0x1af   : > { %v4655_v24 = vor.u32 %v4654_v26, %v4653_v20  ;;  %v2731_v3 = vsel %vm2171_vm14, %v8905_v23, %v2730_v45  ;;  %v3081_v20 = vrot.slane %v7092_v46, 4 }
 0x1b0   : > { %v4659_v2 = vor.u32 %v4658_v34, %v4657_v12  ;;  %v4663_v37 = vor.u32 %v4662_v48, %v4661_v50  ;;  %v3076_v63 = vsel %vm9989_vm4, %v3073_v11, %v3075_v15  ;;  %v7094_v12 = vld [vmem:[#allocation2 + $0x80] sm:$0xff]  ;;  %vm9993_vm4 = vmmov %vm9988_vm0  ;;  %v7095_v34 = vld [vmem:[#allocation2 + $0x88] sm:$0xff] }
 0x1b1   : > { %v3085_v47 = vrot.slane %v7094_v12, 4 }
 0x1b2   : > { %v4664_v9 = vsel %vm4608_vm10, %v4659_v2, %v4663_v37  ;;  %v4668_v29 = vsel %vm4608_vm10, %v4663_v37, %v4667_v33 }
 0x1b3   : > { %6325 = vmatmul.mubr.bf16.gmra.mrb[20].mxu1 %v8875_v21  ;;  %v4656_v21 = vsel %vm4608_vm10, %v4651_v5, %v4655_v24  ;;  %v7091_v5 = vld [vmem:[#allocation2 + $0x68] sm:$0xff] }
 0x1b4   : > { %6328 = vmatprep.mubr.bf16.mxu1 %v8894_v58  ;;  %v4660_v58 = vsel %vm4608_vm10, %v4655_v24, %v4659_v2  ;;  %v7096_v24 = vld [vmem:[#allocation2 + $0x90] sm:$0xff] }
 0x1b5   : > { %6577 = vmatmul.mubr.bf16.gmra.mrb[12].mxu0 %v4648_v43  ;;  %v3079_v43 = vrot.slane %v7091_v5, 4  ;;  %v3089_v2 = vrot.slane %v7096_v24, 4 }
 0x1b6   : > { %6580 = vmatprep.mubr.bf16.mxu0 %v4652_v1  ;;  %v7093_v1 = vld [vmem:[#allocation2 + $0x78] sm:$0xff] }
 0x1b7   : > { %v3080_v40 = vsel %vm9991_vm12, %v3077_v38, %v3079_v43  ;;  %v3082_v26 = vsel %vm9988_vm0, %v3079_v43, %v3081_v20  ;;  %v3083_v16 = vrot.slane %v7093_v1, 4  ;;  %vm9995_vm12 = vmmov %vm9988_vm0 }
 0x1b9   : > { %v3086_v22 = vsel %vm9993_vm4, %v3083_v16, %v3085_v47 }
 0x1bb   : > { %6329 = vmatmul.mubr.bf16.gmra.mrb[24].mxu1 %v8899_v17  ;;  %v2735_v17 = vrot.slane %v2733_v28, 3 }
 0x1bc   : > { %6332 = vmatprep.mubr.bf16.mxu1 %v8910_v27  ;;  %v9985_v27 = vshll.u32 %v9983_v42, 16 }
 0x1bd   : > { %6581 = vmatmul.mubr.bf16.gmra.mrb[16].mxu0 %v4656_v21  ;;  %v2739_v39 = vor.u32 %v2738_v25, %v2735_v17  ;;  %v3091_v21 = vrot.slane %v9030_v0, 4 }
 0x1be   : > { %6584 = vmatprep.mubr.bf16.mxu0 %v4660_v58  ;;  %v4670_v30 = vrot.slane %v9985_v27, 6 }
 0x1bf   : > { %v2740_v23 = vsel %vm2171_vm14, %v2730_v45, %v2739_v39  ;;  %vm9990_vm14 = vmmov %vm9988_vm0 }
 0x1c0   : > { %v4671_v61 = vor.u32 %v4670_v30, %v4669_v41  ;;  %v3078_v49 = vsel %vm9990_vm14, %v3075_v15, %v3077_v38  ;;  %vm9994_vm14 = vmmov %vm9988_vm0 }
 0x1c2   : > { %v4672_v13 = vsel %vm4608_vm10, %v4667_v33, %v4671_v61 }
 0x1c3   : > { %6333 = vmatmul.mubr.bf16.gmra.mrb[28].mxu1 %v8914_v53  ;;  %v4676_v53 = vsel %vm4608_vm10, %v4671_v61, %v8853_v35  ;;  %vm9992_vm10 = vmmov %vm9988_vm0 }
 0x1c4   : > { %6336 = vmatprep.mubr.bf16.mxu1 %v2731_v3  ;;  %v3084_v35 = vsel %vm9992_vm10, %v3081_v20, %v3083_v16 }
 0x1c5   : > { %6585 = vmatmul.mubr.bf16.gmra.mrb[20].mxu0 %v4664_v9 }
 0x1c6   : > { %6588 = vmatprep.mubr.bf16.mxu0 %v4668_v29 }
 0x1cb   : > { %6337 = vmatmul.mubr.bf16.gmra.mrb[32].mxu1 %v2740_v23 }
 0x1cc   : > { %6372 = vmatprep.mubr.bf16.mxu1 %v3074_v52 }
 0x1cd   : > { %6589 = vmatmul.mubr.bf16.gmra.mrb[24].mxu0 %v4672_v13 }
 0x1ce   : > { %6592 = vmatprep.mubr.bf16.mxu0 %v4676_v53 }
 0x1d3   : > { %6373 = vmatmul.mubr.bf16.vlgmr.msra.gmra.mrb[16].mxu1 %v3076_v63 }
 0x1d4   : > { %6376 = vmatprep.mubr.bf16.mxu1 %v3078_v49 }
 0x1d5   : > { %6593 = vmatmul.mubr.bf16.gmra.mrb[28].mxu0 %v4680_v60 }
 0x1d6   : > { %6596 = vmatprep.mubr.bf16.mxu0 %v8881_v54  ;;  %v3087_v54 = vrot.slane %v7095_v34, 4 }
 0x1d8   : > { %v3088_v8 = vsel %vm9994_vm14, %v3085_v47, %v3087_v54  ;;  %v3090_v59 = vsel %vm9995_vm12, %v3087_v54, %v3089_v2  ;;  %v10003_v47 = vld [vmem:[#allocation8_spill] sm:$0xff] }
 0x1d9   : > { %vm10004_vm10 = vnez %v10003_v47 }
 0x1db   : > { %6377 = vmatmul.mubr.bf16.gmra.mrb[20].mxu1 %v3080_v40 }
 0x1dc   : > { %6380 = vmatprep.mubr.bf16.mxu1 %v3082_v26 }
 0x1dd   : > { %6597 = vmatmul.mubr.bf16.gmra.mrb[32].mxu0 %v8884_v10  ;;  %v3092_v10 = vsel %vm9988_vm0, %v3089_v2, %v3091_v21 }
 0x1e3   : > { %6381 = vmatmul.mubr.bf16.gmra.mrb[24].mxu1 %v3084_v35 }
 0x1e4   : > { %6384 = vmatprep.mubr.bf16.mxu1 %v3086_v22 }
 0x1eb   : > { %6385 = vmatmul.mubr.bf16.gmra.mrb[28].mxu1 %v3088_v8 }
 0x1ec   : > { %6388 = vmatprep.mubr.bf16.mxu1 %v3090_v59 }
 0x1f3   : > { %6389 = vmatmul.mubr.bf16.gmra.mrb[32].mxu1 %v3092_v10 }
 0x25e   : > { %v6306_v19 = vpop.f32.mrb[0].mxu1 }
 0x25f   : > { %v2841_v57 = vpop.f32.mrb[1].mxu1 }
 0x260   : > { %v6307_v50 = vpop.f32.mrb[2].mxu1 }
 0x261   : > { %v2844_v18 = vpop.f32.mrb[3].mxu1 }
 0x266   : > { %v6310_v48 = vpop.f32.mrb[4].mxu1 }
 0x267   : > { %v2857_v58 = vpop.f32.mrb[5].mxu1 }
 0x268   : > { %v6311_v32 = vpop.f32.mrb[6].mxu1 }
 0x269   : > { %v2860_v44 = vpop.f32.mrb[7].mxu1 }
 0x26e   : > { %v6314_v55 = vpop.f32.mrb[8].mxu1 }
 0x26f   : > { %v2873_v56 = vpop.f32.mrb[9].mxu1 }
 0x270   : > { %v6315_v7 = vpop.f32.mrb[10].mxu1  ;;  %v6566_v28 = vpop.f32.mrb[0].mxu0 }
 0x271   : > { %v2876_v14 = vpop.f32.mrb[11].mxu1  ;;  %v9077_v45 = vadd.f32 %v6566_v28, %v6306_v19  ;;  %v4794_v0 = vpop.f32.mrb[1].mxu0 }
 0x272   : > { %v9079_v37 = vadd.f32 %v4794_v0, %v2841_v57  ;;  %v6567_v33 = vpop.f32.mrb[2].mxu0 }
 0x273   : > { %v9081_v17 = vadd.f32 %v6567_v33, %v6307_v50  ;;  %v4797_v25 = vpop.f32.mrb[3].mxu0  ;;  %v4975_v42 = vsel %vm7349_vm15, %v9077_v45, 0.0  ;;  %v10005_v50 = vld [vmem:[#allocation14_spill] sm:$0xff] }
 0x274   : > { %v9083_v3 = vadd.f32 %v4797_v25, %v2844_v18  ;;  %v4973_v29 = vsel %vm7336_vm7, %v9079_v37, 0.0  ;;  %vm10006_vm4 = vnez %v10005_v50 }
 0x275   : > { %v4976_v41 = vsel %vm7364_vm1, %v9081_v17, 0.0 }
 0x276   : > { %v6318_v27 = vpop.f32.mrb[12].mxu1  ;;  %v5782_v39 = vpack.c.bf16 %v4976_v41, %v4975_v42  ;;  %v4974_v11 = vsel %vm7340_vm8, %v9083_v3, 0.0 }
 0x277   : > { %v2889_v61 = vpop.f32.mrb[13].mxu1  ;;  %v5009_v23 = vadd.f32 %v4974_v11, %v4973_v29  ;;  %v5777_v4 = vpack.c.bf16 %v4974_v11, %v4973_v29 }
 0x278   : > { %v6319_v31 = vpop.f32.mrb[14].mxu1  ;;  %5881 = vst [vmem:[%s9093_s8 + $0x8] sm:$0xff] %v5782_v39   ;;  %v6570_v52 = vpop.f32.mrb[4].mxu0 }
 0x279   : > { %v2892_v13 = vpop.f32.mrb[15].mxu1  ;;  %v5010_v53 = vadd.f32 %v5009_v23, %v4975_v42  ;;  %5778 = vst [vmem:[%s9093_s8] sm:$0xff] %v5777_v4   ;;  %v9106_v51 = vadd.f32 %v6570_v52, %v6310_v48  ;;  %v4810_v15 = vpop.f32.mrb[5].mxu0  ;;  %v10007_v48 = vld [vmem:[#allocation15_spill] sm:$0xff]  ;;  %v10015_v4 = vld [vmem:[#allocation18_spill] sm:$0xff] }
 0x27a   : > { %v9108_v36 = vadd.f32 %v4810_v15, %v2857_v58  ;;  %v6571_v38 = vpop.f32.mrb[6].mxu0  ;;  %vm10008_vm14 = vnez %v10007_v48  ;;  %v10019_v15 = vld [vmem:[#allocation16_spill] sm:$0xff] }
 0x27b   : > { %v5011_v63 = vadd.f32 %v5010_v53, %v4976_v41  ;;  %v9110_v49 = vadd.f32 %v6571_v38, %v6311_v32  ;;  %v4813_v60 = vpop.f32.mrb[7].mxu0  ;;  %v4979_v40 = vsel %vm7462_vm6, %v9106_v51, 0.0  ;;  %v10009_v32 = vld [vmem:[#allocation12_spill] sm:$0xff]  ;;  %v10017_v53 = vld [vmem:[#allocation19_spill] sm:$0xff] }
 0x27c   : > { %v4977_v43 = vsel %vm7424_vm11, %v9108_v36, 0.0  ;;  %v9115_v46 = vadd.f32 %v4813_v60, %v2860_v44  ;;  %vm10010_vm12 = vnez %v10009_v32 }
 0x27d   : > { %v5012_v26 = vadd.f32 %v5011_v63, %v4977_v43  ;;  %v4980_v16 = vsel %vm7477_vm9, %v9110_v49, 0.0 }
 0x27e   : > { %v5792_v12 = vpack.c.bf16 %v4980_v16, %v4979_v40  ;;  %v4978_v35 = vsel %vm10004_vm10, %v9115_v46, 0.0 }
 0x27f   : > { %v5787_v22 = vpack.c.bf16 %v4978_v35, %v4977_v43  ;;  %v5013_v54 = vadd.f32 %v5012_v26, %v4978_v35 }
 0x280   : > { %5883 = vst [vmem:[%s9093_s8 + $0x18] sm:$0xff] %v5792_v12   ;;  %v6574_v34 = vpop.f32.mrb[8].mxu0 }
 0x281   : > { %5882 = vst [vmem:[%s9093_s8 + $0x10] sm:$0xff] %v5787_v22   ;;  %v9128_v24 = vadd.f32 %v6574_v34, %v6314_v55  ;;  %v4826_v2 = vpop.f32.mrb[9].mxu0  ;;  %v5014_v57 = vadd.f32 %v5013_v54, %v4979_v40 }
 0x282   : > { %v9130_v8 = vadd.f32 %v4826_v2, %v2873_v56  ;;  %v6575_v59 = vpop.f32.mrb[10].mxu0  ;;  %v10011_v56 = vld [vmem:[#allocation13_spill] sm:$0xff] }
 0x283   : > { %v9132_v21 = vadd.f32 %v6575_v59, %v6315_v7  ;;  %v4829_v10 = vpop.f32.mrb[11].mxu0  ;;  %v4983_v18 = vsel %vm10006_vm4, %v9128_v24, 0.0  ;;  %vm10012_vm0 = vnez %v10011_v56  ;;  %v5015_v0 = vadd.f32 %v5014_v57, %v4980_v16 }
 0x284   : > { %v9134_v19 = vadd.f32 %v4829_v10, %v2876_v14  ;;  %v4981_v44 = vsel %vm10010_vm12, %v9130_v8, 0.0  ;;  %vm10018_vm4 = vnez %v10017_v53 }
 0x285   : > { %v4984_v58 = vsel %vm10008_vm14, %v9132_v21, 0.0  ;;  %v5016_v23 = vadd.f32 %v5015_v0, %v4981_v44  ;;  %vm10016_vm14 = vnez %v10015_v4 }
 0x286   : > { %v5802_v55 = vpack.c.bf16 %v4984_v58, %v4983_v18  ;;  %v4982_v7 = vsel %vm10012_vm0, %v9134_v19, 0.0  ;;  %vm10020_vm0 = vnez %v10019_v15 }
 0x287   : > { %v5797_v28 = vpack.c.bf16 %v4982_v7, %v4981_v44  ;;  %v5017_v43 = vadd.f32 %v5016_v23, %v4982_v7 }
 0x288   : > { %5885 = vst [vmem:[%s9093_s8 + $0x28] sm:$0xff] %v5802_v55   ;;  %v6578_v14 = vpop.f32.mrb[12].mxu0 }
 0x289   : > { %5884 = vst [vmem:[%s9093_s8 + $0x20] sm:$0xff] %v5797_v28   ;;  %v9150_v33 = vadd.f32 %v6578_v14, %v6318_v27  ;;  %v4842_v25 = vpop.f32.mrb[13].mxu0  ;;  %v5018_v12 = vadd.f32 %v5017_v43, %v4983_v18  ;;  %v10025_v43 = vld [vmem:[#allocation23_spill] sm:$0xff] }
 0x28a   : > { %v9152_v42 = vadd.f32 %v4842_v25, %v2889_v61  ;;  %v6579_v41 = vpop.f32.mrb[14].mxu0 }
 0x28b   : > { %10013 = vst [vmem:[#allocation33_spill] sm:$0xff] %v9150_v33  ;;  %v9154_v29 = vadd.f32 %v6579_v41, %v6319_v31  ;;  %v4845_v39 = vpop.f32.mrb[15].mxu0  ;;  %v4987_v52 = vsel %vm10016_vm14, %v9150_v33, 0.0  ;;  %v10021_v31 = vld [vmem:[#allocation17_spill] sm:$0xff]  ;;  %v5019_v22 = vadd.f32 %v5018_v12, %v4984_v58  ;;  %vm10026_vm14 = vnez %v10025_v43 }
 0x28c   : > { %v9156_v11 = vadd.f32 %v4845_v39, %v2892_v13  ;;  %v4985_v61 = vsel %vm10020_vm0, %v9152_v42, 0.0  ;;  %vm10022_vm12 = vnez %v10021_v31 }
 0x28d   : > { %10014 = vst [vmem:[#allocation38_spill] sm:$0xff] %v9154_v29  ;;  %v4988_v27 = vsel %vm10018_vm4, %v9154_v29, 0.0  ;;  %v5020_v59 = vadd.f32 %v5019_v22, %v4985_v61  ;;  %v10027_v22 = vld [vmem:[#allocation24_spill] sm:$0xff] }
 0x28e   : > { %v5812_v38 = vpack.c.bf16 %v4988_v27, %v4987_v52  ;;  %v4986_v63 = vsel %vm10022_vm12, %v9156_v11, 0.0  ;;  %vm10028_vm12 = vnez %v10027_v22 }
 0x28f   : > { %v5807_v13 = vpack.c.bf16 %v4986_v63, %v4985_v61  ;;  %v5021_v57 = vadd.f32 %v5020_v59, %v4986_v63  ;;  %v10023_v63 = vld [vmem:[#allocation20_spill] sm:$0xff] }
 0x290   : > { %5887 = vst [vmem:[%s9093_s8 + $0x38] sm:$0xff] %v5812_v38   ;;  %v6582_v60 = vpop.f32.mrb[16].mxu0  ;;  %vm10024_vm4 = vnez %v10023_v63 }
 0x291   : > { %5886 = vst [vmem:[%s9093_s8 + $0x30] sm:$0xff] %v5807_v13   ;;  %v4858_v40 = vpop.f32.mrb[17].mxu0  ;;  %v5022_v14 = vadd.f32 %v5021_v57, %v4987_v52  ;;  %v10029_v57 = vld [vmem:[#allocation21_spill] sm:$0xff] }
 0x292   : > { %v6583_v26 = vpop.f32.mrb[18].mxu0  ;;  %vm10030_vm0 = vnez %v10029_v57 }
 0x293   : > { %v4861_v16 = vpop.f32.mrb[19].mxu0  ;;  %v5023_v58 = vadd.f32 %v5022_v14, %v4988_v27 }
 0x298   : > { %v6586_v35 = vpop.f32.mrb[20].mxu0 }
 0x299   : > { %v4874_v34 = vpop.f32.mrb[21].mxu0 }
 0x29a   : > { %v6587_v54 = vpop.f32.mrb[22].mxu0 }
 0x29b   : > { %v4877_v2 = vpop.f32.mrb[23].mxu0 }
 0x2a0   : > { %v6590_v10 = vpop.f32.mrb[24].mxu0 }
 0x2a1   : > { %v4890_v44 = vpop.f32.mrb[25].mxu0 }
 0x2a2   : > { %v6591_v55 = vpop.f32.mrb[26].mxu0 }
 0x2a3   : > { %v4893_v28 = vpop.f32.mrb[27].mxu0 }
 0x2a6   : > { %v6374_v0 = vpop.f32.mrb[16].mxu1 }
 0x2a7   : > { %v9172_v25 = vadd.f32 %v6582_v60, %v6374_v0  ;;  %v3257_v7 = vpop.f32.mrb[17].mxu1 }
 0x2a8   : > { %v9174_v41 = vadd.f32 %v4858_v40, %v3257_v7  ;;  %v6375_v39 = vpop.f32.mrb[18].mxu1  ;;  %v9176_v18 = vpop.f32.mrb[28].mxu0 }
 0x2a9   : > { %v9178_v23 = vadd.f32 %v6583_v26, %v6375_v39  ;;  %v3260_v61 = vpop.f32.mrb[19].mxu1  ;;  %v4906_v38 = vpop.f32.mrb[29].mxu0  ;;  %v4991_v40 = vsel %vm10026_vm14, %v9172_v25, 0.0 }
 0x2aa   : > { %v4989_v52 = vsel %vm10024_vm4, %v9174_v41, 0.0  ;;  %v9183_v13 = vadd.f32 %v4861_v16, %v3260_v61  ;;  %v6595_v60 = vpop.f32.mrb[30].mxu0 }
 0x2ab   : > { %v5024_v12 = vadd.f32 %v5023_v58, %v4989_v52  ;;  %v4992_v27 = vsel %vm10028_vm12, %v9178_v23, 0.0  ;;  %v4909_v26 = vpop.f32.mrb[31].mxu0 }
 0x2ac   : > { %v5822_v59 = vpack.c.bf16 %v4992_v27, %v4991_v40  ;;  %v4990_v14 = vsel %vm10030_vm0, %v9183_v13, 0.0 }
 0x2ad   : > { %v5025_v0 = vadd.f32 %v5024_v12, %v4990_v14  ;;  %v5817_v7 = vpack.c.bf16 %v4990_v14, %v4989_v52  ;;  %v10034_v14 = vld [vmem:[#allocation28_spill] sm:$0xff] }
 0x2ae   : > { %5889 = vst [vmem:[%s9093_s8 + $0x48] sm:$0xff] %v5822_v59   ;;  %v6378_v16 = vpop.f32.mrb[20].mxu1  ;;  %v10032_v59 = vld [vmem:[#allocation27_spill] sm:$0xff]  ;;  %vm10035_vm14 = vnez %v10034_v14 }
 0x2af   : > { %v5026_v39 = vadd.f32 %v5025_v0, %v4991_v40  ;;  %5888 = vst [vmem:[%s9093_s8 + $0x40] sm:$0xff] %v5817_v7   ;;  %v9196_v61 = vadd.f32 %v6586_v35, %v6378_v16  ;;  %v3273_v43 = vpop.f32.mrb[21].mxu1  ;;  %vm10033_vm12 = vnez %v10032_v59  ;;  %v10036_v0 = vld [vmem:[#allocation26_spill] sm:$0xff] }
 0x2b0   : > { %v9198_v58 = vadd.f32 %v4874_v34, %v3273_v43  ;;  %v6379_v63 = vpop.f32.mrb[22].mxu1  ;;  %v6598_v22 = vpop.f32.mrb[32].mxu0  ;;  %vm10037_vm0 = vnez %v10036_v0  ;;  %v10038_v0 = vld [vmem:[#allocation29_spill] sm:$0xff] }
 0x2b1   : > { %v5027_v53 = vadd.f32 %v5026_v39, %v4992_v27  ;;  %v9200_v4 = vadd.f32 %v6587_v54, %v6379_v63  ;;  %v3276_v31 = vpop.f32.mrb[23].mxu1  ;;  %v4922_v57 = vpop.f32.mrb[33].mxu0  ;;  %v4995_v34 = vsel %vm10033_vm12, %v9196_v61, 0.0 }
 0x2b2   : > { %v4993_v12 = vsel %vm7923_vm13, %v9198_v58, 0.0  ;;  %v9205_v40 = vadd.f32 %v4877_v2, %v3276_v31  ;;  %v6599_v35 = vpop.f32.mrb[34].mxu0 }
 0x2b3   : > { %v5028_v43 = vadd.f32 %v5027_v53, %v4993_v12  ;;  %v4996_v54 = vsel %vm10035_vm14, %v9200_v4, 0.0  ;;  %v4925_v63 = vpop.f32.mrb[35].mxu0  ;;  %vm10039_vm14 = vnez %v10038_v0 }
 0x2b4   : > { %v5832_v27 = vpack.c.bf16 %v4996_v54, %v4995_v34  ;;  %v4994_v7 = vsel %vm10037_vm0, %v9205_v40, 0.0 }
 0x2b5   : > { %v5029_v16 = vadd.f32 %v5028_v43, %v4994_v7  ;;  %v5827_v39 = vpack.c.bf16 %v4994_v7, %v4993_v12 }
 0x2b6   : > { %5891 = vst [vmem:[%s9093_s8 + $0x58] sm:$0xff] %v5832_v27   ;;  %v6382_v31 = vpop.f32.mrb[24].mxu1 }
 0x2b7   : > { %v5030_v2 = vadd.f32 %v5029_v16, %v4995_v34  ;;  %5890 = vst [vmem:[%s9093_s8 + $0x50] sm:$0xff] %v5827_v39   ;;  %v9218_v52 = vadd.f32 %v6590_v10, %v6382_v31  ;;  %v3289_v53 = vpop.f32.mrb[25].mxu1  ;;  %v10040_v34 = vld [vmem:[#allocation31_spill] sm:$0xff] }
 0x2b8   : > { %v9220_v59 = vadd.f32 %v4890_v44, %v3289_v53  ;;  %v6383_v14 = vpop.f32.mrb[26].mxu1  ;;  %vm10041_vm12 = vnez %v10040_v34  ;;  %v10042_v44 = vld [vmem:[#allocation32_spill] sm:$0xff] }
 0x2b9   : > { %v5031_v29 = vadd.f32 %v5030_v2, %v4996_v54  ;;  %v9222_v15 = vadd.f32 %v6591_v55, %v6383_v14  ;;  %v3292_v33 = vpop.f32.mrb[27].mxu1  ;;  %v4999_v10 = vsel %vm10041_vm12, %v9218_v52, 0.0  ;;  %vm10043_vm0 = vnez %v10042_v44  ;;  %v10044_v55 = vld [vmem:[#allocation30_spill] sm:$0xff] }
 0x2ba   : > { %v4997_v12 = vsel %vm10039_vm14, %v9220_v59, 0.0  ;;  %v9227_v43 = vadd.f32 %v4893_v28, %v3292_v33  ;;  %vm10045_vm13 = vnez %v10044_v55 }
 0x2bb   : > { %v5032_v27 = vadd.f32 %v5031_v29, %v4997_v12  ;;  %v5000_v7 = vsel %vm10043_vm0, %v9222_v15, 0.0 }
 0x2bc   : > { %v5842_v16 = vpack.c.bf16 %v5000_v7, %v4999_v10  ;;  %v4998_v14 = vsel %vm10045_vm13, %v9227_v43, 0.0 }
 0x2bd   : > { %v5033_v54 = vadd.f32 %v5032_v27, %v4998_v14  ;;  %v5837_v39 = vpack.c.bf16 %v4998_v14, %v4997_v12  ;;  %v10046_v27 = vld [vmem:[#allocation34_spill] sm:$0xff] }
 0x2be   : > { %5893 = vst [vmem:[%s9093_s8 + $0x68] sm:$0xff] %v5842_v16   ;;  %v6386_v31 = vpop.f32.mrb[28].mxu1  ;;  %vm10047_vm0 = vnez %v10046_v27 }
 0x2bf   : > { %v5034_v33 = vadd.f32 %v5033_v54, %v4999_v10  ;;  %5892 = vst [vmem:[%s9093_s8 + $0x60] sm:$0xff] %v5837_v39   ;;  %v9241_v28 = vadd.f32 %v9176_v18, %v6386_v31  ;;  %v3305_v29 = vpop.f32.mrb[29].mxu1  ;;  %v10048_v10 = vld [vmem:[#allocation36_spill] sm:$0xff] }
 0x2c0   : > { %v9243_v2 = vadd.f32 %v4906_v38, %v3305_v29  ;;  %v6387_v53 = vpop.f32.mrb[30].mxu1  ;;  %vm10049_vm12 = vnez %v10048_v10  ;;  %v10050_v38 = vld [vmem:[#allocation37_spill] sm:$0xff] }
 0x2c1   : > { %v5035_v44 = vadd.f32 %v5034_v33, %v5000_v7  ;;  %v9245_v34 = vadd.f32 %v6595_v60, %v6387_v53  ;;  %v3308_v55 = vpop.f32.mrb[31].mxu1  ;;  %v5003_v18 = vsel %vm10049_vm12, %v9241_v28, 0.0  ;;  %vm10051_vm13 = vnez %v10050_v38  ;;  %v10052_v60 = vld [vmem:[#allocation35_spill] sm:$0xff] }
 0x2c2   : > { %v5001_v12 = vsel %vm10047_vm0, %v9243_v2, 0.0  ;;  %v9250_v16 = vadd.f32 %v4909_v26, %v3308_v55  ;;  %vm10053_vm14 = vnez %v10052_v60 }
 0x2c3   : > { %v5036_v14 = vadd.f32 %v5035_v44, %v5001_v12  ;;  %v5004_v54 = vsel %vm10051_vm13, %v9245_v34, 0.0 }
 0x2c4   : > { %v5852_v39 = vpack.c.bf16 %v5004_v54, %v5003_v18  ;;  %v5002_v7 = vsel %vm10053_vm14, %v9250_v16, 0.0 }
 0x2c5   : > { %v5037_v31 = vadd.f32 %v5036_v14, %v5002_v7  ;;  %v5847_v33 = vpack.c.bf16 %v5002_v7, %v5001_v12 }
 0x2c6   : > { %5895 = vst [vmem:[%s9093_s8 + $0x78] sm:$0xff] %v5852_v39   ;;  %v6390_v29 = vpop.f32.mrb[32].mxu1 }
 0x2c7   : > { %v5038_v26 = vadd.f32 %v5037_v31, %v5003_v18  ;;  %5894 = vst [vmem:[%s9093_s8 + $0x70] sm:$0xff] %v5847_v33   ;;  %v9263_v55 = vadd.f32 %v6598_v22, %v6390_v29  ;;  %v3321_v53 = vpop.f32.mrb[33].mxu1 }
 0x2c8   : > { %v9265_v44 = vadd.f32 %v4922_v57, %v3321_v53  ;;  %v6391_v38 = vpop.f32.mrb[34].mxu1 }
 0x2c9   : > { %v5039_v10 = vadd.f32 %v5038_v26, %v5004_v54  ;;  %v9267_v27 = vadd.f32 %v6599_v35, %v6391_v38  ;;  %v3324_v0 = vpop.f32.mrb[35].mxu1  ;;  %v5007_v22 = vsel %vm8258_vm3, %v9263_v55, 0.0  ;;  %v10057_v35 = vld [vmem:[#allocation40_spill] sm:$0xff] }
 0x2ca   : > { %v5005_v12 = vsel %vm8239_vm5, %v9265_v44, 0.0  ;;  %v9272_v14 = vadd.f32 %v4925_v63, %v3324_v0  ;;  %vm10058_vm13 = vnez %v10057_v35 }
 0x2cb   : > { %v5040_v39 = vadd.f32 %v5039_v10, %v5005_v12  ;;  %v5008_v7 = vsel %vm8272_vm2, %v9267_v27, 0.0 }
 0x2cc   : > { %v5862_v54 = vpack.c.bf16 %v5008_v7, %v5007_v22  ;;  %v5006_v38 = vsel %vm10058_vm13, %v9272_v14, 0.0 }
 0x2cd   : > { %v5041_v31 = vadd.f32 %v5040_v39, %v5006_v38  ;;  %v5857_v33 = vpack.c.bf16 %v5006_v38, %v5005_v12 }
 0x2ce   : > { %5897 = vst [vmem:[%s9093_s8 + $0x88] sm:$0xff] %v5862_v54  }
 0x2cf   : > { %v5042_v63 = vadd.f32 %v5041_v31, %v5007_v22  ;;  %5896 = vst [vmem:[%s9093_s8 + $0x80] sm:$0xff] %v5857_v33  }
 0x2d1   : > { %v5043_v0 = vadd.f32 %v5042_v63, %v5008_v7 }
 0x2d3   : > { %v5044_v29 = vrot.slane %v5043_v0, 4 }
 0x2d5   : > { %v5045_v26 = vadd.f32 %v5044_v29, %v5043_v0 }
 0x2d7   : > { %v5046_v53 = vrot.slane %v5045_v26, 2 }
 0x2d9   : > { %v5047_v18 = vadd.f32 %v5046_v53, %v5045_v26 }
 0x2db   : > { %v5048_v10 = vrot.slane %v5047_v18, 1 }
 0x2dd   : > { %v5049_v57 = vadd.f32 %v5048_v10, %v5047_v18 }
 0x2df   : > { %5381 = vst [vmem:[%s315_s10] sm:$0x1] %v5049_v57  ;;  %v9289_v60 = vmul.f32 0.00390625, %v5049_v57 }
 0x2e1   : > { %v5068_v12 = vsub.f32 %v9174_v41, %v9289_v60  ;;  %v5069_v22 = vsub.f32 %v9183_v13, %v9289_v60  ;;  %v5070_v39 = vsub.f32 %v9172_v25, %v9289_v60  ;;  %v5071_v7 = vsub.f32 %v9178_v23, %v9289_v60 }
 0x2e2   : > { %v5072_v54 = vsub.f32 %v9198_v58, %v9289_v60  ;;  %v5073_v18 = vsub.f32 %v9205_v40, %v9289_v60  ;;  %v5074_v57 = vsub.f32 %v9196_v61, %v9289_v60  ;;  %v5075_v38 = vsub.f32 %v9200_v4, %v9289_v60 }
 0x2e3   : > { %v5052_v26 = vsub.f32 %v9079_v37, %v9289_v60  ;;  %v5053_v53 = vsub.f32 %v9083_v3, %v9289_v60  ;;  %v5054_v10 = vsub.f32 %v9077_v45, %v9289_v60  ;;  %v5055_v0 = vsub.f32 %v9081_v17, %v9289_v60 }
 0x2e4   : > { %v5056_v37 = vsub.f32 %v9108_v36, %v9289_v60  ;;  %v5057_v45 = vsub.f32 %v9115_v46, %v9289_v60  ;;  %v5059_v9 = vsub.f32 %v9110_v49, %v9289_v60  ;;  %v5060_v6 = vsub.f32 %v9130_v8, %v9289_v60 }
 0x2e5   : > { %v5088_v33 = vsel %vm7336_vm7, %v5052_v26, 0.0  ;;  %v5089_v63 = vsel %vm7340_vm8, %v5053_v53, 0.0  ;;  %v5090_v3 = vsel %vm7349_vm15, %v5054_v10, 0.0  ;;  %v5091_v30 = vsel %vm7364_vm1, %v5055_v0, 0.0 }
 0x2e6   : > { %v5124_v31 = vmul.f32 %v5088_v33, %v5088_v33  ;;  %v5125_v29 = vmul.f32 %v5089_v63, %v5089_v63  ;;  %v5126_v26 = vmul.f32 %v5090_v3, %v5090_v3  ;;  %v5058_v53 = vsub.f32 %v9106_v51, %v9289_v60 }
 0x2e7   : > { %v5092_v17 = vsel %vm7424_vm11, %v5056_v37, 0.0  ;;  %v5127_v33 = vmul.f32 %v5091_v30, %v5091_v30  ;;  %v5093_v36 = vsel %vm10004_vm10, %v5057_v45, 0.0  ;;  %v5061_v5 = vsub.f32 %v9134_v19, %v9289_v60 }
 0x2e8   : > { %v5160_v62 = vadd.f32 %v5125_v29, %v5124_v31  ;;  %v5128_v46 = vmul.f32 %v5092_v17, %v5092_v17  ;;  %v5094_v31 = vsel %vm7462_vm6, %v5058_v53, 0.0  ;;  %v5129_v51 = vmul.f32 %v5093_v36, %v5093_v36 }
 0x2e9   : > { %v5095_v29 = vsel %vm7477_vm9, %v5059_v9, 0.0  ;;  %v5130_v49 = vmul.f32 %v5094_v31, %v5094_v31  ;;  %v5062_v47 = vsub.f32 %v9128_v24, %v9289_v60  ;;  %vm10059_vm7 = vnez %v10009_v32  ;;  %v10064_v9 = vld [vmem:[#allocation16_spill] sm:$0xff] }
 0x2ea   : > { %v5161_v63 = vadd.f32 %v5160_v62, %v5126_v26  ;;  %v5096_v3 = vsel %vm10059_vm7, %v5060_v6, 0.0  ;;  %v5131_v8 = vmul.f32 %v5095_v29, %v5095_v29  ;;  %v5063_v20 = vsub.f32 %v9132_v21, %v9289_v60  ;;  %v10067_v6 = vld [vmem:[#allocation17_spill] sm:$0xff] }
 0x2eb   : > { %vm10060_vm8 = vnez %v10011_v56  ;;  %v5132_v19 = vmul.f32 %v5096_v3, %v5096_v3  ;;  %v5064_v1 = vsub.f32 %v9152_v42, %v9289_v60  ;;  %vm10061_vm15 = vnez %v10005_v50  ;;  %v10063_v56 = vld [vmem:[#allocation33_spill] sm:$0xff]  ;;  %v10066_v50 = vld [vmem:[#allocation38_spill] sm:$0xff] }
 0x2ec   : > { %v5162_v10 = vadd.f32 %v5161_v63, %v5127_v33  ;;  %v5097_v30 = vsel %vm10060_vm8, %v5061_v5, 0.0  ;;  %v5098_v62 = vsel %vm10061_vm15, %v5062_v47, 0.0  ;;  %v5065_v32 = vsub.f32 %v9156_v11, %v9289_v60 }
 0x2ed   : > { %v5133_v24 = vmul.f32 %v5097_v30, %v5097_v30  ;;  %vm10062_vm1 = vnez %v10007_v48  ;;  %v5134_v21 = vmul.f32 %v5098_v62, %v5098_v62  ;;  %v5066_v63 = vsub.f32 %v10063_v56, %v9289_v60  ;;  %v10069_v48 = vld [vmem:[#allocation18_spill] sm:$0xff] }
 0x2ee   : > { %v5163_v0 = vadd.f32 %v5162_v10, %v5128_v46  ;;  %v5099_v17 = vsel %vm10062_vm1, %v5063_v20, 0.0  ;;  %vm10065_vm11 = vnez %v10064_v9  ;;  %v5067_v10 = vsub.f32 %v10066_v50, %v9289_v60 }
 0x2ef   : > { %v5100_v36 = vsel %vm10065_vm11, %v5064_v1, 0.0  ;;  %v5135_v42 = vmul.f32 %v5099_v17, %v5099_v17  ;;  %vm10068_vm6 = vnez %v10067_v6  ;;  %vm10070_vm9 = vnez %v10069_v48 }
 0x2f0   : > { %v5164_v37 = vadd.f32 %v5163_v0, %v5129_v51  ;;  %v5101_v31 = vsel %vm10068_vm6, %v5065_v32, 0.0  ;;  %v5136_v11 = vmul.f32 %v5100_v36, %v5100_v36  ;;  %v5102_v0 = vsel %vm10070_vm9, %v5066_v63, 0.0 }
 0x2f1   : > { %v5137_v5 = vmul.f32 %v5101_v31, %v5101_v31  ;;  %v5138_v47 = vmul.f32 %v5102_v0, %v5102_v0  ;;  %v10095_v0 = vld [vmem:[#allocation31_spill] sm:$0xff] }
 0x2f2   : > { %v5165_v45 = vadd.f32 %v5164_v37, %v5130_v49  ;;  %v10071_v49 = vld [vmem:[#allocation19_spill] sm:$0xff] }
 0x2f3   : > { %vm10072_vm10 = vnez %v10071_v49  ;;  %v10097_v49 = vsub.f32 %v9222_v15, %v9289_v60 }
 0x2f4   : > { %v5166_v26 = vadd.f32 %v5165_v45, %v5131_v8  ;;  %v5103_v37 = vsel %vm10072_vm10, %v5067_v10, 0.0  ;;  %v5104_v45 = vsel %vm10024_vm4, %v5068_v12, 0.0  ;;  %v10078_v12 = vld [vmem:[#allocation24_spill] sm:$0xff]  ;;  %v10089_v10 = vld [vmem:[#allocation29_spill] sm:$0xff]  ;;  %v10100_v8 = vsub.f32 %v9243_v2, %v9289_v60 }
 0x2f5   : > { %v5139_v20 = vmul.f32 %v5103_v37, %v5103_v37  ;;  %v5140_v1 = vmul.f32 %v5104_v45, %v5104_v45  ;;  %vm10079_vm4 = vnez %v10078_v12  ;;  %vm10090_vm9 = vnez %v10089_v10  ;;  %v10098_v37 = vld [vmem:[#allocation32_spill] sm:$0xff] }
 0x2f6   : > { %v5167_v53 = vadd.f32 %v5166_v26, %v5132_v19  ;;  %v10074_v19 = vld [vmem:[#allocation21_spill] sm:$0xff]  ;;  %v5107_v17 = vsel %vm10079_vm4, %v5071_v7, 0.0  ;;  %v10084_v7 = vld [vmem:[#allocation27_spill] sm:$0xff]  ;;  %v10106_v12 = vsub.f32 %v9245_v34, %v9289_v60 }
 0x2f7   : > { %vm10075_vm7 = vnez %v10074_v19  ;;  %v5143_v25 = vmul.f32 %v5107_v17, %v5107_v17  ;;  %vm10085_vm11 = vnez %v10084_v7  ;;  %v10102_v19 = vsub.f32 %v9250_v16, %v9289_v60  ;;  %v10107_v17 = vld [vmem:[#allocation37_spill] sm:$0xff] }
 0x2f8   : > { %v5168_v33 = vadd.f32 %v5167_v53, %v5133_v24  ;;  %v5105_v26 = vsel %vm10075_vm7, %v5069_v22, 0.0  ;;  %v10076_v24 = vld [vmem:[#allocation23_spill] sm:$0xff]  ;;  %v10080_v22 = vld [vmem:[#allocation25_spill] sm:$0xff]  ;;  %v5110_v36 = vsel %vm10085_vm11, %v5074_v57, 0.0  ;;  %v10091_v57 = vsub.f32 %v9227_v43, %v9289_v60 }
 0x2f9   : > { %vm10077_vm8 = vnez %v10076_v24  ;;  %v5141_v41 = vmul.f32 %v5105_v26, %v5105_v26  ;;  %vm10081_vm15 = vnez %v10080_v22  ;;  %v5146_v40 = vmul.f32 %v5110_v36, %v5110_v36 }
 0x2fa   : > { %v5169_v46 = vadd.f32 %v5168_v33, %v5134_v21  ;;  %v5106_v53 = vsel %vm10077_vm8, %v5070_v39, 0.0  ;;  %v5108_v33 = vsel %vm10081_vm15, %v5072_v54, 0.0  ;;  %v10082_v39 = vld [vmem:[#allocation26_spill] sm:$0xff]  ;;  %v10086_v54 = vld [vmem:[#allocation28_spill] sm:$0xff]  ;;  %vm10096_vm7 = vnez %v10095_v0 }
 0x2fb   : > { %v5142_v13 = vmul.f32 %v5106_v53, %v5106_v53  ;;  %vm10083_vm1 = vnez %v10082_v39  ;;  %v5144_v23 = vmul.f32 %v5108_v33, %v5108_v33  ;;  %vm10087_vm6 = vnez %v10086_v54 }
 0x2fc   : > { %v5170_v51 = vadd.f32 %v5169_v46, %v5135_v42  ;;  %v5109_v63 = vsel %vm10083_vm1, %v5073_v18, 0.0  ;;  %v5111_v46 = vsel %vm10087_vm6, %v5075_v38, 0.0  ;;  %v10088_v18 = vsub.f32 %v9220_v59, %v9289_v60 }
 0x2fd   : > { %v5145_v58 = vmul.f32 %v5109_v63, %v5109_v63  ;;  %v5147_v61 = vmul.f32 %v5111_v46, %v5111_v46  ;;  %v10094_v38 = vsub.f32 %v9218_v52, %v9289_v60  ;;  %vm10099_vm8 = vnez %v10098_v37 }
 0x2fe   : > { %v5171_v29 = vadd.f32 %v5170_v51, %v5136_v11  ;;  %v5112_v6 = vsel %vm10090_vm9, %v10088_v18, 0.0  ;;  %v10092_v11 = vld [vmem:[#allocation30_spill] sm:$0xff]  ;;  %v10104_v24 = vsub.f32 %v9241_v28, %v9289_v60  ;;  %v10109_v22 = vsub.f32 %v9265_v44, %v9289_v60 }
 0x2ff   : > { %vm10093_vm10 = vnez %v10092_v11  ;;  %v5148_v4 = vmul.f32 %v5112_v6, %v5112_v6  ;;  %v10111_v39 = vsub.f32 %v9272_v14, %v9289_v60 }
 0x300   : > { %v5172_v3 = vadd.f32 %v5171_v29, %v5137_v5  ;;  %v5113_v51 = vsel %vm10093_vm10, %v10091_v57, 0.0  ;;  %v5114_v5 = vsel %vm10096_vm7, %v10094_v38, 0.0 }
 0x301   : > { %v5149_v59 = vmul.f32 %v5113_v51, %v5113_v51  ;;  %v5150_v43 = vmul.f32 %v5114_v5, %v5114_v5  ;;  %v5121_v63 = vsel %vm10058_vm13, %v10111_v39, 0.0 }
 0x302   : > { %v5173_v30 = vadd.f32 %v5172_v3, %v5138_v47  ;;  %v5115_v47 = vsel %vm10099_vm8, %v10097_v49, 0.0  ;;  %v5157_v36 = vmul.f32 %v5121_v63, %v5121_v63 }
 0x303   : > { %v5151_v52 = vmul.f32 %v5115_v47, %v5115_v47 }
 0x304   : > { %v5174_v62 = vadd.f32 %v5173_v30, %v5139_v20  ;;  %v5116_v20 = vsel %vm10047_vm0, %v10100_v8, 0.0  ;;  %vm10108_vm0 = vnez %v10107_v17 }
 0x305   : > { %v5152_v15 = vmul.f32 %v5116_v20, %v5116_v20 }
 0x306   : > { %v5175_v32 = vadd.f32 %v5174_v62, %v5140_v1  ;;  %v5117_v1 = vsel %vm10053_vm14, %v10102_v19, 0.0 }
 0x307   : > { %v5153_v2 = vmul.f32 %v5117_v1, %v5117_v1 }
 0x308   : > { %v5176_v21 = vadd.f32 %v5175_v32, %v5141_v41  ;;  %v5118_v41 = vsel %vm10049_vm12, %v10104_v24, 0.0 }
 0x309   : > { %v5154_v16 = vmul.f32 %v5118_v41, %v5118_v41 }
 0x30a   : > { %v5177_v56 = vadd.f32 %v5176_v21, %v5142_v13  ;;  %v5119_v13 = vsel %vm10108_vm0, %v10106_v12, 0.0 }
 0x30b   : > { %v5155_v28 = vmul.f32 %v5119_v13, %v5119_v13 }
 0x30c   : > { %v5178_v9 = vadd.f32 %v5177_v56, %v5143_v25  ;;  %v5120_v25 = vsel %vm8239_vm5, %v10109_v22, 0.0 }
 0x30d   : > { %v5156_v34 = vmul.f32 %v5120_v25, %v5120_v25 }
 0x30e   : > { %v5179_v42 = vadd.f32 %v5178_v9, %v5144_v23  ;;  %v10112_v9 = vsub.f32 %v9263_v55, %v9289_v60 }
 0x310   : > { %v5180_v50 = vadd.f32 %v5179_v42, %v5145_v58  ;;  %v5122_v44 = vsel %vm8258_vm3, %v10112_v9, 0.0  ;;  %v10114_v42 = vsub.f32 %v9267_v27, %v9289_v60 }
 0x311   : > { %v5158_v46 = vmul.f32 %v5122_v44, %v5122_v44 }
 0x312   : > { %v5181_v31 = vadd.f32 %v5180_v50, %v5146_v40  ;;  %v5123_v14 = vsel %vm8272_vm2, %v10114_v42, 0.0 }
 0x313   : > { %v5159_v40 = vmul.f32 %v5123_v14, %v5123_v14 }
 0x314   : > { %v5182_v48 = vadd.f32 %v5181_v31, %v5147_v61 }
 0x316   : > { %v5183_v29 = vadd.f32 %v5182_v48, %v5148_v4 }
 0x318   : > { %v5184_v3 = vadd.f32 %v5183_v29, %v5149_v59 }
 0x31a   : > { %v5185_v30 = vadd.f32 %v5184_v3, %v5150_v43 }
 0x31c   : > { %v5186_v62 = vadd.f32 %v5185_v30, %v5151_v52 }
 0x31e   : > { %v5187_v32 = vadd.f32 %v5186_v62, %v5152_v15 }
 0x320   : > { %v5188_v21 = vadd.f32 %v5187_v32, %v5153_v2 }
 0x322   : > { %v5189_v56 = vadd.f32 %v5188_v21, %v5154_v16 }
 0x324   : > { %v5190_v23 = vadd.f32 %v5189_v56, %v5155_v28 }
 0x326   : > { %v5191_v58 = vadd.f32 %v5190_v23, %v5156_v34 }
 0x328   : > { %v5192_v35 = vadd.f32 %v5191_v58, %v5157_v36 }
 0x32a   : > { %v5193_v50 = vadd.f32 %v5192_v35, %v5158_v46 }
 0x32c   : > { %v5194_v18 = vadd.f32 %v5193_v50, %v5159_v40 }
 0x32e   : > { %v5195_v10 = vrot.slane %v5194_v18, 4 }
 0x330   : > { %v5196_v6 = vadd.f32 %v5195_v10, %v5194_v18 }
 0x332   : > { %v5197_v61 = vrot.slane %v5196_v6, 2 }
 0x334   : > { %v5198_v55 = vadd.f32 %v5197_v61, %v5196_v6 }
 0x336   : > { %v5199_v31 = vrot.slane %v5198_v55, 1 }
 0x338   : > { %v5200_v57 = vadd.f32 %v5199_v31, %v5198_v55 }
 0x33a   : > { %5382 = vst [vmem:[%s321_s13] sm:$0x1] %v5200_v57 }
 0x33b PF: > { %s17_s23 = sadd.s32 1, %s7119_s23   ;;  %s10116_s21 = smov %s7115_s22 }
 0x33c   : > { %p14_p5 = scmp.ge.s32.totalorder %s17_s23, 4   ;;  %s10117_s22 = smov %s10119_s24 }
 0x33e   :  { %16 = sbr.rel (!%p14_p5) target bundleno = 2 (0x2), region = 93 }

</bundles_post_ra>
